<compile_context>
chip_gen: v7x
topology: tpu7x:2x2x1
jax: 0.10.0
libtpu: 0.0.40
codegen_flags: <defaults>
</compile_context>

<pallas_src>
import jax
import jax.numpy as jnp
from jax.experimental import pallas as pl
from jax.experimental.pallas import tpu as pltpu


def _normal_nn_kernel(x_ref, w1_ref, b1_ref, w2_ref, b2_ref, w3_ref, b3_ref,
                      wh_ref, bh_ref, heads_ref):
    """Fused forward for one batch block. bf16 weights/activations, f32 accumulation."""
    # x arrives already in bf16 (cast once in the wrapper).
    h = jnp.dot(x_ref[...], w1_ref[...],
                preferred_element_type=jnp.float32) + b1_ref[...]
    # ReLU in f32, bf16 downcast fused on the same line so the f32 post-ReLU tensor
    # is never a separate live VMEM buffer.
    h = jnp.maximum(h, 0.0).astype(jnp.bfloat16)
    # dropout1: identity (eval mode)

    h = jnp.dot(h, w2_ref[...],
                preferred_element_type=jnp.float32) + b2_ref[...]
    h = jnp.maximum(h, 0.0).astype(jnp.bfloat16)
    # dropout2: identity (eval mode)

    h = jnp.dot(h, w3_ref[...],
                preferred_element_type=jnp.float32) + b3_ref[...]
    h = jnp.maximum(h, 0.0).astype(jnp.bfloat16)

    # Fused (1024, 2) head matmul: column 0 = fc_out, column 1 = fc_logvar.
    # Single lane-dense (bb, 2) store; the wrapper splits the two columns.
    heads_ref[...] = (jnp.dot(h, wh_ref[...], preferred_element_type=jnp.float32)
                      + bh_ref[...])


def _round_up(n, m):
    return (n + m - 1) // m * m


def _derive_vmem_limit(bb, in_size):
    """Scoped-VMEM budget derived from the tile: single-buffered bf16 weights +
    double-buffered x/out blocks + live activations, with headroom for compiler
    scratch. Capped below v7x's 64 MiB physical VMEM."""
    BF16, F32 = 2, 4
    weights = (in_size * 2048 + 2048 * 1280 + 1280 * 1024 + 1024 * 2) * BF16
    biases = (2048 + 1280 + 1024 + 2) * F32
    x_io = 2 * bb * in_size * BF16 + 2 * bb * 2 * F32        # double-buffered in/out
    acts = bb * 2048 * (F32 + BF16) + bb * (1280 + 1024) * (F32 + BF16)
    total = weights + biases + x_io + acts
    limit = int(total * 1.5) + (8 << 20)                      # headroom
    return min(limit, 56 << 20)


def normal_nn_forward(params, x, *, block_b=512):
    """Forward pass of NormalNN. x: (B, input_size) f32 -> (output (B,1), logvar (B,1))."""
    B, in_size = x.shape
    bb = min(block_b, _round_up(B, 8))
    Bp = _round_up(B, bb)

    # Halve x HBM traffic / VMEM: cast to bf16 once in the wrapper.
    xb = x.astype(jnp.bfloat16)
    if Bp != B:
        xb = jnp.pad(xb, ((0, Bp - B), (0, 0)))

    w1, b1 = params["fc1"]["w"], params["fc1"]["b"]
    w2, b2 = params["fc2"]["w"], params["fc2"]["b"]
    w3, b3 = params["fc3"]["w"], params["fc3"]["b"]
    wh, bh = params["heads"]["w"], params["heads"]["b"]

    # Weights/biases: VMEM-resident for the whole call (constant index map) and
    # single-buffered -- no point double-buffering an operand that never changes.
    def resident(arr):
        return pl.BlockSpec(arr.shape, lambda i: (0, 0),
                            pipeline_mode=pl.Buffered(1))

    heads = pl.pallas_call(
        _normal_nn_kernel,
        out_shape=jax.ShapeDtypeStruct((Bp, 2), jnp.float32),
        grid_spec=pltpu.PrefetchScalarGridSpec(
            num_scalar_prefetch=0,
            grid=(Bp // bb,),
            in_specs=[
                pl.BlockSpec((bb, in_size), lambda i: (i, 0)),  # x (batch-tiled)
                resident(w1), resident(b1),
                resident(w2), resident(b2),
                resident(w3), resident(b3),
                resident(wh), resident(bh),
            ],
            out_specs=pl.BlockSpec((bb, 2), lambda i: (i, 0)),
        ),
        compiler_params=pltpu.CompilerParams(
            dimension_semantics=("parallel",),
            vmem_limit_bytes=_derive_vmem_limit(bb, in_size),
        ),
    )(xb, w1, b1, w2, b2, w3, b3, wh, bh)

    # Free column split in the wrapper (and drop any batch padding).
    return heads[:B, 0:1], heads[:B, 1:2]


def init_params(key, input_size):
    """f32 init matching nn.Linear (uniform +-1/sqrt(fan_in)); w stored (in, out)."""
    dims = [("fc1", input_size, 2048), ("fc2", 2048, 1280), ("fc3", 1280, 1024),
            ("fc_out", 1024, 1), ("fc_logvar", 1024, 1)]
    params = {}
    for name, fan_in, fan_out in dims:
        key, kw, kb = jax.random.split(key, 3)
        bound = 1.0 / jnp.sqrt(jnp.float32(fan_in))
        params[name] = {
            "w": jax.random.uniform(kw, (fan_in, fan_out), jnp.float32, -bound, bound),
            "b": jax.random.uniform(kb, (fan_out,), jnp.float32, -bound, bound),
        }
    return params


def pack_params(raw):
    """Kernel-ready params: bf16 weights, (1, N) f32 biases, fused (1024, 2) heads."""
    def cvt(p):
        return {"w": p["w"].astype(jnp.bfloat16),
                "b": p["b"].reshape(1, -1).astype(jnp.float32)}
    packed = {k: cvt(raw[k]) for k in ("fc1", "fc2", "fc3")}
    wh = jnp.concatenate([raw["fc_out"]["w"], raw["fc_logvar"]["w"]], axis=1)
    bh = jnp.concatenate([raw["fc_out"]["b"], raw["fc_logvar"]["b"]], axis=0)
    packed["heads"] = {"w": wh.astype(jnp.bfloat16),
                       "b": bh.reshape(1, -1).astype(jnp.float32)}
    return packed


def ref_forward_f32(raw, x):
    """Original f32 semantics (PyTorch module, eval mode)."""
    lin = lambda p, a: a @ p["w"] + p["b"]
    h = jnp.maximum(lin(raw["fc1"], x), 0.0)
    h = jnp.maximum(lin(raw["fc2"], h), 0.0)
    h = jnp.maximum(lin(raw["fc3"], h), 0.0)
    return lin(raw["fc_out"], h), lin(raw["fc_logvar"], h)


def ref_forward_bf16(packed, x):
    """Same bf16-weight / f32-accumulate math as the kernel, in plain JAX."""
    def lin(p, a):
        return jnp.dot(a.astype(jnp.bfloat16), p["w"],
                       preferred_element_type=jnp.float32) + p["b"]
    h = jnp.maximum(lin(packed["fc1"], x), 0.0)
    h = jnp.maximum(lin(packed["fc2"], h), 0.0)
    h = jnp.maximum(lin(packed["fc3"], h), 0.0)
    heads = lin(packed["heads"], h)
    return heads[:, 0:1], heads[:, 1:2]


if __name__ == "__main__":
    key = jax.random.PRNGKey(0)
    input_size = 32
    batch = 8

    key, kp, kx = jax.random.split(key, 3)
    raw_params = init_params(kp, input_size)
    params = pack_params(raw_params)
    x = jax.random.normal(kx, (batch, input_size), jnp.float32)

    fwd = jax.jit(normal_nn_forward)
    output, logvar = fwd(params, x)
    jax.block_until_ready((output, logvar))
    assert output.shape == (batch, 1) and logvar.shape == (batch, 1)

    # Tight check against a JAX reference doing the exact same bf16/f32 math.
    ro_b, rlv_b = jax.jit(ref_forward_bf16)(params, x)
    assert jnp.allclose(output, ro_b, atol=2e-3, rtol=2e-3)
    assert jnp.allclose(logvar, rlv_b, atol=2e-3, rtol=2e-3)

    # Loose sanity check against the original f32 semantics (bf16 weight rounding).
    ro_f, rlv_f = jax.jit(ref_forward_f32)(raw_params, x)
    assert jnp.allclose(output, ro_f, atol=2e-2, rtol=2e-2)
    assert jnp.allclose(logvar, rlv_f, atol=2e-2, rtol=2e-2)

    # Ragged-batch path (wrapper pads to the batch block, then slices).
    x5 = x[:5]
    o5, lv5 = jax.jit(normal_nn_forward)(params, x5)
    jax.block_until_ready((o5, lv5))
    assert o5.shape == (5, 1) and lv5.shape == (5, 1)
    assert jnp.allclose(o5, output[:5], atol=2e-3, rtol=2e-3)
    assert jnp.allclose(lv5, logvar[:5], atol=2e-3, rtol=2e-3)

    print("KERNEL_OK")
</pallas_src>

<mosaic_0001>
module attributes {stable_mosaic.version = 11 : i64} {
  func.func @_normal_nn_kernel(%arg0: i32, %arg1: memref<8x32xbf16, #tpu.memory_space<vmem>>, %arg2: memref<32x2048xbf16, #tpu.memory_space<vmem>>, %arg3: memref<1x2048xf32, #tpu.memory_space<vmem>>, %arg4: memref<2048x1280xbf16, #tpu.memory_space<vmem>>, %arg5: memref<1x1280xf32, #tpu.memory_space<vmem>>, %arg6: memref<1280x1024xbf16, #tpu.memory_space<vmem>>, %arg7: memref<1x1024xf32, #tpu.memory_space<vmem>>, %arg8: memref<1024x2xbf16, #tpu.memory_space<vmem>>, %arg9: memref<1x2xf32, #tpu.memory_space<vmem>>, %arg10: memref<8x2xf32, #tpu.memory_space<vmem>>) attributes {dimension_semantics = [#tpu.dimension_semantics<parallel>], iteration_bounds = array<i64: 1>, scalar_prefetch = 0 : i64, scratch_operands = 0 : i64, tpu.core_type = #tpu.core_type<tc>, window_params = [{transform_indices = @transform_0, window_bounds = array<i64: 8, 32>}, {pipeline_mode = #tpu.pipeline_mode<synchronous>, transform_indices = @transform_1, window_bounds = array<i64: 32, 2048>}, {pipeline_mode = #tpu.pipeline_mode<synchronous>, transform_indices = @transform_2, window_bounds = array<i64: 1, 2048>}, {pipeline_mode = #tpu.pipeline_mode<synchronous>, transform_indices = @transform_3, window_bounds = array<i64: 2048, 1280>}, {pipeline_mode = #tpu.pipeline_mode<synchronous>, transform_indices = @transform_4, window_bounds = array<i64: 1, 1280>}, {pipeline_mode = #tpu.pipeline_mode<synchronous>, transform_indices = @transform_5, window_bounds = array<i64: 1280, 1024>}, {pipeline_mode = #tpu.pipeline_mode<synchronous>, transform_indices = @transform_6, window_bounds = array<i64: 1, 1024>}, {pipeline_mode = #tpu.pipeline_mode<synchronous>, transform_indices = @transform_7, window_bounds = array<i64: 1024, 2>}, {pipeline_mode = #tpu.pipeline_mode<synchronous>, transform_indices = @transform_8, window_bounds = array<i64: 1, 2>}, {transform_indices = @transform_9, window_bounds = array<i64: 8, 2>}]} {
    %c0 = arith.constant 0 : index
    %c0_0 = arith.constant 0 : index
    %0 = vector.load %arg1[%c0, %c0_0] : memref<8x32xbf16, #tpu.memory_space<vmem>>, vector<8x32xbf16>
    %c0_1 = arith.constant 0 : index
    %c0_2 = arith.constant 0 : index
    %1 = vector.load %arg2[%c0_1, %c0_2] : memref<32x2048xbf16, #tpu.memory_space<vmem>>, vector<32x2048xbf16>
    %cst = arith.constant dense<0.000000e+00> : vector<8x2048xf32>
    %2 = tpu.matmul %0, %1, %cst {dimension_numbers = #tpu.dot_dimension_numbers<[1], [0], [0], [1], [0, 0, 1, 1], [], []>} : vector<8x32xbf16>, vector<32x2048xbf16>, vector<8x2048xf32> -> vector<8x2048xf32>
    %c0_3 = arith.constant 0 : index
    %c0_4 = arith.constant 0 : index
    %3 = vector.load %arg3[%c0_3, %c0_4] : memref<1x2048xf32, #tpu.memory_space<vmem>>, vector<1x2048xf32>
    %4 = vector.broadcast %3 : vector<1x2048xf32> to vector<8x2048xf32>
    %5 = arith.addf %2, %4 : vector<8x2048xf32>
    %cst_5 = arith.constant 0.000000e+00 : f32
    %6 = vector.broadcast %cst_5 : f32 to vector<8x2048xf32>
    %7 = arith.maximumf %5, %6 : vector<8x2048xf32>
    %8 = arith.truncf %7 : vector<8x2048xf32> to vector<8x2048xbf16>
    %c0_6 = arith.constant 0 : index
    %c0_7 = arith.constant 0 : index
    %9 = vector.load %arg4[%c0_6, %c0_7] : memref<2048x1280xbf16, #tpu.memory_space<vmem>>, vector<2048x1280xbf16>
    %cst_8 = arith.constant dense<0.000000e+00> : vector<8x1280xf32>
    %10 = tpu.matmul %8, %9, %cst_8 {dimension_numbers = #tpu.dot_dimension_numbers<[1], [0], [0], [1], [0, 0, 1, 1], [], []>} : vector<8x2048xbf16>, vector<2048x1280xbf16>, vector<8x1280xf32> -> vector<8x1280xf32>
    %c0_9 = arith.constant 0 : index
    %c0_10 = arith.constant 0 : index
    %11 = vector.load %arg5[%c0_9, %c0_10] : memref<1x1280xf32, #tpu.memory_space<vmem>>, vector<1x1280xf32>
    %12 = vector.broadcast %11 : vector<1x1280xf32> to vector<8x1280xf32>
    %13 = arith.addf %10, %12 : vector<8x1280xf32>
    %cst_11 = arith.constant 0.000000e+00 : f32
    %14 = vector.broadcast %cst_11 : f32 to vector<8x1280xf32>
    %15 = arith.maximumf %13, %14 : vector<8x1280xf32>
    %16 = arith.truncf %15 : vector<8x1280xf32> to vector<8x1280xbf16>
    %c0_12 = arith.constant 0 : index
    %c0_13 = arith.constant 0 : index
    %17 = vector.load %arg6[%c0_12, %c0_13] : memref<1280x1024xbf16, #tpu.memory_space<vmem>>, vector<1280x1024xbf16>
    %cst_14 = arith.constant dense<0.000000e+00> : vector<8x1024xf32>
    %18 = tpu.matmul %16, %17, %cst_14 {dimension_numbers = #tpu.dot_dimension_numbers<[1], [0], [0], [1], [0, 0, 1, 1], [], []>} : vector<8x1280xbf16>, vector<1280x1024xbf16>, vector<8x1024xf32> -> vector<8x1024xf32>
    %c0_15 = arith.constant 0 : index
    %c0_16 = arith.constant 0 : index
    %19 = vector.load %arg7[%c0_15, %c0_16] : memref<1x1024xf32, #tpu.memory_space<vmem>>, vector<1x1024xf32>
    %20 = vector.broadcast %19 : vector<1x1024xf32> to vector<8x1024xf32>
    %21 = arith.addf %18, %20 : vector<8x1024xf32>
    %cst_17 = arith.constant 0.000000e+00 : f32
    %22 = vector.broadcast %cst_17 : f32 to vector<8x1024xf32>
    %23 = arith.maximumf %21, %22 : vector<8x1024xf32>
    %24 = arith.truncf %23 : vector<8x1024xf32> to vector<8x1024xbf16>
    %c0_18 = arith.constant 0 : index
    %c0_19 = arith.constant 0 : index
    %25 = vector.load %arg8[%c0_18, %c0_19] : memref<1024x2xbf16, #tpu.memory_space<vmem>>, vector<1024x2xbf16>
    %cst_20 = arith.constant dense<0.000000e+00> : vector<8x2xf32>
    %26 = tpu.matmul %24, %25, %cst_20 {dimension_numbers = #tpu.dot_dimension_numbers<[1], [0], [0], [1], [0, 0, 1, 1], [], []>} : vector<8x1024xbf16>, vector<1024x2xbf16>, vector<8x2xf32> -> vector<8x2xf32>
    %c0_21 = arith.constant 0 : index
    %c0_22 = arith.constant 0 : index
    %27 = vector.load %arg9[%c0_21, %c0_22] : memref<1x2xf32, #tpu.memory_space<vmem>>, vector<1x2xf32>
    %28 = vector.broadcast %27 : vector<1x2xf32> to vector<8x2xf32>
    %29 = arith.addf %26, %28 : vector<8x2xf32>
    %c0_23 = arith.constant 0 : index
    %c0_24 = arith.constant 0 : index
    %30 = vector.load %arg10[%c0_23, %c0_24] : memref<8x2xf32, #tpu.memory_space<vmem>>, vector<8x2xf32>
    tpu.vector_store %arg10[%c0_23, %c0_24], %29 {strides = array<i32>} : memref<8x2xf32, #tpu.memory_space<vmem>>, vector<8x2xf32>,
    return
  }
  func.func @transform_0(%arg0: i32) -> (i32, i32) {
    %c0_i32 = arith.constant 0 : i32
    %c0_i32_0 = arith.constant 0 : i32
    return %arg0, %c0_i32 : i32, i32
  }
  func.func @transform_1(%arg0: i32) -> (i32, i32) {
    %c0_i32 = arith.constant 0 : i32
    %c0_i32_0 = arith.constant 0 : i32
    %c0_i32_1 = arith.constant 0 : i32
    return %c0_i32, %c0_i32_0 : i32, i32
  }
  func.func @transform_2(%arg0: i32) -> (i32, i32) {
    %c0_i32 = arith.constant 0 : i32
    %c0_i32_0 = arith.constant 0 : i32
    %c0_i32_1 = arith.constant 0 : i32
    return %c0_i32, %c0_i32_0 : i32, i32
  }
  func.func @transform_3(%arg0: i32) -> (i32, i32) {
    %c0_i32 = arith.constant 0 : i32
    %c0_i32_0 = arith.constant 0 : i32
    %c0_i32_1 = arith.constant 0 : i32
    return %c0_i32, %c0_i32_0 : i32, i32
  }
  func.func @transform_4(%arg0: i32) -> (i32, i32) {
    %c0_i32 = arith.constant 0 : i32
    %c0_i32_0 = arith.constant 0 : i32
    %c0_i32_1 = arith.constant 0 : i32
    return %c0_i32, %c0_i32_0 : i32, i32
  }
  func.func @transform_5(%arg0: i32) -> (i32, i32) {
    %c0_i32 = arith.constant 0 : i32
    %c0_i32_0 = arith.constant 0 : i32
    %c0_i32_1 = arith.constant 0 : i32
    return %c0_i32, %c0_i32_0 : i32, i32
  }
  func.func @transform_6(%arg0: i32) -> (i32, i32) {
    %c0_i32 = arith.constant 0 : i32
    %c0_i32_0 = arith.constant 0 : i32
    %c0_i32_1 = arith.constant 0 : i32
    return %c0_i32, %c0_i32_0 : i32, i32
  }
  func.func @transform_7(%arg0: i32) -> (i32, i32) {
    %c0_i32 = arith.constant 0 : i32
    %c0_i32_0 = arith.constant 0 : i32
    %c0_i32_1 = arith.constant 0 : i32
    return %c0_i32, %c0_i32_0 : i32, i32
  }
  func.func @transform_8(%arg0: i32) -> (i32, i32) {
    %c0_i32 = arith.constant 0 : i32
    %c0_i32_0 = arith.constant 0 : i32
    %c0_i32_1 = arith.constant 0 : i32
    return %c0_i32, %c0_i32_0 : i32, i32
  }
  func.func @transform_9(%arg0: i32) -> (i32, i32) {
    %c0_i32 = arith.constant 0 : i32
    %c0_i32_0 = arith.constant 0 : i32
    return %arg0, %c0_i32 : i32, i32
  }
}

</mosaic_0001>

<bundles_post_ra>
// kernel: normal_nn_forward.1
= control target key start
LH: loop header
LB: loop body
LE: loop exit
PB: predicated region body
PF: predicated region fallthrough
CT: control target
= control target key end

     0   :  { %14 = vsyncpa [#allocation3], 0  ;;  %s20798_s0 = inlined_call_operand.vmem [shape: bf16[8,32], index: 0, kind: input, shape index: {}]   ;;  %s20799_s1 = inlined_call_operand.hbm [shape: bf16[32,2048], index: 1, kind: input, shape index: {}]   ;;  %s20800_s2 = inlined_call_operand.hbm [shape: f32[1,2048], index: 2, kind: input, shape index: {}]   ;;  %s20801_s3 = inlined_call_operand.hbm [shape: bf16[2048,1280], index: 3, kind: input, shape index: {}]   ;;  %s20802_s4 = inlined_call_operand.hbm [shape: f32[1,1280], index: 4, kind: input, shape index: {}]   ;;  %s20803_s5 = inlined_call_operand.hbm [shape: bf16[1280,1024], index: 5, kind: input, shape index: {}]   ;;  %s20804_s6 = inlined_call_operand.hbm [shape: f32[1,1024], index: 6, kind: input, shape index: {}]   ;;  %s20805_s7 = inlined_call_operand.vmem [shape: bf16[1024,2], index: 7, kind: input, shape index: {}]   ;;  %s20806_s8 = inlined_call_operand.hbm [shape: f32[1,2], index: 8, kind: input, shape index: {}]   ;;  %s20807_s9 = inlined_call_operand.vmem [shape: f32[8,2], index: 9, kind: output, shape index: {}]  }
   0x1   :  { %15 = vsyncpa [#allocation5], 0 }
   0x2   :  { %16 = vsyncpa [#allocation8], 0 }
   0x3   :  { %17 = vsyncpa [#allocation11], 0  ;;  %s20062_s30 = smov [#allocation4]   ;;  %s20063_s11 = smov [#allocation7]  }
   0x4   :  { %s38_s10 = sshll.u32 %s20062_s30, 4  ;;  %s60_s12 = sshll.u32 %s20063_s11, 4  ;;  %s39_s10 = int_to_ptr.vmem [resolvable:$true] %s38_s10  ;;  %s61_s12 = int_to_ptr.vmem [resolvable:$true] %s60_s12 }
   0x5   :  { %s19900_s15 = scalar_lea.hbm %s20800_s2, 256 }
   0x6   :  { %p19901_p0 = scmp.ne.s32.totalorder %s20800_s2, %s19900_s15  ;;  %p19904_p1 = scmp.lt.u32.totalorder %s19900_s15, %s20800_s2 }
   0x8   :  { %p19906_p2 = pnand %p19904_p1, %p19901_p0 }
   0xa   :  { %19909 = shalt.err (!%p19906_p2)
}
   0xb   :  { %s19910_s20 = scalar_lea.vmem %s39_s10, 256  ;;  %p19915_p4 = scmp.lt.s32.totalorder %s39_s10, %s39_s10 }
   0xc   :  { %p19911_p3 = scmp.ne.s32.totalorder %s39_s10, %s19910_s20  ;;  %p19916_p5 = scmp.lt.s32.totalorder %s19910_s20, %s19910_s20 }
   0xe   :  { %p19917_p6 = por %p19916_p5, %p19915_p4 }
  0x10   :  { %p19918_p7 = pnand %p19917_p6, %p19911_p3 }
  0x12   :  { %19921 = shalt.err (!%p19918_p7)
}
  0x13   :  { %41 = dma.hbm_to_vmem [thread:$0]  %s20800_s2, 256, %s39_s10, [#allocation5]  }
  0x14   :  { %s19922_s25 = scalar_lea.hbm %s20802_s4, 160 }
  0x15   :  { %p19923_p8 = scmp.ne.s32.totalorder %s20802_s4, %s19922_s25  ;;  %p19926_p9 = scmp.lt.u32.totalorder %s19922_s25, %s20802_s4 }
  0x17   :  { %p19928_p10 = pnand %p19926_p9, %p19923_p8 }
  0x19   :  { %19931 = shalt.err (!%p19928_p10)
}
  0x1a   :  { %s19932_s30 = scalar_lea.vmem %s61_s12, 160  ;;  %p19937_p12 = scmp.lt.s32.totalorder %s61_s12, %s61_s12 }
  0x1b   :  { %p19933_p11 = scmp.ne.s32.totalorder %s61_s12, %s19932_s30  ;;  %p19938_p13 = scmp.lt.s32.totalorder %s19932_s30, %s19932_s30 }
  0x1d   :  { %p19939_p0 = por %p19938_p13, %p19937_p12 }
  0x1f   :  { %p19940_p1 = pnand %p19939_p0, %p19933_p11 }
  0x21   :  { %19943 = shalt.err (!%p19940_p1)
}
  0x22   :  { %63 = dma.hbm_to_vmem [thread:$0]  %s20802_s4, 160, %s61_s12, [#allocation8]  }
  0x23   :  { %s20064_s11 = smov [#allocation10]   ;;  %s20065_s14 = smov [#allocation2]  }
  0x24   :  { %s82_s13 = sshll.u32 %s20064_s11, 4  ;;  %s25_s15 = sshll.u32 %s20065_s14, 4  ;;  %s83_s13 = int_to_ptr.vmem [resolvable:$true] %s82_s13  ;;  %s20150_s15 = int_to_ptr.vmem [resolvable:$true] %s25_s15 }
  0x25   :  { %s19944_s18 = scalar_lea.hbm %s20804_s6, 128 }
  0x26   :  { %p19945_p2 = scmp.ne.s32.totalorder %s20804_s6, %s19944_s18  ;;  %p19948_p3 = scmp.lt.u32.totalorder %s19944_s18, %s20804_s6 }
  0x28   :  { %p19950_p4 = pnand %p19948_p3, %p19945_p2 }
  0x2a   :  { %19953 = shalt.err (!%p19950_p4)
}
  0x2b   :  { %s19954_s4 = scalar_lea.vmem %s83_s13, 128  ;;  %p19959_p6 = scmp.lt.s32.totalorder %s83_s13, %s83_s13 }
  0x2c   :  { %p19955_p5 = scmp.ne.s32.totalorder %s83_s13, %s19954_s4  ;;  %p19960_p7 = scmp.lt.s32.totalorder %s19954_s4, %s19954_s4 }
  0x2e   :  { %p19961_p8 = por %p19960_p7, %p19959_p6 }
  0x30   :  { %p19962_p9 = pnand %p19961_p8, %p19955_p5 }
  0x32   :  { %19965 = shalt.err (!%p19962_p9)
}
  0x33   :  { %85 = dma.hbm_to_vmem [thread:$0]  %s20804_s6, 128, %s83_s13, [#allocation11]  }
  0x34   :  { %s19966_s26 = scalar_lea.hbm %s20799_s1, 4096 }
  0x35   :  { %p19967_p10 = scmp.ne.s32.totalorder %s20799_s1, %s19966_s26  ;;  %p19970_p11 = scmp.lt.u32.totalorder %s19966_s26, %s20799_s1 }
  0x37   :  { %p19972_p12 = pnand %p19970_p11, %p19967_p10 }
  0x39   :  { %19975 = shalt.err (!%p19972_p12)
}
  0x3a   :  { %s19976_s2 = scalar_lea.vmem %s20150_s15, 4096  ;;  %p19981_p0 = scmp.lt.s32.totalorder %s20150_s15, %s20150_s15 }
  0x3b   :  { %p19977_p13 = scmp.ne.s32.totalorder %s20150_s15, %s19976_s2  ;;  %p19982_p1 = scmp.lt.s32.totalorder %s19976_s2, %s19976_s2 }
  0x3d   :  { %p19983_p2 = por %p19982_p1, %p19981_p0 }
  0x3f   :  { %p19984_p3 = pnand %p19983_p2, %p19977_p13 }
  0x41   :  { %19987 = shalt.err (!%p19984_p3)
}
  0x42   :  { %s20066_s6 = smov 1024   ;;  %s20067_s10 = smov 64  }
  0x43   :  { %31 = dma.hbm_to_vmem [thread:$0]  %s20799_s1, 4096, %s20150_s15, [#allocation3], %s20066_s6, %s20066_s6, %s20067_s10  }
  0x44   :  { %s20068_s14 = smov [#allocation6]   ;;  %s19988_s19 = scalar_lea.hbm %s20801_s3, 163840 }
  0x45   :  { %s47_s16 = sshll.u32 %s20068_s14, 4  ;;  %p19989_p4 = scmp.ne.s32.totalorder %s20801_s3, %s19988_s19  ;;  %s48_s16 = int_to_ptr.vmem [resolvable:$true] %s47_s16 }
  0x46   :  { %p19992_p5 = scmp.lt.u32.totalorder %s19988_s19, %s20801_s3 }
  0x48   :  { %p19994_p6 = pnand %p19992_p5, %p19989_p4 }
  0x4a   :  { %19997 = shalt.err (!%p19994_p6)
}
  0x4b   :  { %s19998_s12 = scalar_lea.vmem %s48_s16, 163840  ;;  %p20003_p8 = scmp.lt.s32.totalorder %s48_s16, %s48_s16 }
  0x4c   :  { %p19999_p7 = scmp.ne.s32.totalorder %s48_s16, %s19998_s12  ;;  %p20004_p9 = scmp.lt.s32.totalorder %s19998_s12, %s19998_s12 }
  0x4e   :  { %p20005_p10 = por %p20004_p9, %p20003_p8 }
  0x50   :  { %p20006_p11 = pnand %p20005_p10, %p19999_p7 }
  0x52   :  { %20009 = shalt.err (!%p20006_p11)
}
  0x53   :  { %s20069_s1 = smov 640   ;;  %s20070_s15 = smov 40  }
  0x54   :  { %53 = dma.hbm_to_vmem [thread:$0]  %s20801_s3, 163840, %s48_s16, [#allocation5], %s20069_s1, %s20069_s1, %s20070_s15  }
  0x55   :  { %s20071_s25 = smov [#allocation9]   ;;  %s20010_s29 = scalar_lea.hbm %s20803_s5, 81920 }
  0x56   :  { %s69_s26 = sshll.u32 %s20071_s25, 4  ;;  %p20011_p12 = scmp.ne.s32.totalorder %s20803_s5, %s20010_s29  ;;  %s70_s26 = int_to_ptr.vmem [resolvable:$true] %s69_s26 }
  0x57   :  { %p20014_p13 = scmp.lt.u32.totalorder %s20010_s29, %s20803_s5 }
  0x59   :  { %p20016_p0 = pnand %p20014_p13, %p20011_p12 }
  0x5b   :  { %20019 = shalt.err (!%p20016_p0)
}
  0x5c   :  { %s20020_s11 = scalar_lea.vmem %s70_s26, 81920  ;;  %p20025_p2 = scmp.lt.s32.totalorder %s70_s26, %s70_s26 }
  0x5d   :  { %p20021_p1 = scmp.ne.s32.totalorder %s70_s26, %s20020_s11  ;;  %p20026_p3 = scmp.lt.s32.totalorder %s20020_s11, %s20020_s11 }
  0x5f   :  { %p20027_p4 = por %p20026_p3, %p20025_p2 }
  0x61   :  { %p20028_p5 = pnand %p20027_p4, %p20021_p1 }
  0x63   :  { %20031 = shalt.err (!%p20028_p5)
}
  0x64   :  { %s20072_s3 = smov 512   ;;  %s20073_s13 = smov 32  }
  0x65   :  { %75 = dma.hbm_to_vmem [thread:$0]  %s20803_s5, 81920, %s70_s26, [#allocation8], %s20072_s3, %s20072_s3, %s20073_s13  }
  0x66   :  { %s20074_s17 = smov [#allocation12]   ;;  %s20032_s21 = scalar_lea.hbm %s20806_s8, 16 }
  0x67   :  { %s94_s18 = sshll.u32 %s20074_s17, 4  ;;  %p20033_p6 = scmp.ne.s32.totalorder %s20806_s8, %s20032_s21  ;;  %s95_s18 = int_to_ptr.vmem [resolvable:$true] %s94_s18 }
  0x68   :  { %p20036_p7 = scmp.lt.u32.totalorder %s20032_s21, %s20806_s8 }
  0x6a   :  { %p20038_p8 = pnand %p20036_p7, %p20033_p6 }
  0x6c   :  { %20041 = shalt.err (!%p20038_p8)
}
  0x6d   :  { %s20042_s15 = scalar_lea.vmem %s95_s18, 16  ;;  %s20046_s5 = scalar_lea.vmem %s95_s18, 32 }
  0x6e   :  { %p20043_p9 = scmp.ne.s32.totalorder %s95_s18, %s20042_s15  ;;  %p20047_p10 = scmp.lt.s32.totalorder %s95_s18, %s95_s18 }
  0x6f   :  { %p20048_p11 = scmp.lt.s32.totalorder %s20046_s5, %s20042_s15 }
  0x71   :  { %p20049_p12 = por %p20048_p11, %p20047_p10 }
  0x73   :  { %p20050_p13 = pnand %p20049_p12, %p20043_p9 }
  0x75   :  { %20053 = shalt.err (!%p20050_p13)
}
  0x76   :  { %97 = dma.hbm_to_vmem [thread:$0]  %s20806_s8, 16, %s95_s18, [#allocation11]  }
  0x77   :  { %20054 = dma.done.wait [#allocation3], 4096  }
  0x78   :  { %20055 = vsyncadd [#allocation3], 4294963200 }
  0x79   :  { %20056 = dma.done.wait [#allocation5], 164096  }
  0x7a   :  { %20057 = vsyncadd [#allocation5], 4294803200 }
  0x7b   :  { %20058 = dma.done.wait [#allocation8], 82080  }
  0x7c   :  { %20059 = vsyncadd [#allocation8], 4294885216 }
  0x7d   :  { %20060 = dma.done.wait [#allocation11], 144  }
  0x7e   :  { %20061 = vsyncadd [#allocation11], 4294967152  ;;  %v20075_v0 = vmov 0   ;;  %v121_v1 = vld [vmem:[#allocation2] sm:$0xff]  ;;  %v122_v7 = vld [vmem:[#allocation2 + $0x8] sm:$0xff]  ;;  %vm397_vm0 = vcmask 261120  }
  0x7f   :  { %433 = vmatprep.mubr.bf16.mxu0 %v20075_v0  ;;  %474 = vmatprep.mubr.bf16.mxu1 %v20075_v0  ;;  %v129_v2 = vld [vmem:[#allocation2 + $0x40] sm:$0xff]  ;;  %v130_v9 = vld [vmem:[#allocation2 + $0x48] sm:$0xff]  ;;  %v123_v15 = vld [vmem:[#allocation2 + $0x10] sm:$0xff]  ;;  %vm15552_vm1 = vcmask 15360  }
  0x80   :  { %v137_v3 = vld [vmem:[#allocation2 + $0x80] sm:$0xff]  ;;  %v15563_v4 = vcombine.high %v121_v1, %v129_v2  ;;  %v15562_v5 = vcombine.low %v121_v1, %v129_v2  ;;  %v138_v10 = vld [vmem:[#allocation2 + $0x88] sm:$0xff]  ;;  %v15565_v12 = vcombine.high %v122_v7, %v130_v9  ;;  %v15564_v13 = vcombine.low %v122_v7, %v130_v9  ;;  %v131_v16 = vld [vmem:[#allocation2 + $0x50] sm:$0xff] }
  0x81   :  { %v145_v6 = vld [vmem:[#allocation2 + $0xc0] sm:$0xff]  ;;  %v146_v11 = vld [vmem:[#allocation2 + $0xc8] sm:$0xff]  ;;  %v124_v18 = vld [vmem:[#allocation2 + $0x18] sm:$0xff]  ;;  %v15567_v20 = vcombine.high %v123_v15, %v131_v16  ;;  %v15566_v26 = vcombine.low %v123_v15, %v131_v16 }
  0x82   :  { %v15579_v8 = vcombine.high %v137_v3, %v145_v6  ;;  %401 = vmatprep.subr.bf16.mxu0 %v15563_v4  ;;  %v15581_v14 = vcombine.high %v138_v10, %v146_v11  ;;  %v15578_v17 = vcombine.low %v137_v3, %v145_v6  ;;  %v132_v19 = vld [vmem:[#allocation2 + $0x58] sm:$0xff]  ;;  %442 = vmatprep.subr.bf16.mxu1 %v15565_v12  ;;  %v139_v22 = vld [vmem:[#allocation2 + $0x90] sm:$0xff]  ;;  %v20222_v25 = vld [vmem:[%s20798_s0] sm:$0xf] }
  0x83   :  { %402 = vmatpush1.bf16.msra.mxu0 %v15562_v5  ;;  %443 = vmatpush1.bf16.msra.mxu1 %v15564_v13  ;;  %v15580_v21 = vcombine.low %v138_v10, %v146_v11  ;;  %v147_v23 = vld [vmem:[#allocation2 + $0xd0] sm:$0xff]  ;;  %v15569_v24 = vcombine.high %v124_v18, %v132_v19  ;;  %v140_v27 = vld [vmem:[#allocation2 + $0x98] sm:$0xff]  ;;  %v15568_v30 = vcombine.low %v124_v18, %v132_v19  ;;  %v125_v31 = vld [vmem:[#allocation2 + $0x20] sm:$0xff] }
  0x84   :  { %403 = vmatprep.subr.bf16.mxu0 %v15579_v8  ;;  %444 = vmatprep.subr.bf16.mxu1 %v15581_v14  ;;  %v148_v28 = vld [vmem:[#allocation2 + $0xd8] sm:$0xff]  ;;  %v15583_v29 = vcombine.high %v139_v22, %v147_v23  ;;  %v133_v32 = vld [vmem:[#allocation2 + $0x60] sm:$0xff]  ;;  %v126_v34 = vld [vmem:[#allocation2 + $0x28] sm:$0xff]  ;;  %v15582_v35 = vcombine.low %v139_v22, %v147_v23 }
  0x85   :  { %v15585_v33 = vcombine.high %v140_v27, %v148_v28  ;;  %v134_v36 = vld [vmem:[#allocation2 + $0x68] sm:$0xff]  ;;  %v15571_v37 = vcombine.high %v125_v31, %v133_v32  ;;  %v15584_v38 = vcombine.low %v140_v27, %v148_v28  ;;  %v141_v39 = vld [vmem:[#allocation2 + $0xa0] sm:$0xff]  ;;  %v15570_v43 = vcombine.low %v125_v31, %v133_v32  ;;  %v127_v47 = vld [vmem:[#allocation2 + $0x30] sm:$0xff] }
  0x86   :  { %v149_v40 = vld [vmem:[#allocation2 + $0xe0] sm:$0xff]  ;;  %v15573_v41 = vcombine.high %v126_v34, %v134_v36  ;;  %v142_v42 = vld [vmem:[#allocation2 + $0xa8] sm:$0xff]  ;;  %v15572_v46 = vcombine.low %v126_v34, %v134_v36  ;;  %v135_v48 = vld [vmem:[#allocation2 + $0x70] sm:$0xff] }
  0x87   :  { %404 = vmatpush1.bf16.msra.mxu0 %v15578_v17  ;;  %445 = vmatpush1.bf16.msra.mxu1 %v15580_v21  ;;  %v150_v44 = vld [vmem:[#allocation2 + $0xe8] sm:$0xff]  ;;  %v15587_v45 = vcombine.high %v141_v39, %v149_v40  ;;  %v128_v50 = vld [vmem:[#allocation2 + $0x38] sm:$0xff]  ;;  %v15586_v51 = vcombine.low %v141_v39, %v149_v40  ;;  %v15575_v53 = vcombine.high %v127_v47, %v135_v48  ;;  %v143_v55 = vld [vmem:[#allocation2 + $0xb0] sm:$0xff] }
  0x88   :  { %483 = vmatprep.subr.bf16.mxu0 %v15567_v20  ;;  %524 = vmatprep.subr.bf16.mxu1 %v15569_v24  ;;  %v15589_v49 = vcombine.high %v142_v42, %v150_v44  ;;  %v136_v52 = vld [vmem:[#allocation2 + $0x78] sm:$0xff]  ;;  %v15588_v54 = vcombine.low %v142_v42, %v150_v44  ;;  %v151_v56 = vld [vmem:[#allocation2 + $0xf0] sm:$0xff]  ;;  %v15574_v59 = vcombine.low %v127_v47, %v135_v48  ;;  %v17919_v6 = vld [vmem:[#allocation6 + $0x54] ss:$40 sps:$4 sm:$0xff]  }
  0x89   :  { %v15577_v57 = vcombine.high %v128_v50, %v136_v52  ;;  %v144_v58 = vld [vmem:[#allocation2 + $0xb8] sm:$0xff]  ;;  %v15591_v61 = vcombine.high %v143_v55, %v151_v56  ;;  %v15576_v62 = vcombine.low %v128_v50, %v136_v52  ;;  %v15590_v1 = vcombine.low %v143_v55, %v151_v56  ;;  %v17922_v8 = vld [vmem:[#allocation6 + $0x5c] ss:$40 sps:$4 sm:$0xff]   ;;  %v17917_v9 = vld [vmem:[#allocation6 + $0x50] ss:$40 sps:$4 sm:$0xff]  }
  0x8a   :  { %15594 = vmatmul.mubr.msk.bf16.vlgmr.msra.gmra.mrb[0].mxu0 %vm397_vm0, %v20222_v25  ;;  %15595 = vmatmul.mubr.msk.bf16.vlgmr.msra.gmra.mrb[0].mxu1 %vm397_vm0, %v20222_v25  ;;  %v152_v60 = vld [vmem:[#allocation2 + $0xf8] sm:$0xff]  ;;  %v17920_v10 = vld [vmem:[#allocation6 + $0x58] ss:$40 sps:$4 sm:$0xff]   ;;  %v17931_v13 = vld [vmem:[#allocation6 + $0xf4] ss:$40 sps:$4 sm:$0xff]  }
  0x8b   :  { %484 = vmatpush1.bf16.msra.mxu0 %v15566_v26  ;;  %515 = vmatprep.mubr.bf16.mxu0 %v20075_v0  ;;  %v15593_v63 = vcombine.high %v144_v58, %v152_v60  ;;  %v17913_v2 = vld [vmem:[#allocation6 + $0x4] ss:$40 sps:$4 sm:$0xff]   ;;  %v15592_v3 = vcombine.low %v144_v58, %v152_v60  ;;  %v17911_v5 = vld [vmem:[#allocation6] ss:$40 sps:$4 sm:$0xff]   ;;  %v17929_v16 = vld [vmem:[#allocation6 + $0xf0] ss:$40 sps:$4 sm:$0xff]  }
  0x8c   :  { %485 = vmatprep.subr.bf16.mxu0 %v15583_v29  ;;  %525 = vmatpush1.bf16.msra.mxu1 %v15568_v30  ;;  %v17916_v4 = vld [vmem:[#allocation6 + $0xc] ss:$40 sps:$4 sm:$0xff]   ;;  %v17914_v7 = vld [vmem:[#allocation6 + $0x8] ss:$40 sps:$4 sm:$0xff]   ;;  %v17934_v15 = vld [vmem:[#allocation6 + $0xfc] ss:$40 sps:$4 sm:$0xff]  }
  0x8d   :  { %556 = vmatprep.mubr.bf16.mxu1 %v20075_v0  ;;  %526 = vmatprep.subr.bf16.mxu1 %v15585_v33  ;;  %v17928_v11 = vld [vmem:[#allocation6 + $0xac] ss:$40 sps:$4 sm:$0xff]   ;;  %v17923_v12 = vld [vmem:[#allocation6 + $0xa0] ss:$40 sps:$4 sm:$0xff]   ;;  %v17946_v23 = vld [vmem:[#allocation6 + $0x19c] ss:$40 sps:$4 sm:$0xff]  }
  0x8e   :  { %v17926_v14 = vld [vmem:[#allocation6 + $0xa8] ss:$40 sps:$4 sm:$0xff]   ;;  %v17937_v17 = vld [vmem:[#allocation6 + $0x144] ss:$40 sps:$4 sm:$0xff]   ;;  %v17932_v18 = vld [vmem:[#allocation6 + $0xf8] ss:$40 sps:$4 sm:$0xff]  }
  0x8f   :  { %486 = vmatpush1.bf16.msra.mxu0 %v15582_v35  ;;  %v17935_v19 = vld [vmem:[#allocation6 + $0x140] ss:$40 sps:$4 sm:$0xff]   ;;  %v17940_v20 = vld [vmem:[#allocation6 + $0x14c] ss:$40 sps:$4 sm:$0xff]   ;;  %v17941_v24 = vld [vmem:[#allocation6 + $0x190] ss:$40 sps:$4 sm:$0xff]  }
  0x90   :  { %565 = vmatprep.subr.bf16.mxu0 %v15571_v37  ;;  %527 = vmatpush1.bf16.msra.mxu1 %v15584_v38  ;;  %v17938_v21 = vld [vmem:[#allocation6 + $0x148] ss:$40 sps:$4 sm:$0xff]   ;;  %v17943_v22 = vld [vmem:[#allocation6 + $0x194] ss:$40 sps:$4 sm:$0xff]   ;;  %v17944_v26 = vld [vmem:[#allocation6 + $0x198] ss:$40 sps:$4 sm:$0xff]  }
  0x91   :  { %606 = vmatprep.subr.bf16.mxu1 %v15573_v41  ;;  %v17952_v27 = vld [vmem:[#allocation6 + $0x1ec] ss:$40 sps:$4 sm:$0xff]   ;;  %v17947_v28 = vld [vmem:[#allocation6 + $0x1e0] ss:$40 sps:$4 sm:$0xff]   ;;  %v17958_v31 = vld [vmem:[#allocation6 + $0x23c] ss:$40 sps:$4 sm:$0xff]  }
  0x92   :  { %15596 = vmatmul.mubr.msk.bf16.vlgmr.msra.gmra.mrb[4].mxu0 %vm397_vm0, %v20222_v25  ;;  %v17955_v29 = vld [vmem:[#allocation6 + $0x234] ss:$40 sps:$4 sm:$0xff]   ;;  %v17950_v30 = vld [vmem:[#allocation6 + $0x1e8] ss:$40 sps:$4 sm:$0xff]   ;;  %v17961_v33 = vld [vmem:[#allocation6 + $0x284] ss:$40 sps:$4 sm:$0xff]  }
  0x93   :  { %566 = vmatpush1.bf16.msra.mxu0 %v15570_v43  ;;  %597 = vmatprep.mubr.bf16.mxu0 %v20075_v0  ;;  %v17953_v32 = vld [vmem:[#allocation6 + $0x230] ss:$40 sps:$4 sm:$0xff]   ;;  %v17964_v35 = vld [vmem:[#allocation6 + $0x28c] ss:$40 sps:$4 sm:$0xff]   ;;  %v17959_v36 = vld [vmem:[#allocation6 + $0x280] ss:$40 sps:$4 sm:$0xff]  }
  0x94   :  { %15597 = vmatmul.mubr.msk.bf16.vlgmr.msra.gmra.mrb[4].mxu1 %vm397_vm0, %v20222_v25  ;;  %567 = vmatprep.subr.bf16.mxu0 %v15587_v45  ;;  %v17956_v34 = vld [vmem:[#allocation6 + $0x238] ss:$40 sps:$4 sm:$0xff]   ;;  %v17967_v37 = vld [vmem:[#allocation6 + $0x2d4] ss:$40 sps:$4 sm:$0xff]   ;;  %v17962_v38 = vld [vmem:[#allocation6 + $0x288] ss:$40 sps:$4 sm:$0xff]  }
  0x95   :  { %607 = vmatpush1.bf16.msra.mxu1 %v15572_v46  ;;  %638 = vmatprep.mubr.bf16.mxu1 %v20075_v0  ;;  %v17970_v39 = vld [vmem:[#allocation6 + $0x2dc] ss:$40 sps:$4 sm:$0xff]   ;;  %v17965_v40 = vld [vmem:[#allocation6 + $0x2d0] ss:$40 sps:$4 sm:$0xff]   ;;  %v17976_v43 = vld [vmem:[#allocation6 + $0x32c] ss:$40 sps:$4 sm:$0xff]  }
  0x96   :  { %608 = vmatprep.subr.bf16.mxu1 %v15589_v49  ;;  %v17973_v41 = vld [vmem:[#allocation6 + $0x324] ss:$40 sps:$4 sm:$0xff]   ;;  %v17968_v42 = vld [vmem:[#allocation6 + $0x2d8] ss:$40 sps:$4 sm:$0xff]   ;;  %v17979_v45 = vld [vmem:[#allocation6 + $0x374] ss:$40 sps:$4 sm:$0xff]  }
  0x97   :  { %568 = vmatpush1.bf16.msra.mxu0 %v15586_v51  ;;  %v17971_v44 = vld [vmem:[#allocation6 + $0x320] ss:$40 sps:$4 sm:$0xff]   ;;  %v17982_v47 = vld [vmem:[#allocation6 + $0x37c] ss:$40 sps:$4 sm:$0xff]   ;;  %v17977_v48 = vld [vmem:[#allocation6 + $0x370] ss:$40 sps:$4 sm:$0xff]  }
  0x98   :  { %647 = vmatprep.subr.bf16.mxu0 %v15575_v53  ;;  %v17974_v46 = vld [vmem:[#allocation6 + $0x328] ss:$40 sps:$4 sm:$0xff]   ;;  %v17985_v49 = vld [vmem:[#allocation6 + $0x3c4] ss:$40 sps:$4 sm:$0xff]   ;;  %v17980_v50 = vld [vmem:[#allocation6 + $0x378] ss:$40 sps:$4 sm:$0xff]  }
  0x99   :  { %609 = vmatpush1.bf16.msra.mxu1 %v15588_v54  ;;  %v17988_v51 = vld [vmem:[#allocation6 + $0x3cc] ss:$40 sps:$4 sm:$0xff]   ;;  %v17983_v52 = vld [vmem:[#allocation6 + $0x3c0] ss:$40 sps:$4 sm:$0xff]   ;;  %v17994_v55 = vld [vmem:[#allocation6 + $0x41c] ss:$40 sps:$4 sm:$0xff]  }
  0x9a   :  { %15598 = vmatmul.mubr.msk.bf16.vlgmr.msra.gmra.mrb[8].mxu0 %vm397_vm0, %v20222_v25  ;;  %688 = vmatprep.subr.bf16.mxu1 %v15577_v57  ;;  %v17991_v53 = vld [vmem:[#allocation6 + $0x414] ss:$40 sps:$4 sm:$0xff]   ;;  %v17986_v54 = vld [vmem:[#allocation6 + $0x3c8] ss:$40 sps:$4 sm:$0xff]   ;;  %v17992_v57 = vld [vmem:[#allocation6 + $0x418] ss:$40 sps:$4 sm:$0xff]  }
  0x9b   :  { %648 = vmatpush1.bf16.msra.mxu0 %v15574_v59  ;;  %679 = vmatprep.mubr.bf16.mxu0 %v20075_v0  ;;  %v17989_v56 = vld [vmem:[#allocation6 + $0x410] ss:$40 sps:$4 sm:$0xff]   ;;  %v17997_v58 = vld [vmem:[#allocation6 + $0x464] ss:$40 sps:$4 sm:$0xff]   ;;  %v17995_v60 = vld [vmem:[#allocation6 + $0x460] ss:$40 sps:$4 sm:$0xff]  }
  0x9c   :  { %15599 = vmatmul.mubr.msk.bf16.vlgmr.msra.gmra.mrb[8].mxu1 %vm397_vm0, %v20222_v25  ;;  %649 = vmatprep.subr.bf16.mxu0 %v15591_v61  ;;  %v18000_v59 = vld [vmem:[#allocation6 + $0x46c] ss:$40 sps:$4 sm:$0xff]   ;;  %v17998_v61 = vld [vmem:[#allocation6 + $0x468] ss:$40 sps:$4 sm:$0xff]  }
  0x9d   :  { %689 = vmatpush1.bf16.msra.mxu1 %v15576_v62  ;;  %720 = vmatprep.mubr.bf16.mxu1 %v20075_v0  ;;  %v17925_v0 = vld [vmem:[#allocation6 + $0xa4] ss:$40 sps:$4 sm:$0xff]   ;;  %v18003_v62 = vld [vmem:[#allocation6 + $0x4b4] ss:$40 sps:$4 sm:$0xff]  }
  0x9e   :  { %690 = vmatprep.subr.bf16.mxu1 %v15593_v63  ;;  %v18006_v63 = vld [vmem:[#allocation6 + $0x4bc] ss:$40 sps:$4 sm:$0xff]  }
  0x9f   :  { %650 = vmatpush1.bf16.msra.mxu0 %v15590_v1  ;;  %v18001_v1 = vld [vmem:[#allocation6 + $0x4b0] ss:$40 sps:$4 sm:$0xff]  }
  0xa0   :  { %8495 = vmatprep.subr.bf16.mxu0 %v17913_v2  ;;  %v18004_v2 = vld [vmem:[#allocation6 + $0x4b8] ss:$40 sps:$4 sm:$0xff]  }
  0xa1   :  { %691 = vmatpush1.bf16.msra.mxu1 %v15592_v3  ;;  %v18009_v3 = vld [vmem:[#allocation6 + $0x504] ss:$40 sps:$4 sm:$0xff]  }
  0xa2   :  { %15600 = vmatmul.mubr.msk.bf16.vlgmr.msra.gmra.mrb[12].mxu0 %vm397_vm0, %v20222_v25  ;;  %8823 = vmatprep.subr.bf16.mxu1 %v17916_v4  ;;  %v18012_v4 = vld [vmem:[#allocation6 + $0x50c] ss:$40 sps:$4 sm:$0xff]  }
  0xa3   :  { %8496 = vmatpush1.bf16.msra.mxu0 %v17911_v5  ;;  %v157_v5 = vlaneseq }
  0xa4   :  { %15601 = vmatmul.mubr.msk.bf16.vlgmr.msra.gmra.mrb[12].mxu1 %vm397_vm0, %v20222_v25  ;;  %8497 = vmatprep.subr.bf16.mxu0 %v17919_v6  ;;  %v17949_v25 = vld [vmem:[#allocation6 + $0x1e4] ss:$40 sps:$4 sm:$0xff]  }
  0xa5   :  { %8824 = vmatpush1.bf16.msra.mxu1 %v17914_v7  ;;  %v20246_v6 = vshrl.u32 %v157_v5, 7  ;;  %v18051_v5 = vld [vmem:[#allocation6 + $0x734] ss:$40 sps:$4 sm:$0xff]  }
  0xa6   :  { %8825 = vmatprep.subr.bf16.mxu1 %v17922_v8  ;;  %v20251_v8 = vld [vmem:[#allocation4] sm:$0xff] }
  0xa7   :  { %8498 = vmatpush1.bf16.msra.mxu0 %v17917_v9  ;;  %v20249_v7 = vsub.s32 0, %v20246_v6  ;;  %v20254_v9 = vsub.s32 1, %v20246_v6 }
  0xa8   :  { %8499 = vmatprep.subr.bf16.mxu0 %v17925_v0  ;;  %v20257_v0 = vsub.s32 3, %v20246_v6 }
  0xa9   :  { %8826 = vmatpush1.bf16.msra.mxu1 %v17920_v10  ;;  %v160_v10 = vrot.slane %v20251_v8, %v20249_v7 }
  0xaa   :  { %8827 = vmatprep.subr.bf16.mxu1 %v17928_v11  ;;  %v164_v11 = vrot.slane %v20251_v8, %v20254_v9 }
  0xab   :  { %8500 = vmatpush1.bf16.msra.mxu0 %v17923_v12 }
  0xac   :  { %8501 = vmatprep.subr.bf16.mxu0 %v17931_v13  ;;  %v172_v13 = vrot.slane %v20251_v8, %v20257_v0 }
  0xad   :  { %8828 = vmatpush1.bf16.msra.mxu1 %v17926_v14 }
  0xae   :  { %8829 = vmatprep.subr.bf16.mxu1 %v17934_v15 }
  0xaf   :  { %8502 = vmatpush1.bf16.msra.mxu0 %v17929_v16 }
  0xb0   :  { %8503 = vmatprep.subr.bf16.mxu0 %v17937_v17 }
  0xb1   :  { %8830 = vmatpush1.bf16.msra.mxu1 %v17932_v18 }
  0xb2   :  { %8831 = vmatprep.subr.bf16.mxu1 %v17940_v20 }
  0xb3   :  { %8504 = vmatpush1.bf16.msra.mxu0 %v17935_v19 }
  0xb4   :  { %8505 = vmatprep.subr.bf16.mxu0 %v17943_v22 }
  0xb5   :  { %8832 = vmatpush1.bf16.msra.mxu1 %v17938_v21 }
  0xb6   :  { %8833 = vmatprep.subr.bf16.mxu1 %v17946_v23  ;;  %v18007_v23 = vld [vmem:[#allocation6 + $0x500] ss:$40 sps:$4 sm:$0xff]  }
  0xb7   :  { %8506 = vmatpush1.bf16.msra.mxu0 %v17941_v24  ;;  %v18010_v24 = vld [vmem:[#allocation6 + $0x508] ss:$40 sps:$4 sm:$0xff]  }
  0xb8   :  { %8507 = vmatprep.subr.bf16.mxu0 %v17949_v25 }
  0xb9   :  { %8834 = vmatpush1.bf16.msra.mxu1 %v17944_v26 }
  0xba   :  { %8835 = vmatprep.subr.bf16.mxu1 %v17952_v27 }
  0xbb   :  { %8508 = vmatpush1.bf16.msra.mxu0 %v17947_v28 }
  0xbc   :  { %8509 = vmatprep.subr.bf16.mxu0 %v17955_v29 }
  0xbd   :  { %8836 = vmatpush1.bf16.msra.mxu1 %v17950_v30 }
  0xbe   :  { %8837 = vmatprep.subr.bf16.mxu1 %v17958_v31  ;;  %v18015_v31 = vld [vmem:[#allocation6 + $0x554] ss:$40 sps:$4 sm:$0xff]  }
  0xbf   :  { %8510 = vmatpush1.bf16.msra.mxu0 %v17953_v32  ;;  %v18018_v32 = vld [vmem:[#allocation6 + $0x55c] ss:$40 sps:$4 sm:$0xff]  }
  0xc0   :  { %8511 = vmatprep.subr.bf16.mxu0 %v17961_v33 }
  0xc1   :  { %8838 = vmatpush1.bf16.msra.mxu1 %v17956_v34 }
  0xc2   :  { %8839 = vmatprep.subr.bf16.mxu1 %v17964_v35 }
  0xc3   :  { %8512 = vmatpush1.bf16.msra.mxu0 %v17959_v36  ;;  %v18013_v36 = vld [vmem:[#allocation6 + $0x550] ss:$40 sps:$4 sm:$0xff]  }
  0xc4   :  { %8513 = vmatprep.subr.bf16.mxu0 %v17967_v37  ;;  %v18016_v37 = vld [vmem:[#allocation6 + $0x558] ss:$40 sps:$4 sm:$0xff]  }
  0xc5   :  { %8840 = vmatpush1.bf16.msra.mxu1 %v17962_v38 }
  0xc6   :  { %8841 = vmatprep.subr.bf16.mxu1 %v17970_v39  ;;  %v18021_v39 = vld [vmem:[#allocation6 + $0x5a4] ss:$40 sps:$4 sm:$0xff]  }
  0xc7   :  { %8514 = vmatpush1.bf16.msra.mxu0 %v17965_v40  ;;  %v18024_v40 = vld [vmem:[#allocation6 + $0x5ac] ss:$40 sps:$4 sm:$0xff]  }
  0xc8   :  { %8515 = vmatprep.subr.bf16.mxu0 %v17973_v41 }
  0xc9   :  { %8842 = vmatpush1.bf16.msra.mxu1 %v17968_v42  ;;  %v18019_v42 = vld [vmem:[#allocation6 + $0x5a0] ss:$40 sps:$4 sm:$0xff]  }
  0xca   :  { %8843 = vmatprep.subr.bf16.mxu1 %v17976_v43  ;;  %v18022_v43 = vld [vmem:[#allocation6 + $0x5a8] ss:$40 sps:$4 sm:$0xff]  }
  0xcb   :  { %8516 = vmatpush1.bf16.msra.mxu0 %v17971_v44  ;;  %v18027_v44 = vld [vmem:[#allocation6 + $0x5f4] ss:$40 sps:$4 sm:$0xff]  }
  0xcc   :  { %8517 = vmatprep.subr.bf16.mxu0 %v17979_v45  ;;  %v18030_v45 = vld [vmem:[#allocation6 + $0x5fc] ss:$40 sps:$4 sm:$0xff]  }
  0xcd   :  { %8844 = vmatpush1.bf16.msra.mxu1 %v17974_v46 }
  0xce   :  { %8845 = vmatprep.subr.bf16.mxu1 %v17982_v47  ;;  %v18025_v47 = vld [vmem:[#allocation6 + $0x5f0] ss:$40 sps:$4 sm:$0xff]  }
  0xcf   :  { %8518 = vmatpush1.bf16.msra.mxu0 %v17977_v48  ;;  %v18028_v48 = vld [vmem:[#allocation6 + $0x5f8] ss:$40 sps:$4 sm:$0xff]  }
  0xd0   :  { %8519 = vmatprep.subr.bf16.mxu0 %v17985_v49 }
  0xd1   :  { %8846 = vmatpush1.bf16.msra.mxu1 %v17980_v50  ;;  %v18033_v50 = vld [vmem:[#allocation6 + $0x644] ss:$40 sps:$4 sm:$0xff]  }
  0xd2   :  { %8847 = vmatprep.subr.bf16.mxu1 %v17988_v51  ;;  %v18036_v51 = vld [vmem:[#allocation6 + $0x64c] ss:$40 sps:$4 sm:$0xff]  }
  0xd3   :  { %8520 = vmatpush1.bf16.msra.mxu0 %v17983_v52 }
  0xd4   :  { %8521 = vmatprep.subr.bf16.mxu0 %v17991_v53 }
  0xd5   :  { %8848 = vmatpush1.bf16.msra.mxu1 %v17986_v54  ;;  %v18031_v54 = vld [vmem:[#allocation6 + $0x640] ss:$40 sps:$4 sm:$0xff]  }
  0xd6   :  { %8849 = vmatprep.subr.bf16.mxu1 %v17994_v55  ;;  %v18034_v55 = vld [vmem:[#allocation6 + $0x648] ss:$40 sps:$4 sm:$0xff]  }
  0xd7   :  { %8522 = vmatpush1.bf16.msra.mxu0 %v17989_v56  ;;  %v18039_v56 = vld [vmem:[#allocation6 + $0x694] ss:$40 sps:$4 sm:$0xff]  }
  0xd8   :  { %8523 = vmatprep.subr.bf16.mxu0 %v17997_v58 }
  0xd9   :  { %8850 = vmatpush1.bf16.msra.mxu1 %v17992_v57  ;;  %v18042_v57 = vld [vmem:[#allocation6 + $0x69c] ss:$40 sps:$4 sm:$0xff]  }
  0xda   :  { %8851 = vmatprep.subr.bf16.mxu1 %v18000_v59  ;;  %v18037_v59 = vld [vmem:[#allocation6 + $0x690] ss:$40 sps:$4 sm:$0xff]  }
  0xdb   :  { %8524 = vmatpush1.bf16.msra.mxu0 %v17995_v60  ;;  %v18040_v60 = vld [vmem:[#allocation6 + $0x698] ss:$40 sps:$4 sm:$0xff]  }
  0xdc   :  { %8525 = vmatprep.subr.bf16.mxu0 %v18003_v62  ;;  %v18045_v62 = vld [vmem:[#allocation6 + $0x6e4] ss:$40 sps:$4 sm:$0xff]  }
  0xdd   :  { %8852 = vmatpush1.bf16.msra.mxu1 %v17998_v61 }
  0xde   :  { %8853 = vmatprep.subr.bf16.mxu1 %v18006_v63  ;;  %v18048_v63 = vld [vmem:[#allocation6 + $0x6ec] ss:$40 sps:$4 sm:$0xff]  }
  0xdf   :  { %8526 = vmatpush1.bf16.msra.mxu0 %v18001_v1 }
  0xe0   :  { %8536 = vmatprep.subr.bf16.mxu0 %v18009_v3  ;;  %v18043_v3 = vld [vmem:[#allocation6 + $0x6e0] ss:$40 sps:$4 sm:$0xff]  }
  0xe1   :  { %8854 = vmatpush1.bf16.msra.mxu1 %v18004_v2 }
  0xe2   :  { %8864 = vmatprep.subr.bf16.mxu1 %v18012_v4  ;;  %v18046_v4 = vld [vmem:[#allocation6 + $0x6e8] ss:$40 sps:$4 sm:$0xff]  }
 0x15d   :  { %v435_v12 = vpop.f32.mrb[0].mxu0  ;;  %v20265_v18 = vpop.f32.mrb[0].mxu1 }
 0x15e   :  { %v436_v14 = vadd.f32 %v435_v12, %v160_v10  ;;  %v437_v15 = vpop.f32.mrb[1].mxu0  ;;  %v478_v21 = vpop.f32.mrb[1].mxu1  ;;  %v18054_v10 = vld [vmem:[#allocation6 + $0x73c] ss:$40 sps:$4 sm:$0xff]   ;;  %v18052_v12 = vld [vmem:[#allocation6 + $0x738] ss:$40 sps:$4 sm:$0xff]  }
 0x15f   :  { %v438_v16 = vadd.f32 %v437_v15, %v164_v11  ;;  %v439_v17 = vpop.f32.mrb[2].mxu0  ;;  %v479_v25 = vadd.f32 %v478_v21, %v172_v13  ;;  %v480_v26 = vpop.f32.mrb[2].mxu1  ;;  %v18049_v11 = vld [vmem:[#allocation6 + $0x730] ss:$40 sps:$4 sm:$0xff]   ;;  %v18057_v13 = vld [vmem:[#allocation6 + $0x784] ss:$40 sps:$4 sm:$0xff]  }
 0x160   :  { %v729_v19 = vmax.f32 %v436_v14, 0.0  ;;  %v440_v20 = vpop.f32.mrb[3].mxu0  ;;  %v481_v27 = vpop.f32.mrb[3].mxu1  ;;  %v18060_v14 = vld [vmem:[#allocation6 + $0x78c] ss:$40 sps:$4 sm:$0xff]  }
 0x161   :  { %v730_v22 = vmax.f32 %v438_v16, 0.0  ;;  %v732_v29 = vmax.f32 %v479_v25, 0.0  ;;  %v18055_v15 = vld [vmem:[#allocation6 + $0x780] ss:$40 sps:$4 sm:$0xff]   ;;  %v18063_v17 = vld [vmem:[#allocation6 + $0x7d4] ss:$40 sps:$4 sm:$0xff]  }
 0x162   :  { %v20269_v30 = vpack.c.bf16 %v729_v19, %v729_v19  ;;  %v18058_v16 = vld [vmem:[#allocation6 + $0x788] ss:$40 sps:$4 sm:$0xff]   ;;  %v18066_v19 = vld [vmem:[#allocation6 + $0x7dc] ss:$40 sps:$4 sm:$0xff]   ;;  %v18064_v21 = vld [vmem:[#allocation6 + $0x7d8] ss:$40 sps:$4 sm:$0xff]  }
 0x163   :  { %v20267_v28 = vpack.c.bf16 %v730_v22, %v730_v22  ;;  %v20273_v33 = vpack.c.bf16 %v732_v29, %v732_v29  ;;  %v18061_v20 = vld [vmem:[#allocation6 + $0x7d0] ss:$40 sps:$4 sm:$0xff]   ;;  %v18069_v22 = vld [vmem:[#allocation6 + $0x824] ss:$40 sps:$4 sm:$0xff]   ;;  %v18075_v26 = vld [vmem:[#allocation6 + $0x874] ss:$40 sps:$4 sm:$0xff]  }
 0x164   :  { %v18070_v25 = vld [vmem:[#allocation6 + $0x828] ss:$40 sps:$4 sm:$0xff]   ;;  %v18078_v27 = vld [vmem:[#allocation6 + $0x87c] ss:$40 sps:$4 sm:$0xff]  }
 0x165   :  { %8527 = vmatprep.mubr.bf16.mxu0 %v20267_v28  ;;  %8855 = vmatprep.mubr.bf16.mxu1 %v20267_v28  ;;  %v20275_v34 = vpop.f32.mrb[4].mxu0  ;;  %v18073_v29 = vld [vmem:[#allocation6 + $0x870] ss:$40 sps:$4 sm:$0xff]  }
 0x166   :  { %8528 = vmatmul.mubr.bf16.vlgmr.msra.gmra.mrb[16].mxu0 %v20269_v30  ;;  %8856 = vmatmul.mubr.bf16.vlgmr.msra.gmra.mrb[16].mxu1 %v20269_v30  ;;  %v20279_v35 = vpop.f32.mrb[5].mxu0 }
 0x167   :  { %8537 = vmatpush1.bf16.msra.mxu0 %v18007_v23  ;;  %8865 = vmatpush1.bf16.msra.mxu1 %v18010_v24  ;;  %v521_v38 = vpop.f32.mrb[6].mxu0  ;;  %v18072_v23 = vld [vmem:[#allocation6 + $0x82c] ss:$40 sps:$4 sm:$0xff]   ;;  %v18067_v24 = vld [vmem:[#allocation6 + $0x820] ss:$40 sps:$4 sm:$0xff]  }
 0x168   :  { %8538 = vmatprep.subr.bf16.mxu0 %v18015_v31  ;;  %8866 = vmatprep.subr.bf16.mxu1 %v18018_v32  ;;  %v522_v41 = vpop.f32.mrb[7].mxu0  ;;  %v18076_v31 = vld [vmem:[#allocation6 + $0x878] ss:$40 sps:$4 sm:$0xff]   ;;  %v18081_v32 = vld [vmem:[#allocation6 + $0x8c4] ss:$40 sps:$4 sm:$0xff]  }
 0x169   :  { %8568 = vmatprep.mubr.bf16.mxu0 %v20273_v33  ;;  %8896 = vmatprep.mubr.bf16.mxu1 %v20273_v33  ;;  %v18079_v38 = vld [vmem:[#allocation6 + $0x8c0] ss:$40 sps:$4 sm:$0xff]   ;;  %v18090_v41 = vld [vmem:[#allocation6 + $0x91c] ss:$40 sps:$4 sm:$0xff]  }
 0x16b   :  { %8539 = vmatpush1.bf16.msra.mxu0 %v18013_v36  ;;  %8867 = vmatpush1.bf16.msra.mxu1 %v18016_v37  ;;  %v18084_v36 = vld [vmem:[#allocation6 + $0x8cc] ss:$40 sps:$4 sm:$0xff]   ;;  %v20292_v37 = vsub.s32 2, %v20246_v6 }
 0x16c   :  { %8540 = vmatprep.subr.bf16.mxu0 %v18021_v39  ;;  %8868 = vmatprep.subr.bf16.mxu1 %v18024_v40  ;;  %v18082_v39 = vld [vmem:[#allocation6 + $0x8c8] ss:$40 sps:$4 sm:$0xff]   ;;  %v18087_v40 = vld [vmem:[#allocation6 + $0x914] ss:$40 sps:$4 sm:$0xff]  }
 0x16d   :  { %v20283_v46 = vpop.f32.mrb[8].mxu0 }
 0x16e   :  { %v20285_v49 = vpop.f32.mrb[9].mxu0 }
 0x16f   :  { %8541 = vmatpush1.bf16.msra.mxu0 %v18019_v42  ;;  %8869 = vmatpush1.bf16.msra.mxu1 %v18022_v43  ;;  %v603_v52 = vpop.f32.mrb[10].mxu0  ;;  %v20295_v42 = vsub.s32 5, %v20246_v6  ;;  %v168_v43 = vrot.slane %v20251_v8, %v20292_v37 }
 0x170   :  { %8542 = vmatprep.subr.bf16.mxu0 %v18027_v44  ;;  %8870 = vmatprep.subr.bf16.mxu1 %v18030_v45  ;;  %v604_v53 = vpop.f32.mrb[11].mxu0  ;;  %v18085_v44 = vld [vmem:[#allocation6 + $0x910] ss:$40 sps:$4 sm:$0xff]  }
 0x171   :  { %v18088_v45 = vld [vmem:[#allocation6 + $0x918] ss:$40 sps:$4 sm:$0xff]   ;;  %v477_v52 = vadd.f32 %v20265_v18, %v168_v43  ;;  %v18105_v18 = vld [vmem:[#allocation6 + $0xa04] ss:$40 sps:$4 sm:$0xff]   ;;  %v18147_v43 = vld [vmem:[#allocation6 + $0xc34] ss:$40 sps:$4 sm:$0xff]  }
 0x172   :  { %v18091_v53 = vld [vmem:[#allocation6 + $0x960] ss:$40 sps:$4 sm:$0xff]  }
 0x173   :  { %8543 = vmatpush1.bf16.msra.mxu0 %v18025_v47  ;;  %8871 = vmatpush1.bf16.msra.mxu1 %v18028_v48  ;;  %v18093_v47 = vld [vmem:[#allocation6 + $0x964] ss:$40 sps:$4 sm:$0xff]  }
 0x174   :  { %8544 = vmatprep.subr.bf16.mxu0 %v18033_v50  ;;  %8872 = vmatprep.subr.bf16.mxu1 %v18036_v51  ;;  %v18096_v48 = vld [vmem:[#allocation6 + $0x96c] ss:$40 sps:$4 sm:$0xff]   ;;  %v20299_v50 = vpop.f32.mrb[4].mxu1  ;;  %v180_v51 = vrot.slane %v20251_v8, %v20295_v42  ;;  %v18097_v8 = vld [vmem:[#allocation6 + $0x9b0] ss:$40 sps:$4 sm:$0xff]  }
 0x175   :  { %v20287_v58 = vpop.f32.mrb[12].mxu0 }
 0x176   :  { %v20289_v61 = vpop.f32.mrb[13].mxu0 }
 0x177   :  { %8545 = vmatpush1.bf16.msra.mxu0 %v18031_v54  ;;  %8873 = vmatpush1.bf16.msra.mxu1 %v18034_v55  ;;  %v685_v1 = vpop.f32.mrb[14].mxu0  ;;  %v18094_v54 = vld [vmem:[#allocation6 + $0x968] ss:$40 sps:$4 sm:$0xff]   ;;  %v20304_v55 = vpop.f32.mrb[5].mxu1 }
 0x178   :  { %8546 = vmatprep.subr.bf16.mxu0 %v18039_v56  ;;  %8874 = vmatprep.subr.bf16.mxu1 %v18042_v57  ;;  %v686_v2 = vpop.f32.mrb[15].mxu0  ;;  %v18099_v56 = vld [vmem:[#allocation6 + $0x9b4] ss:$40 sps:$4 sm:$0xff]   ;;  %v18100_v1 = vld [vmem:[#allocation6 + $0x9b8] ss:$40 sps:$4 sm:$0xff]  }
 0x179   :  { %v18102_v57 = vld [vmem:[#allocation6 + $0x9bc] ss:$40 sps:$4 sm:$0xff]   ;;  %v18108_v2 = vld [vmem:[#allocation6 + $0xa0c] ss:$40 sps:$4 sm:$0xff]  }
 0x17b   :  { %8547 = vmatpush1.bf16.msra.mxu0 %v18037_v59  ;;  %8875 = vmatpush1.bf16.msra.mxu1 %v18040_v60  ;;  %v562_v59 = vpop.f32.mrb[6].mxu1  ;;  %v520_v60 = vadd.f32 %v20279_v35, %v180_v51  ;;  %v18111_v35 = vld [vmem:[#allocation6 + $0xa54] ss:$40 sps:$4 sm:$0xff]  }
 0x17c   :  { %8548 = vmatprep.subr.bf16.mxu0 %v18045_v62  ;;  %8876 = vmatprep.subr.bf16.mxu1 %v18048_v63  ;;  %v563_v62 = vpop.f32.mrb[7].mxu1  ;;  %v731_v63 = vmax.f32 %v477_v52, 0.0  ;;  %v18156_v51 = vld [vmem:[#allocation6 + $0xc8c] ss:$40 sps:$4 sm:$0xff]   ;;  %v18151_v52 = vld [vmem:[#allocation6 + $0xc80] ss:$40 sps:$4 sm:$0xff]  }
 0x17d   :  { %v18160_v59 = vld [vmem:[#allocation6 + $0xcd8] ss:$40 sps:$4 sm:$0xff]   ;;  %v18168_v62 = vld [vmem:[#allocation6 + $0xd2c] ss:$40 sps:$4 sm:$0xff]  }
 0x17f   :  { %8549 = vmatpush1.bf16.msra.mxu0 %v18043_v3  ;;  %8877 = vmatpush1.bf16.msra.mxu1 %v18046_v4  ;;  %v18103_v3 = vld [vmem:[#allocation6 + $0xa00] ss:$40 sps:$4 sm:$0xff]  }
 0x180   :  { %8550 = vmatprep.subr.bf16.mxu0 %v18051_v5  ;;  %8878 = vmatprep.subr.bf16.mxu1 %v18054_v10  ;;  %v18106_v4 = vld [vmem:[#allocation6 + $0xa08] ss:$40 sps:$4 sm:$0xff]   ;;  %v734_v5 = vmax.f32 %v520_v60, 0.0  ;;  %v20307_v10 = vpack.c.bf16 %v731_v63, %v731_v63  ;;  %v18165_v60 = vld [vmem:[#allocation6 + $0xd24] ss:$40 sps:$4 sm:$0xff]  }
 0x181   :  { %v18163_v63 = vld [vmem:[#allocation6 + $0xd20] ss:$40 sps:$4 sm:$0xff]  }
 0x183   :  { %8551 = vmatpush1.bf16.msra.mxu0 %v18049_v11  ;;  %8879 = vmatpush1.bf16.msra.mxu1 %v18052_v12  ;;  %v18114_v11 = vld [vmem:[#allocation6 + $0xa5c] ss:$40 sps:$4 sm:$0xff]   ;;  %v18109_v12 = vld [vmem:[#allocation6 + $0xa50] ss:$40 sps:$4 sm:$0xff]  }
 0x184   :  { %8552 = vmatprep.subr.bf16.mxu0 %v18057_v13  ;;  %8880 = vmatprep.subr.bf16.mxu1 %v18060_v14  ;;  %v18112_v13 = vld [vmem:[#allocation6 + $0xa58] ss:$40 sps:$4 sm:$0xff]   ;;  %v20309_v14 = vpack.c.bf16 %v734_v5, %v734_v5  ;;  %v18180_v5 = vld [vmem:[#allocation6 + $0xdcc] ss:$40 sps:$4 sm:$0xff]  }
 0x187   :  { %8553 = vmatpush1.bf16.msra.mxu0 %v18055_v15  ;;  %8881 = vmatpush1.bf16.msra.mxu1 %v18058_v16  ;;  %v18117_v15 = vld [vmem:[#allocation6 + $0xaa4] ss:$40 sps:$4 sm:$0xff]  }
 0x188   :  { %8554 = vmatprep.subr.bf16.mxu0 %v18063_v17  ;;  %8882 = vmatprep.subr.bf16.mxu1 %v18066_v19  ;;  %v18120_v16 = vld [vmem:[#allocation6 + $0xaac] ss:$40 sps:$4 sm:$0xff]   ;;  %v18115_v17 = vld [vmem:[#allocation6 + $0xaa0] ss:$40 sps:$4 sm:$0xff]  }
 0x189   :  { %v18118_v19 = vld [vmem:[#allocation6 + $0xaa8] ss:$40 sps:$4 sm:$0xff]  }
 0x18b   :  { %8555 = vmatpush1.bf16.msra.mxu0 %v18061_v20  ;;  %8883 = vmatpush1.bf16.msra.mxu1 %v18064_v21  ;;  %v18123_v20 = vld [vmem:[#allocation6 + $0xaf4] ss:$40 sps:$4 sm:$0xff]  }
 0x18c   :  { %8556 = vmatprep.subr.bf16.mxu0 %v18069_v22  ;;  %8884 = vmatprep.subr.bf16.mxu1 %v18072_v23  ;;  %v18126_v21 = vld [vmem:[#allocation6 + $0xafc] ss:$40 sps:$4 sm:$0xff]   ;;  %v18121_v22 = vld [vmem:[#allocation6 + $0xaf0] ss:$40 sps:$4 sm:$0xff]  }
 0x18d   :  { %v18124_v23 = vld [vmem:[#allocation6 + $0xaf8] ss:$40 sps:$4 sm:$0xff]  }
 0x18f   :  { %8557 = vmatpush1.bf16.msra.mxu0 %v18067_v24  ;;  %8885 = vmatpush1.bf16.msra.mxu1 %v18070_v25  ;;  %v18129_v24 = vld [vmem:[#allocation6 + $0xb44] ss:$40 sps:$4 sm:$0xff]  }
 0x190   :  { %8558 = vmatprep.subr.bf16.mxu0 %v18075_v26  ;;  %8886 = vmatprep.subr.bf16.mxu1 %v18078_v27  ;;  %v18132_v25 = vld [vmem:[#allocation6 + $0xb4c] ss:$40 sps:$4 sm:$0xff]   ;;  %v18127_v26 = vld [vmem:[#allocation6 + $0xb40] ss:$40 sps:$4 sm:$0xff]  }
 0x191   :  { %v18130_v27 = vld [vmem:[#allocation6 + $0xb48] ss:$40 sps:$4 sm:$0xff]  }
 0x193   :  { %8559 = vmatpush1.bf16.msra.mxu0 %v18073_v29  ;;  %8887 = vmatpush1.bf16.msra.mxu1 %v18076_v31  ;;  %v18135_v29 = vld [vmem:[#allocation6 + $0xb94] ss:$40 sps:$4 sm:$0xff]  }
 0x194   :  { %8560 = vmatprep.subr.bf16.mxu0 %v18081_v32  ;;  %8888 = vmatprep.subr.bf16.mxu1 %v18084_v36  ;;  %v18138_v31 = vld [vmem:[#allocation6 + $0xb9c] ss:$40 sps:$4 sm:$0xff]   ;;  %v18133_v32 = vld [vmem:[#allocation6 + $0xb90] ss:$40 sps:$4 sm:$0xff]  }
 0x195   :  { %v18136_v36 = vld [vmem:[#allocation6 + $0xb98] ss:$40 sps:$4 sm:$0xff]  }
 0x197   :  { %8561 = vmatpush1.bf16.msra.mxu0 %v18079_v38  ;;  %8889 = vmatpush1.bf16.msra.mxu1 %v18082_v39  ;;  %v18141_v38 = vld [vmem:[#allocation6 + $0xbe4] ss:$40 sps:$4 sm:$0xff]  }
 0x198   :  { %8562 = vmatprep.subr.bf16.mxu0 %v18087_v40  ;;  %8890 = vmatprep.subr.bf16.mxu1 %v18090_v41  ;;  %v18144_v39 = vld [vmem:[#allocation6 + $0xbec] ss:$40 sps:$4 sm:$0xff]   ;;  %v18139_v40 = vld [vmem:[#allocation6 + $0xbe0] ss:$40 sps:$4 sm:$0xff]  }
 0x199   :  { %v18142_v41 = vld [vmem:[#allocation6 + $0xbe8] ss:$40 sps:$4 sm:$0xff]  }
 0x19b   :  { %8563 = vmatpush1.bf16.msra.mxu0 %v18085_v44  ;;  %8891 = vmatpush1.bf16.msra.mxu1 %v18088_v45  ;;  %v18150_v44 = vld [vmem:[#allocation6 + $0xc3c] ss:$40 sps:$4 sm:$0xff]   ;;  %v18145_v45 = vld [vmem:[#allocation6 + $0xc30] ss:$40 sps:$4 sm:$0xff]  }
 0x19c   :  { %8564 = vmatprep.subr.bf16.mxu0 %v18093_v47  ;;  %8892 = vmatprep.subr.bf16.mxu1 %v18096_v48  ;;  %v18148_v47 = vld [vmem:[#allocation6 + $0xc38] ss:$40 sps:$4 sm:$0xff]   ;;  %v18153_v48 = vld [vmem:[#allocation6 + $0xc84] ss:$40 sps:$4 sm:$0xff]  }
 0x19f   :  { %8565 = vmatpush1.bf16.msra.mxu0 %v18091_v53  ;;  %8893 = vmatpush1.bf16.msra.mxu1 %v18094_v54  ;;  %v18154_v53 = vld [vmem:[#allocation6 + $0xc88] ss:$40 sps:$4 sm:$0xff]   ;;  %v18159_v54 = vld [vmem:[#allocation6 + $0xcd4] ss:$40 sps:$4 sm:$0xff]  }
 0x1a0   :  { %8566 = vmatprep.subr.bf16.mxu0 %v18099_v56  ;;  %8894 = vmatprep.subr.bf16.mxu1 %v18102_v57  ;;  %v18162_v56 = vld [vmem:[#allocation6 + $0xcdc] ss:$40 sps:$4 sm:$0xff]   ;;  %v18157_v57 = vld [vmem:[#allocation6 + $0xcd0] ss:$40 sps:$4 sm:$0xff]  }
 0x1a3   :  { %8567 = vmatpush1.bf16.msra.mxu0 %v18097_v8  ;;  %8895 = vmatpush1.bf16.msra.mxu1 %v18100_v1  ;;  %v18166_v8 = vld [vmem:[#allocation6 + $0xd28] ss:$40 sps:$4 sm:$0xff]   ;;  %v18171_v1 = vld [vmem:[#allocation6 + $0xd74] ss:$40 sps:$4 sm:$0xff]  }
 0x1a4   :  { %8577 = vmatprep.subr.bf16.mxu0 %v18105_v18  ;;  %8905 = vmatprep.subr.bf16.mxu1 %v18108_v2  ;;  %v18174_v18 = vld [vmem:[#allocation6 + $0xd7c] ss:$40 sps:$4 sm:$0xff]   ;;  %v18169_v2 = vld [vmem:[#allocation6 + $0xd70] ss:$40 sps:$4 sm:$0xff]  }
 0x1a6   :  { %8569 = vmatmul.mubr.bf16.vlgmr.msra.gmra.mrb[16].mxu0 %v20307_v10  ;;  %8897 = vmatmul.mubr.bf16.vlgmr.msra.gmra.mrb[16].mxu1 %v20307_v10 }
 0x1a7   :  { %8578 = vmatpush1.bf16.msra.mxu0 %v18103_v3  ;;  %8906 = vmatpush1.bf16.msra.mxu1 %v18106_v4  ;;  %v18172_v3 = vld [vmem:[#allocation6 + $0xd78] ss:$40 sps:$4 sm:$0xff]   ;;  %v18177_v4 = vld [vmem:[#allocation6 + $0xdc4] ss:$40 sps:$4 sm:$0xff]  }
 0x1a8   :  { %8579 = vmatprep.subr.bf16.mxu0 %v18111_v35  ;;  %8907 = vmatprep.subr.bf16.mxu1 %v18114_v11  ;;  %v18175_v35 = vld [vmem:[#allocation6 + $0xdc0] ss:$40 sps:$4 sm:$0xff]  }
 0x1a9   :  { %8609 = vmatprep.mubr.bf16.mxu0 %v20309_v14  ;;  %8937 = vmatprep.mubr.bf16.mxu1 %v20309_v14  ;;  %v18178_v11 = vld [vmem:[#allocation6 + $0xdc8] ss:$40 sps:$4 sm:$0xff]  }
 0x1ab   :  { %8580 = vmatpush1.bf16.msra.mxu0 %v18109_v12  ;;  %8908 = vmatpush1.bf16.msra.mxu1 %v18112_v13  ;;  %v20316_v12 = vsub.s32 4, %v20246_v6  ;;  %v18183_v13 = vld [vmem:[#allocation6 + $0xe14] ss:$40 sps:$4 sm:$0xff]  }
 0x1ac   :  { %8581 = vmatprep.subr.bf16.mxu0 %v18117_v15  ;;  %8909 = vmatprep.subr.bf16.mxu1 %v18120_v16  ;;  %v18186_v15 = vld [vmem:[#allocation6 + $0xe1c] ss:$40 sps:$4 sm:$0xff]   ;;  %v18181_v16 = vld [vmem:[#allocation6 + $0xe10] ss:$40 sps:$4 sm:$0xff]  }
 0x1af   :  { %8582 = vmatpush1.bf16.msra.mxu0 %v18115_v17  ;;  %8910 = vmatpush1.bf16.msra.mxu1 %v18118_v19  ;;  %v18184_v17 = vld [vmem:[#allocation6 + $0xe18] ss:$40 sps:$4 sm:$0xff]   ;;  %v20319_v19 = vsub.s32 7, %v20246_v6 }
 0x1b0   :  { %8583 = vmatprep.subr.bf16.mxu0 %v18123_v20  ;;  %8911 = vmatprep.subr.bf16.mxu1 %v18126_v21  ;;  %v20321_v20 = vld [vmem:[#allocation4] sm:$0xff] }
 0x1b1   :  { %v176_v21 = vrot.slane %v20321_v20, %v20316_v12 }
 0x1b3   :  { %8584 = vmatpush1.bf16.msra.mxu0 %v18121_v22  ;;  %8912 = vmatpush1.bf16.msra.mxu1 %v18124_v23  ;;  %v18189_v22 = vld [vmem:[#allocation6 + $0xe64] ss:$40 sps:$4 sm:$0xff]  }
 0x1b4   :  { %8585 = vmatprep.subr.bf16.mxu0 %v18129_v24  ;;  %8913 = vmatprep.subr.bf16.mxu1 %v18132_v25  ;;  %v18192_v23 = vld [vmem:[#allocation6 + $0xe6c] ss:$40 sps:$4 sm:$0xff]   ;;  %v18187_v24 = vld [vmem:[#allocation6 + $0xe60] ss:$40 sps:$4 sm:$0xff]  }
 0x1b5   :  { %v18190_v25 = vld [vmem:[#allocation6 + $0xe68] ss:$40 sps:$4 sm:$0xff]  }
 0x1b7   :  { %8586 = vmatpush1.bf16.msra.mxu0 %v18127_v26  ;;  %8914 = vmatpush1.bf16.msra.mxu1 %v18130_v27  ;;  %v188_v26 = vrot.slane %v20321_v20, %v20319_v19  ;;  %v518_v27 = vadd.f32 %v20275_v34, %v176_v21  ;;  %v18246_v21 = vld [vmem:[#allocation6 + $0x113c] ss:$40 sps:$4 sm:$0xff]  }
 0x1b8   :  { %8587 = vmatprep.subr.bf16.mxu0 %v18135_v29  ;;  %8915 = vmatprep.subr.bf16.mxu1 %v18138_v31  ;;  %v18195_v29 = vld [vmem:[#allocation6 + $0xeb4] ss:$40 sps:$4 sm:$0xff]  }
 0x1b9   :  { %v18198_v31 = vld [vmem:[#allocation6 + $0xebc] ss:$40 sps:$4 sm:$0xff]  }
 0x1bb   :  { %8588 = vmatpush1.bf16.msra.mxu0 %v18133_v32  ;;  %8916 = vmatpush1.bf16.msra.mxu1 %v18136_v36  ;;  %v18193_v32 = vld [vmem:[#allocation6 + $0xeb0] ss:$40 sps:$4 sm:$0xff]  }
 0x1bc   :  { %8589 = vmatprep.subr.bf16.mxu0 %v18141_v38  ;;  %8917 = vmatprep.subr.bf16.mxu1 %v18144_v39  ;;  %v18196_v36 = vld [vmem:[#allocation6 + $0xeb8] ss:$40 sps:$4 sm:$0xff]   ;;  %v561_v38 = vadd.f32 %v20304_v55, %v188_v26  ;;  %v733_v39 = vmax.f32 %v518_v27, 0.0  ;;  %v18250_v27 = vld [vmem:[#allocation6 + $0x1188] ss:$40 sps:$4 sm:$0xff]  }
 0x1bd   :  { %v18205_v55 = vld [vmem:[#allocation6 + $0xf50] ss:$40 sps:$4 sm:$0xff]   ;;  %v18247_v26 = vld [vmem:[#allocation6 + $0x1180] ss:$40 sps:$4 sm:$0xff]  }
 0x1be   :  { %v736_v34 = vmax.f32 %v561_v38, 0.0  ;;  %v18261_v38 = vld [vmem:[#allocation6 + $0x1224] ss:$40 sps:$4 sm:$0xff]  }
 0x1bf   :  { %8590 = vmatpush1.bf16.msra.mxu0 %v18139_v40  ;;  %8918 = vmatpush1.bf16.msra.mxu1 %v18142_v41  ;;  %v18201_v40 = vld [vmem:[#allocation6 + $0xf04] ss:$40 sps:$4 sm:$0xff]  }
 0x1c0   :  { %8591 = vmatprep.subr.bf16.mxu0 %v18147_v43  ;;  %8919 = vmatprep.subr.bf16.mxu1 %v18150_v44  ;;  %v18204_v41 = vld [vmem:[#allocation6 + $0xf0c] ss:$40 sps:$4 sm:$0xff]   ;;  %v18199_v43 = vld [vmem:[#allocation6 + $0xf00] ss:$40 sps:$4 sm:$0xff]  }
 0x1c1   :  { %v18202_v44 = vld [vmem:[#allocation6 + $0xf08] ss:$40 sps:$4 sm:$0xff]  }
 0x1c3   :  { %8592 = vmatpush1.bf16.msra.mxu0 %v18145_v45  ;;  %8920 = vmatpush1.bf16.msra.mxu1 %v18148_v47  ;;  %v20329_v45 = vpack.c.bf16 %v733_v39, %v733_v39  ;;  %v18207_v47 = vld [vmem:[#allocation6 + $0xf54] ss:$40 sps:$4 sm:$0xff]  }
 0x1c4   :  { %8593 = vmatprep.subr.bf16.mxu0 %v18153_v48  ;;  %8921 = vmatprep.subr.bf16.mxu1 %v18156_v51  ;;  %v18210_v48 = vld [vmem:[#allocation6 + $0xf5c] ss:$40 sps:$4 sm:$0xff]   ;;  %v20331_v51 = vpack.c.bf16 %v736_v34, %v736_v34  ;;  %v18264_v39 = vld [vmem:[#allocation6 + $0x122c] ss:$40 sps:$4 sm:$0xff]   ;;  %v18265_v34 = vld [vmem:[#allocation6 + $0x1270] ss:$40 sps:$4 sm:$0xff]  }
 0x1c7   :  { %8594 = vmatpush1.bf16.msra.mxu0 %v18151_v52  ;;  %8922 = vmatpush1.bf16.msra.mxu1 %v18154_v53  ;;  %v18208_v52 = vld [vmem:[#allocation6 + $0xf58] ss:$40 sps:$4 sm:$0xff]   ;;  %v18213_v53 = vld [vmem:[#allocation6 + $0xfa4] ss:$40 sps:$4 sm:$0xff]  }
 0x1c8   :  { %8595 = vmatprep.subr.bf16.mxu0 %v18159_v54  ;;  %8923 = vmatprep.subr.bf16.mxu1 %v18162_v56  ;;  %v18216_v54 = vld [vmem:[#allocation6 + $0xfac] ss:$40 sps:$4 sm:$0xff]   ;;  %v18211_v56 = vld [vmem:[#allocation6 + $0xfa0] ss:$40 sps:$4 sm:$0xff]  }
 0x1cb   :  { %8596 = vmatpush1.bf16.msra.mxu0 %v18157_v57  ;;  %8924 = vmatpush1.bf16.msra.mxu1 %v18160_v59  ;;  %v18214_v57 = vld [vmem:[#allocation6 + $0xfa8] ss:$40 sps:$4 sm:$0xff]   ;;  %v18219_v59 = vld [vmem:[#allocation6 + $0xff4] ss:$40 sps:$4 sm:$0xff]  }
 0x1cc   :  { %8597 = vmatprep.subr.bf16.mxu0 %v18165_v60  ;;  %8925 = vmatprep.subr.bf16.mxu1 %v18168_v62  ;;  %v18222_v60 = vld [vmem:[#allocation6 + $0xffc] ss:$40 sps:$4 sm:$0xff]   ;;  %v18217_v62 = vld [vmem:[#allocation6 + $0xff0] ss:$40 sps:$4 sm:$0xff]  }
 0x1cf   :  { %8598 = vmatpush1.bf16.msra.mxu0 %v18163_v63  ;;  %8926 = vmatpush1.bf16.msra.mxu1 %v18166_v8  ;;  %v18220_v63 = vld [vmem:[#allocation6 + $0xff8] ss:$40 sps:$4 sm:$0xff]   ;;  %v18225_v8 = vld [vmem:[#allocation6 + $0x1044] ss:$40 sps:$4 sm:$0xff]  }
 0x1d0   :  { %8599 = vmatprep.subr.bf16.mxu0 %v18171_v1  ;;  %8927 = vmatprep.subr.bf16.mxu1 %v18174_v18  ;;  %v18228_v1 = vld [vmem:[#allocation6 + $0x104c] ss:$40 sps:$4 sm:$0xff]   ;;  %v18223_v18 = vld [vmem:[#allocation6 + $0x1040] ss:$40 sps:$4 sm:$0xff]  }
 0x1d3   :  { %8600 = vmatpush1.bf16.msra.mxu0 %v18169_v2  ;;  %8928 = vmatpush1.bf16.msra.mxu1 %v18172_v3  ;;  %v18226_v2 = vld [vmem:[#allocation6 + $0x1048] ss:$40 sps:$4 sm:$0xff]   ;;  %v18231_v3 = vld [vmem:[#allocation6 + $0x1094] ss:$40 sps:$4 sm:$0xff]  }
 0x1d4   :  { %8601 = vmatprep.subr.bf16.mxu0 %v18177_v4  ;;  %8929 = vmatprep.subr.bf16.mxu1 %v18180_v5  ;;  %v18234_v4 = vld [vmem:[#allocation6 + $0x109c] ss:$40 sps:$4 sm:$0xff]   ;;  %v18229_v5 = vld [vmem:[#allocation6 + $0x1090] ss:$40 sps:$4 sm:$0xff]  }
 0x1d7   :  { %8602 = vmatpush1.bf16.msra.mxu0 %v18175_v35  ;;  %8930 = vmatpush1.bf16.msra.mxu1 %v18178_v11  ;;  %v18232_v35 = vld [vmem:[#allocation6 + $0x1098] ss:$40 sps:$4 sm:$0xff]   ;;  %v18237_v11 = vld [vmem:[#allocation6 + $0x10e4] ss:$40 sps:$4 sm:$0xff]  }
 0x1d8   :  { %8603 = vmatprep.subr.bf16.mxu0 %v18183_v13  ;;  %8931 = vmatprep.subr.bf16.mxu1 %v18186_v15  ;;  %v18240_v13 = vld [vmem:[#allocation6 + $0x10ec] ss:$40 sps:$4 sm:$0xff]   ;;  %v18235_v15 = vld [vmem:[#allocation6 + $0x10e0] ss:$40 sps:$4 sm:$0xff]  }
 0x1db   :  { %8604 = vmatpush1.bf16.msra.mxu0 %v18181_v16  ;;  %8932 = vmatpush1.bf16.msra.mxu1 %v18184_v17  ;;  %v18238_v16 = vld [vmem:[#allocation6 + $0x10e8] ss:$40 sps:$4 sm:$0xff]   ;;  %v18243_v17 = vld [vmem:[#allocation6 + $0x1134] ss:$40 sps:$4 sm:$0xff]  }
 0x1dc   :  { %8605 = vmatprep.subr.bf16.mxu0 %v18189_v22  ;;  %8933 = vmatprep.subr.bf16.mxu1 %v18192_v23  ;;  %v18241_v22 = vld [vmem:[#allocation6 + $0x1130] ss:$40 sps:$4 sm:$0xff]  }
 0x1dd   :  { %v18244_v23 = vld [vmem:[#allocation6 + $0x1138] ss:$40 sps:$4 sm:$0xff]  }
 0x1df   :  { %8606 = vmatpush1.bf16.msra.mxu0 %v18187_v24  ;;  %8934 = vmatpush1.bf16.msra.mxu1 %v18190_v25  ;;  %v18249_v24 = vld [vmem:[#allocation6 + $0x1184] ss:$40 sps:$4 sm:$0xff]  }
 0x1e0   :  { %8607 = vmatprep.subr.bf16.mxu0 %v18195_v29  ;;  %8935 = vmatprep.subr.bf16.mxu1 %v18198_v31  ;;  %v18252_v25 = vld [vmem:[#allocation6 + $0x118c] ss:$40 sps:$4 sm:$0xff]   ;;  %v18258_v31 = vld [vmem:[#allocation6 + $0x11dc] ss:$40 sps:$4 sm:$0xff]  }
 0x1e1   :  { %v18255_v29 = vld [vmem:[#allocation6 + $0x11d4] ss:$40 sps:$4 sm:$0xff]  }
 0x1e3   :  { %8608 = vmatpush1.bf16.msra.mxu0 %v18193_v32  ;;  %8936 = vmatpush1.bf16.msra.mxu1 %v18196_v36  ;;  %v18253_v32 = vld [vmem:[#allocation6 + $0x11d0] ss:$40 sps:$4 sm:$0xff]  }
 0x1e4   :  { %8618 = vmatprep.subr.bf16.mxu0 %v18201_v40  ;;  %8946 = vmatprep.subr.bf16.mxu1 %v18204_v41  ;;  %v18256_v36 = vld [vmem:[#allocation6 + $0x11d8] ss:$40 sps:$4 sm:$0xff]   ;;  %v18262_v41 = vld [vmem:[#allocation6 + $0x1228] ss:$40 sps:$4 sm:$0xff]  }
 0x1e5   :  { %v18259_v40 = vld [vmem:[#allocation6 + $0x1220] ss:$40 sps:$4 sm:$0xff]  }
 0x1e6   :  { %8610 = vmatmul.mubr.bf16.vlgmr.msra.gmra.mrb[16].mxu0 %v20329_v45  ;;  %8938 = vmatmul.mubr.bf16.vlgmr.msra.gmra.mrb[16].mxu1 %v20329_v45 }
 0x1e7   :  { %8619 = vmatpush1.bf16.msra.mxu0 %v18199_v43  ;;  %8947 = vmatpush1.bf16.msra.mxu1 %v18202_v44  ;;  %v18267_v43 = vld [vmem:[#allocation6 + $0x1274] ss:$40 sps:$4 sm:$0xff]  }
 0x1e8   :  { %8620 = vmatprep.subr.bf16.mxu0 %v18207_v47  ;;  %8948 = vmatprep.subr.bf16.mxu1 %v18210_v48  ;;  %v18270_v44 = vld [vmem:[#allocation6 + $0x127c] ss:$40 sps:$4 sm:$0xff]   ;;  %v18268_v47 = vld [vmem:[#allocation6 + $0x1278] ss:$40 sps:$4 sm:$0xff]  }
 0x1e9   :  { %8650 = vmatprep.mubr.bf16.mxu0 %v20331_v51  ;;  %8978 = vmatprep.mubr.bf16.mxu1 %v20331_v51  ;;  %v18273_v48 = vld [vmem:[#allocation6 + $0x12c4] ss:$40 sps:$4 sm:$0xff]  }
 0x1eb   :  { %8621 = vmatpush1.bf16.msra.mxu0 %v18205_v55  ;;  %8949 = vmatpush1.bf16.msra.mxu1 %v18208_v52  ;;  %v18276_v55 = vld [vmem:[#allocation6 + $0x12cc] ss:$40 sps:$4 sm:$0xff]   ;;  %v18271_v52 = vld [vmem:[#allocation6 + $0x12c0] ss:$40 sps:$4 sm:$0xff]  }
 0x1ec   :  { %8622 = vmatprep.subr.bf16.mxu0 %v18213_v53  ;;  %8950 = vmatprep.subr.bf16.mxu1 %v18216_v54  ;;  %v18274_v53 = vld [vmem:[#allocation6 + $0x12c8] ss:$40 sps:$4 sm:$0xff]   ;;  %v20338_v54 = vsub.s32 6, %v20246_v6  ;;  %v18288_v6 = vld [vmem:[#allocation6 + $0x136c] ss:$40 sps:$4 sm:$0xff]  }
 0x1ef   :  { %8623 = vmatpush1.bf16.msra.mxu0 %v18211_v56  ;;  %8951 = vmatpush1.bf16.msra.mxu1 %v18214_v57  ;;  %v20340_v56 = vld [vmem:[#allocation4 + $0x8] sm:$0xff] }
 0x1f0   :  { %8624 = vmatprep.subr.bf16.mxu0 %v18219_v59  ;;  %8952 = vmatprep.subr.bf16.mxu1 %v18222_v60  ;;  %v18279_v57 = vld [vmem:[#allocation6 + $0x1314] ss:$40 sps:$4 sm:$0xff]   ;;  %v18277_v60 = vld [vmem:[#allocation6 + $0x1310] ss:$40 sps:$4 sm:$0xff]  }
 0x1f1   :  { %v18282_v59 = vld [vmem:[#allocation6 + $0x131c] ss:$40 sps:$4 sm:$0xff]  }
 0x1f3   :  { %8625 = vmatpush1.bf16.msra.mxu0 %v18217_v62  ;;  %8953 = vmatpush1.bf16.msra.mxu1 %v18220_v63  ;;  %v18280_v62 = vld [vmem:[#allocation6 + $0x1318] ss:$40 sps:$4 sm:$0xff]   ;;  %v184_v63 = vrot.slane %v20321_v20, %v20338_v54  ;;  %v18291_v20 = vld [vmem:[#allocation6 + $0x13b4] ss:$40 sps:$4 sm:$0xff]  }
 0x1f4   :  { %8626 = vmatprep.subr.bf16.mxu0 %v18225_v8  ;;  %8954 = vmatprep.subr.bf16.mxu1 %v18228_v1  ;;  %v18285_v8 = vld [vmem:[#allocation6 + $0x1364] ss:$40 sps:$4 sm:$0xff]   ;;  %v196_v1 = vrot.slane %v20340_v56, %v20254_v9 }
 0x1f7   :  { %8627 = vmatpush1.bf16.msra.mxu0 %v18223_v18  ;;  %8955 = vmatpush1.bf16.msra.mxu1 %v18226_v2  ;;  %v18283_v18 = vld [vmem:[#allocation6 + $0x1360] ss:$40 sps:$4 sm:$0xff]  }
 0x1f8   :  { %8628 = vmatprep.subr.bf16.mxu0 %v18231_v3  ;;  %8956 = vmatprep.subr.bf16.mxu1 %v18234_v4  ;;  %v18286_v2 = vld [vmem:[#allocation6 + $0x1368] ss:$40 sps:$4 sm:$0xff]   ;;  %v20346_v3 = vpop.f32.mrb[8].mxu1  ;;  %v559_v4 = vadd.f32 %v20299_v50, %v184_v63  ;;  %v18297_v50 = vld [vmem:[#allocation6 + $0x1404] ss:$40 sps:$4 sm:$0xff]  }
 0x1f9   :  { %v18331_v63 = vld [vmem:[#allocation6 + $0x15e0] ss:$40 sps:$4 sm:$0xff]  }
 0x1fb   :  { %8629 = vmatpush1.bf16.msra.mxu0 %v18229_v5  ;;  %8957 = vmatpush1.bf16.msra.mxu1 %v18232_v35  ;;  %v18294_v5 = vld [vmem:[#allocation6 + $0x13bc] ss:$40 sps:$4 sm:$0xff]   ;;  %v20349_v35 = vpop.f32.mrb[9].mxu1 }
 0x1fc   :  { %8630 = vmatprep.subr.bf16.mxu0 %v18237_v11  ;;  %8958 = vmatprep.subr.bf16.mxu1 %v18240_v13  ;;  %v602_v11 = vadd.f32 %v20285_v49, %v196_v1  ;;  %v18289_v13 = vld [vmem:[#allocation6 + $0x13b0] ss:$40 sps:$4 sm:$0xff]   ;;  %v18339_v1 = vld [vmem:[#allocation6 + $0x1634] ss:$40 sps:$4 sm:$0xff]  }
 0x1ff   :  { %8631 = vmatpush1.bf16.msra.mxu0 %v18235_v15  ;;  %8959 = vmatpush1.bf16.msra.mxu1 %v18238_v16  ;;  %v18292_v15 = vld [vmem:[#allocation6 + $0x13b8] ss:$40 sps:$4 sm:$0xff]   ;;  %v644_v16 = vpop.f32.mrb[10].mxu1 }
 0x200   :  { %8632 = vmatprep.subr.bf16.mxu0 %v18243_v17  ;;  %8960 = vmatprep.subr.bf16.mxu1 %v18246_v21  ;;  %v735_v17 = vmax.f32 %v559_v4, 0.0  ;;  %v645_v21 = vpop.f32.mrb[11].mxu1  ;;  %v18340_v4 = vld [vmem:[#allocation6 + $0x1638] ss:$40 sps:$4 sm:$0xff]  }
 0x201   :  { %v18349_v16 = vld [vmem:[#allocation6 + $0x16d0] ss:$40 sps:$4 sm:$0xff]  }
 0x202   :  { %v18352_v21 = vld [vmem:[#allocation6 + $0x16d8] ss:$40 sps:$4 sm:$0xff]  }
 0x203   :  { %8633 = vmatpush1.bf16.msra.mxu0 %v18241_v22  ;;  %8961 = vmatpush1.bf16.msra.mxu1 %v18244_v23  ;;  %v18300_v22 = vld [vmem:[#allocation6 + $0x140c] ss:$40 sps:$4 sm:$0xff]   ;;  %v738_v23 = vmax.f32 %v602_v11, 0.0 }
 0x204   :  { %8634 = vmatprep.subr.bf16.mxu0 %v18249_v24  ;;  %8962 = vmatprep.subr.bf16.mxu1 %v18252_v25  ;;  %v18295_v24 = vld [vmem:[#allocation6 + $0x1400] ss:$40 sps:$4 sm:$0xff]   ;;  %v20352_v25 = vpack.c.bf16 %v735_v17, %v735_v17  ;;  %v18348_v11 = vld [vmem:[#allocation6 + $0x168c] ss:$40 sps:$4 sm:$0xff]   ;;  %v18354_v17 = vld [vmem:[#allocation6 + $0x16dc] ss:$40 sps:$4 sm:$0xff]  }
 0x205   :  { %v20354_v49 = vpack.c.bf16 %v738_v23, %v738_v23  ;;  %v18360_v23 = vld [vmem:[#allocation6 + $0x172c] ss:$40 sps:$4 sm:$0xff]  }
 0x207   :  { %8635 = vmatpush1.bf16.msra.mxu0 %v18247_v26  ;;  %8963 = vmatpush1.bf16.msra.mxu1 %v18250_v27  ;;  %v18298_v26 = vld [vmem:[#allocation6 + $0x1408] ss:$40 sps:$4 sm:$0xff]  }
 0x208   :  { %8636 = vmatprep.subr.bf16.mxu0 %v18255_v29  ;;  %8964 = vmatprep.subr.bf16.mxu1 %v18258_v31  ;;  %v18301_v27 = vld [vmem:[#allocation6 + $0x1450] ss:$40 sps:$4 sm:$0xff]   ;;  %v18303_v29 = vld [vmem:[#allocation6 + $0x1454] ss:$40 sps:$4 sm:$0xff]  }
 0x209   :  { %v18306_v31 = vld [vmem:[#allocation6 + $0x145c] ss:$40 sps:$4 sm:$0xff]  }
 0x20b   :  { %8637 = vmatpush1.bf16.msra.mxu0 %v18253_v32  ;;  %8965 = vmatpush1.bf16.msra.mxu1 %v18256_v36  ;;  %v18304_v32 = vld [vmem:[#allocation6 + $0x1458] ss:$40 sps:$4 sm:$0xff]   ;;  %v18309_v36 = vld [vmem:[#allocation6 + $0x14a4] ss:$40 sps:$4 sm:$0xff]  }
 0x20c   :  { %8638 = vmatprep.subr.bf16.mxu0 %v18261_v38  ;;  %8966 = vmatprep.subr.bf16.mxu1 %v18264_v39  ;;  %v18312_v38 = vld [vmem:[#allocation6 + $0x14ac] ss:$40 sps:$4 sm:$0xff]   ;;  %v18307_v39 = vld [vmem:[#allocation6 + $0x14a0] ss:$40 sps:$4 sm:$0xff]  }
 0x20f   :  { %8639 = vmatpush1.bf16.msra.mxu0 %v18259_v40  ;;  %8967 = vmatpush1.bf16.msra.mxu1 %v18262_v41  ;;  %v18310_v40 = vld [vmem:[#allocation6 + $0x14a8] ss:$40 sps:$4 sm:$0xff]   ;;  %v18315_v41 = vld [vmem:[#allocation6 + $0x14f4] ss:$40 sps:$4 sm:$0xff]  }
 0x210   :  { %8640 = vmatprep.subr.bf16.mxu0 %v18267_v43  ;;  %8968 = vmatprep.subr.bf16.mxu1 %v18270_v44  ;;  %v18313_v43 = vld [vmem:[#allocation6 + $0x14f0] ss:$40 sps:$4 sm:$0xff]   ;;  %v18318_v44 = vld [vmem:[#allocation6 + $0x14fc] ss:$40 sps:$4 sm:$0xff]  }
 0x213   :  { %8641 = vmatpush1.bf16.msra.mxu0 %v18265_v34  ;;  %8969 = vmatpush1.bf16.msra.mxu1 %v18268_v47  ;;  %v18316_v34 = vld [vmem:[#allocation6 + $0x14f8] ss:$40 sps:$4 sm:$0xff]   ;;  %v18321_v47 = vld [vmem:[#allocation6 + $0x1544] ss:$40 sps:$4 sm:$0xff]  }
 0x214   :  { %8642 = vmatprep.subr.bf16.mxu0 %v18273_v48  ;;  %8970 = vmatprep.subr.bf16.mxu1 %v18276_v55  ;;  %v18319_v48 = vld [vmem:[#allocation6 + $0x1540] ss:$40 sps:$4 sm:$0xff]   ;;  %v18324_v55 = vld [vmem:[#allocation6 + $0x154c] ss:$40 sps:$4 sm:$0xff]  }
 0x217   :  { %8643 = vmatpush1.bf16.msra.mxu0 %v18271_v52  ;;  %8971 = vmatpush1.bf16.msra.mxu1 %v18274_v53  ;;  %v18322_v52 = vld [vmem:[#allocation6 + $0x1548] ss:$40 sps:$4 sm:$0xff]   ;;  %v18327_v53 = vld [vmem:[#allocation6 + $0x1594] ss:$40 sps:$4 sm:$0xff]  }
 0x218   :  { %8644 = vmatprep.subr.bf16.mxu0 %v18279_v57  ;;  %8972 = vmatprep.subr.bf16.mxu1 %v18282_v59  ;;  %v18325_v57 = vld [vmem:[#allocation6 + $0x1590] ss:$40 sps:$4 sm:$0xff]   ;;  %v18330_v59 = vld [vmem:[#allocation6 + $0x159c] ss:$40 sps:$4 sm:$0xff]  }
 0x21b   :  { %8645 = vmatpush1.bf16.msra.mxu0 %v18277_v60  ;;  %8973 = vmatpush1.bf16.msra.mxu1 %v18280_v62  ;;  %v18328_v60 = vld [vmem:[#allocation6 + $0x1598] ss:$40 sps:$4 sm:$0xff]   ;;  %v18333_v62 = vld [vmem:[#allocation6 + $0x15e4] ss:$40 sps:$4 sm:$0xff]  }
 0x21c   :  { %8646 = vmatprep.subr.bf16.mxu0 %v18285_v8  ;;  %8974 = vmatprep.subr.bf16.mxu1 %v18288_v6  ;;  %v18336_v8 = vld [vmem:[#allocation6 + $0x15ec] ss:$40 sps:$4 sm:$0xff]   ;;  %v18334_v6 = vld [vmem:[#allocation6 + $0x15e8] ss:$40 sps:$4 sm:$0xff]  }
 0x21f   :  { %8647 = vmatpush1.bf16.msra.mxu0 %v18283_v18  ;;  %8975 = vmatpush1.bf16.msra.mxu1 %v18286_v2  ;;  %v18337_v18 = vld [vmem:[#allocation6 + $0x1630] ss:$40 sps:$4 sm:$0xff]   ;;  %v18342_v2 = vld [vmem:[#allocation6 + $0x163c] ss:$40 sps:$4 sm:$0xff]  }
 0x220   :  { %8648 = vmatprep.subr.bf16.mxu0 %v18291_v20  ;;  %8976 = vmatprep.subr.bf16.mxu1 %v18294_v5  ;;  %v18345_v20 = vld [vmem:[#allocation6 + $0x1684] ss:$40 sps:$4 sm:$0xff]   ;;  %v18343_v5 = vld [vmem:[#allocation6 + $0x1680] ss:$40 sps:$4 sm:$0xff]  }
 0x223   :  { %8649 = vmatpush1.bf16.msra.mxu0 %v18289_v13  ;;  %8977 = vmatpush1.bf16.msra.mxu1 %v18292_v15  ;;  %v18346_v13 = vld [vmem:[#allocation6 + $0x1688] ss:$40 sps:$4 sm:$0xff]   ;;  %v18351_v15 = vld [vmem:[#allocation6 + $0x16d4] ss:$40 sps:$4 sm:$0xff]  }
 0x224   :  { %8659 = vmatprep.subr.bf16.mxu0 %v18297_v50  ;;  %8987 = vmatprep.subr.bf16.mxu1 %v18300_v22  ;;  %v18357_v50 = vld [vmem:[#allocation6 + $0x1724] ss:$40 sps:$4 sm:$0xff]   ;;  %v18355_v22 = vld [vmem:[#allocation6 + $0x1720] ss:$40 sps:$4 sm:$0xff]  }
 0x226   :  { %8651 = vmatmul.mubr.bf16.vlgmr.msra.gmra.mrb[16].mxu0 %v20352_v25  ;;  %8979 = vmatmul.mubr.bf16.vlgmr.msra.gmra.mrb[16].mxu1 %v20352_v25 }
 0x227   :  { %8660 = vmatpush1.bf16.msra.mxu0 %v18295_v24  ;;  %8691 = vmatprep.mubr.bf16.mxu0 %v20354_v49  ;;  %v18358_v24 = vld [vmem:[#allocation6 + $0x1728] ss:$40 sps:$4 sm:$0xff]  }
 0x228   :  { %8988 = vmatpush1.bf16.msra.mxu1 %v18298_v26  ;;  %9019 = vmatprep.mubr.bf16.mxu1 %v20354_v49  ;;  %v18363_v26 = vld [vmem:[#allocation6 + $0x1774] ss:$40 sps:$4 sm:$0xff]  }
 0x229   :  { %8661 = vmatprep.subr.bf16.mxu0 %v18303_v29  ;;  %8989 = vmatprep.subr.bf16.mxu1 %v18306_v31  ;;  %v18366_v29 = vld [vmem:[#allocation6 + $0x177c] ss:$40 sps:$4 sm:$0xff]   ;;  %v18364_v31 = vld [vmem:[#allocation6 + $0x1778] ss:$40 sps:$4 sm:$0xff]  }
 0x22b   :  { %8662 = vmatpush1.bf16.msra.mxu0 %v18301_v27  ;;  %v18361_v27 = vld [vmem:[#allocation6 + $0x1770] ss:$40 sps:$4 sm:$0xff]  }
 0x22c   :  { %8990 = vmatpush1.bf16.msra.mxu1 %v18304_v32  ;;  %8663 = vmatprep.subr.bf16.mxu0 %v18309_v36  ;;  %v18369_v32 = vld [vmem:[#allocation6 + $0x17c4] ss:$40 sps:$4 sm:$0xff]   ;;  %v18367_v36 = vld [vmem:[#allocation6 + $0x17c0] ss:$40 sps:$4 sm:$0xff]  }
 0x22d   :  { %8991 = vmatprep.subr.bf16.mxu1 %v18312_v38  ;;  %v18372_v38 = vld [vmem:[#allocation6 + $0x17cc] ss:$40 sps:$4 sm:$0xff]  }
 0x22f   :  { %8664 = vmatpush1.bf16.msra.mxu0 %v18307_v39  ;;  %v18370_v39 = vld [vmem:[#allocation6 + $0x17c8] ss:$40 sps:$4 sm:$0xff]  }
 0x230   :  { %8992 = vmatpush1.bf16.msra.mxu1 %v18310_v40  ;;  %8665 = vmatprep.subr.bf16.mxu0 %v18315_v41  ;;  %v18375_v40 = vld [vmem:[#allocation6 + $0x1814] ss:$40 sps:$4 sm:$0xff]   ;;  %v18373_v41 = vld [vmem:[#allocation6 + $0x1810] ss:$40 sps:$4 sm:$0xff]  }
 0x231   :  { %8993 = vmatprep.subr.bf16.mxu1 %v18318_v44  ;;  %v192_v44 = vrot.slane %v20340_v56, %v20249_v7 }
 0x233   :  { %8666 = vmatpush1.bf16.msra.mxu0 %v18313_v43  ;;  %v18378_v43 = vld [vmem:[#allocation6 + $0x181c] ss:$40 sps:$4 sm:$0xff]  }
 0x234   :  { %8994 = vmatpush1.bf16.msra.mxu1 %v18316_v34  ;;  %8667 = vmatprep.subr.bf16.mxu0 %v18321_v47  ;;  %v18376_v34 = vld [vmem:[#allocation6 + $0x1818] ss:$40 sps:$4 sm:$0xff]   ;;  %v18381_v47 = vld [vmem:[#allocation6 + $0x1864] ss:$40 sps:$4 sm:$0xff]  }
 0x235   :  { %8995 = vmatprep.subr.bf16.mxu1 %v18324_v55  ;;  %v18384_v55 = vld [vmem:[#allocation6 + $0x186c] ss:$40 sps:$4 sm:$0xff]  }
 0x237   :  { %8668 = vmatpush1.bf16.msra.mxu0 %v18319_v48  ;;  %v18379_v48 = vld [vmem:[#allocation6 + $0x1860] ss:$40 sps:$4 sm:$0xff]  }
 0x238   :  { %8996 = vmatpush1.bf16.msra.mxu1 %v18322_v52  ;;  %8669 = vmatprep.subr.bf16.mxu0 %v18327_v53  ;;  %v204_v52 = vrot.slane %v20340_v56, %v20257_v0  ;;  %v600_v53 = vadd.f32 %v20283_v46, %v192_v44  ;;  %v18391_v56 = vld [vmem:[#allocation6 + $0x1900] ss:$40 sps:$4 sm:$0xff]  }
 0x239   :  { %8997 = vmatprep.subr.bf16.mxu1 %v18330_v59  ;;  %v18387_v59 = vld [vmem:[#allocation6 + $0x18b4] ss:$40 sps:$4 sm:$0xff]   ;;  %v18430_v44 = vld [vmem:[#allocation6 + $0x1ae8] ss:$40 sps:$4 sm:$0xff]  }
 0x23b   :  { %8670 = vmatpush1.bf16.msra.mxu0 %v18325_v57  ;;  %v18382_v57 = vld [vmem:[#allocation6 + $0x1868] ss:$40 sps:$4 sm:$0xff]  }
 0x23c   :  { %8998 = vmatpush1.bf16.msra.mxu1 %v18328_v60  ;;  %8671 = vmatprep.subr.bf16.mxu0 %v18333_v62  ;;  %v18385_v60 = vld [vmem:[#allocation6 + $0x18b0] ss:$40 sps:$4 sm:$0xff]   ;;  %v18390_v62 = vld [vmem:[#allocation6 + $0x18bc] ss:$40 sps:$4 sm:$0xff]  }
 0x23d   :  { %8999 = vmatprep.subr.bf16.mxu1 %v18336_v8  ;;  %v737_v8 = vmax.f32 %v600_v53, 0.0  ;;  %v18439_v53 = vld [vmem:[#allocation6 + $0x1b80] ss:$40 sps:$4 sm:$0xff]  }
 0x23f   :  { %8672 = vmatpush1.bf16.msra.mxu0 %v18331_v63  ;;  %v643_v63 = vadd.f32 %v20349_v35, %v204_v52  ;;  %v18441_v52 = vld [vmem:[#allocation6 + $0x1b84] ss:$40 sps:$4 sm:$0xff]  }
 0x240   :  { %9000 = vmatpush1.bf16.msra.mxu1 %v18334_v6  ;;  %8673 = vmatprep.subr.bf16.mxu0 %v18339_v1  ;;  %v18388_v6 = vld [vmem:[#allocation6 + $0x18b8] ss:$40 sps:$4 sm:$0xff]   ;;  %v18393_v1 = vld [vmem:[#allocation6 + $0x1904] ss:$40 sps:$4 sm:$0xff]  }
 0x241   :  { %9001 = vmatprep.subr.bf16.mxu1 %v18342_v2  ;;  %v740_v46 = vmax.f32 %v643_v63, 0.0  ;;  %v18394_v2 = vld [vmem:[#allocation6 + $0x1908] ss:$40 sps:$4 sm:$0xff]   ;;  %v18450_v63 = vld [vmem:[#allocation6 + $0x1bdc] ss:$40 sps:$4 sm:$0xff]  }
 0x243   :  { %8674 = vmatpush1.bf16.msra.mxu0 %v18337_v18  ;;  %v18396_v18 = vld [vmem:[#allocation6 + $0x190c] ss:$40 sps:$4 sm:$0xff]   ;;  %v20368_v35 = vpack.c.bf16 %v740_v46, %v740_v46 }
 0x244   :  { %9002 = vmatpush1.bf16.msra.mxu1 %v18340_v4  ;;  %8675 = vmatprep.subr.bf16.mxu0 %v18345_v20  ;;  %v18399_v4 = vld [vmem:[#allocation6 + $0x1954] ss:$40 sps:$4 sm:$0xff]  }
 0x245   :  { %9003 = vmatprep.subr.bf16.mxu1 %v18348_v11  ;;  %v18402_v20 = vld [vmem:[#allocation6 + $0x195c] ss:$40 sps:$4 sm:$0xff]   ;;  %v18397_v11 = vld [vmem:[#allocation6 + $0x1950] ss:$40 sps:$4 sm:$0xff]  }
 0x246   :  { %v18459_v46 = vld [vmem:[#allocation6 + $0x1c74] ss:$40 sps:$4 sm:$0xff]  }
 0x247   :  { %8676 = vmatpush1.bf16.msra.mxu0 %v18343_v5  ;;  %v20366_v5 = vpack.c.bf16 %v737_v8, %v737_v8  ;;  %v18448_v8 = vld [vmem:[#allocation6 + $0x1bd8] ss:$40 sps:$4 sm:$0xff]  }
 0x248   :  { %9004 = vmatpush1.bf16.msra.mxu1 %v18346_v13  ;;  %8677 = vmatprep.subr.bf16.mxu0 %v18351_v15  ;;  %v18400_v13 = vld [vmem:[#allocation6 + $0x1958] ss:$40 sps:$4 sm:$0xff]   ;;  %v18405_v15 = vld [vmem:[#allocation6 + $0x19a4] ss:$40 sps:$4 sm:$0xff]  }
 0x249   :  { %9005 = vmatprep.subr.bf16.mxu1 %v18354_v17  ;;  %v18408_v17 = vld [vmem:[#allocation6 + $0x19ac] ss:$40 sps:$4 sm:$0xff]  }
 0x24b   :  { %8678 = vmatpush1.bf16.msra.mxu0 %v18349_v16  ;;  %v18403_v16 = vld [vmem:[#allocation6 + $0x19a0] ss:$40 sps:$4 sm:$0xff]  }
 0x24c   :  { %9006 = vmatpush1.bf16.msra.mxu1 %v18352_v21  ;;  %8679 = vmatprep.subr.bf16.mxu0 %v18357_v50  ;;  %v18406_v21 = vld [vmem:[#allocation6 + $0x19a8] ss:$40 sps:$4 sm:$0xff]   ;;  %v18411_v50 = vld [vmem:[#allocation6 + $0x19f4] ss:$40 sps:$4 sm:$0xff]  }
 0x24d   :  { %9007 = vmatprep.subr.bf16.mxu1 %v18360_v23  ;;  %v18414_v23 = vld [vmem:[#allocation6 + $0x19fc] ss:$40 sps:$4 sm:$0xff]  }
 0x24f   :  { %8680 = vmatpush1.bf16.msra.mxu0 %v18355_v22  ;;  %v18409_v22 = vld [vmem:[#allocation6 + $0x19f0] ss:$40 sps:$4 sm:$0xff]  }
 0x250   :  { %9008 = vmatpush1.bf16.msra.mxu1 %v18358_v24  ;;  %8681 = vmatprep.subr.bf16.mxu0 %v18363_v26  ;;  %v18412_v24 = vld [vmem:[#allocation6 + $0x19f8] ss:$40 sps:$4 sm:$0xff]   ;;  %v18417_v26 = vld [vmem:[#allocation6 + $0x1a44] ss:$40 sps:$4 sm:$0xff]  }
 0x251   :  { %9009 = vmatprep.subr.bf16.mxu1 %v18366_v29  ;;  %v18420_v29 = vld [vmem:[#allocation6 + $0x1a4c] ss:$40 sps:$4 sm:$0xff]  }
 0x253   :  { %8682 = vmatpush1.bf16.msra.mxu0 %v18361_v27  ;;  %v18415_v27 = vld [vmem:[#allocation6 + $0x1a40] ss:$40 sps:$4 sm:$0xff]  }
 0x254   :  { %9010 = vmatpush1.bf16.msra.mxu1 %v18364_v31  ;;  %8683 = vmatprep.subr.bf16.mxu0 %v18369_v32  ;;  %v18418_v31 = vld [vmem:[#allocation6 + $0x1a48] ss:$40 sps:$4 sm:$0xff]   ;;  %v18423_v32 = vld [vmem:[#allocation6 + $0x1a94] ss:$40 sps:$4 sm:$0xff]  }
 0x255   :  { %9011 = vmatprep.subr.bf16.mxu1 %v18372_v38  ;;  %v18426_v38 = vld [vmem:[#allocation6 + $0x1a9c] ss:$40 sps:$4 sm:$0xff]  }
 0x257   :  { %8684 = vmatpush1.bf16.msra.mxu0 %v18367_v36  ;;  %v18421_v36 = vld [vmem:[#allocation6 + $0x1a90] ss:$40 sps:$4 sm:$0xff]  }
 0x258   :  { %9012 = vmatpush1.bf16.msra.mxu1 %v18370_v39  ;;  %8685 = vmatprep.subr.bf16.mxu0 %v18375_v40  ;;  %v18424_v39 = vld [vmem:[#allocation6 + $0x1a98] ss:$40 sps:$4 sm:$0xff]   ;;  %v18429_v40 = vld [vmem:[#allocation6 + $0x1ae4] ss:$40 sps:$4 sm:$0xff]  }
 0x259   :  { %9013 = vmatprep.subr.bf16.mxu1 %v18378_v43  ;;  %v18432_v43 = vld [vmem:[#allocation6 + $0x1aec] ss:$40 sps:$4 sm:$0xff]  }
 0x25b   :  { %8686 = vmatpush1.bf16.msra.mxu0 %v18373_v41  ;;  %v18427_v41 = vld [vmem:[#allocation6 + $0x1ae0] ss:$40 sps:$4 sm:$0xff]  }
 0x25c   :  { %9014 = vmatpush1.bf16.msra.mxu1 %v18376_v34  ;;  %8687 = vmatprep.subr.bf16.mxu0 %v18381_v47  ;;  %v18435_v34 = vld [vmem:[#allocation6 + $0x1b34] ss:$40 sps:$4 sm:$0xff]   ;;  %v18433_v47 = vld [vmem:[#allocation6 + $0x1b30] ss:$40 sps:$4 sm:$0xff]  }
 0x25d   :  { %9015 = vmatprep.subr.bf16.mxu1 %v18384_v55  ;;  %v18436_v55 = vld [vmem:[#allocation6 + $0x1b38] ss:$40 sps:$4 sm:$0xff]  }
 0x25f   :  { %8688 = vmatpush1.bf16.msra.mxu0 %v18379_v48  ;;  %v18438_v48 = vld [vmem:[#allocation6 + $0x1b3c] ss:$40 sps:$4 sm:$0xff]  }
 0x260   :  { %9016 = vmatpush1.bf16.msra.mxu1 %v18382_v57  ;;  %8689 = vmatprep.subr.bf16.mxu0 %v18387_v59  ;;  %v18444_v57 = vld [vmem:[#allocation6 + $0x1b8c] ss:$40 sps:$4 sm:$0xff]   ;;  %v18442_v59 = vld [vmem:[#allocation6 + $0x1b88] ss:$40 sps:$4 sm:$0xff]  }
 0x261   :  { %9017 = vmatprep.subr.bf16.mxu1 %v18390_v62  ;;  %v18445_v62 = vld [vmem:[#allocation6 + $0x1bd0] ss:$40 sps:$4 sm:$0xff]  }
 0x263   :  { %8690 = vmatpush1.bf16.msra.mxu0 %v18385_v60  ;;  %v18447_v60 = vld [vmem:[#allocation6 + $0x1bd4] ss:$40 sps:$4 sm:$0xff]  }
 0x264   :  { %9018 = vmatpush1.bf16.msra.mxu1 %v18388_v6  ;;  %8700 = vmatprep.subr.bf16.mxu0 %v18393_v1  ;;  %v18453_v6 = vld [vmem:[#allocation6 + $0x1c24] ss:$40 sps:$4 sm:$0xff]   ;;  %v18451_v1 = vld [vmem:[#allocation6 + $0x1c20] ss:$40 sps:$4 sm:$0xff]  }
 0x265   :  { %9028 = vmatprep.subr.bf16.mxu1 %v18396_v18  ;;  %v18456_v18 = vld [vmem:[#allocation6 + $0x1c2c] ss:$40 sps:$4 sm:$0xff]  }
 0x266   :  { %8692 = vmatmul.mubr.bf16.vlgmr.msra.gmra.mrb[16].mxu0 %v20366_v5 }
 0x267   :  { %9020 = vmatmul.mubr.bf16.vlgmr.msra.gmra.mrb[16].mxu1 %v20366_v5  ;;  %8701 = vmatpush1.bf16.msra.mxu0 %v18391_v56  ;;  %v18454_v56 = vld [vmem:[#allocation6 + $0x1c28] ss:$40 sps:$4 sm:$0xff]  }
 0x268   :  { %9029 = vmatpush1.bf16.msra.mxu1 %v18394_v2  ;;  %8702 = vmatprep.subr.bf16.mxu0 %v18399_v4  ;;  %v18457_v2 = vld [vmem:[#allocation6 + $0x1c70] ss:$40 sps:$4 sm:$0xff]   ;;  %v18462_v4 = vld [vmem:[#allocation6 + $0x1c7c] ss:$40 sps:$4 sm:$0xff]  }
 0x269   :  { %9030 = vmatprep.subr.bf16.mxu1 %v18402_v20  ;;  %8732 = vmatprep.mubr.bf16.mxu0 %v20368_v35  ;;  %v18460_v20 = vld [vmem:[#allocation6 + $0x1c78] ss:$40 sps:$4 sm:$0xff]  }
 0x26a   :  { %9060 = vmatprep.mubr.bf16.mxu1 %v20368_v35 }
 0x26b   :  { %8703 = vmatpush1.bf16.msra.mxu0 %v18397_v11  ;;  %v18465_v11 = vld [vmem:[#allocation6 + $0x1cc4] ss:$40 sps:$4 sm:$0xff]  }
 0x26c   :  { %9031 = vmatpush1.bf16.msra.mxu1 %v18400_v13  ;;  %8704 = vmatprep.subr.bf16.mxu0 %v18405_v15  ;;  %v18463_v13 = vld [vmem:[#allocation6 + $0x1cc0] ss:$40 sps:$4 sm:$0xff]   ;;  %v18468_v15 = vld [vmem:[#allocation6 + $0x1ccc] ss:$40 sps:$4 sm:$0xff]  }
 0x26d   :  { %9032 = vmatprep.subr.bf16.mxu1 %v18408_v17  ;;  %v18471_v17 = vld [vmem:[#allocation6 + $0x1d14] ss:$40 sps:$4 sm:$0xff]  }
 0x26f   :  { %8705 = vmatpush1.bf16.msra.mxu0 %v18403_v16  ;;  %v18466_v16 = vld [vmem:[#allocation6 + $0x1cc8] ss:$40 sps:$4 sm:$0xff]  }
 0x270   :  { %9033 = vmatpush1.bf16.msra.mxu1 %v18406_v21  ;;  %8706 = vmatprep.subr.bf16.mxu0 %v18411_v50  ;;  %v18469_v21 = vld [vmem:[#allocation6 + $0x1d10] ss:$40 sps:$4 sm:$0xff]   ;;  %v18474_v50 = vld [vmem:[#allocation6 + $0x1d1c] ss:$40 sps:$4 sm:$0xff]  }
 0x271   :  { %9034 = vmatprep.subr.bf16.mxu1 %v18414_v23 }
 0x273   :  { %8707 = vmatpush1.bf16.msra.mxu0 %v18409_v22  ;;  %v20374_v22 = vld [vmem:[#allocation4 + $0x8] sm:$0xff] }
 0x274   :  { %9035 = vmatpush1.bf16.msra.mxu1 %v18412_v24  ;;  %8708 = vmatprep.subr.bf16.mxu0 %v18417_v26  ;;  %v200_v23 = vrot.slane %v20374_v22, %v20292_v37  ;;  %v18472_v24 = vld [vmem:[#allocation6 + $0x1d18] ss:$40 sps:$4 sm:$0xff]   ;;  %v18477_v26 = vld [vmem:[#allocation6 + $0x1d64] ss:$40 sps:$4 sm:$0xff]  }
 0x275   :  { %9036 = vmatprep.subr.bf16.mxu1 %v18420_v29  ;;  %v18480_v29 = vld [vmem:[#allocation6 + $0x1d6c] ss:$40 sps:$4 sm:$0xff]  }
 0x277   :  { %8709 = vmatpush1.bf16.msra.mxu0 %v18415_v27  ;;  %v18475_v27 = vld [vmem:[#allocation6 + $0x1d60] ss:$40 sps:$4 sm:$0xff]  }
 0x278   :  { %9037 = vmatpush1.bf16.msra.mxu1 %v18418_v31  ;;  %8710 = vmatprep.subr.bf16.mxu0 %v18423_v32  ;;  %v20378_v31 = vpop.f32.mrb[12].mxu1  ;;  %v212_v32 = vrot.slane %v20374_v22, %v20295_v42 }
 0x279   :  { %9038 = vmatprep.subr.bf16.mxu1 %v18426_v38  ;;  %v18478_v38 = vld [vmem:[#allocation6 + $0x1d68] ss:$40 sps:$4 sm:$0xff]  }
 0x27b   :  { %8711 = vmatpush1.bf16.msra.mxu0 %v18421_v36  ;;  %v641_v36 = vadd.f32 %v20346_v3, %v200_v23  ;;  %v18489_v3 = vld [vmem:[#allocation6 + $0x1e04] ss:$40 sps:$4 sm:$0xff]  }
 0x27c   :  { %9039 = vmatpush1.bf16.msra.mxu1 %v18424_v39  ;;  %8712 = vmatprep.subr.bf16.mxu0 %v18429_v40  ;;  %v18483_v39 = vld [vmem:[#allocation6 + $0x1db4] ss:$40 sps:$4 sm:$0xff]   ;;  %v20383_v40 = vpop.f32.mrb[13].mxu1 }
 0x27d   :  { %9040 = vmatprep.subr.bf16.mxu1 %v18432_v43  ;;  %v18486_v43 = vld [vmem:[#allocation6 + $0x1dbc] ss:$40 sps:$4 sm:$0xff]  }
 0x27e   :  { %v18522_v23 = vld [vmem:[#allocation6 + $0x1f9c] ss:$40 sps:$4 sm:$0xff]  }
 0x27f   :  { %8713 = vmatpush1.bf16.msra.mxu0 %v18427_v41  ;;  %v18481_v41 = vld [vmem:[#allocation6 + $0x1db0] ss:$40 sps:$4 sm:$0xff]  }
 0x280   :  { %9041 = vmatpush1.bf16.msra.mxu1 %v18430_v44  ;;  %8714 = vmatprep.subr.bf16.mxu0 %v18435_v34  ;;  %v726_v44 = vpop.f32.mrb[14].mxu1  ;;  %v684_v34 = vadd.f32 %v20289_v61, %v212_v32  ;;  %v18526_v32 = vld [vmem:[#allocation6 + $0x1fe8] ss:$40 sps:$4 sm:$0xff]  }
 0x281   :  { %9042 = vmatprep.subr.bf16.mxu1 %v18438_v48  ;;  %v727_v48 = vpop.f32.mrb[15].mxu1  ;;  %v18535_v44 = vld [vmem:[#allocation6 + $0x2080] ss:$40 sps:$4 sm:$0xff]  }
 0x282   :  { %v18543_v48 = vld [vmem:[#allocation6 + $0x20d4] ss:$40 sps:$4 sm:$0xff]  }
 0x283   :  { %8715 = vmatpush1.bf16.msra.mxu0 %v18433_v47  ;;  %v739_v47 = vmax.f32 %v641_v36, 0.0  ;;  %v18531_v36 = vld [vmem:[#allocation6 + $0x2034] ss:$40 sps:$4 sm:$0xff]  }
 0x284   :  { %9043 = vmatpush1.bf16.msra.mxu1 %v18436_v55  ;;  %8716 = vmatprep.subr.bf16.mxu0 %v18441_v52  ;;  %v18484_v55 = vld [vmem:[#allocation6 + $0x1db8] ss:$40 sps:$4 sm:$0xff]  }
 0x285   :  { %9044 = vmatprep.subr.bf16.mxu1 %v18444_v57  ;;  %v18487_v52 = vld [vmem:[#allocation6 + $0x1e00] ss:$40 sps:$4 sm:$0xff]   ;;  %v742_v57 = vmax.f32 %v684_v34, 0.0  ;;  %v18540_v34 = vld [vmem:[#allocation6 + $0x208c] ss:$40 sps:$4 sm:$0xff]  }
 0x287   :  { %8717 = vmatpush1.bf16.msra.mxu0 %v18439_v53  ;;  %v18492_v53 = vld [vmem:[#allocation6 + $0x1e0c] ss:$40 sps:$4 sm:$0xff]   ;;  %v20388_v61 = vpack.c.bf16 %v742_v57, %v742_v57  ;;  %v18547_v57 = vld [vmem:[#allocation6 + $0x2120] ss:$40 sps:$4 sm:$0xff]  }
 0x288   :  { %9045 = vmatpush1.bf16.msra.mxu1 %v18442_v59  ;;  %8718 = vmatprep.subr.bf16.mxu0 %v18447_v60  ;;  %v20386_v59 = vpack.c.bf16 %v739_v47, %v739_v47  ;;  %v18490_v60 = vld [vmem:[#allocation6 + $0x1e08] ss:$40 sps:$4 sm:$0xff]  }
 0x289   :  { %9046 = vmatprep.subr.bf16.mxu1 %v18450_v63  ;;  %v18493_v63 = vld [vmem:[#allocation6 + $0x1e50] ss:$40 sps:$4 sm:$0xff]  }
 0x28a   :  { %v18538_v47 = vld [vmem:[#allocation6 + $0x2088] ss:$40 sps:$4 sm:$0xff]  }
 0x28b   :  { %8719 = vmatpush1.bf16.msra.mxu0 %v18445_v62  ;;  %v18495_v62 = vld [vmem:[#allocation6 + $0x1e54] ss:$40 sps:$4 sm:$0xff]  }
 0x28c   :  { %9047 = vmatpush1.bf16.msra.mxu1 %v18448_v8  ;;  %8720 = vmatprep.subr.bf16.mxu0 %v18453_v6  ;;  %v18498_v8 = vld [vmem:[#allocation6 + $0x1e5c] ss:$40 sps:$4 sm:$0xff]   ;;  %v18496_v6 = vld [vmem:[#allocation6 + $0x1e58] ss:$40 sps:$4 sm:$0xff]  }
 0x28d   :  { %9048 = vmatprep.subr.bf16.mxu1 %v18456_v18  ;;  %v18504_v18 = vld [vmem:[#allocation6 + $0x1eac] ss:$40 sps:$4 sm:$0xff]  }
 0x28f   :  { %8721 = vmatpush1.bf16.msra.mxu0 %v18451_v1  ;;  %v18501_v1 = vld [vmem:[#allocation6 + $0x1ea4] ss:$40 sps:$4 sm:$0xff]  }
 0x290   :  { %9049 = vmatpush1.bf16.msra.mxu1 %v18454_v56  ;;  %8722 = vmatprep.subr.bf16.mxu0 %v18459_v46  ;;  %v18499_v56 = vld [vmem:[#allocation6 + $0x1ea0] ss:$40 sps:$4 sm:$0xff]  }
 0x291   :  { %9050 = vmatprep.subr.bf16.mxu1 %v18462_v4  ;;  %v18502_v46 = vld [vmem:[#allocation6 + $0x1ea8] ss:$40 sps:$4 sm:$0xff]  }
 0x292   :  { %v18505_v4 = vld [vmem:[#allocation6 + $0x1ef0] ss:$40 sps:$4 sm:$0xff]  }
 0x293   :  { %8723 = vmatpush1.bf16.msra.mxu0 %v18457_v2  ;;  %v18507_v2 = vld [vmem:[#allocation6 + $0x1ef4] ss:$40 sps:$4 sm:$0xff]  }
 0x294   :  { %9051 = vmatpush1.bf16.msra.mxu1 %v18460_v20  ;;  %8724 = vmatprep.subr.bf16.mxu0 %v18465_v11  ;;  %v18510_v20 = vld [vmem:[#allocation6 + $0x1efc] ss:$40 sps:$4 sm:$0xff]   ;;  %v18508_v11 = vld [vmem:[#allocation6 + $0x1ef8] ss:$40 sps:$4 sm:$0xff]  }
 0x295   :  { %9052 = vmatprep.subr.bf16.mxu1 %v18468_v15  ;;  %v18511_v15 = vld [vmem:[#allocation6 + $0x1f40] ss:$40 sps:$4 sm:$0xff]  }
 0x297   :  { %8725 = vmatpush1.bf16.msra.mxu0 %v18463_v13  ;;  %v18513_v13 = vld [vmem:[#allocation6 + $0x1f44] ss:$40 sps:$4 sm:$0xff]  }
 0x298   :  { %9053 = vmatpush1.bf16.msra.mxu1 %v18466_v16  ;;  %8726 = vmatprep.subr.bf16.mxu0 %v18471_v17  ;;  %v18516_v16 = vld [vmem:[#allocation6 + $0x1f4c] ss:$40 sps:$4 sm:$0xff]   ;;  %v18514_v17 = vld [vmem:[#allocation6 + $0x1f48] ss:$40 sps:$4 sm:$0xff]  }
 0x299   :  { %9054 = vmatprep.subr.bf16.mxu1 %v18474_v50  ;;  %v18517_v50 = vld [vmem:[#allocation6 + $0x1f90] ss:$40 sps:$4 sm:$0xff]  }
 0x29b   :  { %8727 = vmatpush1.bf16.msra.mxu0 %v18469_v21  ;;  %v18519_v21 = vld [vmem:[#allocation6 + $0x1f94] ss:$40 sps:$4 sm:$0xff]  }
 0x29c   :  { %9055 = vmatpush1.bf16.msra.mxu1 %v18472_v24  ;;  %8728 = vmatprep.subr.bf16.mxu0 %v18477_v26  ;;  %v18520_v24 = vld [vmem:[#allocation6 + $0x1f98] ss:$40 sps:$4 sm:$0xff]   ;;  %v18525_v26 = vld [vmem:[#allocation6 + $0x1fe4] ss:$40 sps:$4 sm:$0xff]  }
 0x29d   :  { %9056 = vmatprep.subr.bf16.mxu1 %v18480_v29  ;;  %v18528_v29 = vld [vmem:[#allocation6 + $0x1fec] ss:$40 sps:$4 sm:$0xff]  }
 0x29f   :  { %8729 = vmatpush1.bf16.msra.mxu0 %v18475_v27  ;;  %v18523_v27 = vld [vmem:[#allocation6 + $0x1fe0] ss:$40 sps:$4 sm:$0xff]  }
 0x2a0   :  { %9057 = vmatpush1.bf16.msra.mxu1 %v18478_v38  ;;  %8730 = vmatprep.subr.bf16.mxu0 %v18483_v39  ;;  %v18529_v38 = vld [vmem:[#allocation6 + $0x2030] ss:$40 sps:$4 sm:$0xff]   ;;  %v18534_v39 = vld [vmem:[#allocation6 + $0x203c] ss:$40 sps:$4 sm:$0xff]  }
 0x2a1   :  { %9058 = vmatprep.subr.bf16.mxu1 %v18486_v43  ;;  %v18537_v43 = vld [vmem:[#allocation6 + $0x2084] ss:$40 sps:$4 sm:$0xff]  }
 0x2a3   :  { %8731 = vmatpush1.bf16.msra.mxu0 %v18481_v41  ;;  %v18532_v41 = vld [vmem:[#allocation6 + $0x2038] ss:$40 sps:$4 sm:$0xff]  }
 0x2a4   :  { %9059 = vmatpush1.bf16.msra.mxu1 %v18484_v55  ;;  %8741 = vmatprep.subr.bf16.mxu0 %v18489_v3  ;;  %v18541_v55 = vld [vmem:[#allocation6 + $0x20d0] ss:$40 sps:$4 sm:$0xff]   ;;  %v18546_v3 = vld [vmem:[#allocation6 + $0x20dc] ss:$40 sps:$4 sm:$0xff]  }
 0x2a5   :  { %9069 = vmatprep.subr.bf16.mxu1 %v18492_v53  ;;  %v18549_v53 = vld [vmem:[#allocation6 + $0x2124] ss:$40 sps:$4 sm:$0xff]  }
 0x2a6   :  { %8733 = vmatmul.mubr.bf16.vlgmr.msra.gmra.mrb[16].mxu0 %v20386_v59 }
 0x2a7   :  { %9061 = vmatmul.mubr.bf16.vlgmr.msra.gmra.mrb[16].mxu1 %v20386_v59  ;;  %8742 = vmatpush1.bf16.msra.mxu0 %v18487_v52  ;;  %v18544_v52 = vld [vmem:[#allocation6 + $0x20d8] ss:$40 sps:$4 sm:$0xff]  }
 0x2a8   :  { %8773 = vmatprep.mubr.bf16.mxu0 %v20388_v61  ;;  %9070 = vmatpush1.bf16.msra.mxu1 %v18490_v60  ;;  %v18552_v60 = vld [vmem:[#allocation6 + $0x212c] ss:$40 sps:$4 sm:$0xff]  }
 0x2a9   :  { %9101 = vmatprep.mubr.bf16.mxu1 %v20388_v61  ;;  %8743 = vmatprep.subr.bf16.mxu0 %v18495_v62  ;;  %v18550_v62 = vld [vmem:[#allocation6 + $0x2128] ss:$40 sps:$4 sm:$0xff]  }
 0x2aa   :  { %9071 = vmatprep.subr.bf16.mxu1 %v18498_v8  ;;  %v18553_v8 = vld [vmem:[#allocation6 + $0x2170] ss:$40 sps:$4 sm:$0xff]  }
 0x2ab   :  { %8744 = vmatpush1.bf16.msra.mxu0 %v18493_v63  ;;  %v18555_v63 = vld [vmem:[#allocation6 + $0x2174] ss:$40 sps:$4 sm:$0xff]  }
 0x2ac   :  { %9072 = vmatpush1.bf16.msra.mxu1 %v18496_v6  ;;  %8745 = vmatprep.subr.bf16.mxu0 %v18501_v1  ;;  %v18558_v6 = vld [vmem:[#allocation6 + $0x217c] ss:$40 sps:$4 sm:$0xff]   ;;  %v18556_v1 = vld [vmem:[#allocation6 + $0x2178] ss:$40 sps:$4 sm:$0xff]  }
 0x2ad   :  { %9073 = vmatprep.subr.bf16.mxu1 %v18504_v18  ;;  %v18561_v18 = vld [vmem:[#allocation6 + $0x21c4] ss:$40 sps:$4 sm:$0xff]  }
 0x2af   :  { %8746 = vmatpush1.bf16.msra.mxu0 %v18499_v56  ;;  %v18559_v56 = vld [vmem:[#allocation6 + $0x21c0] ss:$40 sps:$4 sm:$0xff]  }
 0x2b0   :  { %9074 = vmatpush1.bf16.msra.mxu1 %v18502_v46  ;;  %8747 = vmatprep.subr.bf16.mxu0 %v18507_v2  ;;  %v18564_v46 = vld [vmem:[#allocation6 + $0x21cc] ss:$40 sps:$4 sm:$0xff]   ;;  %v18562_v2 = vld [vmem:[#allocation6 + $0x21c8] ss:$40 sps:$4 sm:$0xff]  }
 0x2b1   :  { %9075 = vmatprep.subr.bf16.mxu1 %v18510_v20  ;;  %v18565_v20 = vld [vmem:[#allocation6 + $0x2210] ss:$40 sps:$4 sm:$0xff]  }
 0x2b3   :  { %8748 = vmatpush1.bf16.msra.mxu0 %v18505_v4  ;;  %v18567_v4 = vld [vmem:[#allocation6 + $0x2214] ss:$40 sps:$4 sm:$0xff]  }
 0x2b4   :  { %9076 = vmatpush1.bf16.msra.mxu1 %v18508_v11  ;;  %8749 = vmatprep.subr.bf16.mxu0 %v18513_v13  ;;  %v18570_v11 = vld [vmem:[#allocation6 + $0x221c] ss:$40 sps:$4 sm:$0xff]   ;;  %v208_v13 = vrot.slane %v20374_v22, %v20316_v12 }
 0x2b5   :  { %9077 = vmatprep.subr.bf16.mxu1 %v18516_v16  ;;  %v18573_v16 = vld [vmem:[#allocation6 + $0x2264] ss:$40 sps:$4 sm:$0xff]  }
 0x2b7   :  { %8750 = vmatpush1.bf16.msra.mxu0 %v18511_v15  ;;  %v18568_v15 = vld [vmem:[#allocation6 + $0x2218] ss:$40 sps:$4 sm:$0xff]  }
 0x2b8   :  { %9078 = vmatpush1.bf16.msra.mxu1 %v18514_v17  ;;  %8751 = vmatprep.subr.bf16.mxu0 %v18519_v21  ;;  %v18571_v17 = vld [vmem:[#allocation6 + $0x2260] ss:$40 sps:$4 sm:$0xff]   ;;  %v18576_v21 = vld [vmem:[#allocation6 + $0x226c] ss:$40 sps:$4 sm:$0xff]  }
 0x2b9   :  { %9079 = vmatprep.subr.bf16.mxu1 %v18522_v23  ;;  %v682_v23 = vadd.f32 %v20287_v58, %v208_v13  ;;  %v18586_v58 = vld [vmem:[#allocation6 + $0x2308] ss:$40 sps:$4 sm:$0xff]  }
 0x2ba   :  { %v18619_v13 = vld [vmem:[#allocation6 + $0x24e0] ss:$40 sps:$4 sm:$0xff]  }
 0x2bb   :  { %8752 = vmatpush1.bf16.msra.mxu0 %v18517_v50  ;;  %v220_v50 = vrot.slane %v20374_v22, %v20319_v19  ;;  %v18583_v22 = vld [vmem:[#allocation6 + $0x2300] ss:$40 sps:$4 sm:$0xff]  }
 0x2bc   :  { %9080 = vmatpush1.bf16.msra.mxu1 %v18520_v24  ;;  %8753 = vmatprep.subr.bf16.mxu0 %v18525_v26  ;;  %v18574_v24 = vld [vmem:[#allocation6 + $0x2268] ss:$40 sps:$4 sm:$0xff]   ;;  %v18579_v26 = vld [vmem:[#allocation6 + $0x22b4] ss:$40 sps:$4 sm:$0xff]  }
 0x2bd   :  { %9081 = vmatprep.subr.bf16.mxu1 %v18528_v29  ;;  %v18582_v29 = vld [vmem:[#allocation6 + $0x22bc] ss:$40 sps:$4 sm:$0xff]  }
 0x2bf   :  { %8754 = vmatpush1.bf16.msra.mxu0 %v18523_v27  ;;  %v18577_v27 = vld [vmem:[#allocation6 + $0x22b0] ss:$40 sps:$4 sm:$0xff]  }
 0x2c0   :  { %9082 = vmatpush1.bf16.msra.mxu1 %v18526_v32  ;;  %8755 = vmatprep.subr.bf16.mxu0 %v18531_v36  ;;  %v725_v32 = vadd.f32 %v20383_v40, %v220_v50  ;;  %v741_v36 = vmax.f32 %v682_v23, 0.0  ;;  %v18630_v50 = vld [vmem:[#allocation6 + $0x253c] ss:$40 sps:$4 sm:$0xff]   ;;  %v18628_v23 = vld [vmem:[#allocation6 + $0x2538] ss:$40 sps:$4 sm:$0xff]  }
 0x2c1   :  { %9083 = vmatprep.subr.bf16.mxu1 %v18534_v39  ;;  %v18585_v39 = vld [vmem:[#allocation6 + $0x2304] ss:$40 sps:$4 sm:$0xff]  }
 0x2c3   :  { %8756 = vmatpush1.bf16.msra.mxu0 %v18529_v38  ;;  %v18580_v38 = vld [vmem:[#allocation6 + $0x22b8] ss:$40 sps:$4 sm:$0xff]  }
 0x2c4   :  { %9084 = vmatpush1.bf16.msra.mxu1 %v18532_v41  ;;  %8757 = vmatprep.subr.bf16.mxu0 %v18537_v43  ;;  %v18588_v41 = vld [vmem:[#allocation6 + $0x230c] ss:$40 sps:$4 sm:$0xff]   ;;  %v744_v43 = vmax.f32 %v725_v32, 0.0 }
 0x2c5   :  { %9085 = vmatprep.subr.bf16.mxu1 %v18540_v34  ;;  %v18594_v34 = vld [vmem:[#allocation6 + $0x235c] ss:$40 sps:$4 sm:$0xff]  }
 0x2c6   :  { %v20402_v40 = vpack.c.bf16 %v744_v43, %v744_v43  ;;  %v18639_v32 = vld [vmem:[#allocation6 + $0x25d4] ss:$40 sps:$4 sm:$0xff]  }
 0x2c7   :  { %8758 = vmatpush1.bf16.msra.mxu0 %v18535_v44  ;;  %v18591_v44 = vld [vmem:[#allocation6 + $0x2354] ss:$40 sps:$4 sm:$0xff]  }
 0x2c8   :  { %9086 = vmatpush1.bf16.msra.mxu1 %v18538_v47  ;;  %8759 = vmatprep.subr.bf16.mxu0 %v18543_v48  ;;  %v20400_v47 = vpack.c.bf16 %v741_v36, %v741_v36  ;;  %v18589_v48 = vld [vmem:[#allocation6 + $0x2350] ss:$40 sps:$4 sm:$0xff]   ;;  %v18648_v43 = vld [vmem:[#allocation6 + $0x262c] ss:$40 sps:$4 sm:$0xff]  }
 0x2c9   :  { %9087 = vmatprep.subr.bf16.mxu1 %v18546_v3  ;;  %v18597_v3 = vld [vmem:[#allocation6 + $0x23a4] ss:$40 sps:$4 sm:$0xff]   ;;  %v18637_v36 = vld [vmem:[#allocation6 + $0x25d0] ss:$40 sps:$4 sm:$0xff]  }
 0x2cb   :  { %8760 = vmatpush1.bf16.msra.mxu0 %v18541_v55  ;;  %v18592_v55 = vld [vmem:[#allocation6 + $0x2358] ss:$40 sps:$4 sm:$0xff]  }
 0x2cc   :  { %9088 = vmatpush1.bf16.msra.mxu1 %v18544_v52  ;;  %8761 = vmatprep.subr.bf16.mxu0 %v18549_v53  ;;  %v18600_v52 = vld [vmem:[#allocation6 + $0x23ac] ss:$40 sps:$4 sm:$0xff]   ;;  %v18595_v53 = vld [vmem:[#allocation6 + $0x23a0] ss:$40 sps:$4 sm:$0xff]  }
 0x2cd   :  { %9089 = vmatprep.subr.bf16.mxu1 %v18552_v60  ;;  %v18603_v60 = vld [vmem:[#allocation6 + $0x23f4] ss:$40 sps:$4 sm:$0xff]  }
 0x2cf   :  { %8762 = vmatpush1.bf16.msra.mxu0 %v18547_v57  ;;  %v18598_v57 = vld [vmem:[#allocation6 + $0x23a8] ss:$40 sps:$4 sm:$0xff]  }
 0x2d0   :  { %9090 = vmatpush1.bf16.msra.mxu1 %v18550_v62  ;;  %8763 = vmatprep.subr.bf16.mxu0 %v18555_v63  ;;  %v18601_v62 = vld [vmem:[#allocation6 + $0x23f0] ss:$40 sps:$4 sm:$0xff]   ;;  %v18606_v63 = vld [vmem:[#allocation6 + $0x23fc] ss:$40 sps:$4 sm:$0xff]  }
 0x2d1   :  { %9091 = vmatprep.subr.bf16.mxu1 %v18558_v6  ;;  %v18609_v6 = vld [vmem:[#allocation6 + $0x2444] ss:$40 sps:$4 sm:$0xff]  }
 0x2d3   :  { %8764 = vmatpush1.bf16.msra.mxu0 %v18553_v8  ;;  %v18604_v8 = vld [vmem:[#allocation6 + $0x23f8] ss:$40 sps:$4 sm:$0xff]  }
 0x2d4   :  { %9092 = vmatpush1.bf16.msra.mxu1 %v18556_v1  ;;  %8765 = vmatprep.subr.bf16.mxu0 %v18561_v18  ;;  %v18607_v1 = vld [vmem:[#allocation6 + $0x2440] ss:$40 sps:$4 sm:$0xff]   ;;  %v18612_v18 = vld [vmem:[#allocation6 + $0x244c] ss:$40 sps:$4 sm:$0xff]  }
 0x2d5   :  { %9093 = vmatprep.subr.bf16.mxu1 %v18564_v46  ;;  %v18615_v46 = vld [vmem:[#allocation6 + $0x2494] ss:$40 sps:$4 sm:$0xff]  }
 0x2d7   :  { %8766 = vmatpush1.bf16.msra.mxu0 %v18559_v56  ;;  %v18610_v56 = vld [vmem:[#allocation6 + $0x2448] ss:$40 sps:$4 sm:$0xff]  }
 0x2d8   :  { %9094 = vmatpush1.bf16.msra.mxu1 %v18562_v2  ;;  %8767 = vmatprep.subr.bf16.mxu0 %v18567_v4  ;;  %v18613_v2 = vld [vmem:[#allocation6 + $0x2490] ss:$40 sps:$4 sm:$0xff]   ;;  %v18618_v4 = vld [vmem:[#allocation6 + $0x249c] ss:$40 sps:$4 sm:$0xff]  }
 0x2d9   :  { %9095 = vmatprep.subr.bf16.mxu1 %v18570_v11  ;;  %v18621_v11 = vld [vmem:[#allocation6 + $0x24e4] ss:$40 sps:$4 sm:$0xff]  }
 0x2db   :  { %8768 = vmatpush1.bf16.msra.mxu0 %v18565_v20  ;;  %v18616_v20 = vld [vmem:[#allocation6 + $0x2498] ss:$40 sps:$4 sm:$0xff]  }
 0x2dc   :  { %9096 = vmatpush1.bf16.msra.mxu1 %v18568_v15  ;;  %8769 = vmatprep.subr.bf16.mxu0 %v18573_v16  ;;  %v18624_v15 = vld [vmem:[#allocation6 + $0x24ec] ss:$40 sps:$4 sm:$0xff]   ;;  %v18622_v16 = vld [vmem:[#allocation6 + $0x24e8] ss:$40 sps:$4 sm:$0xff]  }
 0x2dd   :  { %9097 = vmatprep.subr.bf16.mxu1 %v18576_v21  ;;  %v18625_v21 = vld [vmem:[#allocation6 + $0x2530] ss:$40 sps:$4 sm:$0xff]  }
 0x2df   :  { %8770 = vmatpush1.bf16.msra.mxu0 %v18571_v17  ;;  %v18627_v17 = vld [vmem:[#allocation6 + $0x2534] ss:$40 sps:$4 sm:$0xff]  }
 0x2e0   :  { %9098 = vmatpush1.bf16.msra.mxu1 %v18574_v24  ;;  %8771 = vmatprep.subr.bf16.mxu0 %v18579_v26  ;;  %v18633_v24 = vld [vmem:[#allocation6 + $0x2584] ss:$40 sps:$4 sm:$0xff]   ;;  %v18631_v26 = vld [vmem:[#allocation6 + $0x2580] ss:$40 sps:$4 sm:$0xff]  }
 0x2e1   :  { %9099 = vmatprep.subr.bf16.mxu1 %v18582_v29  ;;  %v18634_v29 = vld [vmem:[#allocation6 + $0x2588] ss:$40 sps:$4 sm:$0xff]  }
 0x2e3   :  { %8772 = vmatpush1.bf16.msra.mxu0 %v18577_v27  ;;  %v18636_v27 = vld [vmem:[#allocation6 + $0x258c] ss:$40 sps:$4 sm:$0xff]  }
 0x2e4   :  { %9100 = vmatpush1.bf16.msra.mxu1 %v18580_v38  ;;  %8782 = vmatprep.subr.bf16.mxu0 %v18585_v39  ;;  %v18642_v38 = vld [vmem:[#allocation6 + $0x25dc] ss:$40 sps:$4 sm:$0xff]   ;;  %v18640_v39 = vld [vmem:[#allocation6 + $0x25d8] ss:$40 sps:$4 sm:$0xff]  }
 0x2e5   :  { %9110 = vmatprep.subr.bf16.mxu1 %v18588_v41  ;;  %v18643_v41 = vld [vmem:[#allocation6 + $0x2620] ss:$40 sps:$4 sm:$0xff]  }
 0x2e6   :  { %8774 = vmatmul.mubr.bf16.vlgmr.msra.gmra.mrb[16].mxu0 %v20400_v47 }
 0x2e7   :  { %9102 = vmatmul.mubr.bf16.vlgmr.msra.gmra.mrb[16].mxu1 %v20400_v47  ;;  %8783 = vmatpush1.bf16.msra.mxu0 %v18583_v22  ;;  %v18645_v22 = vld [vmem:[#allocation6 + $0x2624] ss:$40 sps:$4 sm:$0xff]  }
 0x2e8   :  { %9111 = vmatpush1.bf16.msra.mxu1 %v18586_v58  ;;  %8784 = vmatprep.subr.bf16.mxu0 %v18591_v44  ;;  %v18646_v58 = vld [vmem:[#allocation6 + $0x2628] ss:$40 sps:$4 sm:$0xff]   ;;  %v18651_v44 = vld [vmem:[#allocation6 + $0x2674] ss:$40 sps:$4 sm:$0xff]  }
 0x2e9   :  { %9112 = vmatprep.subr.bf16.mxu1 %v18594_v34  ;;  %8814 = vmatprep.mubr.bf16.mxu0 %v20402_v40  ;;  %v18649_v34 = vld [vmem:[#allocation6 + $0x2670] ss:$40 sps:$4 sm:$0xff]  }
 0x2ea   :  { %9142 = vmatprep.mubr.bf16.mxu1 %v20402_v40 }
 0x2eb   :  { %8785 = vmatpush1.bf16.msra.mxu0 %v18589_v48  ;;  %v18654_v48 = vld [vmem:[#allocation6 + $0x267c] ss:$40 sps:$4 sm:$0xff]  }
 0x2ec   :  { %9113 = vmatpush1.bf16.msra.mxu1 %v18592_v55  ;;  %8786 = vmatprep.subr.bf16.mxu0 %v18597_v3  ;;  %v18652_v55 = vld [vmem:[#allocation6 + $0x2678] ss:$40 sps:$4 sm:$0xff]   ;;  %v18657_v3 = vld [vmem:[#allocation6 + $0x26c4] ss:$40 sps:$4 sm:$0xff]  }
 0x2ed   :  { %9114 = vmatprep.subr.bf16.mxu1 %v18600_v52  ;;  %v18655_v52 = vld [vmem:[#allocation6 + $0x26c0] ss:$40 sps:$4 sm:$0xff]  }
 0x2ef   :  { %8787 = vmatpush1.bf16.msra.mxu0 %v18595_v53  ;;  %v18660_v53 = vld [vmem:[#allocation6 + $0x26cc] ss:$40 sps:$4 sm:$0xff]  }
 0x2f0   :  { %9115 = vmatpush1.bf16.msra.mxu1 %v18598_v57  ;;  %8788 = vmatprep.subr.bf16.mxu0 %v18603_v60  ;;  %v18658_v57 = vld [vmem:[#allocation6 + $0x26c8] ss:$40 sps:$4 sm:$0xff]   ;;  %v18663_v60 = vld [vmem:[#allocation6 + $0x2714] ss:$40 sps:$4 sm:$0xff]  }
 0x2f1   :  { %9116 = vmatprep.subr.bf16.mxu1 %v18606_v63 }
 0x2f3   :  { %8789 = vmatpush1.bf16.msra.mxu0 %v18601_v62  ;;  %v19897_v62 = vld [vmem:[#allocation4 + $0x8] sm:$0xff] }
 0x2f4   :  { %9117 = vmatpush1.bf16.msra.mxu1 %v18604_v8  ;;  %8790 = vmatprep.subr.bf16.mxu0 %v18609_v6  ;;  %v216_v63 = vrot.slane %v19897_v62, %v20338_v54  ;;  %v18661_v8 = vld [vmem:[#allocation6 + $0x2710] ss:$40 sps:$4 sm:$0xff]   ;;  %v18666_v6 = vld [vmem:[#allocation6 + $0x271c] ss:$40 sps:$4 sm:$0xff]  }
 0x2f5   :  { %9118 = vmatprep.subr.bf16.mxu1 %v18612_v18  ;;  %v18715_v62 = vld [vmem:[#allocation6 + $0x1f0] ss:$40 sps:$4 sm:$0xff]  }
 0x2f6   :  { %v723_v18 = vadd.f32 %v20378_v31, %v216_v63  ;;  %v18679_v31 = vld [vmem:[#allocation6 + $0x10] ss:$40 sps:$4 sm:$0xff]   ;;  %v18720_v63 = vld [vmem:[#allocation6 + $0x1fc] ss:$40 sps:$4 sm:$0xff]  }
 0x2f7   :  { %8791 = vmatpush1.bf16.msra.mxu0 %v18607_v1  ;;  %v18664_v1 = vld [vmem:[#allocation6 + $0x2718] ss:$40 sps:$4 sm:$0xff]  }
 0x2f8   :  { %9119 = vmatpush1.bf16.msra.mxu1 %v18610_v56  ;;  %8792 = vmatprep.subr.bf16.mxu0 %v18615_v46  ;;  %v18669_v56 = vld [vmem:[#allocation6 + $0x2764] ss:$40 sps:$4 sm:$0xff]   ;;  %v18667_v46 = vld [vmem:[#allocation6 + $0x2760] ss:$40 sps:$4 sm:$0xff]  }
 0x2f9   :  { %9120 = vmatprep.subr.bf16.mxu1 %v18618_v4  ;;  %v743_v4 = vmax.f32 %v723_v18, 0.0  ;;  %v18726_v18 = vld [vmem:[#allocation6 + $0x24c] ss:$40 sps:$4 sm:$0xff]  }
 0x2fb   :  { %8793 = vmatpush1.bf16.msra.mxu0 %v18613_v2  ;;  %v18672_v2 = vld [vmem:[#allocation6 + $0x276c] ss:$40 sps:$4 sm:$0xff]  }
 0x2fc   :  { %9121 = vmatpush1.bf16.msra.mxu1 %v18616_v20  ;;  %8794 = vmatprep.subr.bf16.mxu0 %v18621_v11  ;;  %v18670_v20 = vld [vmem:[#allocation6 + $0x2768] ss:$40 sps:$4 sm:$0xff]   ;;  %v18675_v11 = vld [vmem:[#allocation6 + $0x27b4] ss:$40 sps:$4 sm:$0xff]  }
 0x2fd   :  { %9122 = vmatprep.subr.bf16.mxu1 %v18624_v15  ;;  %v18678_v15 = vld [vmem:[#allocation6 + $0x27bc] ss:$40 sps:$4 sm:$0xff]  }
 0x2ff   :  { %8795 = vmatpush1.bf16.msra.mxu0 %v18619_v13  ;;  %v18673_v13 = vld [vmem:[#allocation6 + $0x27b0] ss:$40 sps:$4 sm:$0xff]  }
 0x300   :  { %9123 = vmatpush1.bf16.msra.mxu1 %v18622_v16  ;;  %8796 = vmatprep.subr.bf16.mxu0 %v18627_v17  ;;  %v18676_v16 = vld [vmem:[#allocation6 + $0x27b8] ss:$40 sps:$4 sm:$0xff]   ;;  %v18681_v17 = vld [vmem:[#allocation6 + $0x14] ss:$40 sps:$4 sm:$0xff]  }
 0x301   :  { %9124 = vmatprep.subr.bf16.mxu1 %v18630_v50  ;;  %v20410_v50 = vpack.c.bf16 %v743_v4, %v743_v4  ;;  %v18727_v4 = vld [vmem:[#allocation6 + $0x290] ss:$40 sps:$4 sm:$0xff]  }
 0x303   :  { %8797 = vmatpush1.bf16.msra.mxu0 %v18625_v21  ;;  %v18684_v21 = vld [vmem:[#allocation6 + $0x1c] ss:$40 sps:$4 sm:$0xff]  }
 0x304   :  { %9125 = vmatpush1.bf16.msra.mxu1 %v18628_v23  ;;  %8798 = vmatprep.subr.bf16.mxu0 %v18633_v24  ;;  %v18682_v23 = vld [vmem:[#allocation6 + $0x18] ss:$40 sps:$4 sm:$0xff]   ;;  %v18687_v24 = vld [vmem:[#allocation6 + $0x64] ss:$40 sps:$4 sm:$0xff]  }
 0x305   :  { %9126 = vmatprep.subr.bf16.mxu1 %v18636_v27  ;;  %v18688_v27 = vld [vmem:[#allocation6 + $0x68] ss:$40 sps:$4 sm:$0xff]  }
 0x307   :  { %8799 = vmatpush1.bf16.msra.mxu0 %v18631_v26  ;;  %v18685_v26 = vld [vmem:[#allocation6 + $0x60] ss:$40 sps:$4 sm:$0xff]  }
 0x308   :  { %9127 = vmatpush1.bf16.msra.mxu1 %v18634_v29  ;;  %8800 = vmatprep.subr.bf16.mxu0 %v18639_v32  ;;  %v18690_v29 = vld [vmem:[#allocation6 + $0x6c] ss:$40 sps:$4 sm:$0xff]  }
 0x309   :  { %9128 = vmatprep.subr.bf16.mxu1 %v18642_v38  ;;  %v18693_v32 = vld [vmem:[#allocation6 + $0xb4] ss:$40 sps:$4 sm:$0xff]   ;;  %v18691_v38 = vld [vmem:[#allocation6 + $0xb0] ss:$40 sps:$4 sm:$0xff]  }
 0x30b   :  { %8801 = vmatpush1.bf16.msra.mxu0 %v18637_v36  ;;  %v18696_v36 = vld [vmem:[#allocation6 + $0xbc] ss:$40 sps:$4 sm:$0xff]  }
 0x30c   :  { %9129 = vmatpush1.bf16.msra.mxu1 %v18640_v39  ;;  %8802 = vmatprep.subr.bf16.mxu0 %v18645_v22  ;;  %v18694_v39 = vld [vmem:[#allocation6 + $0xb8] ss:$40 sps:$4 sm:$0xff]   ;;  %v18699_v22 = vld [vmem:[#allocation6 + $0x104] ss:$40 sps:$4 sm:$0xff]  }
 0x30d   :  { %9130 = vmatprep.subr.bf16.mxu1 %v18648_v43  ;;  %v18702_v43 = vld [vmem:[#allocation6 + $0x10c] ss:$40 sps:$4 sm:$0xff]  }
 0x30f   :  { %8803 = vmatpush1.bf16.msra.mxu0 %v18643_v41  ;;  %v18697_v41 = vld [vmem:[#allocation6 + $0x100] ss:$40 sps:$4 sm:$0xff]  }
 0x310   :  { %9131 = vmatpush1.bf16.msra.mxu1 %v18646_v58  ;;  %8804 = vmatprep.subr.bf16.mxu0 %v18651_v44  ;;  %v18700_v58 = vld [vmem:[#allocation6 + $0x108] ss:$40 sps:$4 sm:$0xff]   ;;  %v18705_v44 = vld [vmem:[#allocation6 + $0x154] ss:$40 sps:$4 sm:$0xff]  }
 0x311   :  { %9132 = vmatprep.subr.bf16.mxu1 %v18654_v48  ;;  %v18708_v48 = vld [vmem:[#allocation6 + $0x15c] ss:$40 sps:$4 sm:$0xff]  }
 0x313   :  { %8805 = vmatpush1.bf16.msra.mxu0 %v18649_v34  ;;  %v18703_v34 = vld [vmem:[#allocation6 + $0x150] ss:$40 sps:$4 sm:$0xff]  }
 0x314   :  { %9133 = vmatpush1.bf16.msra.mxu1 %v18652_v55  ;;  %8806 = vmatprep.subr.bf16.mxu0 %v18657_v3  ;;  %v18706_v55 = vld [vmem:[#allocation6 + $0x158] ss:$40 sps:$4 sm:$0xff]   ;;  %v18711_v3 = vld [vmem:[#allocation6 + $0x1a4] ss:$40 sps:$4 sm:$0xff]  }
 0x315   :  { %9134 = vmatprep.subr.bf16.mxu1 %v18660_v53  ;;  %v18714_v53 = vld [vmem:[#allocation6 + $0x1ac] ss:$40 sps:$4 sm:$0xff]  }
 0x317   :  { %8807 = vmatpush1.bf16.msra.mxu0 %v18655_v52  ;;  %v18709_v52 = vld [vmem:[#allocation6 + $0x1a0] ss:$40 sps:$4 sm:$0xff]  }
 0x318   :  { %9135 = vmatpush1.bf16.msra.mxu1 %v18658_v57  ;;  %8808 = vmatprep.subr.bf16.mxu0 %v18663_v60  ;;  %v18712_v57 = vld [vmem:[#allocation6 + $0x1a8] ss:$40 sps:$4 sm:$0xff]   ;;  %v18717_v60 = vld [vmem:[#allocation6 + $0x1f4] ss:$40 sps:$4 sm:$0xff]  }
 0x319   :  { %9136 = vmatprep.subr.bf16.mxu1 %v18666_v6  ;;  %v18723_v6 = vld [vmem:[#allocation6 + $0x244] ss:$40 sps:$4 sm:$0xff]  }
 0x31b   :  { %8809 = vmatpush1.bf16.msra.mxu0 %v18661_v8  ;;  %v18718_v8 = vld [vmem:[#allocation6 + $0x1f8] ss:$40 sps:$4 sm:$0xff]  }
 0x31c   :  { %9137 = vmatpush1.bf16.msra.mxu1 %v18664_v1  ;;  %8810 = vmatprep.subr.bf16.mxu0 %v18669_v56  ;;  %v18721_v1 = vld [vmem:[#allocation6 + $0x240] ss:$40 sps:$4 sm:$0xff]  }
 0x31d   :  { %9138 = vmatprep.subr.bf16.mxu1 %v18672_v2  ;;  %v18724_v56 = vld [vmem:[#allocation6 + $0x248] ss:$40 sps:$4 sm:$0xff]   ;;  %v18732_v2 = vld [vmem:[#allocation6 + $0x29c] ss:$40 sps:$4 sm:$0xff]  }
 0x31f   :  { %8811 = vmatpush1.bf16.msra.mxu0 %v18667_v46  ;;  %v18729_v46 = vld [vmem:[#allocation6 + $0x294] ss:$40 sps:$4 sm:$0xff]  }
 0x320   :  { %9139 = vmatpush1.bf16.msra.mxu1 %v18670_v20  ;;  %8812 = vmatprep.subr.bf16.mxu0 %v18675_v11  ;;  %v18730_v20 = vld [vmem:[#allocation6 + $0x298] ss:$40 sps:$4 sm:$0xff]   ;;  %v18735_v11 = vld [vmem:[#allocation6 + $0x2e4] ss:$40 sps:$4 sm:$0xff]  }
 0x321   :  { %9140 = vmatprep.subr.bf16.mxu1 %v18678_v15  ;;  %v18733_v15 = vld [vmem:[#allocation6 + $0x2e0] ss:$40 sps:$4 sm:$0xff]  }
 0x323   :  { %8813 = vmatpush1.bf16.msra.mxu0 %v18673_v13  ;;  %v18738_v13 = vld [vmem:[#allocation6 + $0x2ec] ss:$40 sps:$4 sm:$0xff]  }
 0x324   :  { %9141 = vmatpush1.bf16.msra.mxu1 %v18676_v16  ;;  %9151 = vmatprep.subr.bf16.mxu0 %v18681_v17  ;;  %v18736_v16 = vld [vmem:[#allocation6 + $0x2e8] ss:$40 sps:$4 sm:$0xff]   ;;  %v18741_v17 = vld [vmem:[#allocation6 + $0x334] ss:$40 sps:$4 sm:$0xff]  }
 0x325   :  { %9479 = vmatprep.subr.bf16.mxu1 %v18684_v21  ;;  %v18744_v21 = vld [vmem:[#allocation6 + $0x33c] ss:$40 sps:$4 sm:$0xff]  }
 0x326   :  { %8815 = vmatmul.mubr.bf16.vlgmr.msra.gmra.mrb[16].mxu0 %v20410_v50 }
 0x327   :  { %9143 = vmatmul.mubr.bf16.vlgmr.msra.gmra.mrb[16].mxu1 %v20410_v50  ;;  %9152 = vmatpush1.bf16.msra.mxu0 %v18679_v31  ;;  %v18739_v31 = vld [vmem:[#allocation6 + $0x330] ss:$40 sps:$4 sm:$0xff]  }
 0x328   :  { %9183 = vmatprep.mubr.bf16.mxu0 %v20267_v28  ;;  %9480 = vmatpush1.bf16.msra.mxu1 %v18682_v23  ;;  %v18742_v23 = vld [vmem:[#allocation6 + $0x338] ss:$40 sps:$4 sm:$0xff]  }
 0x329   :  { %9511 = vmatprep.mubr.bf16.mxu1 %v20267_v28  ;;  %9153 = vmatprep.subr.bf16.mxu0 %v18687_v24  ;;  %v18747_v24 = vld [vmem:[#allocation6 + $0x384] ss:$40 sps:$4 sm:$0xff]  }
 0x32a   :  { %9481 = vmatprep.subr.bf16.mxu1 %v18690_v29  ;;  %v18748_v29 = vld [vmem:[#allocation6 + $0x388] ss:$40 sps:$4 sm:$0xff]  }
 0x32b   :  { %9154 = vmatpush1.bf16.msra.mxu0 %v18685_v26  ;;  %v18750_v26 = vld [vmem:[#allocation6 + $0x38c] ss:$40 sps:$4 sm:$0xff]  }
 0x32c   :  { %9482 = vmatpush1.bf16.msra.mxu1 %v18688_v27  ;;  %9155 = vmatprep.subr.bf16.mxu0 %v18693_v32  ;;  %v18745_v27 = vld [vmem:[#allocation6 + $0x380] ss:$40 sps:$4 sm:$0xff]   ;;  %v18753_v32 = vld [vmem:[#allocation6 + $0x3d4] ss:$40 sps:$4 sm:$0xff]  }
 0x32d   :  { %9483 = vmatprep.subr.bf16.mxu1 %v18696_v36  ;;  %v18756_v36 = vld [vmem:[#allocation6 + $0x3dc] ss:$40 sps:$4 sm:$0xff]  }
 0x32f   :  { %9156 = vmatpush1.bf16.msra.mxu0 %v18691_v38  ;;  %v18751_v38 = vld [vmem:[#allocation6 + $0x3d0] ss:$40 sps:$4 sm:$0xff]  }
 0x330   :  { %9484 = vmatpush1.bf16.msra.mxu1 %v18694_v39  ;;  %9157 = vmatprep.subr.bf16.mxu0 %v18699_v22  ;;  %v18754_v39 = vld [vmem:[#allocation6 + $0x3d8] ss:$40 sps:$4 sm:$0xff]   ;;  %v18759_v22 = vld [vmem:[#allocation6 + $0x424] ss:$40 sps:$4 sm:$0xff]  }
 0x331   :  { %9485 = vmatprep.subr.bf16.mxu1 %v18702_v43  ;;  %v18757_v43 = vld [vmem:[#allocation6 + $0x420] ss:$40 sps:$4 sm:$0xff]  }
 0x333   :  { %9158 = vmatpush1.bf16.msra.mxu0 %v18697_v41  ;;  %v18762_v41 = vld [vmem:[#allocation6 + $0x42c] ss:$40 sps:$4 sm:$0xff]  }
 0x334   :  { %9486 = vmatpush1.bf16.msra.mxu1 %v18700_v58  ;;  %9159 = vmatprep.subr.bf16.mxu0 %v18705_v44  ;;  %v18760_v58 = vld [vmem:[#allocation6 + $0x428] ss:$40 sps:$4 sm:$0xff]   ;;  %v18765_v44 = vld [vmem:[#allocation6 + $0x474] ss:$40 sps:$4 sm:$0xff]  }
 0x335   :  { %9487 = vmatprep.subr.bf16.mxu1 %v18708_v48  ;;  %v18763_v48 = vld [vmem:[#allocation6 + $0x470] ss:$40 sps:$4 sm:$0xff]  }
 0x337   :  { %9160 = vmatpush1.bf16.msra.mxu0 %v18703_v34  ;;  %v18768_v34 = vld [vmem:[#allocation6 + $0x47c] ss:$40 sps:$4 sm:$0xff]  }
 0x338   :  { %9488 = vmatpush1.bf16.msra.mxu1 %v18706_v55  ;;  %9161 = vmatprep.subr.bf16.mxu0 %v18711_v3  ;;  %v18766_v55 = vld [vmem:[#allocation6 + $0x478] ss:$40 sps:$4 sm:$0xff]   ;;  %v18771_v3 = vld [vmem:[#allocation6 + $0x4c4] ss:$40 sps:$4 sm:$0xff]  }
 0x339   :  { %9489 = vmatprep.subr.bf16.mxu1 %v18714_v53  ;;  %v18769_v53 = vld [vmem:[#allocation6 + $0x4c0] ss:$40 sps:$4 sm:$0xff]  }
 0x33b   :  { %9162 = vmatpush1.bf16.msra.mxu0 %v18709_v52  ;;  %v18774_v52 = vld [vmem:[#allocation6 + $0x4cc] ss:$40 sps:$4 sm:$0xff]  }
 0x33c   :  { %9490 = vmatpush1.bf16.msra.mxu1 %v18712_v57  ;;  %9163 = vmatprep.subr.bf16.mxu0 %v18717_v60  ;;  %v18772_v57 = vld [vmem:[#allocation6 + $0x4c8] ss:$40 sps:$4 sm:$0xff]   ;;  %v18777_v60 = vld [vmem:[#allocation6 + $0x514] ss:$40 sps:$4 sm:$0xff]  }
 0x33d   :  { %9491 = vmatprep.subr.bf16.mxu1 %v18720_v63  ;;  %v18775_v63 = vld [vmem:[#allocation6 + $0x510] ss:$40 sps:$4 sm:$0xff]  }
 0x33f   :  { %9164 = vmatpush1.bf16.msra.mxu0 %v18715_v62  ;;  %v18780_v62 = vld [vmem:[#allocation6 + $0x51c] ss:$40 sps:$4 sm:$0xff]  }
 0x340   :  { %9492 = vmatpush1.bf16.msra.mxu1 %v18718_v8  ;;  %9165 = vmatprep.subr.bf16.mxu0 %v18723_v6  ;;  %v18778_v8 = vld [vmem:[#allocation6 + $0x518] ss:$40 sps:$4 sm:$0xff]   ;;  %v18783_v6 = vld [vmem:[#allocation6 + $0x564] ss:$40 sps:$4 sm:$0xff]  }
 0x341   :  { %9493 = vmatprep.subr.bf16.mxu1 %v18726_v18  ;;  %v18781_v18 = vld [vmem:[#allocation6 + $0x560] ss:$40 sps:$4 sm:$0xff]  }
 0x343   :  { %9166 = vmatpush1.bf16.msra.mxu0 %v18721_v1  ;;  %v18786_v1 = vld [vmem:[#allocation6 + $0x56c] ss:$40 sps:$4 sm:$0xff]  }
 0x344   :  { %9494 = vmatpush1.bf16.msra.mxu1 %v18724_v56  ;;  %9167 = vmatprep.subr.bf16.mxu0 %v18729_v46  ;;  %v18784_v56 = vld [vmem:[#allocation6 + $0x568] ss:$40 sps:$4 sm:$0xff]   ;;  %v18789_v46 = vld [vmem:[#allocation6 + $0x5b4] ss:$40 sps:$4 sm:$0xff]  }
 0x345   :  { %9495 = vmatprep.subr.bf16.mxu1 %v18732_v2  ;;  %v18792_v2 = vld [vmem:[#allocation6 + $0x5bc] ss:$40 sps:$4 sm:$0xff]  }
 0x347   :  { %9168 = vmatpush1.bf16.msra.mxu0 %v18727_v4  ;;  %v18787_v4 = vld [vmem:[#allocation6 + $0x5b0] ss:$40 sps:$4 sm:$0xff]  }
 0x348   :  { %9496 = vmatpush1.bf16.msra.mxu1 %v18730_v20  ;;  %9169 = vmatprep.subr.bf16.mxu0 %v18735_v11  ;;  %v18790_v20 = vld [vmem:[#allocation6 + $0x5b8] ss:$40 sps:$4 sm:$0xff]   ;;  %v18795_v11 = vld [vmem:[#allocation6 + $0x604] ss:$40 sps:$4 sm:$0xff]  }
 0x349   :  { %9497 = vmatprep.subr.bf16.mxu1 %v18738_v13  ;;  %v18798_v13 = vld [vmem:[#allocation6 + $0x60c] ss:$40 sps:$4 sm:$0xff]  }
 0x34b   :  { %9170 = vmatpush1.bf16.msra.mxu0 %v18733_v15  ;;  %v18793_v15 = vld [vmem:[#allocation6 + $0x600] ss:$40 sps:$4 sm:$0xff]  }
 0x34c   :  { %9498 = vmatpush1.bf16.msra.mxu1 %v18736_v16  ;;  %9171 = vmatprep.subr.bf16.mxu0 %v18741_v17  ;;  %v18796_v16 = vld [vmem:[#allocation6 + $0x608] ss:$40 sps:$4 sm:$0xff]   ;;  %v18801_v17 = vld [vmem:[#allocation6 + $0x654] ss:$40 sps:$4 sm:$0xff]  }
 0x34d   :  { %9499 = vmatprep.subr.bf16.mxu1 %v18744_v21  ;;  %v18804_v21 = vld [vmem:[#allocation6 + $0x65c] ss:$40 sps:$4 sm:$0xff]  }
 0x34f   :  { %9172 = vmatpush1.bf16.msra.mxu0 %v18739_v31  ;;  %v18799_v31 = vld [vmem:[#allocation6 + $0x650] ss:$40 sps:$4 sm:$0xff]  }
 0x350   :  { %9500 = vmatpush1.bf16.msra.mxu1 %v18742_v23  ;;  %9173 = vmatprep.subr.bf16.mxu0 %v18747_v24  ;;  %v18802_v23 = vld [vmem:[#allocation6 + $0x658] ss:$40 sps:$4 sm:$0xff]   ;;  %v18807_v24 = vld [vmem:[#allocation6 + $0x6a4] ss:$40 sps:$4 sm:$0xff]  }
 0x351   :  { %9501 = vmatprep.subr.bf16.mxu1 %v18750_v26  ;;  %v18810_v26 = vld [vmem:[#allocation6 + $0x6ac] ss:$40 sps:$4 sm:$0xff]  }
 0x353   :  { %9174 = vmatpush1.bf16.msra.mxu0 %v18745_v27  ;;  %v18805_v27 = vld [vmem:[#allocation6 + $0x6a0] ss:$40 sps:$4 sm:$0xff]  }
 0x354   :  { %9502 = vmatpush1.bf16.msra.mxu1 %v18748_v29  ;;  %9175 = vmatprep.subr.bf16.mxu0 %v18753_v32  ;;  %v18808_v29 = vld [vmem:[#allocation6 + $0x6a8] ss:$40 sps:$4 sm:$0xff]   ;;  %v18813_v32 = vld [vmem:[#allocation6 + $0x6f4] ss:$40 sps:$4 sm:$0xff]  }
 0x355   :  { %9503 = vmatprep.subr.bf16.mxu1 %v18756_v36  ;;  %v18816_v36 = vld [vmem:[#allocation6 + $0x6fc] ss:$40 sps:$4 sm:$0xff]  }
 0x357   :  { %9176 = vmatpush1.bf16.msra.mxu0 %v18751_v38  ;;  %v18811_v38 = vld [vmem:[#allocation6 + $0x6f0] ss:$40 sps:$4 sm:$0xff]  }
 0x358   :  { %9504 = vmatpush1.bf16.msra.mxu1 %v18754_v39  ;;  %9177 = vmatprep.subr.bf16.mxu0 %v18759_v22  ;;  %v18814_v39 = vld [vmem:[#allocation6 + $0x6f8] ss:$40 sps:$4 sm:$0xff]   ;;  %v18819_v22 = vld [vmem:[#allocation6 + $0x744] ss:$40 sps:$4 sm:$0xff]  }
 0x359   :  { %9505 = vmatprep.subr.bf16.mxu1 %v18762_v41  ;;  %v18822_v41 = vld [vmem:[#allocation6 + $0x74c] ss:$40 sps:$4 sm:$0xff]  }
 0x35b   :  { %9178 = vmatpush1.bf16.msra.mxu0 %v18757_v43  ;;  %v18817_v43 = vld [vmem:[#allocation6 + $0x740] ss:$40 sps:$4 sm:$0xff]  }
 0x35c   :  { %9506 = vmatpush1.bf16.msra.mxu1 %v18760_v58  ;;  %9179 = vmatprep.subr.bf16.mxu0 %v18765_v44  ;;  %v18820_v58 = vld [vmem:[#allocation6 + $0x748] ss:$40 sps:$4 sm:$0xff]   ;;  %v18825_v44 = vld [vmem:[#allocation6 + $0x794] ss:$40 sps:$4 sm:$0xff]  }
 0x35d   :  { %9507 = vmatprep.subr.bf16.mxu1 %v18768_v34  ;;  %v18828_v34 = vld [vmem:[#allocation6 + $0x79c] ss:$40 sps:$4 sm:$0xff]  }
 0x35f   :  { %9180 = vmatpush1.bf16.msra.mxu0 %v18763_v48  ;;  %v18823_v48 = vld [vmem:[#allocation6 + $0x790] ss:$40 sps:$4 sm:$0xff]  }
 0x360   :  { %9508 = vmatpush1.bf16.msra.mxu1 %v18766_v55  ;;  %9181 = vmatprep.subr.bf16.mxu0 %v18771_v3  ;;  %v18826_v55 = vld [vmem:[#allocation6 + $0x798] ss:$40 sps:$4 sm:$0xff]   ;;  %v18831_v3 = vld [vmem:[#allocation6 + $0x7e4] ss:$40 sps:$4 sm:$0xff]  }
 0x361   :  { %9509 = vmatprep.subr.bf16.mxu1 %v18774_v52  ;;  %v18834_v52 = vld [vmem:[#allocation6 + $0x7ec] ss:$40 sps:$4 sm:$0xff]  }
 0x363   :  { %9182 = vmatpush1.bf16.msra.mxu0 %v18769_v53  ;;  %v18829_v53 = vld [vmem:[#allocation6 + $0x7e0] ss:$40 sps:$4 sm:$0xff]  }
 0x364   :  { %9510 = vmatpush1.bf16.msra.mxu1 %v18772_v57  ;;  %9192 = vmatprep.subr.bf16.mxu0 %v18777_v60  ;;  %v18832_v57 = vld [vmem:[#allocation6 + $0x7e8] ss:$40 sps:$4 sm:$0xff]   ;;  %v18837_v60 = vld [vmem:[#allocation6 + $0x834] ss:$40 sps:$4 sm:$0xff]  }
 0x365   :  { %9520 = vmatprep.subr.bf16.mxu1 %v18780_v62  ;;  %v18840_v62 = vld [vmem:[#allocation6 + $0x83c] ss:$40 sps:$4 sm:$0xff]  }
 0x366   :  { %9184 = vmatmul.mubr.bf16.vlgmr.msra.gmra.mrb[20].mxu0 %v20269_v30 }
 0x367   :  { %9512 = vmatmul.mubr.bf16.vlgmr.msra.gmra.mrb[20].mxu1 %v20269_v30  ;;  %9193 = vmatpush1.bf16.msra.mxu0 %v18775_v63  ;;  %v18835_v63 = vld [vmem:[#allocation6 + $0x830] ss:$40 sps:$4 sm:$0xff]  }
 0x368   :  { %9224 = vmatprep.mubr.bf16.mxu0 %v20273_v33  ;;  %9521 = vmatpush1.bf16.msra.mxu1 %v18778_v8  ;;  %v18838_v8 = vld [vmem:[#allocation6 + $0x838] ss:$40 sps:$4 sm:$0xff]  }
 0x369   :  { %9552 = vmatprep.mubr.bf16.mxu1 %v20273_v33  ;;  %9194 = vmatprep.subr.bf16.mxu0 %v18783_v6  ;;  %v18843_v6 = vld [vmem:[#allocation6 + $0x884] ss:$40 sps:$4 sm:$0xff]  }
 0x36a   :  { %9522 = vmatprep.subr.bf16.mxu1 %v18786_v1  ;;  %v18846_v1 = vld [vmem:[#allocation6 + $0x88c] ss:$40 sps:$4 sm:$0xff]  }
 0x36b   :  { %9195 = vmatpush1.bf16.msra.mxu0 %v18781_v18  ;;  %v18841_v18 = vld [vmem:[#allocation6 + $0x880] ss:$40 sps:$4 sm:$0xff]  }
 0x36c   :  { %9523 = vmatpush1.bf16.msra.mxu1 %v18784_v56  ;;  %9196 = vmatprep.subr.bf16.mxu0 %v18789_v46  ;;  %v18844_v56 = vld [vmem:[#allocation6 + $0x888] ss:$40 sps:$4 sm:$0xff]   ;;  %v18849_v46 = vld [vmem:[#allocation6 + $0x8d4] ss:$40 sps:$4 sm:$0xff]  }
 0x36d   :  { %9524 = vmatprep.subr.bf16.mxu1 %v18792_v2  ;;  %v18852_v2 = vld [vmem:[#allocation6 + $0x8dc] ss:$40 sps:$4 sm:$0xff]  }
 0x36f   :  { %9197 = vmatpush1.bf16.msra.mxu0 %v18787_v4  ;;  %v18847_v4 = vld [vmem:[#allocation6 + $0x8d0] ss:$40 sps:$4 sm:$0xff]  }
 0x370   :  { %9525 = vmatpush1.bf16.msra.mxu1 %v18790_v20  ;;  %9198 = vmatprep.subr.bf16.mxu0 %v18795_v11  ;;  %v18850_v20 = vld [vmem:[#allocation6 + $0x8d8] ss:$40 sps:$4 sm:$0xff]   ;;  %v18855_v11 = vld [vmem:[#allocation6 + $0x924] ss:$40 sps:$4 sm:$0xff]  }
 0x371   :  { %9526 = vmatprep.subr.bf16.mxu1 %v18798_v13  ;;  %v18858_v13 = vld [vmem:[#allocation6 + $0x92c] ss:$40 sps:$4 sm:$0xff]  }
 0x373   :  { %9199 = vmatpush1.bf16.msra.mxu0 %v18793_v15  ;;  %v18853_v15 = vld [vmem:[#allocation6 + $0x920] ss:$40 sps:$4 sm:$0xff]  }
 0x374   :  { %9527 = vmatpush1.bf16.msra.mxu1 %v18796_v16  ;;  %9200 = vmatprep.subr.bf16.mxu0 %v18801_v17  ;;  %v18856_v16 = vld [vmem:[#allocation6 + $0x928] ss:$40 sps:$4 sm:$0xff]   ;;  %v18861_v17 = vld [vmem:[#allocation6 + $0x974] ss:$40 sps:$4 sm:$0xff]  }
 0x375   :  { %9528 = vmatprep.subr.bf16.mxu1 %v18804_v21  ;;  %v18864_v21 = vld [vmem:[#allocation6 + $0x97c] ss:$40 sps:$4 sm:$0xff]  }
 0x377   :  { %9201 = vmatpush1.bf16.msra.mxu0 %v18799_v31  ;;  %v18859_v31 = vld [vmem:[#allocation6 + $0x970] ss:$40 sps:$4 sm:$0xff]  }
 0x378   :  { %9529 = vmatpush1.bf16.msra.mxu1 %v18802_v23  ;;  %9202 = vmatprep.subr.bf16.mxu0 %v18807_v24  ;;  %v18862_v23 = vld [vmem:[#allocation6 + $0x978] ss:$40 sps:$4 sm:$0xff]   ;;  %v18867_v24 = vld [vmem:[#allocation6 + $0x9c4] ss:$40 sps:$4 sm:$0xff]  }
 0x379   :  { %9530 = vmatprep.subr.bf16.mxu1 %v18810_v26  ;;  %v18870_v26 = vld [vmem:[#allocation6 + $0x9cc] ss:$40 sps:$4 sm:$0xff]  }
 0x37b   :  { %9203 = vmatpush1.bf16.msra.mxu0 %v18805_v27  ;;  %v18865_v27 = vld [vmem:[#allocation6 + $0x9c0] ss:$40 sps:$4 sm:$0xff]  }
 0x37c   :  { %9531 = vmatpush1.bf16.msra.mxu1 %v18808_v29  ;;  %9204 = vmatprep.subr.bf16.mxu0 %v18813_v32  ;;  %v18868_v29 = vld [vmem:[#allocation6 + $0x9c8] ss:$40 sps:$4 sm:$0xff]   ;;  %v18873_v32 = vld [vmem:[#allocation6 + $0xa14] ss:$40 sps:$4 sm:$0xff]  }
 0x37d   :  { %9532 = vmatprep.subr.bf16.mxu1 %v18816_v36  ;;  %v18876_v36 = vld [vmem:[#allocation6 + $0xa1c] ss:$40 sps:$4 sm:$0xff]  }
 0x37f   :  { %9205 = vmatpush1.bf16.msra.mxu0 %v18811_v38  ;;  %v18871_v38 = vld [vmem:[#allocation6 + $0xa10] ss:$40 sps:$4 sm:$0xff]  }
 0x380   :  { %9533 = vmatpush1.bf16.msra.mxu1 %v18814_v39  ;;  %9206 = vmatprep.subr.bf16.mxu0 %v18819_v22  ;;  %v18874_v39 = vld [vmem:[#allocation6 + $0xa18] ss:$40 sps:$4 sm:$0xff]   ;;  %v18879_v22 = vld [vmem:[#allocation6 + $0xa64] ss:$40 sps:$4 sm:$0xff]  }
 0x381   :  { %9534 = vmatprep.subr.bf16.mxu1 %v18822_v41  ;;  %v18882_v41 = vld [vmem:[#allocation6 + $0xa6c] ss:$40 sps:$4 sm:$0xff]  }
 0x383   :  { %9207 = vmatpush1.bf16.msra.mxu0 %v18817_v43  ;;  %v18877_v43 = vld [vmem:[#allocation6 + $0xa60] ss:$40 sps:$4 sm:$0xff]  }
 0x384   :  { %9535 = vmatpush1.bf16.msra.mxu1 %v18820_v58  ;;  %9208 = vmatprep.subr.bf16.mxu0 %v18825_v44  ;;  %v18880_v58 = vld [vmem:[#allocation6 + $0xa68] ss:$40 sps:$4 sm:$0xff]   ;;  %v18885_v44 = vld [vmem:[#allocation6 + $0xab4] ss:$40 sps:$4 sm:$0xff]  }
 0x385   :  { %9536 = vmatprep.subr.bf16.mxu1 %v18828_v34  ;;  %v18888_v34 = vld [vmem:[#allocation6 + $0xabc] ss:$40 sps:$4 sm:$0xff]  }
 0x387   :  { %9209 = vmatpush1.bf16.msra.mxu0 %v18823_v48  ;;  %v18883_v48 = vld [vmem:[#allocation6 + $0xab0] ss:$40 sps:$4 sm:$0xff]  }
 0x388   :  { %9537 = vmatpush1.bf16.msra.mxu1 %v18826_v55  ;;  %9210 = vmatprep.subr.bf16.mxu0 %v18831_v3  ;;  %v18886_v55 = vld [vmem:[#allocation6 + $0xab8] ss:$40 sps:$4 sm:$0xff]   ;;  %v18891_v3 = vld [vmem:[#allocation6 + $0xb04] ss:$40 sps:$4 sm:$0xff]  }
 0x389   :  { %9538 = vmatprep.subr.bf16.mxu1 %v18834_v52  ;;  %v18894_v52 = vld [vmem:[#allocation6 + $0xb0c] ss:$40 sps:$4 sm:$0xff]  }
 0x38b   :  { %9211 = vmatpush1.bf16.msra.mxu0 %v18829_v53  ;;  %v18889_v53 = vld [vmem:[#allocation6 + $0xb00] ss:$40 sps:$4 sm:$0xff]  }
 0x38c   :  { %9539 = vmatpush1.bf16.msra.mxu1 %v18832_v57  ;;  %9212 = vmatprep.subr.bf16.mxu0 %v18837_v60  ;;  %v18892_v57 = vld [vmem:[#allocation6 + $0xb08] ss:$40 sps:$4 sm:$0xff]   ;;  %v18897_v60 = vld [vmem:[#allocation6 + $0xb54] ss:$40 sps:$4 sm:$0xff]  }
 0x38d   :  { %9540 = vmatprep.subr.bf16.mxu1 %v18840_v62  ;;  %v18900_v62 = vld [vmem:[#allocation6 + $0xb5c] ss:$40 sps:$4 sm:$0xff]  }
 0x38f   :  { %9213 = vmatpush1.bf16.msra.mxu0 %v18835_v63  ;;  %v18895_v63 = vld [vmem:[#allocation6 + $0xb50] ss:$40 sps:$4 sm:$0xff]  }
 0x390   :  { %9541 = vmatpush1.bf16.msra.mxu1 %v18838_v8  ;;  %9214 = vmatprep.subr.bf16.mxu0 %v18843_v6  ;;  %v18898_v8 = vld [vmem:[#allocation6 + $0xb58] ss:$40 sps:$4 sm:$0xff]   ;;  %v18903_v6 = vld [vmem:[#allocation6 + $0xba4] ss:$40 sps:$4 sm:$0xff]  }
 0x391   :  { %9542 = vmatprep.subr.bf16.mxu1 %v18846_v1  ;;  %v18906_v1 = vld [vmem:[#allocation6 + $0xbac] ss:$40 sps:$4 sm:$0xff]  }
 0x393   :  { %9215 = vmatpush1.bf16.msra.mxu0 %v18841_v18  ;;  %v18901_v18 = vld [vmem:[#allocation6 + $0xba0] ss:$40 sps:$4 sm:$0xff]  }
 0x394   :  { %9543 = vmatpush1.bf16.msra.mxu1 %v18844_v56  ;;  %9216 = vmatprep.subr.bf16.mxu0 %v18849_v46  ;;  %v18904_v56 = vld [vmem:[#allocation6 + $0xba8] ss:$40 sps:$4 sm:$0xff]   ;;  %v18909_v46 = vld [vmem:[#allocation6 + $0xbf4] ss:$40 sps:$4 sm:$0xff]  }
 0x395   :  { %9544 = vmatprep.subr.bf16.mxu1 %v18852_v2  ;;  %v18912_v2 = vld [vmem:[#allocation6 + $0xbfc] ss:$40 sps:$4 sm:$0xff]  }
 0x397   :  { %9217 = vmatpush1.bf16.msra.mxu0 %v18847_v4  ;;  %v18907_v4 = vld [vmem:[#allocation6 + $0xbf0] ss:$40 sps:$4 sm:$0xff]  }
 0x398   :  { %9545 = vmatpush1.bf16.msra.mxu1 %v18850_v20  ;;  %9218 = vmatprep.subr.bf16.mxu0 %v18855_v11  ;;  %v18910_v20 = vld [vmem:[#allocation6 + $0xbf8] ss:$40 sps:$4 sm:$0xff]   ;;  %v18915_v11 = vld [vmem:[#allocation6 + $0xc44] ss:$40 sps:$4 sm:$0xff]  }
 0x399   :  { %9546 = vmatprep.subr.bf16.mxu1 %v18858_v13  ;;  %v18918_v13 = vld [vmem:[#allocation6 + $0xc4c] ss:$40 sps:$4 sm:$0xff]  }
 0x39b   :  { %9219 = vmatpush1.bf16.msra.mxu0 %v18853_v15  ;;  %v18913_v15 = vld [vmem:[#allocation6 + $0xc40] ss:$40 sps:$4 sm:$0xff]  }
 0x39c   :  { %9547 = vmatpush1.bf16.msra.mxu1 %v18856_v16  ;;  %9220 = vmatprep.subr.bf16.mxu0 %v18861_v17  ;;  %v18916_v16 = vld [vmem:[#allocation6 + $0xc48] ss:$40 sps:$4 sm:$0xff]   ;;  %v18921_v17 = vld [vmem:[#allocation6 + $0xc94] ss:$40 sps:$4 sm:$0xff]  }
 0x39d   :  { %9548 = vmatprep.subr.bf16.mxu1 %v18864_v21  ;;  %v18924_v21 = vld [vmem:[#allocation6 + $0xc9c] ss:$40 sps:$4 sm:$0xff]  }
 0x39f   :  { %9221 = vmatpush1.bf16.msra.mxu0 %v18859_v31  ;;  %v18919_v31 = vld [vmem:[#allocation6 + $0xc90] ss:$40 sps:$4 sm:$0xff]  }
 0x3a0   :  { %9549 = vmatpush1.bf16.msra.mxu1 %v18862_v23  ;;  %9222 = vmatprep.subr.bf16.mxu0 %v18867_v24  ;;  %v18922_v23 = vld [vmem:[#allocation6 + $0xc98] ss:$40 sps:$4 sm:$0xff]   ;;  %v18927_v24 = vld [vmem:[#allocation6 + $0xce4] ss:$40 sps:$4 sm:$0xff]  }
 0x3a1   :  { %9550 = vmatprep.subr.bf16.mxu1 %v18870_v26  ;;  %v18930_v26 = vld [vmem:[#allocation6 + $0xcec] ss:$40 sps:$4 sm:$0xff]  }
 0x3a3   :  { %9223 = vmatpush1.bf16.msra.mxu0 %v18865_v27  ;;  %v18925_v27 = vld [vmem:[#allocation6 + $0xce0] ss:$40 sps:$4 sm:$0xff]  }
 0x3a4   :  { %9551 = vmatpush1.bf16.msra.mxu1 %v18868_v29  ;;  %9233 = vmatprep.subr.bf16.mxu0 %v18873_v32  ;;  %v18928_v29 = vld [vmem:[#allocation6 + $0xce8] ss:$40 sps:$4 sm:$0xff]   ;;  %v18933_v32 = vld [vmem:[#allocation6 + $0xd34] ss:$40 sps:$4 sm:$0xff]  }
 0x3a5   :  { %9561 = vmatprep.subr.bf16.mxu1 %v18876_v36  ;;  %v18936_v36 = vld [vmem:[#allocation6 + $0xd3c] ss:$40 sps:$4 sm:$0xff]  }
 0x3a6   :  { %9225 = vmatmul.mubr.bf16.vlgmr.msra.gmra.mrb[20].mxu0 %v20307_v10 }
 0x3a7   :  { %9553 = vmatmul.mubr.bf16.vlgmr.msra.gmra.mrb[20].mxu1 %v20307_v10  ;;  %9234 = vmatpush1.bf16.msra.mxu0 %v18871_v38  ;;  %v18931_v38 = vld [vmem:[#allocation6 + $0xd30] ss:$40 sps:$4 sm:$0xff]  }
 0x3a8   :  { %9265 = vmatprep.mubr.bf16.mxu0 %v20309_v14  ;;  %9562 = vmatpush1.bf16.msra.mxu1 %v18874_v39  ;;  %v18934_v39 = vld [vmem:[#allocation6 + $0xd38] ss:$40 sps:$4 sm:$0xff]  }
 0x3a9   :  { %9593 = vmatprep.mubr.bf16.mxu1 %v20309_v14  ;;  %9235 = vmatprep.subr.bf16.mxu0 %v18879_v22  ;;  %v18939_v22 = vld [vmem:[#allocation6 + $0xd84] ss:$40 sps:$4 sm:$0xff]  }
 0x3aa   :  { %9563 = vmatprep.subr.bf16.mxu1 %v18882_v41  ;;  %v18942_v41 = vld [vmem:[#allocation6 + $0xd8c] ss:$40 sps:$4 sm:$0xff]  }
 0x3ab   :  { %9236 = vmatpush1.bf16.msra.mxu0 %v18877_v43  ;;  %v18937_v43 = vld [vmem:[#allocation6 + $0xd80] ss:$40 sps:$4 sm:$0xff]  }
 0x3ac   :  { %9564 = vmatpush1.bf16.msra.mxu1 %v18880_v58  ;;  %9237 = vmatprep.subr.bf16.mxu0 %v18885_v44  ;;  %v18940_v58 = vld [vmem:[#allocation6 + $0xd88] ss:$40 sps:$4 sm:$0xff]   ;;  %v18945_v44 = vld [vmem:[#allocation6 + $0xdd4] ss:$40 sps:$4 sm:$0xff]  }
 0x3ad   :  { %9565 = vmatprep.subr.bf16.mxu1 %v18888_v34  ;;  %v18948_v34 = vld [vmem:[#allocation6 + $0xddc] ss:$40 sps:$4 sm:$0xff]  }
 0x3af   :  { %9238 = vmatpush1.bf16.msra.mxu0 %v18883_v48  ;;  %v18943_v48 = vld [vmem:[#allocation6 + $0xdd0] ss:$40 sps:$4 sm:$0xff]  }
 0x3b0   :  { %9566 = vmatpush1.bf16.msra.mxu1 %v18886_v55  ;;  %9239 = vmatprep.subr.bf16.mxu0 %v18891_v3  ;;  %v18946_v55 = vld [vmem:[#allocation6 + $0xdd8] ss:$40 sps:$4 sm:$0xff]   ;;  %v18951_v3 = vld [vmem:[#allocation6 + $0xe24] ss:$40 sps:$4 sm:$0xff]  }
 0x3b1   :  { %9567 = vmatprep.subr.bf16.mxu1 %v18894_v52  ;;  %v18954_v52 = vld [vmem:[#allocation6 + $0xe2c] ss:$40 sps:$4 sm:$0xff]  }
 0x3b3   :  { %9240 = vmatpush1.bf16.msra.mxu0 %v18889_v53  ;;  %v18949_v53 = vld [vmem:[#allocation6 + $0xe20] ss:$40 sps:$4 sm:$0xff]  }
 0x3b4   :  { %9568 = vmatpush1.bf16.msra.mxu1 %v18892_v57  ;;  %9241 = vmatprep.subr.bf16.mxu0 %v18897_v60  ;;  %v18952_v57 = vld [vmem:[#allocation6 + $0xe28] ss:$40 sps:$4 sm:$0xff]   ;;  %v18957_v60 = vld [vmem:[#allocation6 + $0xe74] ss:$40 sps:$4 sm:$0xff]  }
 0x3b5   :  { %9569 = vmatprep.subr.bf16.mxu1 %v18900_v62  ;;  %v18960_v62 = vld [vmem:[#allocation6 + $0xe7c] ss:$40 sps:$4 sm:$0xff]  }
 0x3b7   :  { %9242 = vmatpush1.bf16.msra.mxu0 %v18895_v63  ;;  %v18955_v63 = vld [vmem:[#allocation6 + $0xe70] ss:$40 sps:$4 sm:$0xff]  }
 0x3b8   :  { %9570 = vmatpush1.bf16.msra.mxu1 %v18898_v8  ;;  %9243 = vmatprep.subr.bf16.mxu0 %v18903_v6  ;;  %v18958_v8 = vld [vmem:[#allocation6 + $0xe78] ss:$40 sps:$4 sm:$0xff]   ;;  %v18963_v6 = vld [vmem:[#allocation6 + $0xec4] ss:$40 sps:$4 sm:$0xff]  }
 0x3b9   :  { %9571 = vmatprep.subr.bf16.mxu1 %v18906_v1  ;;  %v18966_v1 = vld [vmem:[#allocation6 + $0xecc] ss:$40 sps:$4 sm:$0xff]  }
 0x3bb   :  { %9244 = vmatpush1.bf16.msra.mxu0 %v18901_v18  ;;  %v18961_v18 = vld [vmem:[#allocation6 + $0xec0] ss:$40 sps:$4 sm:$0xff]  }
 0x3bc   :  { %9572 = vmatpush1.bf16.msra.mxu1 %v18904_v56  ;;  %9245 = vmatprep.subr.bf16.mxu0 %v18909_v46  ;;  %v18964_v56 = vld [vmem:[#allocation6 + $0xec8] ss:$40 sps:$4 sm:$0xff]   ;;  %v18969_v46 = vld [vmem:[#allocation6 + $0xf14] ss:$40 sps:$4 sm:$0xff]  }
 0x3bd   :  { %9573 = vmatprep.subr.bf16.mxu1 %v18912_v2  ;;  %v18972_v2 = vld [vmem:[#allocation6 + $0xf1c] ss:$40 sps:$4 sm:$0xff]  }
 0x3bf   :  { %9246 = vmatpush1.bf16.msra.mxu0 %v18907_v4  ;;  %v18967_v4 = vld [vmem:[#allocation6 + $0xf10] ss:$40 sps:$4 sm:$0xff]  }
 0x3c0   :  { %9574 = vmatpush1.bf16.msra.mxu1 %v18910_v20  ;;  %9247 = vmatprep.subr.bf16.mxu0 %v18915_v11  ;;  %v18970_v20 = vld [vmem:[#allocation6 + $0xf18] ss:$40 sps:$4 sm:$0xff]   ;;  %v18975_v11 = vld [vmem:[#allocation6 + $0xf64] ss:$40 sps:$4 sm:$0xff]  }
 0x3c1   :  { %9575 = vmatprep.subr.bf16.mxu1 %v18918_v13  ;;  %v18978_v13 = vld [vmem:[#allocation6 + $0xf6c] ss:$40 sps:$4 sm:$0xff]  }
 0x3c3   :  { %9248 = vmatpush1.bf16.msra.mxu0 %v18913_v15  ;;  %v18973_v15 = vld [vmem:[#allocation6 + $0xf60] ss:$40 sps:$4 sm:$0xff]  }
 0x3c4   :  { %9576 = vmatpush1.bf16.msra.mxu1 %v18916_v16  ;;  %9249 = vmatprep.subr.bf16.mxu0 %v18921_v17  ;;  %v18976_v16 = vld [vmem:[#allocation6 + $0xf68] ss:$40 sps:$4 sm:$0xff]   ;;  %v18981_v17 = vld [vmem:[#allocation6 + $0xfb4] ss:$40 sps:$4 sm:$0xff]  }
 0x3c5   :  { %9577 = vmatprep.subr.bf16.mxu1 %v18924_v21  ;;  %v18984_v21 = vld [vmem:[#allocation6 + $0xfbc] ss:$40 sps:$4 sm:$0xff]  }
 0x3c7   :  { %9250 = vmatpush1.bf16.msra.mxu0 %v18919_v31  ;;  %v18979_v31 = vld [vmem:[#allocation6 + $0xfb0] ss:$40 sps:$4 sm:$0xff]  }
 0x3c8   :  { %9578 = vmatpush1.bf16.msra.mxu1 %v18922_v23  ;;  %9251 = vmatprep.subr.bf16.mxu0 %v18927_v24  ;;  %v18982_v23 = vld [vmem:[#allocation6 + $0xfb8] ss:$40 sps:$4 sm:$0xff]   ;;  %v18987_v24 = vld [vmem:[#allocation6 + $0x1004] ss:$40 sps:$4 sm:$0xff]  }
 0x3c9   :  { %9579 = vmatprep.subr.bf16.mxu1 %v18930_v26  ;;  %v18990_v26 = vld [vmem:[#allocation6 + $0x100c] ss:$40 sps:$4 sm:$0xff]  }
 0x3cb   :  { %9252 = vmatpush1.bf16.msra.mxu0 %v18925_v27  ;;  %v18985_v27 = vld [vmem:[#allocation6 + $0x1000] ss:$40 sps:$4 sm:$0xff]  }
 0x3cc   :  { %9580 = vmatpush1.bf16.msra.mxu1 %v18928_v29  ;;  %9253 = vmatprep.subr.bf16.mxu0 %v18933_v32  ;;  %v18988_v29 = vld [vmem:[#allocation6 + $0x1008] ss:$40 sps:$4 sm:$0xff]   ;;  %v18993_v32 = vld [vmem:[#allocation6 + $0x1054] ss:$40 sps:$4 sm:$0xff]  }
 0x3cd   :  { %9581 = vmatprep.subr.bf16.mxu1 %v18936_v36  ;;  %v18996_v36 = vld [vmem:[#allocation6 + $0x105c] ss:$40 sps:$4 sm:$0xff]  }
 0x3cf   :  { %9254 = vmatpush1.bf16.msra.mxu0 %v18931_v38  ;;  %v18991_v38 = vld [vmem:[#allocation6 + $0x1050] ss:$40 sps:$4 sm:$0xff]  }
 0x3d0   :  { %9582 = vmatpush1.bf16.msra.mxu1 %v18934_v39  ;;  %9255 = vmatprep.subr.bf16.mxu0 %v18939_v22  ;;  %v18994_v39 = vld [vmem:[#allocation6 + $0x1058] ss:$40 sps:$4 sm:$0xff]   ;;  %v18999_v22 = vld [vmem:[#allocation6 + $0x10a4] ss:$40 sps:$4 sm:$0xff]  }
 0x3d1   :  { %9583 = vmatprep.subr.bf16.mxu1 %v18942_v41  ;;  %v19002_v41 = vld [vmem:[#allocation6 + $0x10ac] ss:$40 sps:$4 sm:$0xff]  }
 0x3d3   :  { %9256 = vmatpush1.bf16.msra.mxu0 %v18937_v43  ;;  %v18997_v43 = vld [vmem:[#allocation6 + $0x10a0] ss:$40 sps:$4 sm:$0xff]  }
 0x3d4   :  { %9584 = vmatpush1.bf16.msra.mxu1 %v18940_v58  ;;  %9257 = vmatprep.subr.bf16.mxu0 %v18945_v44  ;;  %v19000_v58 = vld [vmem:[#allocation6 + $0x10a8] ss:$40 sps:$4 sm:$0xff]   ;;  %v19005_v44 = vld [vmem:[#allocation6 + $0x10f4] ss:$40 sps:$4 sm:$0xff]  }
 0x3d5   :  { %9585 = vmatprep.subr.bf16.mxu1 %v18948_v34 }
 0x3d7   :  { %9258 = vmatpush1.bf16.msra.mxu0 %v18943_v48  ;;  %v19008_v48 = vld [vmem:[#allocation6 + $0x10fc] ss:$40 sps:$4 sm:$0xff]  }
 0x3d8   :  { %9586 = vmatpush1.bf16.msra.mxu1 %v18946_v55  ;;  %9259 = vmatprep.subr.bf16.mxu0 %v18951_v3 }
 0x3d9   :  { %9587 = vmatprep.subr.bf16.mxu1 %v18954_v52 }
 0x3db   :  { %9260 = vmatpush1.bf16.msra.mxu0 %v18949_v53 }
 0x3dc   :  { %9588 = vmatpush1.bf16.msra.mxu1 %v18952_v57  ;;  %9261 = vmatprep.subr.bf16.mxu0 %v18957_v60  ;;  %v19003_v57 = vld [vmem:[#allocation6 + $0x10f0] ss:$40 sps:$4 sm:$0xff]  }
 0x3dd   :  { %9589 = vmatprep.subr.bf16.mxu1 %v18960_v62 }
 0x3df   :  { %9262 = vmatpush1.bf16.msra.mxu0 %v18955_v63  ;;  %v19006_v63 = vld [vmem:[#allocation6 + $0x10f8] ss:$40 sps:$4 sm:$0xff]  }
 0x3e0   :  { %9590 = vmatpush1.bf16.msra.mxu1 %v18958_v8  ;;  %9263 = vmatprep.subr.bf16.mxu0 %v18963_v6  ;;  %v19011_v8 = vld [vmem:[#allocation6 + $0x1144] ss:$40 sps:$4 sm:$0xff]  }
 0x3e1   :  { %9591 = vmatprep.subr.bf16.mxu1 %v18966_v1  ;;  %v19014_v1 = vld [vmem:[#allocation6 + $0x114c] ss:$40 sps:$4 sm:$0xff]  }
 0x3e3   :  { %9264 = vmatpush1.bf16.msra.mxu0 %v18961_v18  ;;  %v19009_v18 = vld [vmem:[#allocation6 + $0x1140] ss:$40 sps:$4 sm:$0xff]  }
 0x3e4   :  { %9592 = vmatpush1.bf16.msra.mxu1 %v18964_v56  ;;  %9274 = vmatprep.subr.bf16.mxu0 %v18969_v46  ;;  %v19012_v56 = vld [vmem:[#allocation6 + $0x1148] ss:$40 sps:$4 sm:$0xff]   ;;  %v19017_v46 = vld [vmem:[#allocation6 + $0x1194] ss:$40 sps:$4 sm:$0xff]  }
 0x3e5   :  { %9602 = vmatprep.subr.bf16.mxu1 %v18972_v2  ;;  %v19020_v2 = vld [vmem:[#allocation6 + $0x119c] ss:$40 sps:$4 sm:$0xff]  }
 0x3e6   :  { %9266 = vmatmul.mubr.bf16.vlgmr.msra.gmra.mrb[20].mxu0 %v20329_v45 }
 0x3e7   :  { %9594 = vmatmul.mubr.bf16.vlgmr.msra.gmra.mrb[20].mxu1 %v20329_v45  ;;  %9275 = vmatpush1.bf16.msra.mxu0 %v18967_v4  ;;  %v19015_v4 = vld [vmem:[#allocation6 + $0x1190] ss:$40 sps:$4 sm:$0xff]  }
 0x3e8   :  { %9306 = vmatprep.mubr.bf16.mxu0 %v20331_v51  ;;  %9603 = vmatpush1.bf16.msra.mxu1 %v18970_v20  ;;  %v19018_v20 = vld [vmem:[#allocation6 + $0x1198] ss:$40 sps:$4 sm:$0xff]  }
 0x3e9   :  { %9634 = vmatprep.mubr.bf16.mxu1 %v20331_v51  ;;  %9276 = vmatprep.subr.bf16.mxu0 %v18975_v11  ;;  %v19023_v11 = vld [vmem:[#allocation6 + $0x11e4] ss:$40 sps:$4 sm:$0xff]  }
 0x3ea   :  { %9604 = vmatprep.subr.bf16.mxu1 %v18978_v13  ;;  %v19026_v13 = vld [vmem:[#allocation6 + $0x11ec] ss:$40 sps:$4 sm:$0xff]  }
 0x3eb   :  { %9277 = vmatpush1.bf16.msra.mxu0 %v18973_v15  ;;  %v19021_v15 = vld [vmem:[#allocation6 + $0x11e0] ss:$40 sps:$4 sm:$0xff]  }
 0x3ec   :  { %9605 = vmatpush1.bf16.msra.mxu1 %v18976_v16  ;;  %9278 = vmatprep.subr.bf16.mxu0 %v18981_v17  ;;  %v19024_v16 = vld [vmem:[#allocation6 + $0x11e8] ss:$40 sps:$4 sm:$0xff]   ;;  %v19029_v17 = vld [vmem:[#allocation6 + $0x1234] ss:$40 sps:$4 sm:$0xff]  }
 0x3ed   :  { %9606 = vmatprep.subr.bf16.mxu1 %v18984_v21  ;;  %v19032_v21 = vld [vmem:[#allocation6 + $0x123c] ss:$40 sps:$4 sm:$0xff]  }
 0x3ef   :  { %9279 = vmatpush1.bf16.msra.mxu0 %v18979_v31  ;;  %v19027_v31 = vld [vmem:[#allocation6 + $0x1230] ss:$40 sps:$4 sm:$0xff]  }
 0x3f0   :  { %9607 = vmatpush1.bf16.msra.mxu1 %v18982_v23  ;;  %9280 = vmatprep.subr.bf16.mxu0 %v18987_v24  ;;  %v19030_v23 = vld [vmem:[#allocation6 + $0x1238] ss:$40 sps:$4 sm:$0xff]   ;;  %v19035_v24 = vld [vmem:[#allocation6 + $0x1284] ss:$40 sps:$4 sm:$0xff]  }
 0x3f1   :  { %9608 = vmatprep.subr.bf16.mxu1 %v18990_v26  ;;  %v19038_v26 = vld [vmem:[#allocation6 + $0x128c] ss:$40 sps:$4 sm:$0xff]  }
 0x3f3   :  { %9281 = vmatpush1.bf16.msra.mxu0 %v18985_v27  ;;  %v19033_v27 = vld [vmem:[#allocation6 + $0x1280] ss:$40 sps:$4 sm:$0xff]  }
 0x3f4   :  { %9609 = vmatpush1.bf16.msra.mxu1 %v18988_v29  ;;  %9282 = vmatprep.subr.bf16.mxu0 %v18993_v32  ;;  %v19036_v29 = vld [vmem:[#allocation6 + $0x1288] ss:$40 sps:$4 sm:$0xff]   ;;  %v19041_v32 = vld [vmem:[#allocation6 + $0x12d4] ss:$40 sps:$4 sm:$0xff]  }
 0x3f5   :  { %9610 = vmatprep.subr.bf16.mxu1 %v18996_v36  ;;  %v19044_v36 = vld [vmem:[#allocation6 + $0x12dc] ss:$40 sps:$4 sm:$0xff]  }
 0x3f7   :  { %9283 = vmatpush1.bf16.msra.mxu0 %v18991_v38  ;;  %v19039_v38 = vld [vmem:[#allocation6 + $0x12d0] ss:$40 sps:$4 sm:$0xff]  }
 0x3f8   :  { %9611 = vmatpush1.bf16.msra.mxu1 %v18994_v39  ;;  %9284 = vmatprep.subr.bf16.mxu0 %v18999_v22  ;;  %v19042_v39 = vld [vmem:[#allocation6 + $0x12d8] ss:$40 sps:$4 sm:$0xff]   ;;  %v19047_v22 = vld [vmem:[#allocation6 + $0x1324] ss:$40 sps:$4 sm:$0xff]  }
 0x3f9   :  { %v20428_v34 = vpop.f32.mrb[16].mxu0  ;;  %9612 = vmatprep.subr.bf16.mxu1 %v19002_v41  ;;  %v19050_v41 = vld [vmem:[#allocation6 + $0x132c] ss:$40 sps:$4 sm:$0xff]  }
 0x3fa   :  { %v20430_v55 = vpop.f32.mrb[16].mxu1  ;;  %v20432_v3 = vpop.f32.mrb[17].mxu0 }
 0x3fb   :  { %v20434_v52 = vpop.f32.mrb[17].mxu1  ;;  %v8820_v53 = vpop.f32.mrb[18].mxu0  ;;  %9285 = vmatpush1.bf16.msra.mxu0 %v18997_v43  ;;  %v19045_v43 = vld [vmem:[#allocation6 + $0x1320] ss:$40 sps:$4 sm:$0xff]  }
 0x3fc   :  { %v9148_v60 = vpop.f32.mrb[18].mxu1  ;;  %9613 = vmatpush1.bf16.msra.mxu1 %v19000_v58  ;;  %v8821_v62 = vpop.f32.mrb[19].mxu0  ;;  %9286 = vmatprep.subr.bf16.mxu0 %v19005_v44  ;;  %v19048_v58 = vld [vmem:[#allocation6 + $0x1328] ss:$40 sps:$4 sm:$0xff]   ;;  %v19053_v44 = vld [vmem:[#allocation6 + $0x1374] ss:$40 sps:$4 sm:$0xff]  }
 0x3fd   :  { %v9149_v6 = vpop.f32.mrb[19].mxu1  ;;  %9614 = vmatprep.subr.bf16.mxu1 %v19008_v48  ;;  %v19056_v48 = vld [vmem:[#allocation6 + $0x137c] ss:$40 sps:$4 sm:$0xff]   ;;  %v19051_v53 = vld [vmem:[#allocation6 + $0x1370] ss:$40 sps:$4 sm:$0xff]  }
 0x3fe   :  { %v19059_v60 = vld [vmem:[#allocation6 + $0x13c4] ss:$40 sps:$4 sm:$0xff]   ;;  %v19065_v6 = vld [vmem:[#allocation6 + $0x1414] ss:$40 sps:$4 sm:$0xff]  }
 0x3ff   :  { %9287 = vmatpush1.bf16.msra.mxu0 %v19003_v57  ;;  %v19054_v57 = vld [vmem:[#allocation6 + $0x1378] ss:$40 sps:$4 sm:$0xff]   ;;  %v19062_v62 = vld [vmem:[#allocation6 + $0x13cc] ss:$40 sps:$4 sm:$0xff]  }
 0x400   :  { %9615 = vmatpush1.bf16.msra.mxu1 %v19006_v63  ;;  %9288 = vmatprep.subr.bf16.mxu0 %v19011_v8  ;;  %v19057_v63 = vld [vmem:[#allocation6 + $0x13c0] ss:$40 sps:$4 sm:$0xff]  }
 0x401   :  { %9616 = vmatprep.subr.bf16.mxu1 %v19014_v1  ;;  %v19060_v8 = vld [vmem:[#allocation6 + $0x13c8] ss:$40 sps:$4 sm:$0xff]   ;;  %v19068_v1 = vld [vmem:[#allocation6 + $0x141c] ss:$40 sps:$4 sm:$0xff]  }
 0x403   :  { %9289 = vmatpush1.bf16.msra.mxu0 %v19009_v18  ;;  %v19063_v18 = vld [vmem:[#allocation6 + $0x1410] ss:$40 sps:$4 sm:$0xff]  }
 0x404   :  { %9617 = vmatpush1.bf16.msra.mxu1 %v19012_v56  ;;  %9290 = vmatprep.subr.bf16.mxu0 %v19017_v46  ;;  %v19066_v56 = vld [vmem:[#allocation6 + $0x1418] ss:$40 sps:$4 sm:$0xff]   ;;  %v19071_v46 = vld [vmem:[#allocation6 + $0x1464] ss:$40 sps:$4 sm:$0xff]  }
 0x405   :  { %9618 = vmatprep.subr.bf16.mxu1 %v19020_v2  ;;  %v19074_v2 = vld [vmem:[#allocation6 + $0x146c] ss:$40 sps:$4 sm:$0xff]  }
 0x407   :  { %9291 = vmatpush1.bf16.msra.mxu0 %v19015_v4  ;;  %v19069_v4 = vld [vmem:[#allocation6 + $0x1460] ss:$40 sps:$4 sm:$0xff]  }
 0x408   :  { %9619 = vmatpush1.bf16.msra.mxu1 %v19018_v20  ;;  %9292 = vmatprep.subr.bf16.mxu0 %v19023_v11  ;;  %v19072_v20 = vld [vmem:[#allocation6 + $0x1468] ss:$40 sps:$4 sm:$0xff]   ;;  %v19077_v11 = vld [vmem:[#allocation6 + $0x14b4] ss:$40 sps:$4 sm:$0xff]  }
 0x409   :  { %9620 = vmatprep.subr.bf16.mxu1 %v19026_v13  ;;  %v19080_v13 = vld [vmem:[#allocation6 + $0x14bc] ss:$40 sps:$4 sm:$0xff]  }
 0x40b   :  { %9293 = vmatpush1.bf16.msra.mxu0 %v19021_v15  ;;  %v19075_v15 = vld [vmem:[#allocation6 + $0x14b0] ss:$40 sps:$4 sm:$0xff]  }
 0x40c   :  { %9621 = vmatpush1.bf16.msra.mxu1 %v19024_v16  ;;  %9294 = vmatprep.subr.bf16.mxu0 %v19029_v17  ;;  %v19078_v16 = vld [vmem:[#allocation6 + $0x14b8] ss:$40 sps:$4 sm:$0xff]   ;;  %v19083_v17 = vld [vmem:[#allocation6 + $0x1504] ss:$40 sps:$4 sm:$0xff]  }
 0x40d   :  { %9622 = vmatprep.subr.bf16.mxu1 %v19032_v21  ;;  %v19086_v21 = vld [vmem:[#allocation6 + $0x150c] ss:$40 sps:$4 sm:$0xff]  }
 0x40f   :  { %9295 = vmatpush1.bf16.msra.mxu0 %v19027_v31  ;;  %v19081_v31 = vld [vmem:[#allocation6 + $0x1500] ss:$40 sps:$4 sm:$0xff]  }
 0x410   :  { %9623 = vmatpush1.bf16.msra.mxu1 %v19030_v23  ;;  %9296 = vmatprep.subr.bf16.mxu0 %v19035_v24  ;;  %v19084_v23 = vld [vmem:[#allocation6 + $0x1508] ss:$40 sps:$4 sm:$0xff]   ;;  %v19089_v24 = vld [vmem:[#allocation6 + $0x1554] ss:$40 sps:$4 sm:$0xff]  }
 0x411   :  { %9624 = vmatprep.subr.bf16.mxu1 %v19038_v26  ;;  %v19092_v26 = vld [vmem:[#allocation6 + $0x155c] ss:$40 sps:$4 sm:$0xff]  }
 0x413   :  { %9297 = vmatpush1.bf16.msra.mxu0 %v19033_v27  ;;  %v19087_v27 = vld [vmem:[#allocation6 + $0x1550] ss:$40 sps:$4 sm:$0xff]  }
 0x414   :  { %9625 = vmatpush1.bf16.msra.mxu1 %v19036_v29  ;;  %9298 = vmatprep.subr.bf16.mxu0 %v19041_v32  ;;  %v19090_v29 = vld [vmem:[#allocation6 + $0x1558] ss:$40 sps:$4 sm:$0xff]   ;;  %v19095_v32 = vld [vmem:[#allocation6 + $0x15a4] ss:$40 sps:$4 sm:$0xff]  }
 0x415   :  { %9626 = vmatprep.subr.bf16.mxu1 %v19044_v36  ;;  %v19098_v36 = vld [vmem:[#allocation6 + $0x15ac] ss:$40 sps:$4 sm:$0xff]  }
 0x417   :  { %9299 = vmatpush1.bf16.msra.mxu0 %v19039_v38  ;;  %v19093_v38 = vld [vmem:[#allocation6 + $0x15a0] ss:$40 sps:$4 sm:$0xff]  }
 0x418   :  { %9627 = vmatpush1.bf16.msra.mxu1 %v19042_v39  ;;  %9300 = vmatprep.subr.bf16.mxu0 %v19047_v22  ;;  %v19096_v39 = vld [vmem:[#allocation6 + $0x15a8] ss:$40 sps:$4 sm:$0xff]   ;;  %v19101_v22 = vld [vmem:[#allocation6 + $0x15f4] ss:$40 sps:$4 sm:$0xff]  }
 0x419   :  { %9628 = vmatprep.subr.bf16.mxu1 %v19050_v41  ;;  %v19104_v41 = vld [vmem:[#allocation6 + $0x15fc] ss:$40 sps:$4 sm:$0xff]  }
 0x41b   :  { %9301 = vmatpush1.bf16.msra.mxu0 %v19045_v43  ;;  %v19099_v43 = vld [vmem:[#allocation6 + $0x15f0] ss:$40 sps:$4 sm:$0xff]  }
 0x41c   :  { %9629 = vmatpush1.bf16.msra.mxu1 %v19048_v58  ;;  %9302 = vmatprep.subr.bf16.mxu0 %v19053_v44  ;;  %v19102_v58 = vld [vmem:[#allocation6 + $0x15f8] ss:$40 sps:$4 sm:$0xff]   ;;  %v19107_v44 = vld [vmem:[#allocation6 + $0x1644] ss:$40 sps:$4 sm:$0xff]  }
 0x41d   :  { %9630 = vmatprep.subr.bf16.mxu1 %v19056_v48  ;;  %v19110_v48 = vld [vmem:[#allocation6 + $0x164c] ss:$40 sps:$4 sm:$0xff]  }
 0x41f   :  { %9303 = vmatpush1.bf16.msra.mxu0 %v19051_v53  ;;  %v19105_v53 = vld [vmem:[#allocation6 + $0x1640] ss:$40 sps:$4 sm:$0xff]  }
 0x420   :  { %9631 = vmatpush1.bf16.msra.mxu1 %v19054_v57  ;;  %9304 = vmatprep.subr.bf16.mxu0 %v19059_v60  ;;  %v19108_v57 = vld [vmem:[#allocation6 + $0x1648] ss:$40 sps:$4 sm:$0xff]   ;;  %v19113_v60 = vld [vmem:[#allocation6 + $0x1694] ss:$40 sps:$4 sm:$0xff]  }
 0x421   :  { %9632 = vmatprep.subr.bf16.mxu1 %v19062_v62  ;;  %v19116_v62 = vld [vmem:[#allocation6 + $0x169c] ss:$40 sps:$4 sm:$0xff]  }
 0x423   :  { %9305 = vmatpush1.bf16.msra.mxu0 %v19057_v63  ;;  %v19111_v63 = vld [vmem:[#allocation6 + $0x1690] ss:$40 sps:$4 sm:$0xff]  }
 0x424   :  { %9633 = vmatpush1.bf16.msra.mxu1 %v19060_v8  ;;  %9315 = vmatprep.subr.bf16.mxu0 %v19065_v6  ;;  %v19114_v8 = vld [vmem:[#allocation6 + $0x1698] ss:$40 sps:$4 sm:$0xff]   ;;  %v19119_v6 = vld [vmem:[#allocation6 + $0x16e4] ss:$40 sps:$4 sm:$0xff]  }
 0x425   :  { %9643 = vmatprep.subr.bf16.mxu1 %v19068_v1  ;;  %v19122_v1 = vld [vmem:[#allocation6 + $0x16ec] ss:$40 sps:$4 sm:$0xff]  }
 0x426   :  { %9307 = vmatmul.mubr.bf16.vlgmr.msra.gmra.mrb[20].mxu0 %v20352_v25 }
 0x427   :  { %9635 = vmatmul.mubr.bf16.vlgmr.msra.gmra.mrb[20].mxu1 %v20352_v25  ;;  %9316 = vmatpush1.bf16.msra.mxu0 %v19063_v18  ;;  %v19117_v18 = vld [vmem:[#allocation6 + $0x16e0] ss:$40 sps:$4 sm:$0xff]  }
 0x428   :  { %9347 = vmatprep.mubr.bf16.mxu0 %v20354_v49  ;;  %9644 = vmatpush1.bf16.msra.mxu1 %v19066_v56  ;;  %v19120_v56 = vld [vmem:[#allocation6 + $0x16e8] ss:$40 sps:$4 sm:$0xff]  }
 0x429   :  { %9675 = vmatprep.mubr.bf16.mxu1 %v20354_v49  ;;  %9317 = vmatprep.subr.bf16.mxu0 %v19071_v46  ;;  %v19125_v46 = vld [vmem:[#allocation6 + $0x1734] ss:$40 sps:$4 sm:$0xff]  }
 0x42a   :  { %9645 = vmatprep.subr.bf16.mxu1 %v19074_v2  ;;  %v19128_v2 = vld [vmem:[#allocation6 + $0x173c] ss:$40 sps:$4 sm:$0xff]  }
 0x42b   :  { %9318 = vmatpush1.bf16.msra.mxu0 %v19069_v4  ;;  %v19123_v4 = vld [vmem:[#allocation6 + $0x1730] ss:$40 sps:$4 sm:$0xff]  }
 0x42c   :  { %9646 = vmatpush1.bf16.msra.mxu1 %v19072_v20  ;;  %9319 = vmatprep.subr.bf16.mxu0 %v19077_v11  ;;  %v19126_v20 = vld [vmem:[#allocation6 + $0x1738] ss:$40 sps:$4 sm:$0xff]   ;;  %v19131_v11 = vld [vmem:[#allocation6 + $0x1784] ss:$40 sps:$4 sm:$0xff]  }
 0x42d   :  { %9647 = vmatprep.subr.bf16.mxu1 %v19080_v13  ;;  %v19134_v13 = vld [vmem:[#allocation6 + $0x178c] ss:$40 sps:$4 sm:$0xff]  }
 0x42f   :  { %9320 = vmatpush1.bf16.msra.mxu0 %v19075_v15  ;;  %v19129_v15 = vld [vmem:[#allocation6 + $0x1780] ss:$40 sps:$4 sm:$0xff]  }
 0x430   :  { %9648 = vmatpush1.bf16.msra.mxu1 %v19078_v16  ;;  %9321 = vmatprep.subr.bf16.mxu0 %v19083_v17  ;;  %v19132_v16 = vld [vmem:[#allocation6 + $0x1788] ss:$40 sps:$4 sm:$0xff]   ;;  %v19137_v17 = vld [vmem:[#allocation6 + $0x17d4] ss:$40 sps:$4 sm:$0xff]  }
 0x431   :  { %9649 = vmatprep.subr.bf16.mxu1 %v19086_v21  ;;  %v19140_v21 = vld [vmem:[#allocation6 + $0x17dc] ss:$40 sps:$4 sm:$0xff]  }
 0x433   :  { %9322 = vmatpush1.bf16.msra.mxu0 %v19081_v31  ;;  %v19135_v31 = vld [vmem:[#allocation6 + $0x17d0] ss:$40 sps:$4 sm:$0xff]  }
 0x434   :  { %9650 = vmatpush1.bf16.msra.mxu1 %v19084_v23  ;;  %9323 = vmatprep.subr.bf16.mxu0 %v19089_v24  ;;  %v19138_v23 = vld [vmem:[#allocation6 + $0x17d8] ss:$40 sps:$4 sm:$0xff]   ;;  %v19143_v24 = vld [vmem:[#allocation6 + $0x1824] ss:$40 sps:$4 sm:$0xff]  }
 0x435   :  { %9651 = vmatprep.subr.bf16.mxu1 %v19092_v26  ;;  %v19146_v26 = vld [vmem:[#allocation6 + $0x182c] ss:$40 sps:$4 sm:$0xff]  }
 0x437   :  { %9324 = vmatpush1.bf16.msra.mxu0 %v19087_v27  ;;  %v19141_v27 = vld [vmem:[#allocation6 + $0x1820] ss:$40 sps:$4 sm:$0xff]  }
 0x438   :  { %9652 = vmatpush1.bf16.msra.mxu1 %v19090_v29  ;;  %9325 = vmatprep.subr.bf16.mxu0 %v19095_v32  ;;  %v19144_v29 = vld [vmem:[#allocation6 + $0x1828] ss:$40 sps:$4 sm:$0xff]   ;;  %v19149_v32 = vld [vmem:[#allocation6 + $0x1874] ss:$40 sps:$4 sm:$0xff]  }
 0x439   :  { %9653 = vmatprep.subr.bf16.mxu1 %v19098_v36  ;;  %v19152_v36 = vld [vmem:[#allocation6 + $0x187c] ss:$40 sps:$4 sm:$0xff]  }
 0x43b   :  { %9326 = vmatpush1.bf16.msra.mxu0 %v19093_v38  ;;  %v19147_v38 = vld [vmem:[#allocation6 + $0x1870] ss:$40 sps:$4 sm:$0xff]  }
 0x43c   :  { %9654 = vmatpush1.bf16.msra.mxu1 %v19096_v39  ;;  %9327 = vmatprep.subr.bf16.mxu0 %v19101_v22  ;;  %v19150_v39 = vld [vmem:[#allocation6 + $0x1878] ss:$40 sps:$4 sm:$0xff]   ;;  %v19155_v22 = vld [vmem:[#allocation6 + $0x18c4] ss:$40 sps:$4 sm:$0xff]  }
 0x43d   :  { %9655 = vmatprep.subr.bf16.mxu1 %v19104_v41  ;;  %v19158_v41 = vld [vmem:[#allocation6 + $0x18cc] ss:$40 sps:$4 sm:$0xff]  }
 0x43f   :  { %9328 = vmatpush1.bf16.msra.mxu0 %v19099_v43  ;;  %v19153_v43 = vld [vmem:[#allocation6 + $0x18c0] ss:$40 sps:$4 sm:$0xff]  }
 0x440   :  { %9656 = vmatpush1.bf16.msra.mxu1 %v19102_v58  ;;  %9329 = vmatprep.subr.bf16.mxu0 %v19107_v44  ;;  %v19156_v58 = vld [vmem:[#allocation6 + $0x18c8] ss:$40 sps:$4 sm:$0xff]   ;;  %v19161_v44 = vld [vmem:[#allocation6 + $0x1914] ss:$40 sps:$4 sm:$0xff]  }
 0x441   :  { %9657 = vmatprep.subr.bf16.mxu1 %v19110_v48  ;;  %v19164_v48 = vld [vmem:[#allocation6 + $0x191c] ss:$40 sps:$4 sm:$0xff]  }
 0x443   :  { %9330 = vmatpush1.bf16.msra.mxu0 %v19105_v53  ;;  %v19159_v53 = vld [vmem:[#allocation6 + $0x1910] ss:$40 sps:$4 sm:$0xff]  }
 0x444   :  { %9658 = vmatpush1.bf16.msra.mxu1 %v19108_v57  ;;  %9331 = vmatprep.subr.bf16.mxu0 %v19113_v60  ;;  %v19162_v57 = vld [vmem:[#allocation6 + $0x1918] ss:$40 sps:$4 sm:$0xff]   ;;  %v19167_v60 = vld [vmem:[#allocation6 + $0x1964] ss:$40 sps:$4 sm:$0xff]  }
 0x445   :  { %9659 = vmatprep.subr.bf16.mxu1 %v19116_v62  ;;  %v19170_v62 = vld [vmem:[#allocation6 + $0x196c] ss:$40 sps:$4 sm:$0xff]  }
 0x447   :  { %9332 = vmatpush1.bf16.msra.mxu0 %v19111_v63  ;;  %v19165_v63 = vld [vmem:[#allocation6 + $0x1960] ss:$40 sps:$4 sm:$0xff]  }
 0x448   :  { %9660 = vmatpush1.bf16.msra.mxu1 %v19114_v8  ;;  %9333 = vmatprep.subr.bf16.mxu0 %v19119_v6  ;;  %v19168_v8 = vld [vmem:[#allocation6 + $0x1968] ss:$40 sps:$4 sm:$0xff]   ;;  %v19173_v6 = vld [vmem:[#allocation6 + $0x19b4] ss:$40 sps:$4 sm:$0xff]  }
 0x449   :  { %9661 = vmatprep.subr.bf16.mxu1 %v19122_v1  ;;  %v19176_v1 = vld [vmem:[#allocation6 + $0x19bc] ss:$40 sps:$4 sm:$0xff]  }
 0x44b   :  { %9334 = vmatpush1.bf16.msra.mxu0 %v19117_v18  ;;  %v19171_v18 = vld [vmem:[#allocation6 + $0x19b0] ss:$40 sps:$4 sm:$0xff]  }
 0x44c   :  { %9662 = vmatpush1.bf16.msra.mxu1 %v19120_v56  ;;  %9335 = vmatprep.subr.bf16.mxu0 %v19125_v46  ;;  %v19174_v56 = vld [vmem:[#allocation6 + $0x19b8] ss:$40 sps:$4 sm:$0xff]   ;;  %v19179_v46 = vld [vmem:[#allocation6 + $0x1a04] ss:$40 sps:$4 sm:$0xff]  }
 0x44d   :  { %9663 = vmatprep.subr.bf16.mxu1 %v19128_v2  ;;  %v19182_v2 = vld [vmem:[#allocation6 + $0x1a0c] ss:$40 sps:$4 sm:$0xff]  }
 0x44f   :  { %9336 = vmatpush1.bf16.msra.mxu0 %v19123_v4  ;;  %v19177_v4 = vld [vmem:[#allocation6 + $0x1a00] ss:$40 sps:$4 sm:$0xff]  }
 0x450   :  { %9664 = vmatpush1.bf16.msra.mxu1 %v19126_v20  ;;  %9337 = vmatprep.subr.bf16.mxu0 %v19131_v11  ;;  %v19180_v20 = vld [vmem:[#allocation6 + $0x1a08] ss:$40 sps:$4 sm:$0xff]   ;;  %v19185_v11 = vld [vmem:[#allocation6 + $0x1a54] ss:$40 sps:$4 sm:$0xff]  }
 0x451   :  { %9665 = vmatprep.subr.bf16.mxu1 %v19134_v13  ;;  %v19188_v13 = vld [vmem:[#allocation6 + $0x1a5c] ss:$40 sps:$4 sm:$0xff]  }
 0x453   :  { %9338 = vmatpush1.bf16.msra.mxu0 %v19129_v15  ;;  %v19183_v15 = vld [vmem:[#allocation6 + $0x1a50] ss:$40 sps:$4 sm:$0xff]  }
 0x454   :  { %9666 = vmatpush1.bf16.msra.mxu1 %v19132_v16  ;;  %9339 = vmatprep.subr.bf16.mxu0 %v19137_v17  ;;  %v19186_v16 = vld [vmem:[#allocation6 + $0x1a58] ss:$40 sps:$4 sm:$0xff]   ;;  %v19191_v17 = vld [vmem:[#allocation6 + $0x1aa4] ss:$40 sps:$4 sm:$0xff]  }
 0x455   :  { %9667 = vmatprep.subr.bf16.mxu1 %v19140_v21  ;;  %v19194_v21 = vld [vmem:[#allocation6 + $0x1aac] ss:$40 sps:$4 sm:$0xff]  }
 0x457   :  { %9340 = vmatpush1.bf16.msra.mxu0 %v19135_v31  ;;  %v19189_v31 = vld [vmem:[#allocation6 + $0x1aa0] ss:$40 sps:$4 sm:$0xff]  }
 0x458   :  { %9668 = vmatpush1.bf16.msra.mxu1 %v19138_v23  ;;  %9341 = vmatprep.subr.bf16.mxu0 %v19143_v24  ;;  %v19192_v23 = vld [vmem:[#allocation6 + $0x1aa8] ss:$40 sps:$4 sm:$0xff]   ;;  %v19197_v24 = vld [vmem:[#allocation6 + $0x1af4] ss:$40 sps:$4 sm:$0xff]  }
 0x459   :  { %9669 = vmatprep.subr.bf16.mxu1 %v19146_v26  ;;  %v19200_v26 = vld [vmem:[#allocation6 + $0x1afc] ss:$40 sps:$4 sm:$0xff]  }
 0x45b   :  { %9342 = vmatpush1.bf16.msra.mxu0 %v19141_v27  ;;  %v19195_v27 = vld [vmem:[#allocation6 + $0x1af0] ss:$40 sps:$4 sm:$0xff]  }
 0x45c   :  { %9670 = vmatpush1.bf16.msra.mxu1 %v19144_v29  ;;  %9343 = vmatprep.subr.bf16.mxu0 %v19149_v32  ;;  %v19198_v29 = vld [vmem:[#allocation6 + $0x1af8] ss:$40 sps:$4 sm:$0xff]   ;;  %v19203_v32 = vld [vmem:[#allocation6 + $0x1b44] ss:$40 sps:$4 sm:$0xff]  }
 0x45d   :  { %9671 = vmatprep.subr.bf16.mxu1 %v19152_v36  ;;  %v19206_v36 = vld [vmem:[#allocation6 + $0x1b4c] ss:$40 sps:$4 sm:$0xff]  }
 0x45f   :  { %9344 = vmatpush1.bf16.msra.mxu0 %v19147_v38  ;;  %v19201_v38 = vld [vmem:[#allocation6 + $0x1b40] ss:$40 sps:$4 sm:$0xff]  }
 0x460   :  { %9672 = vmatpush1.bf16.msra.mxu1 %v19150_v39  ;;  %9345 = vmatprep.subr.bf16.mxu0 %v19155_v22  ;;  %v19204_v39 = vld [vmem:[#allocation6 + $0x1b48] ss:$40 sps:$4 sm:$0xff]   ;;  %v19209_v22 = vld [vmem:[#allocation6 + $0x1b94] ss:$40 sps:$4 sm:$0xff]  }
 0x461   :  { %9673 = vmatprep.subr.bf16.mxu1 %v19158_v41  ;;  %v19212_v41 = vld [vmem:[#allocation6 + $0x1b9c] ss:$40 sps:$4 sm:$0xff]  }
 0x463   :  { %9346 = vmatpush1.bf16.msra.mxu0 %v19153_v43  ;;  %v19207_v43 = vld [vmem:[#allocation6 + $0x1b90] ss:$40 sps:$4 sm:$0xff]  }
 0x464   :  { %9674 = vmatpush1.bf16.msra.mxu1 %v19156_v58  ;;  %9356 = vmatprep.subr.bf16.mxu0 %v19161_v44  ;;  %v19210_v58 = vld [vmem:[#allocation6 + $0x1b98] ss:$40 sps:$4 sm:$0xff]   ;;  %v19215_v44 = vld [vmem:[#allocation6 + $0x1be4] ss:$40 sps:$4 sm:$0xff]  }
 0x465   :  { %9684 = vmatprep.subr.bf16.mxu1 %v19164_v48  ;;  %v19218_v48 = vld [vmem:[#allocation6 + $0x1bec] ss:$40 sps:$4 sm:$0xff]  }
 0x466   :  { %9348 = vmatmul.mubr.bf16.vlgmr.msra.gmra.mrb[20].mxu0 %v20366_v5 }
 0x467   :  { %9676 = vmatmul.mubr.bf16.vlgmr.msra.gmra.mrb[20].mxu1 %v20366_v5  ;;  %9357 = vmatpush1.bf16.msra.mxu0 %v19159_v53  ;;  %v19213_v53 = vld [vmem:[#allocation6 + $0x1be0] ss:$40 sps:$4 sm:$0xff]  }
 0x468   :  { %9388 = vmatprep.mubr.bf16.mxu0 %v20368_v35  ;;  %9685 = vmatpush1.bf16.msra.mxu1 %v19162_v57  ;;  %v19216_v57 = vld [vmem:[#allocation6 + $0x1be8] ss:$40 sps:$4 sm:$0xff]  }
 0x469   :  { %9716 = vmatprep.mubr.bf16.mxu1 %v20368_v35  ;;  %9358 = vmatprep.subr.bf16.mxu0 %v19167_v60  ;;  %v19221_v60 = vld [vmem:[#allocation6 + $0x1c34] ss:$40 sps:$4 sm:$0xff]  }
 0x46a   :  { %9686 = vmatprep.subr.bf16.mxu1 %v19170_v62  ;;  %v19224_v62 = vld [vmem:[#allocation6 + $0x1c3c] ss:$40 sps:$4 sm:$0xff]  }
 0x46b   :  { %9359 = vmatpush1.bf16.msra.mxu0 %v19165_v63  ;;  %v19219_v63 = vld [vmem:[#allocation6 + $0x1c30] ss:$40 sps:$4 sm:$0xff]  }
 0x46c   :  { %9687 = vmatpush1.bf16.msra.mxu1 %v19168_v8  ;;  %9360 = vmatprep.subr.bf16.mxu0 %v19173_v6  ;;  %v19222_v8 = vld [vmem:[#allocation6 + $0x1c38] ss:$40 sps:$4 sm:$0xff]   ;;  %v19227_v6 = vld [vmem:[#allocation6 + $0x1c84] ss:$40 sps:$4 sm:$0xff]  }
 0x46d   :  { %9688 = vmatprep.subr.bf16.mxu1 %v19176_v1  ;;  %v19230_v1 = vld [vmem:[#allocation6 + $0x1c8c] ss:$40 sps:$4 sm:$0xff]  }
 0x46f   :  { %9361 = vmatpush1.bf16.msra.mxu0 %v19171_v18  ;;  %v19225_v18 = vld [vmem:[#allocation6 + $0x1c80] ss:$40 sps:$4 sm:$0xff]  }
 0x470   :  { %9689 = vmatpush1.bf16.msra.mxu1 %v19174_v56  ;;  %9362 = vmatprep.subr.bf16.mxu0 %v19179_v46  ;;  %v19228_v56 = vld [vmem:[#allocation6 + $0x1c88] ss:$40 sps:$4 sm:$0xff]   ;;  %v19233_v46 = vld [vmem:[#allocation6 + $0x1cd4] ss:$40 sps:$4 sm:$0xff]  }
 0x471   :  { %9690 = vmatprep.subr.bf16.mxu1 %v19182_v2  ;;  %v19236_v2 = vld [vmem:[#allocation6 + $0x1cdc] ss:$40 sps:$4 sm:$0xff]  }
 0x473   :  { %9363 = vmatpush1.bf16.msra.mxu0 %v19177_v4  ;;  %v19231_v4 = vld [vmem:[#allocation6 + $0x1cd0] ss:$40 sps:$4 sm:$0xff]  }
 0x474   :  { %9691 = vmatpush1.bf16.msra.mxu1 %v19180_v20  ;;  %9364 = vmatprep.subr.bf16.mxu0 %v19185_v11  ;;  %v19234_v20 = vld [vmem:[#allocation6 + $0x1cd8] ss:$40 sps:$4 sm:$0xff]   ;;  %v19239_v11 = vld [vmem:[#allocation6 + $0x1d24] ss:$40 sps:$4 sm:$0xff]  }
 0x475   :  { %9692 = vmatprep.subr.bf16.mxu1 %v19188_v13  ;;  %v19242_v13 = vld [vmem:[#allocation6 + $0x1d2c] ss:$40 sps:$4 sm:$0xff]  }
 0x477   :  { %9365 = vmatpush1.bf16.msra.mxu0 %v19183_v15  ;;  %v19237_v15 = vld [vmem:[#allocation6 + $0x1d20] ss:$40 sps:$4 sm:$0xff]  }
 0x478   :  { %9693 = vmatpush1.bf16.msra.mxu1 %v19186_v16  ;;  %9366 = vmatprep.subr.bf16.mxu0 %v19191_v17  ;;  %v19240_v16 = vld [vmem:[#allocation6 + $0x1d28] ss:$40 sps:$4 sm:$0xff]   ;;  %v19245_v17 = vld [vmem:[#allocation6 + $0x1d74] ss:$40 sps:$4 sm:$0xff]  }
 0x479   :  { %9694 = vmatprep.subr.bf16.mxu1 %v19194_v21  ;;  %v19248_v21 = vld [vmem:[#allocation6 + $0x1d7c] ss:$40 sps:$4 sm:$0xff]  }
 0x47b   :  { %9367 = vmatpush1.bf16.msra.mxu0 %v19189_v31  ;;  %v19243_v31 = vld [vmem:[#allocation6 + $0x1d70] ss:$40 sps:$4 sm:$0xff]  }
 0x47c   :  { %9695 = vmatpush1.bf16.msra.mxu1 %v19192_v23  ;;  %9368 = vmatprep.subr.bf16.mxu0 %v19197_v24  ;;  %v19246_v23 = vld [vmem:[#allocation6 + $0x1d78] ss:$40 sps:$4 sm:$0xff]   ;;  %v19251_v24 = vld [vmem:[#allocation6 + $0x1dc4] ss:$40 sps:$4 sm:$0xff]  }
 0x47d   :  { %9696 = vmatprep.subr.bf16.mxu1 %v19200_v26  ;;  %v19254_v26 = vld [vmem:[#allocation6 + $0x1dcc] ss:$40 sps:$4 sm:$0xff]  }
 0x47f   :  { %9369 = vmatpush1.bf16.msra.mxu0 %v19195_v27  ;;  %v19249_v27 = vld [vmem:[#allocation6 + $0x1dc0] ss:$40 sps:$4 sm:$0xff]  }
 0x480   :  { %9697 = vmatpush1.bf16.msra.mxu1 %v19198_v29  ;;  %9370 = vmatprep.subr.bf16.mxu0 %v19203_v32  ;;  %v19252_v29 = vld [vmem:[#allocation6 + $0x1dc8] ss:$40 sps:$4 sm:$0xff]   ;;  %v19257_v32 = vld [vmem:[#allocation6 + $0x1e14] ss:$40 sps:$4 sm:$0xff]  }
 0x481   :  { %9698 = vmatprep.subr.bf16.mxu1 %v19206_v36  ;;  %v19260_v36 = vld [vmem:[#allocation6 + $0x1e1c] ss:$40 sps:$4 sm:$0xff]  }
 0x483   :  { %9371 = vmatpush1.bf16.msra.mxu0 %v19201_v38  ;;  %v19255_v38 = vld [vmem:[#allocation6 + $0x1e10] ss:$40 sps:$4 sm:$0xff]  }
 0x484   :  { %9699 = vmatpush1.bf16.msra.mxu1 %v19204_v39  ;;  %9372 = vmatprep.subr.bf16.mxu0 %v19209_v22  ;;  %v19258_v39 = vld [vmem:[#allocation6 + $0x1e18] ss:$40 sps:$4 sm:$0xff]   ;;  %v19263_v22 = vld [vmem:[#allocation6 + $0x1e64] ss:$40 sps:$4 sm:$0xff]  }
 0x485   :  { %9700 = vmatprep.subr.bf16.mxu1 %v19212_v41  ;;  %v19266_v41 = vld [vmem:[#allocation6 + $0x1e6c] ss:$40 sps:$4 sm:$0xff]  }
 0x487   :  { %9373 = vmatpush1.bf16.msra.mxu0 %v19207_v43  ;;  %v19261_v43 = vld [vmem:[#allocation6 + $0x1e60] ss:$40 sps:$4 sm:$0xff]  }
 0x488   :  { %9701 = vmatpush1.bf16.msra.mxu1 %v19210_v58  ;;  %9374 = vmatprep.subr.bf16.mxu0 %v19215_v44  ;;  %v19264_v58 = vld [vmem:[#allocation6 + $0x1e68] ss:$40 sps:$4 sm:$0xff]   ;;  %v19269_v44 = vld [vmem:[#allocation6 + $0x1eb4] ss:$40 sps:$4 sm:$0xff]  }
 0x489   :  { %9702 = vmatprep.subr.bf16.mxu1 %v19218_v48  ;;  %v19272_v48 = vld [vmem:[#allocation6 + $0x1ebc] ss:$40 sps:$4 sm:$0xff]  }
 0x48b   :  { %9375 = vmatpush1.bf16.msra.mxu0 %v19213_v53  ;;  %v19267_v53 = vld [vmem:[#allocation6 + $0x1eb0] ss:$40 sps:$4 sm:$0xff]  }
 0x48c   :  { %9703 = vmatpush1.bf16.msra.mxu1 %v19216_v57  ;;  %9376 = vmatprep.subr.bf16.mxu0 %v19221_v60  ;;  %v19270_v57 = vld [vmem:[#allocation6 + $0x1eb8] ss:$40 sps:$4 sm:$0xff]   ;;  %v19275_v60 = vld [vmem:[#allocation6 + $0x1f04] ss:$40 sps:$4 sm:$0xff]  }
 0x48d   :  { %9704 = vmatprep.subr.bf16.mxu1 %v19224_v62  ;;  %v19278_v62 = vld [vmem:[#allocation6 + $0x1f0c] ss:$40 sps:$4 sm:$0xff]  }
 0x48f   :  { %9377 = vmatpush1.bf16.msra.mxu0 %v19219_v63  ;;  %v19273_v63 = vld [vmem:[#allocation6 + $0x1f00] ss:$40 sps:$4 sm:$0xff]  }
 0x490   :  { %9705 = vmatpush1.bf16.msra.mxu1 %v19222_v8  ;;  %9378 = vmatprep.subr.bf16.mxu0 %v19227_v6  ;;  %v19276_v8 = vld [vmem:[#allocation6 + $0x1f08] ss:$40 sps:$4 sm:$0xff]   ;;  %v19281_v6 = vld [vmem:[#allocation6 + $0x1f54] ss:$40 sps:$4 sm:$0xff]  }
 0x491   :  { %9706 = vmatprep.subr.bf16.mxu1 %v19230_v1  ;;  %v19284_v1 = vld [vmem:[#allocation6 + $0x1f5c] ss:$40 sps:$4 sm:$0xff]  }
 0x493   :  { %9379 = vmatpush1.bf16.msra.mxu0 %v19225_v18  ;;  %v19279_v18 = vld [vmem:[#allocation6 + $0x1f50] ss:$40 sps:$4 sm:$0xff]  }
 0x494   :  { %9707 = vmatpush1.bf16.msra.mxu1 %v19228_v56  ;;  %9380 = vmatprep.subr.bf16.mxu0 %v19233_v46  ;;  %v19282_v56 = vld [vmem:[#allocation6 + $0x1f58] ss:$40 sps:$4 sm:$0xff]   ;;  %v19287_v46 = vld [vmem:[#allocation6 + $0x1fa4] ss:$40 sps:$4 sm:$0xff]  }
 0x495   :  { %9708 = vmatprep.subr.bf16.mxu1 %v19236_v2  ;;  %v19290_v2 = vld [vmem:[#allocation6 + $0x1fac] ss:$40 sps:$4 sm:$0xff]  }
 0x497   :  { %9381 = vmatpush1.bf16.msra.mxu0 %v19231_v4  ;;  %v19285_v4 = vld [vmem:[#allocation6 + $0x1fa0] ss:$40 sps:$4 sm:$0xff]  }
 0x498   :  { %9709 = vmatpush1.bf16.msra.mxu1 %v19234_v20  ;;  %9382 = vmatprep.subr.bf16.mxu0 %v19239_v11  ;;  %v19288_v20 = vld [vmem:[#allocation6 + $0x1fa8] ss:$40 sps:$4 sm:$0xff]   ;;  %v19293_v11 = vld [vmem:[#allocation6 + $0x1ff4] ss:$40 sps:$4 sm:$0xff]  }
 0x499   :  { %9710 = vmatprep.subr.bf16.mxu1 %v19242_v13  ;;  %v19296_v13 = vld [vmem:[#allocation6 + $0x1ffc] ss:$40 sps:$4 sm:$0xff]  }
 0x49b   :  { %9383 = vmatpush1.bf16.msra.mxu0 %v19237_v15  ;;  %v19291_v15 = vld [vmem:[#allocation6 + $0x1ff0] ss:$40 sps:$4 sm:$0xff]  }
 0x49c   :  { %9711 = vmatpush1.bf16.msra.mxu1 %v19240_v16  ;;  %9384 = vmatprep.subr.bf16.mxu0 %v19245_v17  ;;  %v19294_v16 = vld [vmem:[#allocation6 + $0x1ff8] ss:$40 sps:$4 sm:$0xff]   ;;  %v19299_v17 = vld [vmem:[#allocation6 + $0x2044] ss:$40 sps:$4 sm:$0xff]  }
 0x49d   :  { %9712 = vmatprep.subr.bf16.mxu1 %v19248_v21  ;;  %v19302_v21 = vld [vmem:[#allocation6 + $0x204c] ss:$40 sps:$4 sm:$0xff]  }
 0x49f   :  { %9385 = vmatpush1.bf16.msra.mxu0 %v19243_v31  ;;  %v19297_v31 = vld [vmem:[#allocation6 + $0x2040] ss:$40 sps:$4 sm:$0xff]  }
 0x4a0   :  { %9713 = vmatpush1.bf16.msra.mxu1 %v19246_v23  ;;  %9386 = vmatprep.subr.bf16.mxu0 %v19251_v24  ;;  %v19300_v23 = vld [vmem:[#allocation6 + $0x2048] ss:$40 sps:$4 sm:$0xff]   ;;  %v19305_v24 = vld [vmem:[#allocation6 + $0x2094] ss:$40 sps:$4 sm:$0xff]  }
 0x4a1   :  { %9714 = vmatprep.subr.bf16.mxu1 %v19254_v26  ;;  %v19308_v26 = vld [vmem:[#allocation6 + $0x209c] ss:$40 sps:$4 sm:$0xff]  }
 0x4a3   :  { %9387 = vmatpush1.bf16.msra.mxu0 %v19249_v27  ;;  %v19303_v27 = vld [vmem:[#allocation6 + $0x2090] ss:$40 sps:$4 sm:$0xff]  }
 0x4a4   :  { %9715 = vmatpush1.bf16.msra.mxu1 %v19252_v29  ;;  %9397 = vmatprep.subr.bf16.mxu0 %v19257_v32  ;;  %v19306_v29 = vld [vmem:[#allocation6 + $0x2098] ss:$40 sps:$4 sm:$0xff]   ;;  %v19311_v32 = vld [vmem:[#allocation6 + $0x20e4] ss:$40 sps:$4 sm:$0xff]  }
 0x4a5   :  { %9725 = vmatprep.subr.bf16.mxu1 %v19260_v36  ;;  %v19314_v36 = vld [vmem:[#allocation6 + $0x20ec] ss:$40 sps:$4 sm:$0xff]  }
 0x4a6   :  { %9389 = vmatmul.mubr.bf16.vlgmr.msra.gmra.mrb[20].mxu0 %v20386_v59 }
 0x4a7   :  { %9717 = vmatmul.mubr.bf16.vlgmr.msra.gmra.mrb[20].mxu1 %v20386_v59  ;;  %9398 = vmatpush1.bf16.msra.mxu0 %v19255_v38  ;;  %v19309_v38 = vld [vmem:[#allocation6 + $0x20e0] ss:$40 sps:$4 sm:$0xff]  }
 0x4a8   :  { %9429 = vmatprep.mubr.bf16.mxu0 %v20388_v61  ;;  %9726 = vmatpush1.bf16.msra.mxu1 %v19258_v39  ;;  %v19312_v39 = vld [vmem:[#allocation6 + $0x20e8] ss:$40 sps:$4 sm:$0xff]  }
 0x4a9   :  { %9757 = vmatprep.mubr.bf16.mxu1 %v20388_v61  ;;  %9399 = vmatprep.subr.bf16.mxu0 %v19263_v22  ;;  %v19317_v22 = vld [vmem:[#allocation6 + $0x2134] ss:$40 sps:$4 sm:$0xff]  }
 0x4aa   :  { %9727 = vmatprep.subr.bf16.mxu1 %v19266_v41  ;;  %v19320_v41 = vld [vmem:[#allocation6 + $0x213c] ss:$40 sps:$4 sm:$0xff]  }
 0x4ab   :  { %9400 = vmatpush1.bf16.msra.mxu0 %v19261_v43  ;;  %v19315_v43 = vld [vmem:[#allocation6 + $0x2130] ss:$40 sps:$4 sm:$0xff]  }
 0x4ac   :  { %9728 = vmatpush1.bf16.msra.mxu1 %v19264_v58  ;;  %9401 = vmatprep.subr.bf16.mxu0 %v19269_v44  ;;  %v19318_v58 = vld [vmem:[#allocation6 + $0x2138] ss:$40 sps:$4 sm:$0xff]   ;;  %v19323_v44 = vld [vmem:[#allocation6 + $0x2184] ss:$40 sps:$4 sm:$0xff]  }
 0x4ad   :  { %9729 = vmatprep.subr.bf16.mxu1 %v19272_v48  ;;  %v19326_v48 = vld [vmem:[#allocation6 + $0x218c] ss:$40 sps:$4 sm:$0xff]  }
 0x4af   :  { %9402 = vmatpush1.bf16.msra.mxu0 %v19267_v53  ;;  %v19321_v53 = vld [vmem:[#allocation6 + $0x2180] ss:$40 sps:$4 sm:$0xff]  }
 0x4b0   :  { %9730 = vmatpush1.bf16.msra.mxu1 %v19270_v57  ;;  %9403 = vmatprep.subr.bf16.mxu0 %v19275_v60  ;;  %v19324_v57 = vld [vmem:[#allocation6 + $0x2188] ss:$40 sps:$4 sm:$0xff]   ;;  %v19329_v60 = vld [vmem:[#allocation6 + $0x21d4] ss:$40 sps:$4 sm:$0xff]  }
 0x4b1   :  { %9731 = vmatprep.subr.bf16.mxu1 %v19278_v62  ;;  %v19332_v62 = vld [vmem:[#allocation6 + $0x21dc] ss:$40 sps:$4 sm:$0xff]  }
 0x4b3   :  { %9404 = vmatpush1.bf16.msra.mxu0 %v19273_v63  ;;  %v19327_v63 = vld [vmem:[#allocation6 + $0x21d0] ss:$40 sps:$4 sm:$0xff]  }
 0x4b4   :  { %9732 = vmatpush1.bf16.msra.mxu1 %v19276_v8  ;;  %9405 = vmatprep.subr.bf16.mxu0 %v19281_v6  ;;  %v19330_v8 = vld [vmem:[#allocation6 + $0x21d8] ss:$40 sps:$4 sm:$0xff]   ;;  %v19335_v6 = vld [vmem:[#allocation6 + $0x2224] ss:$40 sps:$4 sm:$0xff]  }
 0x4b5   :  { %9733 = vmatprep.subr.bf16.mxu1 %v19284_v1  ;;  %v19338_v1 = vld [vmem:[#allocation6 + $0x222c] ss:$40 sps:$4 sm:$0xff]  }
 0x4b7   :  { %9406 = vmatpush1.bf16.msra.mxu0 %v19279_v18  ;;  %v19333_v18 = vld [vmem:[#allocation6 + $0x2220] ss:$40 sps:$4 sm:$0xff]  }
 0x4b8   :  { %9734 = vmatpush1.bf16.msra.mxu1 %v19282_v56  ;;  %9407 = vmatprep.subr.bf16.mxu0 %v19287_v46  ;;  %v19336_v56 = vld [vmem:[#allocation6 + $0x2228] ss:$40 sps:$4 sm:$0xff]   ;;  %v19341_v46 = vld [vmem:[#allocation6 + $0x2274] ss:$40 sps:$4 sm:$0xff]  }
 0x4b9   :  { %9735 = vmatprep.subr.bf16.mxu1 %v19290_v2  ;;  %v19344_v2 = vld [vmem:[#allocation6 + $0x227c] ss:$40 sps:$4 sm:$0xff]  }
 0x4bb   :  { %9408 = vmatpush1.bf16.msra.mxu0 %v19285_v4  ;;  %v19339_v4 = vld [vmem:[#allocation6 + $0x2270] ss:$40 sps:$4 sm:$0xff]  }
 0x4bc   :  { %9736 = vmatpush1.bf16.msra.mxu1 %v19288_v20  ;;  %9409 = vmatprep.subr.bf16.mxu0 %v19293_v11  ;;  %v19342_v20 = vld [vmem:[#allocation6 + $0x2278] ss:$40 sps:$4 sm:$0xff]   ;;  %v19347_v11 = vld [vmem:[#allocation6 + $0x22c4] ss:$40 sps:$4 sm:$0xff]  }
 0x4bd   :  { %9737 = vmatprep.subr.bf16.mxu1 %v19296_v13  ;;  %v19350_v13 = vld [vmem:[#allocation6 + $0x22cc] ss:$40 sps:$4 sm:$0xff]  }
 0x4bf   :  { %9410 = vmatpush1.bf16.msra.mxu0 %v19291_v15  ;;  %v19345_v15 = vld [vmem:[#allocation6 + $0x22c0] ss:$40 sps:$4 sm:$0xff]  }
 0x4c0   :  { %9738 = vmatpush1.bf16.msra.mxu1 %v19294_v16  ;;  %9411 = vmatprep.subr.bf16.mxu0 %v19299_v17  ;;  %v19348_v16 = vld [vmem:[#allocation6 + $0x22c8] ss:$40 sps:$4 sm:$0xff]   ;;  %v19353_v17 = vld [vmem:[#allocation6 + $0x2314] ss:$40 sps:$4 sm:$0xff]  }
 0x4c1   :  { %9739 = vmatprep.subr.bf16.mxu1 %v19302_v21  ;;  %v19356_v21 = vld [vmem:[#allocation6 + $0x231c] ss:$40 sps:$4 sm:$0xff]  }
 0x4c3   :  { %9412 = vmatpush1.bf16.msra.mxu0 %v19297_v31  ;;  %v19351_v31 = vld [vmem:[#allocation6 + $0x2310] ss:$40 sps:$4 sm:$0xff]  }
 0x4c4   :  { %9740 = vmatpush1.bf16.msra.mxu1 %v19300_v23  ;;  %9413 = vmatprep.subr.bf16.mxu0 %v19305_v24  ;;  %v19354_v23 = vld [vmem:[#allocation6 + $0x2318] ss:$40 sps:$4 sm:$0xff]   ;;  %v19359_v24 = vld [vmem:[#allocation6 + $0x2364] ss:$40 sps:$4 sm:$0xff]  }
 0x4c5   :  { %9741 = vmatprep.subr.bf16.mxu1 %v19308_v26  ;;  %v19362_v26 = vld [vmem:[#allocation6 + $0x236c] ss:$40 sps:$4 sm:$0xff]  }
 0x4c7   :  { %9414 = vmatpush1.bf16.msra.mxu0 %v19303_v27  ;;  %v19357_v27 = vld [vmem:[#allocation6 + $0x2360] ss:$40 sps:$4 sm:$0xff]  }
 0x4c8   :  { %9742 = vmatpush1.bf16.msra.mxu1 %v19306_v29  ;;  %9415 = vmatprep.subr.bf16.mxu0 %v19311_v32  ;;  %v19360_v29 = vld [vmem:[#allocation6 + $0x2368] ss:$40 sps:$4 sm:$0xff]   ;;  %v19365_v32 = vld [vmem:[#allocation6 + $0x23b4] ss:$40 sps:$4 sm:$0xff]  }
 0x4c9   :  { %9743 = vmatprep.subr.bf16.mxu1 %v19314_v36  ;;  %v19368_v36 = vld [vmem:[#allocation6 + $0x23bc] ss:$40 sps:$4 sm:$0xff]  }
 0x4cb   :  { %9416 = vmatpush1.bf16.msra.mxu0 %v19309_v38  ;;  %v19363_v38 = vld [vmem:[#allocation6 + $0x23b0] ss:$40 sps:$4 sm:$0xff]  }
 0x4cc   :  { %9744 = vmatpush1.bf16.msra.mxu1 %v19312_v39  ;;  %9417 = vmatprep.subr.bf16.mxu0 %v19317_v22  ;;  %v19366_v39 = vld [vmem:[#allocation6 + $0x23b8] ss:$40 sps:$4 sm:$0xff]   ;;  %v19371_v22 = vld [vmem:[#allocation6 + $0x2404] ss:$40 sps:$4 sm:$0xff]  }
 0x4cd   :  { %9745 = vmatprep.subr.bf16.mxu1 %v19320_v41  ;;  %v19374_v41 = vld [vmem:[#allocation6 + $0x240c] ss:$40 sps:$4 sm:$0xff]  }
 0x4cf   :  { %9418 = vmatpush1.bf16.msra.mxu0 %v19315_v43  ;;  %v19369_v43 = vld [vmem:[#allocation6 + $0x2400] ss:$40 sps:$4 sm:$0xff]  }
 0x4d0   :  { %9746 = vmatpush1.bf16.msra.mxu1 %v19318_v58  ;;  %9419 = vmatprep.subr.bf16.mxu0 %v19323_v44  ;;  %v19372_v58 = vld [vmem:[#allocation6 + $0x2408] ss:$40 sps:$4 sm:$0xff]   ;;  %v19377_v44 = vld [vmem:[#allocation6 + $0x2454] ss:$40 sps:$4 sm:$0xff]  }
 0x4d1   :  { %9747 = vmatprep.subr.bf16.mxu1 %v19326_v48  ;;  %v19380_v48 = vld [vmem:[#allocation6 + $0x245c] ss:$40 sps:$4 sm:$0xff]  }
 0x4d3   :  { %9420 = vmatpush1.bf16.msra.mxu0 %v19321_v53  ;;  %v19375_v53 = vld [vmem:[#allocation6 + $0x2450] ss:$40 sps:$4 sm:$0xff]  }
 0x4d4   :  { %9748 = vmatpush1.bf16.msra.mxu1 %v19324_v57  ;;  %9421 = vmatprep.subr.bf16.mxu0 %v19329_v60  ;;  %v19378_v57 = vld [vmem:[#allocation6 + $0x2458] ss:$40 sps:$4 sm:$0xff]   ;;  %v19383_v60 = vld [vmem:[#allocation6 + $0x24a4] ss:$40 sps:$4 sm:$0xff]  }
 0x4d5   :  { %9749 = vmatprep.subr.bf16.mxu1 %v19332_v62  ;;  %v19386_v62 = vld [vmem:[#allocation6 + $0x24ac] ss:$40 sps:$4 sm:$0xff]  }
 0x4d7   :  { %9422 = vmatpush1.bf16.msra.mxu0 %v19327_v63  ;;  %v19381_v63 = vld [vmem:[#allocation6 + $0x24a0] ss:$40 sps:$4 sm:$0xff]  }
 0x4d8   :  { %9750 = vmatpush1.bf16.msra.mxu1 %v19330_v8  ;;  %9423 = vmatprep.subr.bf16.mxu0 %v19335_v6  ;;  %v19384_v8 = vld [vmem:[#allocation6 + $0x24a8] ss:$40 sps:$4 sm:$0xff]   ;;  %v19389_v6 = vld [vmem:[#allocation6 + $0x24f4] ss:$40 sps:$4 sm:$0xff]  }
 0x4d9   :  { %9751 = vmatprep.subr.bf16.mxu1 %v19338_v1  ;;  %v19392_v1 = vld [vmem:[#allocation6 + $0x24fc] ss:$40 sps:$4 sm:$0xff]  }
 0x4db   :  { %9424 = vmatpush1.bf16.msra.mxu0 %v19333_v18  ;;  %v19387_v18 = vld [vmem:[#allocation6 + $0x24f0] ss:$40 sps:$4 sm:$0xff]  }
 0x4dc   :  { %9752 = vmatpush1.bf16.msra.mxu1 %v19336_v56  ;;  %9425 = vmatprep.subr.bf16.mxu0 %v19341_v46  ;;  %v19390_v56 = vld [vmem:[#allocation6 + $0x24f8] ss:$40 sps:$4 sm:$0xff]   ;;  %v19395_v46 = vld [vmem:[#allocation6 + $0x2544] ss:$40 sps:$4 sm:$0xff]  }
 0x4dd   :  { %9753 = vmatprep.subr.bf16.mxu1 %v19344_v2  ;;  %v19398_v2 = vld [vmem:[#allocation6 + $0x254c] ss:$40 sps:$4 sm:$0xff]  }
 0x4df   :  { %9426 = vmatpush1.bf16.msra.mxu0 %v19339_v4  ;;  %v19393_v4 = vld [vmem:[#allocation6 + $0x2540] ss:$40 sps:$4 sm:$0xff]  }
 0x4e0   :  { %9754 = vmatpush1.bf16.msra.mxu1 %v19342_v20  ;;  %9427 = vmatprep.subr.bf16.mxu0 %v19347_v11  ;;  %v19396_v20 = vld [vmem:[#allocation6 + $0x2548] ss:$40 sps:$4 sm:$0xff]   ;;  %v19401_v11 = vld [vmem:[#allocation6 + $0x2594] ss:$40 sps:$4 sm:$0xff]  }
 0x4e1   :  { %9755 = vmatprep.subr.bf16.mxu1 %v19350_v13  ;;  %v19404_v13 = vld [vmem:[#allocation6 + $0x259c] ss:$40 sps:$4 sm:$0xff]  }
 0x4e3   :  { %9428 = vmatpush1.bf16.msra.mxu0 %v19345_v15  ;;  %v19399_v15 = vld [vmem:[#allocation6 + $0x2590] ss:$40 sps:$4 sm:$0xff]  }
 0x4e4   :  { %9756 = vmatpush1.bf16.msra.mxu1 %v19348_v16  ;;  %9438 = vmatprep.subr.bf16.mxu0 %v19353_v17  ;;  %v19402_v16 = vld [vmem:[#allocation6 + $0x2598] ss:$40 sps:$4 sm:$0xff]   ;;  %v19407_v17 = vld [vmem:[#allocation6 + $0x25e4] ss:$40 sps:$4 sm:$0xff]  }
 0x4e5   :  { %9766 = vmatprep.subr.bf16.mxu1 %v19356_v21  ;;  %v19410_v21 = vld [vmem:[#allocation6 + $0x25ec] ss:$40 sps:$4 sm:$0xff]  }
 0x4e6   :  { %9430 = vmatmul.mubr.bf16.vlgmr.msra.gmra.mrb[20].mxu0 %v20400_v47 }
 0x4e7   :  { %9758 = vmatmul.mubr.bf16.vlgmr.msra.gmra.mrb[20].mxu1 %v20400_v47  ;;  %9439 = vmatpush1.bf16.msra.mxu0 %v19351_v31  ;;  %v19405_v31 = vld [vmem:[#allocation6 + $0x25e0] ss:$40 sps:$4 sm:$0xff]  }
 0x4e8   :  { %9470 = vmatprep.mubr.bf16.mxu0 %v20402_v40  ;;  %9767 = vmatpush1.bf16.msra.mxu1 %v19354_v23  ;;  %v19408_v23 = vld [vmem:[#allocation6 + $0x25e8] ss:$40 sps:$4 sm:$0xff]  }
 0x4e9   :  { %9798 = vmatprep.mubr.bf16.mxu1 %v20402_v40  ;;  %9440 = vmatprep.subr.bf16.mxu0 %v19359_v24  ;;  %v19413_v24 = vld [vmem:[#allocation6 + $0x2634] ss:$40 sps:$4 sm:$0xff]  }
 0x4ea   :  { %9768 = vmatprep.subr.bf16.mxu1 %v19362_v26  ;;  %v19416_v26 = vld [vmem:[#allocation6 + $0x263c] ss:$40 sps:$4 sm:$0xff]  }
 0x4eb   :  { %9441 = vmatpush1.bf16.msra.mxu0 %v19357_v27  ;;  %v19411_v27 = vld [vmem:[#allocation6 + $0x2630] ss:$40 sps:$4 sm:$0xff]  }
 0x4ec   :  { %9769 = vmatpush1.bf16.msra.mxu1 %v19360_v29  ;;  %9442 = vmatprep.subr.bf16.mxu0 %v19365_v32  ;;  %v19414_v29 = vld [vmem:[#allocation6 + $0x2638] ss:$40 sps:$4 sm:$0xff]   ;;  %v19419_v32 = vld [vmem:[#allocation6 + $0x2684] ss:$40 sps:$4 sm:$0xff]  }
 0x4ed   :  { %9770 = vmatprep.subr.bf16.mxu1 %v19368_v36  ;;  %v19422_v36 = vld [vmem:[#allocation6 + $0x268c] ss:$40 sps:$4 sm:$0xff]  }
 0x4ef   :  { %9443 = vmatpush1.bf16.msra.mxu0 %v19363_v38  ;;  %v19417_v38 = vld [vmem:[#allocation6 + $0x2680] ss:$40 sps:$4 sm:$0xff]  }
 0x4f0   :  { %9771 = vmatpush1.bf16.msra.mxu1 %v19366_v39  ;;  %9444 = vmatprep.subr.bf16.mxu0 %v19371_v22  ;;  %v19420_v39 = vld [vmem:[#allocation6 + $0x2688] ss:$40 sps:$4 sm:$0xff]   ;;  %v19425_v22 = vld [vmem:[#allocation6 + $0x26d4] ss:$40 sps:$4 sm:$0xff]  }
 0x4f1   :  { %9772 = vmatprep.subr.bf16.mxu1 %v19374_v41  ;;  %v19428_v41 = vld [vmem:[#allocation6 + $0x26dc] ss:$40 sps:$4 sm:$0xff]  }
 0x4f3   :  { %9445 = vmatpush1.bf16.msra.mxu0 %v19369_v43  ;;  %v19423_v43 = vld [vmem:[#allocation6 + $0x26d0] ss:$40 sps:$4 sm:$0xff]  }
 0x4f4   :  { %9773 = vmatpush1.bf16.msra.mxu1 %v19372_v58  ;;  %9446 = vmatprep.subr.bf16.mxu0 %v19377_v44  ;;  %v19426_v58 = vld [vmem:[#allocation6 + $0x26d8] ss:$40 sps:$4 sm:$0xff]   ;;  %v19431_v44 = vld [vmem:[#allocation6 + $0x2724] ss:$40 sps:$4 sm:$0xff]  }
 0x4f5   :  { %9774 = vmatprep.subr.bf16.mxu1 %v19380_v48  ;;  %v19434_v48 = vld [vmem:[#allocation6 + $0x272c] ss:$40 sps:$4 sm:$0xff]  }
 0x4f7   :  { %9447 = vmatpush1.bf16.msra.mxu0 %v19375_v53  ;;  %v19429_v53 = vld [vmem:[#allocation6 + $0x2720] ss:$40 sps:$4 sm:$0xff]  }
 0x4f8   :  { %9775 = vmatpush1.bf16.msra.mxu1 %v19378_v57  ;;  %9448 = vmatprep.subr.bf16.mxu0 %v19383_v60  ;;  %v20452_v57 = vld [vmem:[#allocation7] sm:$0xff]  ;;  %v19432_v60 = vld [vmem:[#allocation6 + $0x2728] ss:$40 sps:$4 sm:$0xff]  }
 0x4f9   :  { %9776 = vmatprep.subr.bf16.mxu1 %v19386_v62  ;;  %v19437_v62 = vld [vmem:[#allocation6 + $0x2774] ss:$40 sps:$4 sm:$0xff]  }
 0x4fb   :  { %9449 = vmatpush1.bf16.msra.mxu0 %v19381_v63  ;;  %v19440_v63 = vld [vmem:[#allocation6 + $0x277c] ss:$40 sps:$4 sm:$0xff]  }
 0x4fc   :  { %9777 = vmatpush1.bf16.msra.mxu1 %v19384_v8  ;;  %9450 = vmatprep.subr.bf16.mxu0 %v19389_v6  ;;  %v2052_v8 = vrot.slane %v20452_v57, %v20254_v9  ;;  %v19435_v6 = vld [vmem:[#allocation6 + $0x2770] ss:$40 sps:$4 sm:$0xff]  }
 0x4fd   :  { %9778 = vmatprep.subr.bf16.mxu1 %v19392_v1  ;;  %v19438_v1 = vld [vmem:[#allocation6 + $0x2778] ss:$40 sps:$4 sm:$0xff]  }
 0x4ff   :  { %9451 = vmatpush1.bf16.msra.mxu0 %v19387_v18  ;;  %v19443_v18 = vld [vmem:[#allocation6 + $0x27c4] ss:$40 sps:$4 sm:$0xff]  }
 0x500   :  { %9779 = vmatpush1.bf16.msra.mxu1 %v19390_v56  ;;  %9452 = vmatprep.subr.bf16.mxu0 %v19395_v46  ;;  %v19446_v56 = vld [vmem:[#allocation6 + $0x27cc] ss:$40 sps:$4 sm:$0xff]  }
 0x501   :  { %9780 = vmatprep.subr.bf16.mxu1 %v19398_v2  ;;  %v10155_v46 = vld [vmem:[#allocation9] sm:$0xff] }
 0x502   :  { %v10159_v2 = vld [vmem:[#allocation9 + $0x20] sm:$0xff] }
 0x503   :  { %9453 = vmatpush1.bf16.msra.mxu0 %v19393_v4  ;;  %v17676_v4 = vadd.f32 %v20432_v3, %v2052_v8 }
 0x504   :  { %9781 = vmatpush1.bf16.msra.mxu1 %v19396_v20  ;;  %9454 = vmatprep.subr.bf16.mxu0 %v19401_v11  ;;  %v19441_v20 = vld [vmem:[#allocation6 + $0x27c0] ss:$40 sps:$4 sm:$0xff]  }
 0x505   :  { %9782 = vmatprep.subr.bf16.mxu1 %v19404_v13  ;;  %v19444_v11 = vld [vmem:[#allocation6 + $0x27c8] ss:$40 sps:$4 sm:$0xff]   ;;  %v19449_v13 = vld [vmem:[#allocation6 + $0x24] ss:$40 sps:$4 sm:$0xff]  }
 0x507   :  { %9455 = vmatpush1.bf16.msra.mxu0 %v19399_v15  ;;  %v16883_v15 = vcombine.high %v10155_v46, %v10159_v2 }
 0x508   :  { %9783 = vmatpush1.bf16.msra.mxu1 %v19402_v16  ;;  %9456 = vmatprep.subr.bf16.mxu0 %v19407_v17  ;;  %v10136_v16 = vmax.f32 %v17676_v4, 0.0  ;;  %v19447_v17 = vld [vmem:[#allocation6 + $0x20] ss:$40 sps:$4 sm:$0xff]  }
 0x509   :  { %9784 = vmatprep.subr.bf16.mxu1 %v19410_v21  ;;  %v10163_v21 = vld [vmem:[#allocation9 + $0x40] sm:$0xff] }
 0x50a   :  { %v10203_v4 = vld [vmem:[#allocation9 + $0x180] sm:$0xff] }
 0x50b   :  { %9457 = vmatpush1.bf16.msra.mxu0 %v19405_v31  ;;  %v10167_v31 = vld [vmem:[#allocation9 + $0x60] sm:$0xff] }
 0x50c   :  { %9785 = vmatpush1.bf16.msra.mxu1 %v19408_v23  ;;  %9458 = vmatprep.subr.bf16.mxu0 %v19413_v24  ;;  %v16882_v23 = vcombine.low %v10155_v46, %v10159_v2  ;;  %v19452_v24 = vld [vmem:[#allocation6 + $0x74] ss:$40 sps:$4 sm:$0xff]   ;;  %v16891_v3 = vcombine.high %v10163_v21, %v10167_v31 }
 0x50d   :  { %9786 = vmatprep.subr.bf16.mxu1 %v19416_v26  ;;  %v10171_v26 = vld [vmem:[#allocation9 + $0x80] sm:$0xff]  ;;  %v19464_v46 = vld [vmem:[#allocation6 + $0x1b4] ss:$40 sps:$4 sm:$0xff]  }
 0x50f   :  { %9459 = vmatpush1.bf16.msra.mxu0 %v19411_v27  ;;  %v10175_v27 = vld [vmem:[#allocation9 + $0xa0] sm:$0xff] }
 0x510   :  { %9787 = vmatpush1.bf16.msra.mxu1 %v19414_v29  ;;  %9460 = vmatprep.subr.bf16.mxu0 %v19419_v32  ;;  %v20458_v29 = vpack.c.bf16 %v10136_v16, %v10136_v16  ;;  %v19450_v32 = vld [vmem:[#allocation6 + $0x70] ss:$40 sps:$4 sm:$0xff]  }
 0x511   :  { %9788 = vmatprep.subr.bf16.mxu1 %v19422_v36  ;;  %v16890_v36 = vcombine.low %v10163_v21, %v10167_v31  ;;  %v10215_v21 = vld [vmem:[#allocation9 + $0x1e0] sm:$0xff] }
 0x512   :  { %v19465_v31 = vld [vmem:[#allocation6 + $0x200] ss:$40 sps:$4 sm:$0xff]  }
 0x513   :  { %9461 = vmatpush1.bf16.msra.mxu0 %v19417_v38  ;;  %v19455_v38 = vld [vmem:[#allocation6 + $0xc4] ss:$40 sps:$4 sm:$0xff]  }
 0x514   :  { %9789 = vmatpush1.bf16.msra.mxu1 %v19420_v39  ;;  %9462 = vmatprep.subr.bf16.mxu0 %v19425_v22  ;;  %v16899_v39 = vcombine.high %v10171_v26, %v10175_v27  ;;  %v10179_v22 = vld [vmem:[#allocation9 + $0xc0] sm:$0xff] }
 0x515   :  { %9790 = vmatprep.subr.bf16.mxu1 %v19428_v41  ;;  %v10183_v41 = vld [vmem:[#allocation9 + $0xe0] sm:$0xff] }
 0x517   :  { %9463 = vmatpush1.bf16.msra.mxu0 %v19423_v43  ;;  %v19453_v43 = vld [vmem:[#allocation6 + $0xc0] ss:$40 sps:$4 sm:$0xff]  }
 0x518   :  { %9791 = vmatpush1.bf16.msra.mxu1 %v19426_v58  ;;  %9464 = vmatprep.subr.bf16.mxu0 %v19431_v44  ;;  %v16898_v58 = vcombine.low %v10171_v26, %v10175_v27  ;;  %v19458_v44 = vld [vmem:[#allocation6 + $0x114] ss:$40 sps:$4 sm:$0xff]   ;;  %v10219_v26 = vld [vmem:[#allocation9 + $0x200] sm:$0xff] }
 0x519   :  { %9792 = vmatprep.subr.bf16.mxu1 %v19434_v48  ;;  %v16907_v48 = vcombine.high %v10179_v22, %v10183_v41  ;;  %v10223_v27 = vld [vmem:[#allocation9 + $0x220] sm:$0xff] }
 0x51b   :  { %9465 = vmatpush1.bf16.msra.mxu0 %v19429_v53  ;;  %v10187_v53 = vld [vmem:[#allocation9 + $0x100] sm:$0xff] }
 0x51c   :  { %9793 = vmatpush1.bf16.msra.mxu1 %v19432_v60  ;;  %9466 = vmatprep.subr.bf16.mxu0 %v19437_v62  ;;  %v19456_v60 = vld [vmem:[#allocation6 + $0x110] ss:$40 sps:$4 sm:$0xff]   ;;  %v16906_v62 = vcombine.low %v10179_v22, %v10183_v41 }
 0x51d   :  { %9794 = vmatprep.subr.bf16.mxu1 %v19440_v63  ;;  %v19461_v63 = vld [vmem:[#allocation6 + $0x164] ss:$40 sps:$4 sm:$0xff]  }
 0x51e   :  { %v10227_v22 = vld [vmem:[#allocation9 + $0x240] sm:$0xff] }
 0x51f   :  { %9467 = vmatpush1.bf16.msra.mxu0 %v19435_v6  ;;  %v10195_v6 = vld [vmem:[#allocation9 + $0x140] sm:$0xff] }
 0x520   :  { %9795 = vmatpush1.bf16.msra.mxu1 %v19438_v1  ;;  %9468 = vmatprep.subr.bf16.mxu0 %v19443_v18  ;;  %v10199_v1 = vld [vmem:[#allocation9 + $0x160] sm:$0xff] }
 0x521   :  { %9796 = vmatprep.subr.bf16.mxu1 %v19446_v56  ;;  %v19459_v18 = vld [vmem:[#allocation6 + $0x160] ss:$40 sps:$4 sm:$0xff]   ;;  %v16923_v2 = vcombine.high %v10195_v6, %v10199_v1 }
 0x522   :  { %v10231_v41 = vld [vmem:[#allocation9 + $0x260] sm:$0xff] }
 0x523   :  { %9469 = vmatpush1.bf16.msra.mxu0 %v19441_v20  ;;  %v10207_v20 = vld [vmem:[#allocation9 + $0x1a0] sm:$0xff] }
 0x524   :  { %9797 = vmatpush1.bf16.msra.mxu1 %v19444_v11  ;;  %9807 = vmatprep.subr.bf16.mxu0 %v19449_v13  ;;  %v19462_v11 = vld [vmem:[#allocation6 + $0x1b0] ss:$40 sps:$4 sm:$0xff]   ;;  %v16922_v13 = vcombine.low %v10195_v6, %v10199_v1  ;;  %v16931_v16 = vcombine.high %v10203_v4, %v10207_v20 }
 0x525   :  { %14037 = vmatprep.subr.bf16.mxu1 %v16883_v15  ;;  %v19467_v15 = vld [vmem:[#allocation6 + $0x204] ss:$40 sps:$4 sm:$0xff]  }
 0x526   :  { %9471 = vmatmul.mubr.bf16.vlgmr.msra.gmra.mrb[20].mxu0 %v20410_v50  ;;  %v10243_v6 = vld [vmem:[#allocation9 + $0x2c0] sm:$0xff] }
 0x527   :  { %9799 = vmatmul.mubr.bf16.vlgmr.msra.gmra.mrb[20].mxu1 %v20410_v50  ;;  %9808 = vmatpush1.bf16.msra.mxu0 %v19447_v17  ;;  %v10211_v17 = vld [vmem:[#allocation9 + $0x1c0] sm:$0xff] }
 0x528   :  { %9839 = vmatprep.mubr.bf16.mxu0 %v20267_v28  ;;  %14038 = vmatpush1.bf16.msra.mxu1 %v16882_v23  ;;  %v10191_v28 = vld [vmem:[#allocation9 + $0x120] sm:$0xff]  ;;  %v16930_v23 = vcombine.low %v10203_v4, %v10207_v20 }
 0x529   :  { %14069 = vmatprep.mubr.bf16.mxu1 %v20458_v29  ;;  %9809 = vmatprep.subr.bf16.mxu0 %v19452_v24  ;;  %v16915_v8 = vcombine.high %v10187_v53, %v10191_v28  ;;  %v16914_v56 = vcombine.low %v10187_v53, %v10191_v28  ;;  %v19470_v24 = vld [vmem:[#allocation6 + $0x254] ss:$40 sps:$4 sm:$0xff]   ;;  %v10235_v53 = vld [vmem:[#allocation9 + $0x280] sm:$0xff] }
 0x52a   :  { %14039 = vmatprep.subr.bf16.mxu1 %v16891_v3  ;;  %v16939_v3 = vcombine.high %v10211_v17, %v10215_v21  ;;  %v10239_v28 = vld [vmem:[#allocation9 + $0x2a0] sm:$0xff] }
 0x52b   :  { %9810 = vmatpush1.bf16.msra.mxu0 %v19450_v32  ;;  %v19468_v32 = vld [vmem:[#allocation6 + $0x250] ss:$40 sps:$4 sm:$0xff]  }
 0x52c   :  { %14040 = vmatpush1.bf16.msra.mxu1 %v16890_v36  ;;  %9811 = vmatprep.subr.bf16.mxu0 %v19455_v38  ;;  %v16938_v36 = vcombine.low %v10211_v17, %v10215_v21  ;;  %v19473_v38 = vld [vmem:[#allocation6 + $0x2a4] ss:$40 sps:$4 sm:$0xff]  }
 0x52d   :  { %14041 = vmatprep.subr.bf16.mxu1 %v16899_v39  ;;  %v16947_v39 = vcombine.high %v10219_v26, %v10223_v27  ;;  %v10247_v1 = vld [vmem:[#allocation9 + $0x2e0] sm:$0xff] }
 0x52e   :  { %v10251_v4 = vld [vmem:[#allocation9 + $0x300] sm:$0xff] }
 0x52f   :  { %9812 = vmatpush1.bf16.msra.mxu0 %v19453_v43  ;;  %v19471_v43 = vld [vmem:[#allocation6 + $0x2a0] ss:$40 sps:$4 sm:$0xff]  }
 0x530   :  { %14042 = vmatpush1.bf16.msra.mxu1 %v16898_v58  ;;  %9813 = vmatprep.subr.bf16.mxu0 %v19458_v44  ;;  %v16946_v58 = vcombine.low %v10219_v26, %v10223_v27  ;;  %v19476_v44 = vld [vmem:[#allocation6 + $0x2f4] ss:$40 sps:$4 sm:$0xff]   ;;  %v10255_v20 = vld [vmem:[#allocation9 + $0x320] sm:$0xff] }
 0x531   :  { %14043 = vmatprep.subr.bf16.mxu1 %v16907_v48  ;;  %v16955_v48 = vcombine.high %v10227_v22, %v10231_v41  ;;  %v10259_v17 = vld [vmem:[#allocation9 + $0x340] sm:$0xff] }
 0x532   :  { %v10263_v21 = vld [vmem:[#allocation9 + $0x360] sm:$0xff] }
 0x533   :  { %9814 = vmatpush1.bf16.msra.mxu0 %v19456_v60  ;;  %v19474_v60 = vld [vmem:[#allocation6 + $0x2f0] ss:$40 sps:$4 sm:$0xff]  }
 0x534   :  { %14044 = vmatpush1.bf16.msra.mxu1 %v16906_v62  ;;  %9815 = vmatprep.subr.bf16.mxu0 %v19461_v63  ;;  %v16954_v62 = vcombine.low %v10227_v22, %v10231_v41  ;;  %v19479_v63 = vld [vmem:[#allocation6 + $0x344] ss:$40 sps:$4 sm:$0xff]  }
 0x535   :  { %14045 = vmatprep.subr.bf16.mxu1 %v16915_v8  ;;  %v16963_v8 = vcombine.high %v10235_v53, %v10239_v28  ;;  %v10267_v26 = vld [vmem:[#allocation9 + $0x380] sm:$0xff] }
 0x536   :  { %v10271_v27 = vld [vmem:[#allocation9 + $0x3a0] sm:$0xff] }
 0x537   :  { %9816 = vmatpush1.bf16.msra.mxu0 %v19459_v18  ;;  %v19477_v18 = vld [vmem:[#allocation6 + $0x340] ss:$40 sps:$4 sm:$0xff]   ;;  %v16995_v22 = vcombine.high %v10267_v26, %v10271_v27 }
 0x538   :  { %14046 = vmatpush1.bf16.msra.mxu1 %v16914_v56  ;;  %9817 = vmatprep.subr.bf16.mxu0 %v19464_v46  ;;  %v16962_v56 = vcombine.low %v10235_v53, %v10239_v28  ;;  %v19482_v46 = vld [vmem:[#allocation6 + $0x394] ss:$40 sps:$4 sm:$0xff]   ;;  %v10275_v41 = vld [vmem:[#allocation9 + $0x3c0] sm:$0xff] }
 0x539   :  { %14047 = vmatprep.subr.bf16.mxu1 %v16923_v2  ;;  %v16971_v2 = vcombine.high %v10243_v6, %v10247_v1  ;;  %v19494_v53 = vld [vmem:[#allocation6 + $0x4d4] ss:$40 sps:$4 sm:$0xff]  }
 0x53b   :  { %9818 = vmatpush1.bf16.msra.mxu0 %v19462_v11  ;;  %v19480_v11 = vld [vmem:[#allocation6 + $0x390] ss:$40 sps:$4 sm:$0xff]  }
 0x53c   :  { %14048 = vmatpush1.bf16.msra.mxu1 %v16922_v13  ;;  %9819 = vmatprep.subr.bf16.mxu0 %v19467_v15  ;;  %v16970_v13 = vcombine.low %v10243_v6, %v10247_v1  ;;  %v19485_v15 = vld [vmem:[#allocation6 + $0x3e4] ss:$40 sps:$4 sm:$0xff]   ;;  %v19492_v6 = vld [vmem:[#allocation6 + $0x4d0] ss:$40 sps:$4 sm:$0xff]  }
 0x53d   :  { %14049 = vmatprep.subr.bf16.mxu1 %v16931_v16  ;;  %v16979_v16 = vcombine.high %v10251_v4, %v10255_v20 }
 0x53f   :  { %9820 = vmatpush1.bf16.msra.mxu0 %v19465_v31  ;;  %v19483_v31 = vld [vmem:[#allocation6 + $0x3e0] ss:$40 sps:$4 sm:$0xff]  }
 0x540   :  { %14050 = vmatpush1.bf16.msra.mxu1 %v16930_v23  ;;  %9821 = vmatprep.subr.bf16.mxu0 %v19470_v24  ;;  %v16978_v23 = vcombine.low %v10251_v4, %v10255_v20  ;;  %v19488_v24 = vld [vmem:[#allocation6 + $0x434] ss:$40 sps:$4 sm:$0xff]   ;;  %v19495_v4 = vld [vmem:[#allocation6 + $0x520] ss:$40 sps:$4 sm:$0xff]  }
 0x541   :  { %14051 = vmatprep.subr.bf16.mxu1 %v16939_v3  ;;  %v16987_v3 = vcombine.high %v10259_v17, %v10263_v21  ;;  %v10291_v20 = vld [vmem:[#allocation9 + $0x440] sm:$0xff] }
 0x543   :  { %9822 = vmatpush1.bf16.msra.mxu0 %v19468_v32  ;;  %v19486_v32 = vld [vmem:[#allocation6 + $0x430] ss:$40 sps:$4 sm:$0xff]  }
 0x544   :  { %14052 = vmatpush1.bf16.msra.mxu1 %v16938_v36  ;;  %9823 = vmatprep.subr.bf16.mxu0 %v19473_v38  ;;  %v16986_v36 = vcombine.low %v10259_v17, %v10263_v21  ;;  %v19491_v38 = vld [vmem:[#allocation6 + $0x484] ss:$40 sps:$4 sm:$0xff]  }
 0x545   :  { %14053 = vmatprep.subr.bf16.mxu1 %v16947_v39  ;;  %v2048_v39 = vrot.slane %v20452_v57, %v20249_v7  ;;  %v10303_v17 = vld [vmem:[#allocation9 + $0x4a0] sm:$0xff] }
 0x547   :  { %9824 = vmatpush1.bf16.msra.mxu0 %v19471_v43  ;;  %v10279_v43 = vld [vmem:[#allocation9 + $0x3e0] sm:$0xff]  ;;  %v17675_v28 = vadd.f32 %v20428_v34, %v2048_v39 }
 0x548   :  { %14054 = vmatpush1.bf16.msra.mxu1 %v16946_v58  ;;  %9825 = vmatprep.subr.bf16.mxu0 %v19476_v44  ;;  %v2060_v58 = vrot.slane %v20452_v57, %v20257_v0  ;;  %v19489_v44 = vld [vmem:[#allocation6 + $0x480] ss:$40 sps:$4 sm:$0xff]   ;;  %v17002_v1 = vcombine.low %v10275_v41, %v10279_v43 }
 0x549   :  { %14055 = vmatprep.subr.bf16.mxu1 %v16955_v48  ;;  %v16994_v48 = vcombine.low %v10267_v26, %v10271_v27  ;;  %v10295_v34 = vld [vmem:[#allocation9 + $0x460] sm:$0xff] }
 0x54a   :  { %v10311_v26 = vld [vmem:[#allocation9 + $0x4e0] sm:$0xff] }
 0x54b   :  { %9826 = vmatpush1.bf16.msra.mxu0 %v19474_v60  ;;  %v17003_v60 = vcombine.high %v10275_v41, %v10279_v43  ;;  %v19501_v27 = vld [vmem:[#allocation6 + $0x5c0] ss:$40 sps:$4 sm:$0xff]   ;;  %v19509_v43 = vld [vmem:[#allocation6 + $0x664] ss:$40 sps:$4 sm:$0xff]  }
 0x54c   :  { %14056 = vmatpush1.bf16.msra.mxu1 %v16954_v62  ;;  %9827 = vmatprep.subr.bf16.mxu0 %v19479_v63  ;;  %v10283_v62 = vld [vmem:[#allocation9 + $0x400] sm:$0xff] }
 0x54d   :  { %14057 = vmatprep.subr.bf16.mxu1 %v16963_v8  ;;  %v10287_v63 = vld [vmem:[#allocation9 + $0x420] sm:$0xff]  ;;  %v17678_v8 = vadd.f32 %v20434_v52, %v2060_v58  ;;  %v19500_v52 = vld [vmem:[#allocation6 + $0x574] ss:$40 sps:$4 sm:$0xff]  }
 0x54e   :  { %v10315_v39 = vld [vmem:[#allocation9 + $0x500] sm:$0xff] }
 0x54f   :  { %9828 = vmatpush1.bf16.msra.mxu0 %v19477_v18  ;;  %v19497_v18 = vld [vmem:[#allocation6 + $0x524] ss:$40 sps:$4 sm:$0xff]  }
 0x550   :  { %14058 = vmatpush1.bf16.msra.mxu1 %v16962_v56  ;;  %9829 = vmatprep.subr.bf16.mxu0 %v19482_v46  ;;  %v10135_v56 = vmax.f32 %v17675_v28, 0.0  ;;  %v17011_v46 = vcombine.high %v10283_v62, %v10287_v63 }
 0x551   :  { %14059 = vmatprep.subr.bf16.mxu1 %v16971_v2  ;;  %v10138_v2 = vmax.f32 %v17678_v8, 0.0  ;;  %v10335_v8 = vld [vmem:[#allocation9 + $0x5a0] sm:$0xff] }
 0x553   :  { %9830 = vmatpush1.bf16.msra.mxu0 %v19480_v11  ;;  %v17010_v11 = vcombine.low %v10283_v62, %v10287_v63  ;;  %v20472_v21 = vpack.c.bf16 %v10138_v2, %v10138_v2  ;;  %v10331_v63 = vld [vmem:[#allocation9 + $0x580] sm:$0xff] }
 0x554   :  { %14060 = vmatpush1.bf16.msra.mxu1 %v16970_v13  ;;  %9831 = vmatprep.subr.bf16.mxu0 %v19485_v15  ;;  %v20469_v13 = vpack.c.bf16 %v10135_v56, %v10135_v56  ;;  %v17019_v15 = vcombine.high %v10291_v20, %v10295_v34  ;;  %v17059_v56 = vcombine.high %v10331_v63, %v10335_v8  ;;  %v10343_v2 = vld [vmem:[#allocation9 + $0x5e0] sm:$0xff] }
 0x555   :  { %14061 = vmatprep.subr.bf16.mxu1 %v16979_v16  ;;  %v10299_v16 = vld [vmem:[#allocation9 + $0x480] sm:$0xff] }
 0x557   :  { %9832 = vmatpush1.bf16.msra.mxu0 %v19483_v31  ;;  %v19498_v31 = vld [vmem:[#allocation6 + $0x570] ss:$40 sps:$4 sm:$0xff]  }
 0x558   :  { %14062 = vmatpush1.bf16.msra.mxu1 %v16978_v23  ;;  %9833 = vmatprep.subr.bf16.mxu0 %v19488_v24  ;;  %v17018_v23 = vcombine.low %v10291_v20, %v10295_v34  ;;  %v19503_v24 = vld [vmem:[#allocation6 + $0x5c4] ss:$40 sps:$4 sm:$0xff]   ;;  %v17058_v20 = vcombine.low %v10331_v63, %v10335_v8  ;;  %v19518_v34 = vld [vmem:[#allocation6 + $0x754] ss:$40 sps:$4 sm:$0xff]   ;;  %v19528_v63 = vld [vmem:[#allocation6 + $0x890] ss:$40 sps:$4 sm:$0xff]  }
 0x559   :  { %14063 = vmatprep.subr.bf16.mxu1 %v16987_v3  ;;  %v17027_v3 = vcombine.high %v10299_v16, %v10303_v17 }
 0x55b   :  { %9834 = vmatpush1.bf16.msra.mxu0 %v19486_v32  ;;  %v17026_v32 = vcombine.low %v10299_v16, %v10303_v17  ;;  %v19516_v16 = vld [vmem:[#allocation6 + $0x750] ss:$40 sps:$4 sm:$0xff]  }
 0x55c   :  { %14064 = vmatpush1.bf16.msra.mxu1 %v16986_v36  ;;  %9835 = vmatprep.subr.bf16.mxu0 %v19491_v38  ;;  %v19506_v36 = vld [vmem:[#allocation6 + $0x614] ss:$40 sps:$4 sm:$0xff]  }
 0x55d   :  { %14065 = vmatprep.subr.bf16.mxu1 %v16995_v22  ;;  %v19504_v22 = vld [vmem:[#allocation6 + $0x610] ss:$40 sps:$4 sm:$0xff]  }
 0x55f   :  { %9836 = vmatpush1.bf16.msra.mxu0 %v19489_v44  ;;  %v10323_v44 = vld [vmem:[#allocation9 + $0x540] sm:$0xff] }
 0x560   :  { %14066 = vmatpush1.bf16.msra.mxu1 %v16994_v48  ;;  %9837 = vmatprep.subr.bf16.mxu0 %v19494_v53  ;;  %v10327_v48 = vld [vmem:[#allocation9 + $0x560] sm:$0xff] }
 0x561   :  { %14067 = vmatprep.subr.bf16.mxu1 %v17003_v60  ;;  %v19507_v53 = vld [vmem:[#allocation6 + $0x660] ss:$40 sps:$4 sm:$0xff]   ;;  %v19512_v60 = vld [vmem:[#allocation6 + $0x6b4] ss:$40 sps:$4 sm:$0xff]   ;;  %v17051_v62 = vcombine.high %v10323_v44, %v10327_v48 }
 0x563   :  { %9838 = vmatpush1.bf16.msra.mxu0 %v19492_v6  ;;  %v19510_v6 = vld [vmem:[#allocation6 + $0x6b0] ss:$40 sps:$4 sm:$0xff]  }
 0x564   :  { %14068 = vmatpush1.bf16.msra.mxu1 %v17002_v1  ;;  %9848 = vmatprep.subr.bf16.mxu0 %v19497_v18  ;;  %v17050_v1 = vcombine.low %v10323_v44, %v10327_v48  ;;  %v19515_v18 = vld [vmem:[#allocation6 + $0x704] ss:$40 sps:$4 sm:$0xff]   ;;  %v19525_v44 = vld [vmem:[#allocation6 + $0x840] ss:$40 sps:$4 sm:$0xff]  }
 0x565   :  { %14078 = vmatprep.subr.bf16.mxu1 %v17011_v46  ;;  %v10339_v46 = vld [vmem:[#allocation9 + $0x5c0] sm:$0xff] }
 0x566   :  { %9840 = vmatmul.mubr.bf16.vlgmr.msra.gmra.mrb[24].mxu0 %v20269_v30  ;;  %v10307_v30 = vld [vmem:[#allocation9 + $0x4c0] sm:$0xff]  ;;  %v17066_v17 = vcombine.low %v10339_v46, %v10343_v2 }
 0x567   :  { %14070 = vmatmul.mubr.bf16.vlgmr.msra.gmra.mrb[24].mxu1 %v20469_v13  ;;  %9849 = vmatpush1.bf16.msra.mxu0 %v19495_v4  ;;  %v17035_v38 = vcombine.high %v10307_v30, %v10311_v26  ;;  %v17034_v41 = vcombine.low %v10307_v30, %v10311_v26  ;;  %v19513_v4 = vld [vmem:[#allocation6 + $0x700] ss:$40 sps:$4 sm:$0xff]  }
 0x568   :  { %9880 = vmatprep.mubr.bf16.mxu0 %v20273_v33  ;;  %14079 = vmatpush1.bf16.msra.mxu1 %v17010_v11  ;;  %v10319_v33 = vld [vmem:[#allocation9 + $0x520] sm:$0xff]  ;;  %v17067_v11 = vcombine.high %v10339_v46, %v10343_v2 }
 0x569   :  { %14110 = vmatprep.mubr.bf16.mxu1 %v20472_v21  ;;  %9850 = vmatprep.subr.bf16.mxu0 %v19500_v52  ;;  %v17043_v58 = vcombine.high %v10315_v39, %v10319_v33  ;;  %v17042_v28 = vcombine.low %v10315_v39, %v10319_v33  ;;  %v10347_v52 = vld [vmem:[#allocation9 + $0x600] sm:$0xff] }
 0x56a   :  { %14080 = vmatprep.subr.bf16.mxu1 %v17019_v15  ;;  %v10351_v15 = vld [vmem:[#allocation9 + $0x620] sm:$0xff] }
 0x56b   :  { %9851 = vmatpush1.bf16.msra.mxu0 %v19498_v31  ;;  %v19521_v31 = vld [vmem:[#allocation6 + $0x7a4] ss:$40 sps:$4 sm:$0xff]   ;;  %v19519_v30 = vld [vmem:[#allocation6 + $0x7a0] ss:$40 sps:$4 sm:$0xff]   ;;  %v17074_v26 = vcombine.low %v10347_v52, %v10351_v15  ;;  %v19522_v39 = vld [vmem:[#allocation6 + $0x7f0] ss:$40 sps:$4 sm:$0xff]  }
 0x56c   :  { %14081 = vmatpush1.bf16.msra.mxu1 %v17018_v23  ;;  %9852 = vmatprep.subr.bf16.mxu0 %v19503_v24  ;;  %v17075_v23 = vcombine.high %v10347_v52, %v10351_v15  ;;  %v10355_v24 = vld [vmem:[#allocation9 + $0x640] sm:$0xff] }
 0x56d   :  { %14082 = vmatprep.subr.bf16.mxu1 %v17027_v3  ;;  %v10359_v3 = vld [vmem:[#allocation9 + $0x660] sm:$0xff] }
 0x56e   :  { %v17082_v33 = vcombine.low %v10355_v24, %v10359_v3  ;;  %v19531_v46 = vld [vmem:[#allocation6 + $0x8e0] ss:$40 sps:$4 sm:$0xff]   ;;  %v19534_v52 = vld [vmem:[#allocation6 + $0x930] ss:$40 sps:$4 sm:$0xff]  }
 0x56f   :  { %9853 = vmatpush1.bf16.msra.mxu0 %v19501_v27  ;;  %v19524_v27 = vld [vmem:[#allocation6 + $0x7f4] ss:$40 sps:$4 sm:$0xff]  }
 0x570   :  { %14083 = vmatpush1.bf16.msra.mxu1 %v17026_v32  ;;  %9854 = vmatprep.subr.bf16.mxu0 %v19506_v36  ;;  %v17083_v32 = vcombine.high %v10355_v24, %v10359_v3  ;;  %v10363_v36 = vld [vmem:[#allocation9 + $0x680] sm:$0xff] }
 0x571   :  { %14084 = vmatprep.subr.bf16.mxu1 %v17035_v38  ;;  %v10367_v38 = vld [vmem:[#allocation9 + $0x6a0] sm:$0xff] }
 0x572   :  { %v17090_v48 = vcombine.low %v10363_v36, %v10367_v38  ;;  %v10407_v24 = vld [vmem:[#allocation9 + $0x7e0] sm:$0xff] }
 0x573   :  { %9855 = vmatpush1.bf16.msra.mxu0 %v19504_v22  ;;  %v19527_v22 = vld [vmem:[#allocation6 + $0x844] ss:$40 sps:$4 sm:$0xff]   ;;  %v19537_v3 = vld [vmem:[#allocation6 + $0x980] ss:$40 sps:$4 sm:$0xff]  }
 0x574   :  { %14085 = vmatpush1.bf16.msra.mxu1 %v17034_v41  ;;  %9856 = vmatprep.subr.bf16.mxu0 %v19509_v43  ;;  %v17091_v41 = vcombine.high %v10363_v36, %v10367_v38  ;;  %v10371_v43 = vld [vmem:[#allocation9 + $0x6c0] sm:$0xff] }
 0x575   :  { %14086 = vmatprep.subr.bf16.mxu1 %v17043_v58  ;;  %v10375_v58 = vld [vmem:[#allocation9 + $0x6e0] sm:$0xff] }
 0x576   :  { %v17098_v8 = vcombine.low %v10371_v43, %v10375_v58  ;;  %v10411_v36 = vld [vmem:[#allocation9 + $0x800] sm:$0xff] }
 0x577   :  { %9857 = vmatpush1.bf16.msra.mxu0 %v19507_v53  ;;  %v19530_v53 = vld [vmem:[#allocation6 + $0x894] ss:$40 sps:$4 sm:$0xff]   ;;  %v10415_v38 = vld [vmem:[#allocation9 + $0x820] sm:$0xff] }
 0x578   :  { %14087 = vmatpush1.bf16.msra.mxu1 %v17042_v28  ;;  %9858 = vmatprep.subr.bf16.mxu0 %v19512_v60  ;;  %v17099_v28 = vcombine.high %v10371_v43, %v10375_v58  ;;  %v10379_v60 = vld [vmem:[#allocation9 + $0x700] sm:$0xff] }
 0x579   :  { %14088 = vmatprep.subr.bf16.mxu1 %v17051_v62  ;;  %v10383_v62 = vld [vmem:[#allocation9 + $0x720] sm:$0xff] }
 0x57a   :  { %v17106_v2 = vcombine.low %v10379_v60, %v10383_v62  ;;  %v19543_v43 = vld [vmem:[#allocation6 + $0xa20] ss:$40 sps:$4 sm:$0xff]  }
 0x57b   :  { %9859 = vmatpush1.bf16.msra.mxu0 %v19510_v6  ;;  %v19533_v6 = vld [vmem:[#allocation6 + $0x8e4] ss:$40 sps:$4 sm:$0xff]  }
 0x57c   :  { %14089 = vmatpush1.bf16.msra.mxu1 %v17050_v1  ;;  %9860 = vmatprep.subr.bf16.mxu0 %v19515_v18  ;;  %v17107_v1 = vcombine.high %v10379_v60, %v10383_v62  ;;  %v10387_v18 = vld [vmem:[#allocation9 + $0x740] sm:$0xff] }
 0x57d   :  { %14090 = vmatprep.subr.bf16.mxu1 %v17059_v56  ;;  %v10391_v56 = vld [vmem:[#allocation9 + $0x760] sm:$0xff] }
 0x57e   :  { %v17114_v15 = vcombine.low %v10387_v18, %v10391_v56  ;;  %v10419_v58 = vld [vmem:[#allocation9 + $0x840] sm:$0xff] }
 0x57f   :  { %9861 = vmatpush1.bf16.msra.mxu0 %v19513_v4  ;;  %v19536_v4 = vld [vmem:[#allocation6 + $0x934] ss:$40 sps:$4 sm:$0xff]   ;;  %v19546_v60 = vld [vmem:[#allocation6 + $0xa70] ss:$40 sps:$4 sm:$0xff]  }
 0x580   :  { %14091 = vmatpush1.bf16.msra.mxu1 %v17058_v20  ;;  %9862 = vmatprep.subr.bf16.mxu0 %v19518_v34  ;;  %v17115_v20 = vcombine.high %v10387_v18, %v10391_v56  ;;  %v10395_v34 = vld [vmem:[#allocation9 + $0x780] sm:$0xff] }
 0x581   :  { %14092 = vmatprep.subr.bf16.mxu1 %v17067_v11  ;;  %v10399_v11 = vld [vmem:[#allocation9 + $0x7a0] sm:$0xff] }
 0x582   :  { %v10427_v62 = vld [vmem:[#allocation9 + $0x880] sm:$0xff] }
 0x583   :  { %9863 = vmatpush1.bf16.msra.mxu0 %v19516_v16  ;;  %v19539_v16 = vld [vmem:[#allocation6 + $0x984] ss:$40 sps:$4 sm:$0xff]   ;;  %v19549_v18 = vld [vmem:[#allocation6 + $0xac0] ss:$40 sps:$4 sm:$0xff]  }
 0x584   :  { %14093 = vmatpush1.bf16.msra.mxu1 %v17066_v17  ;;  %9864 = vmatprep.subr.bf16.mxu0 %v19521_v31  ;;  %v2056_v17 = vrot.slane %v20452_v57, %v20292_v37  ;;  %v17123_v31 = vcombine.high %v10395_v34, %v10399_v11  ;;  %v10435_v56 = vld [vmem:[#allocation9 + $0x8c0] sm:$0xff] }
 0x585   :  { %14094 = vmatprep.subr.bf16.mxu1 %v17075_v23  ;;  %v10403_v23 = vld [vmem:[#allocation9 + $0x7c0] sm:$0xff] }
 0x586   :  { %v17130_v57 = vcombine.low %v10403_v23, %v10407_v24 }
 0x587   :  { %9865 = vmatpush1.bf16.msra.mxu0 %v19519_v30  ;;  %v17122_v30 = vcombine.low %v10395_v34, %v10399_v11  ;;  %v10443_v34 = vld [vmem:[#allocation9 + $0x900] sm:$0xff] }
 0x588   :  { %14095 = vmatpush1.bf16.msra.mxu1 %v17074_v26  ;;  %9866 = vmatprep.subr.bf16.mxu0 %v19524_v27  ;;  %v19542_v26 = vld [vmem:[#allocation6 + $0x9d4] ss:$40 sps:$4 sm:$0xff]   ;;  %v17677_v27 = vadd.f32 %v20430_v55, %v2056_v17  ;;  %v19557_v11 = vld [vmem:[#allocation6 + $0xb64] ss:$40 sps:$4 sm:$0xff]  }
 0x589   :  { %14096 = vmatprep.subr.bf16.mxu1 %v17083_v32  ;;  %v17131_v32 = vcombine.high %v10403_v23, %v10407_v24  ;;  %v19548_v55 = vld [vmem:[#allocation6 + $0xa74] ss:$40 sps:$4 sm:$0xff]   ;;  %v10451_v17 = vld [vmem:[#allocation9 + $0x940] sm:$0xff] }
 0x58a   :  { %v19560_v23 = vld [vmem:[#allocation6 + $0xbb4] ss:$40 sps:$4 sm:$0xff]  }
 0x58b   :  { %9867 = vmatpush1.bf16.msra.mxu0 %v19522_v39  ;;  %v19540_v39 = vld [vmem:[#allocation6 + $0x9d0] ss:$40 sps:$4 sm:$0xff]  }
 0x58c   :  { %14097 = vmatpush1.bf16.msra.mxu1 %v17082_v33  ;;  %9868 = vmatprep.subr.bf16.mxu0 %v19527_v22  ;;  %v19545_v33 = vld [vmem:[#allocation6 + $0xa24] ss:$40 sps:$4 sm:$0xff]   ;;  %v10137_v22 = vmax.f32 %v17677_v27, 0.0 }
 0x58d   :  { %14098 = vmatprep.subr.bf16.mxu1 %v17091_v41  ;;  %v17139_v41 = vcombine.high %v10411_v36, %v10415_v38  ;;  %v10463_v27 = vld [vmem:[#allocation9 + $0x9a0] sm:$0xff] }
 0x58f   :  { %9869 = vmatpush1.bf16.msra.mxu0 %v19525_v44  ;;  %v10423_v44 = vld [vmem:[#allocation9 + $0x860] sm:$0xff] }
 0x590   :  { %14099 = vmatpush1.bf16.msra.mxu1 %v17090_v48  ;;  %9870 = vmatprep.subr.bf16.mxu0 %v19530_v53  ;;  %v20480_v48 = vpack.c.bf16 %v10137_v22, %v10137_v22  ;;  %v17138_v53 = vcombine.low %v10411_v36, %v10415_v38  ;;  %v19566_v22 = vld [vmem:[#allocation6 + $0xc54] ss:$40 sps:$4 sm:$0xff]  }
 0x591   :  { %14100 = vmatprep.subr.bf16.mxu1 %v17099_v28  ;;  %v17147_v28 = vcombine.high %v10419_v58, %v10423_v44 }
 0x593   :  { %9871 = vmatpush1.bf16.msra.mxu0 %v19528_v63  ;;  %v10431_v63 = vld [vmem:[#allocation9 + $0x8a0] sm:$0xff] }
 0x594   :  { %14101 = vmatpush1.bf16.msra.mxu1 %v17098_v8  ;;  %9872 = vmatprep.subr.bf16.mxu0 %v19533_v6  ;;  %v19551_v8 = vld [vmem:[#allocation6 + $0xac4] ss:$40 sps:$4 sm:$0xff]   ;;  %v17146_v6 = vcombine.low %v10419_v58, %v10423_v44  ;;  %v19564_v58 = vld [vmem:[#allocation6 + $0xc50] ss:$40 sps:$4 sm:$0xff]  }
 0x595   :  { %14102 = vmatprep.subr.bf16.mxu1 %v17107_v1  ;;  %v17155_v1 = vcombine.high %v10427_v62, %v10431_v63  ;;  %v10475_v44 = vld [vmem:[#allocation9 + $0xa00] sm:$0xff] }
 0x597   :  { %9873 = vmatpush1.bf16.msra.mxu0 %v19531_v46  ;;  %v10439_v46 = vld [vmem:[#allocation9 + $0x8e0] sm:$0xff] }
 0x598   :  { %14103 = vmatpush1.bf16.msra.mxu1 %v17106_v2  ;;  %9874 = vmatprep.subr.bf16.mxu0 %v19536_v4  ;;  %v17154_v2 = vcombine.low %v10427_v62, %v10431_v63  ;;  %v17163_v4 = vcombine.high %v10435_v56, %v10439_v46  ;;  %v19567_v62 = vld [vmem:[#allocation6 + $0xca0] ss:$40 sps:$4 sm:$0xff]  }
 0x599   :  { %14104 = vmatprep.subr.bf16.mxu1 %v17115_v20  ;;  %v19552_v20 = vld [vmem:[#allocation6 + $0xb10] ss:$40 sps:$4 sm:$0xff]  }
 0x59a   :  { %v10483_v63 = vld [vmem:[#allocation9 + $0xa40] sm:$0xff] }
 0x59b   :  { %9875 = vmatpush1.bf16.msra.mxu0 %v19534_v52  ;;  %v17162_v52 = vcombine.low %v10435_v56, %v10439_v46  ;;  %v19570_v56 = vld [vmem:[#allocation6 + $0xcf0] ss:$40 sps:$4 sm:$0xff]  }
 0x59c   :  { %14105 = vmatpush1.bf16.msra.mxu1 %v17114_v15  ;;  %9876 = vmatprep.subr.bf16.mxu0 %v19539_v16  ;;  %v19555_v16 = vld [vmem:[#allocation6 + $0xb60] ss:$40 sps:$4 sm:$0xff]  }
 0x59d   :  { %14106 = vmatprep.subr.bf16.mxu1 %v17123_v31  ;;  %v10455_v31 = vld [vmem:[#allocation9 + $0x960] sm:$0xff] }
 0x59e   :  { %v17178_v36 = vcombine.low %v10451_v17, %v10455_v31  ;;  %v10491_v46 = vld [vmem:[#allocation9 + $0xa80] sm:$0xff] }
 0x59f   :  { %9877 = vmatpush1.bf16.msra.mxu0 %v19537_v3  ;;  %v17179_v3 = vcombine.high %v10451_v17, %v10455_v31  ;;  %v19576_v17 = vld [vmem:[#allocation6 + $0xd90] ss:$40 sps:$4 sm:$0xff]  }
 0x5a0   :  { %14107 = vmatpush1.bf16.msra.mxu1 %v17122_v30  ;;  %9878 = vmatprep.subr.bf16.mxu0 %v19542_v26  ;;  %v19558_v30 = vld [vmem:[#allocation6 + $0xbb0] ss:$40 sps:$4 sm:$0xff]  }
 0x5a1   :  { %14108 = vmatprep.subr.bf16.mxu1 %v17131_v32  ;;  %v10459_v26 = vld [vmem:[#allocation9 + $0x980] sm:$0xff] }
 0x5a2   :  { %v19563_v32 = vld [vmem:[#allocation6 + $0xc04] ss:$40 sps:$4 sm:$0xff]   ;;  %v17187_v38 = vcombine.high %v10459_v26, %v10463_v27 }
 0x5a3   :  { %9879 = vmatpush1.bf16.msra.mxu0 %v19540_v39  ;;  %v19561_v39 = vld [vmem:[#allocation6 + $0xc00] ss:$40 sps:$4 sm:$0xff]  }
 0x5a4   :  { %14109 = vmatpush1.bf16.msra.mxu1 %v17130_v57  ;;  %9889 = vmatprep.subr.bf16.mxu0 %v19545_v33  ;;  %v10467_v57 = vld [vmem:[#allocation9 + $0x9c0] sm:$0xff] }
 0x5a5   :  { %14119 = vmatprep.subr.bf16.mxu1 %v17139_v41  ;;  %v10471_v33 = vld [vmem:[#allocation9 + $0x9e0] sm:$0xff]  ;;  %v17186_v41 = vcombine.low %v10459_v26, %v10463_v27 }
 0x5a6   :  { %9881 = vmatmul.mubr.bf16.vlgmr.msra.gmra.mrb[24].mxu0 %v20307_v10  ;;  %v19554_v10 = vld [vmem:[#allocation6 + $0xb14] ss:$40 sps:$4 sm:$0xff]   ;;  %v10507_v31 = vld [vmem:[#allocation9 + $0xb00] sm:$0xff] }
 0x5a7   :  { %14111 = vmatmul.mubr.bf16.vlgmr.msra.gmra.mrb[24].mxu1 %v20480_v48  ;;  %9890 = vmatpush1.bf16.msra.mxu0 %v19543_v43  ;;  %v17195_v43 = vcombine.high %v10467_v57, %v10471_v33  ;;  %v19579_v26 = vld [vmem:[#allocation6 + $0xde0] ss:$40 sps:$4 sm:$0xff]  }
 0x5a8   :  { %9921 = vmatprep.mubr.bf16.mxu0 %v20309_v14  ;;  %9891 = vmatprep.subr.bf16.mxu0 %v19548_v55  ;;  %v10447_v14 = vld [vmem:[#allocation9 + $0x920] sm:$0xff] }
 0x5a9   :  { %14120 = vmatpush1.bf16.msra.mxu1 %v17138_v53  ;;  %v17171_v15 = vcombine.high %v10443_v34, %v10447_v14  ;;  %v17170_v24 = vcombine.low %v10443_v34, %v10447_v14  ;;  %v10479_v55 = vld [vmem:[#allocation9 + $0xa20] sm:$0xff] }
 0x5aa   :  { %14121 = vmatprep.subr.bf16.mxu1 %v17147_v28  ;;  %v19569_v53 = vld [vmem:[#allocation6 + $0xca4] ss:$40 sps:$4 sm:$0xff]   ;;  %v17194_v28 = vcombine.low %v10467_v57, %v10471_v33  ;;  %v19573_v34 = vld [vmem:[#allocation6 + $0xd40] ss:$40 sps:$4 sm:$0xff]   ;;  %v19582_v57 = vld [vmem:[#allocation6 + $0xe30] ss:$40 sps:$4 sm:$0xff]  }
 0x5ab   :  { %9892 = vmatpush1.bf16.msra.mxu0 %v19546_v60  ;;  %v17203_v60 = vcombine.high %v10475_v44, %v10479_v55  ;;  %v10499_v14 = vld [vmem:[#allocation9 + $0xac0] sm:$0xff] }
 0x5ac   :  { %9893 = vmatprep.subr.bf16.mxu0 %v19551_v8  ;;  %v10487_v8 = vld [vmem:[#allocation9 + $0xa60] sm:$0xff] }
 0x5ad   :  { %14122 = vmatpush1.bf16.msra.mxu1 %v17146_v6  ;;  %v19572_v6 = vld [vmem:[#allocation6 + $0xcf4] ss:$40 sps:$4 sm:$0xff]   ;;  %v10515_v27 = vld [vmem:[#allocation9 + $0xb40] sm:$0xff] }
 0x5ae   :  { %14123 = vmatprep.subr.bf16.mxu1 %v17155_v1  ;;  %v17202_v1 = vcombine.low %v10475_v44, %v10479_v55  ;;  %v10523_v33 = vld [vmem:[#allocation9 + $0xb80] sm:$0xff] }
 0x5af   :  { %9894 = vmatpush1.bf16.msra.mxu0 %v19549_v18  ;;  %v17211_v18 = vcombine.high %v10483_v63, %v10487_v8  ;;  %v19585_v44 = vld [vmem:[#allocation6 + $0xe80] ss:$40 sps:$4 sm:$0xff]  }
 0x5b0   :  { %9895 = vmatprep.subr.bf16.mxu0 %v19554_v10  ;;  %v10495_v10 = vld [vmem:[#allocation9 + $0xaa0] sm:$0xff] }
 0x5b1   :  { %14124 = vmatpush1.bf16.msra.mxu1 %v17154_v2  ;;  %v19575_v2 = vld [vmem:[#allocation6 + $0xd44] ss:$40 sps:$4 sm:$0xff]  }
 0x5b2   :  { %14125 = vmatprep.subr.bf16.mxu1 %v17163_v4  ;;  %v17210_v4 = vcombine.low %v10483_v63, %v10487_v8  ;;  %v10531_v55 = vld [vmem:[#allocation9 + $0xbc0] sm:$0xff] }
 0x5b3   :  { %9896 = vmatpush1.bf16.msra.mxu0 %v19552_v20  ;;  %v17219_v20 = vcombine.high %v10491_v46, %v10495_v10  ;;  %v19588_v63 = vld [vmem:[#allocation6 + $0xed0] ss:$40 sps:$4 sm:$0xff]  }
 0x5b4   :  { %9897 = vmatprep.subr.bf16.mxu0 %v19557_v11  ;;  %v10503_v11 = vld [vmem:[#allocation9 + $0xae0] sm:$0xff] }
 0x5b5   :  { %14126 = vmatpush1.bf16.msra.mxu1 %v17162_v52  ;;  %v19578_v52 = vld [vmem:[#allocation6 + $0xd94] ss:$40 sps:$4 sm:$0xff]   ;;  %v20485_v8 = vld [vmem:[#allocation9 + $0xc00] sm:$0xff] }
 0x5b6   :  { %14127 = vmatprep.subr.bf16.mxu1 %v17171_v15  ;;  %v17218_v15 = vcombine.low %v10491_v46, %v10495_v10  ;;  %v19591_v46 = vld [vmem:[#allocation6 + $0xf20] ss:$40 sps:$4 sm:$0xff]   ;;  %v19596_v10 = vld [vmem:[#allocation6 + $0xf74] ss:$40 sps:$4 sm:$0xff]  }
 0x5b7   :  { %9898 = vmatpush1.bf16.msra.mxu0 %v19555_v16  ;;  %v17227_v16 = vcombine.high %v10499_v14, %v10503_v11 }
 0x5b8   :  { %9899 = vmatprep.subr.bf16.mxu0 %v19560_v23  ;;  %v10511_v23 = vld [vmem:[#allocation9 + $0xb20] sm:$0xff] }
 0x5b9   :  { %14128 = vmatpush1.bf16.msra.mxu1 %v17170_v24  ;;  %v19581_v24 = vld [vmem:[#allocation6 + $0xde4] ss:$40 sps:$4 sm:$0xff]  }
 0x5ba   :  { %14129 = vmatprep.subr.bf16.mxu1 %v17179_v3  ;;  %v17226_v3 = vcombine.low %v10499_v14, %v10503_v11  ;;  %v19600_v14 = vld [vmem:[#allocation6 + $0x1010] ss:$40 sps:$4 sm:$0xff]   ;;  %v19605_v11 = vld [vmem:[#allocation6 + $0x1064] ss:$40 sps:$4 sm:$0xff]  }
 0x5bb   :  { %9900 = vmatpush1.bf16.msra.mxu0 %v19558_v30  ;;  %v17235_v30 = vcombine.high %v10507_v31, %v10511_v23 }
 0x5bc   :  { %9901 = vmatprep.subr.bf16.mxu0 %v19563_v32  ;;  %v10519_v32 = vld [vmem:[#allocation9 + $0xb60] sm:$0xff] }
 0x5bd   :  { %14130 = vmatpush1.bf16.msra.mxu1 %v17178_v36  ;;  %v19584_v36 = vld [vmem:[#allocation6 + $0xe34] ss:$40 sps:$4 sm:$0xff]  }
 0x5be   :  { %14131 = vmatprep.subr.bf16.mxu1 %v17187_v38  ;;  %v17234_v38 = vcombine.low %v10507_v31, %v10511_v23  ;;  %v19611_v23 = vld [vmem:[#allocation6 + $0x1104] ss:$40 sps:$4 sm:$0xff]  }
 0x5bf   :  { %9902 = vmatpush1.bf16.msra.mxu0 %v19561_v39  ;;  %v17243_v39 = vcombine.high %v10515_v27, %v10519_v32 }
 0x5c0   :  { %9903 = vmatprep.subr.bf16.mxu0 %v19566_v22  ;;  %v10527_v22 = vld [vmem:[#allocation9 + $0xba0] sm:$0xff] }
 0x5c1   :  { %14132 = vmatpush1.bf16.msra.mxu1 %v17186_v41  ;;  %v19587_v41 = vld [vmem:[#allocation6 + $0xe84] ss:$40 sps:$4 sm:$0xff]  }
 0x5c2   :  { %14133 = vmatprep.subr.bf16.mxu1 %v17195_v43  ;;  %v17242_v43 = vcombine.low %v10515_v27, %v10519_v32 }
 0x5c3   :  { %9904 = vmatpush1.bf16.msra.mxu0 %v19564_v58  ;;  %v17251_v58 = vcombine.high %v10523_v33, %v10527_v22 }
 0x5c4   :  { %9905 = vmatprep.subr.bf16.mxu0 %v19569_v53  ;;  %v10535_v53 = vld [vmem:[#allocation9 + $0xbe0] sm:$0xff] }
 0x5c5   :  { %14134 = vmatpush1.bf16.msra.mxu1 %v17194_v28  ;;  %v19590_v28 = vld [vmem:[#allocation6 + $0xed4] ss:$40 sps:$4 sm:$0xff]  }
 0x5c6   :  { %14135 = vmatprep.subr.bf16.mxu1 %v17203_v60  ;;  %v17250_v60 = vcombine.low %v10523_v33, %v10527_v22 }
 0x5c7   :  { %9906 = vmatpush1.bf16.msra.mxu0 %v19567_v62  ;;  %v17259_v62 = vcombine.high %v10531_v55, %v10535_v53 }
 0x5c8   :  { %9907 = vmatprep.subr.bf16.mxu0 %v19572_v6  ;;  %v20487_v6 = vld [vmem:[#allocation9 + $0xc20] sm:$0xff] }
 0x5c9   :  { %14136 = vmatpush1.bf16.msra.mxu1 %v17202_v1  ;;  %v19593_v1 = vld [vmem:[#allocation6 + $0xf24] ss:$40 sps:$4 sm:$0xff]  }
 0x5ca   :  { %14137 = vmatprep.subr.bf16.mxu1 %v17211_v18  ;;  %v17258_v18 = vcombine.low %v10531_v55, %v10535_v53  ;;  %v10551_v55 = vld [vmem:[#allocation9 + $0xc60] sm:$0xff] }
 0x5cb   :  { %9908 = vmatpush1.bf16.msra.mxu0 %v19570_v56  ;;  %v17267_v56 = vcombine.high %v20485_v8, %v20487_v6 }
 0x5cc   :  { %9909 = vmatprep.subr.bf16.mxu0 %v19575_v2  ;;  %v19594_v2 = vld [vmem:[#allocation6 + $0xf70] ss:$40 sps:$4 sm:$0xff]  }
 0x5cd   :  { %14138 = vmatpush1.bf16.msra.mxu1 %v17210_v4  ;;  %v19599_v4 = vld [vmem:[#allocation6 + $0xfc4] ss:$40 sps:$4 sm:$0xff]  }
 0x5ce   :  { %14139 = vmatprep.subr.bf16.mxu1 %v17219_v20  ;;  %v19597_v20 = vld [vmem:[#allocation6 + $0xfc0] ss:$40 sps:$4 sm:$0xff]  }
 0x5cf   :  { %9910 = vmatpush1.bf16.msra.mxu0 %v19573_v34  ;;  %v19602_v34 = vld [vmem:[#allocation6 + $0x1014] ss:$40 sps:$4 sm:$0xff]  }
 0x5d0   :  { %9911 = vmatprep.subr.bf16.mxu0 %v19578_v52  ;;  %v19603_v52 = vld [vmem:[#allocation6 + $0x1060] ss:$40 sps:$4 sm:$0xff]  }
 0x5d1   :  { %14140 = vmatpush1.bf16.msra.mxu1 %v17218_v15  ;;  %v19608_v15 = vld [vmem:[#allocation6 + $0x10b4] ss:$40 sps:$4 sm:$0xff]  }
 0x5d2   :  { %14141 = vmatprep.subr.bf16.mxu1 %v17227_v16 }
 0x5d3   :  { %9912 = vmatpush1.bf16.msra.mxu0 %v19576_v17  ;;  %v19606_v17 = vld [vmem:[#allocation6 + $0x10b0] ss:$40 sps:$4 sm:$0xff]  }
 0x5d4   :  { %9913 = vmatprep.subr.bf16.mxu0 %v19581_v24 }
 0x5d5   :  { %14142 = vmatpush1.bf16.msra.mxu1 %v17226_v3 }
 0x5d6   :  { %14143 = vmatprep.subr.bf16.mxu1 %v17235_v30 }
 0x5d7   :  { %9914 = vmatpush1.bf16.msra.mxu0 %v19579_v26 }
 0x5d8   :  { %9915 = vmatprep.subr.bf16.mxu0 %v19584_v36 }
 0x5d9   :  { %14144 = vmatpush1.bf16.msra.mxu1 %v17234_v38  ;;  %v19609_v38 = vld [vmem:[#allocation6 + $0x1100] ss:$40 sps:$4 sm:$0xff]  }
 0x5da   :  { %14145 = vmatprep.subr.bf16.mxu1 %v17243_v39 }
 0x5db   :  { %9916 = vmatpush1.bf16.msra.mxu0 %v19582_v57 }
 0x5dc   :  { %9917 = vmatprep.subr.bf16.mxu0 %v19587_v41  ;;  %v19614_v41 = vld [vmem:[#allocation6 + $0x1154] ss:$40 sps:$4 sm:$0xff]  }
 0x5dd   :  { %14146 = vmatpush1.bf16.msra.mxu1 %v17242_v43 }
 0x5de   :  { %14147 = vmatprep.subr.bf16.mxu1 %v17251_v58 }
 0x5df   :  { %9918 = vmatpush1.bf16.msra.mxu0 %v19585_v44  ;;  %v10547_v44 = vld [vmem:[#allocation9 + $0xc40] sm:$0xff] }
 0x5e0   :  { %9919 = vmatprep.subr.bf16.mxu0 %v19590_v28 }
 0x5e1   :  { %14148 = vmatpush1.bf16.msra.mxu1 %v17250_v60  ;;  %v17266_v60 = vcombine.low %v20485_v8, %v20487_v6  ;;  %v19620_v6 = vld [vmem:[#allocation6 + $0x11f4] ss:$40 sps:$4 sm:$0xff]  }
 0x5e2   :  { %14149 = vmatprep.subr.bf16.mxu1 %v17259_v62  ;;  %v19612_v62 = vld [vmem:[#allocation6 + $0x1150] ss:$40 sps:$4 sm:$0xff]  }
 0x5e3   :  { %9920 = vmatpush1.bf16.msra.mxu0 %v19588_v63 }
 0x5e4   :  { %9930 = vmatprep.subr.bf16.mxu0 %v19593_v1  ;;  %v17275_v1 = vcombine.high %v10547_v44, %v10551_v55 }
 0x5e5   :  { %14150 = vmatpush1.bf16.msra.mxu1 %v17258_v18  ;;  %v19617_v18 = vld [vmem:[#allocation6 + $0x11a4] ss:$40 sps:$4 sm:$0xff]  }
 0x5e6   :  { %9922 = vmatmul.mubr.bf16.vlgmr.msra.gmra.mrb[24].mxu0 %v20329_v45  ;;  %14160 = vmatprep.subr.bf16.mxu1 %v17267_v56  ;;  %v20493_v45 = vld [vmem:[#allocation7] sm:$0xff]  ;;  %v10555_v56 = vld [vmem:[#allocation9 + $0xc80] sm:$0xff] }
 0x5e7   :  { %9931 = vmatpush1.bf16.msra.mxu0 %v19591_v46  ;;  %9962 = vmatprep.mubr.bf16.mxu0 %v20331_v51  ;;  %v2064_v51 = vrot.slane %v20493_v45, %v20316_v12  ;;  %v2068_v16 = vrot.slane %v20493_v45, %v20295_v42  ;;  %v2076_v31 = vrot.slane %v20493_v45, %v20319_v19  ;;  %v10559_v46 = vld [vmem:[#allocation9 + $0xca0] sm:$0xff] }
 0x5e8   :  { %9932 = vmatprep.subr.bf16.mxu0 %v19596_v10  ;;  %v17283_v8 = vcombine.high %v10555_v56, %v10559_v46 }
 0x5eb   :  { %9933 = vmatpush1.bf16.msra.mxu0 %v19594_v2  ;;  %v17274_v2 = vcombine.low %v10547_v44, %v10551_v55  ;;  %v10599_v44 = vld [vmem:[#allocation9 + $0xde0] sm:$0xff] }
 0x5ec   :  { %9934 = vmatprep.subr.bf16.mxu0 %v19599_v4  ;;  %v19615_v4 = vld [vmem:[#allocation6 + $0x11a0] ss:$40 sps:$4 sm:$0xff]  }
 0x5ef   :  { %9935 = vmatpush1.bf16.msra.mxu0 %v19597_v20  ;;  %v10563_v20 = vld [vmem:[#allocation9 + $0xcc0] sm:$0xff] }
 0x5f0   :  { %9936 = vmatprep.subr.bf16.mxu0 %v19602_v34  ;;  %v10567_v34 = vld [vmem:[#allocation9 + $0xce0] sm:$0xff] }
 0x5f3   :  { %9937 = vmatpush1.bf16.msra.mxu0 %v19600_v14  ;;  %v17282_v14 = vcombine.low %v10555_v56, %v10559_v46  ;;  %v19633_v46 = vld [vmem:[#allocation6 + $0x1380] ss:$40 sps:$4 sm:$0xff]  }
 0x5f4   :  { %9938 = vmatprep.subr.bf16.mxu0 %v19605_v11  ;;  %v19618_v11 = vld [vmem:[#allocation6 + $0x11f0] ss:$40 sps:$4 sm:$0xff]  }
 0x5f7   :  { %9939 = vmatpush1.bf16.msra.mxu0 %v19603_v52  ;;  %v17291_v52 = vcombine.high %v10563_v20, %v10567_v34 }
 0x5f8   :  { %9940 = vmatprep.subr.bf16.mxu0 %v19608_v15  ;;  %v19623_v15 = vld [vmem:[#allocation6 + $0x1244] ss:$40 sps:$4 sm:$0xff]  }
 0x5f9   :  { %v9472_v24 = vpop.f32.mrb[20].mxu0 }
 0x5fa   :  { %v17679_v3 = vadd.f32 %v9472_v24, %v2064_v51  ;;  %v20501_v30 = vpop.f32.mrb[20].mxu1  ;;  %v9474_v26 = vpop.f32.mrb[21].mxu0  ;;  %v10571_v51 = vld [vmem:[#allocation9 + $0xd00] sm:$0xff]  ;;  %v19626_v24 = vld [vmem:[#allocation6 + $0x1294] ss:$40 sps:$4 sm:$0xff]  }
 0x5fb   :  { %v17680_v27 = vadd.f32 %v9474_v26, %v2068_v16  ;;  %v9802_v32 = vpop.f32.mrb[21].mxu1  ;;  %v9476_v36 = vpop.f32.mrb[22].mxu0  ;;  %9941 = vmatpush1.bf16.msra.mxu0 %v19606_v17  ;;  %v10575_v16 = vld [vmem:[#allocation9 + $0xd20] sm:$0xff]  ;;  %v17290_v17 = vcombine.low %v10563_v20, %v10567_v34 }
 0x5fc   :  { %v10139_v39 = vmax.f32 %v17679_v3, 0.0  ;;  %v17682_v57 = vadd.f32 %v9802_v32, %v2076_v31  ;;  %v9804_v33 = vpop.f32.mrb[22].mxu1  ;;  %v9477_v22 = vpop.f32.mrb[23].mxu0  ;;  %9942 = vmatprep.subr.bf16.mxu0 %v19611_v23  ;;  %v19621_v31 = vld [vmem:[#allocation6 + $0x1240] ss:$40 sps:$4 sm:$0xff]   ;;  %v17299_v23 = vcombine.high %v10571_v51, %v10575_v16 }
 0x5fd   :  { %v10140_v43 = vmax.f32 %v17680_v27, 0.0  ;;  %v9805_v58 = vpop.f32.mrb[23].mxu1  ;;  %v10579_v3 = vld [vmem:[#allocation9 + $0xd40] sm:$0xff]  ;;  %v17298_v27 = vcombine.low %v10571_v51, %v10575_v16 }
 0x5fe   :  { %v10142_v53 = vmax.f32 %v17682_v57, 0.0  ;;  %v20507_v63 = vpack.c.bf16 %v10139_v39, %v10139_v39  ;;  %v10583_v26 = vld [vmem:[#allocation9 + $0xd60] sm:$0xff] }
 0x5ff   :  { %v20503_v28 = vpack.c.bf16 %v10140_v43, %v10140_v43  ;;  %9943 = vmatpush1.bf16.msra.mxu0 %v19609_v38  ;;  %v19624_v32 = vld [vmem:[#allocation6 + $0x1290] ss:$40 sps:$4 sm:$0xff]   ;;  %v17307_v36 = vcombine.high %v10579_v3, %v10583_v26  ;;  %v19629_v38 = vld [vmem:[#allocation6 + $0x12e4] ss:$40 sps:$4 sm:$0xff]   ;;  %v17306_v33 = vcombine.low %v10579_v3, %v10583_v26  ;;  %v19627_v22 = vld [vmem:[#allocation6 + $0x12e0] ss:$40 sps:$4 sm:$0xff]  }
 0x600   :  { %9944 = vmatprep.subr.bf16.mxu0 %v19614_v41  ;;  %v20510_v10 = vpack.c.bf16 %v10142_v53, %v10142_v53  ;;  %v10587_v39 = vld [vmem:[#allocation9 + $0xd80] sm:$0xff]  ;;  %v19632_v43 = vld [vmem:[#allocation6 + $0x1334] ss:$40 sps:$4 sm:$0xff]  }
 0x601   :  { %14151 = vmatprep.mubr.bf16.mxu1 %v20503_v28  ;;  %v10591_v57 = vld [vmem:[#allocation9 + $0xda0] sm:$0xff] }
 0x602   :  { %14152 = vmatmul.mubr.bf16.vlgmr.msra.gmra.mrb[24].mxu1 %v20507_v63  ;;  %v17315_v41 = vcombine.high %v10587_v39, %v10591_v57  ;;  %v10595_v58 = vld [vmem:[#allocation9 + $0xdc0] sm:$0xff]  ;;  %v17314_v55 = vcombine.low %v10587_v39, %v10591_v57 }
 0x603   :  { %14161 = vmatpush1.bf16.msra.mxu1 %v17266_v60  ;;  %9945 = vmatpush1.bf16.msra.mxu0 %v19612_v62  ;;  %v19630_v53 = vld [vmem:[#allocation6 + $0x1330] ss:$40 sps:$4 sm:$0xff]   ;;  %v17323_v60 = vcombine.high %v10595_v58, %v10599_v44  ;;  %v19635_v62 = vld [vmem:[#allocation6 + $0x1384] ss:$40 sps:$4 sm:$0xff]   ;;  %v17322_v56 = vcombine.low %v10595_v58, %v10599_v44  ;;  %v19639_v16 = vld [vmem:[#allocation6 + $0x1420] ss:$40 sps:$4 sm:$0xff]  }
 0x604   :  { %14192 = vmatprep.mubr.bf16.mxu1 %v20510_v10  ;;  %14162 = vmatprep.subr.bf16.mxu1 %v17275_v1  ;;  %v10603_v1 = vld [vmem:[#allocation9 + $0xe00] sm:$0xff] }
 0x605   :  { %9946 = vmatprep.subr.bf16.mxu0 %v19617_v18  ;;  %v10607_v18 = vld [vmem:[#allocation9 + $0xe20] sm:$0xff] }
 0x606   :  { %v17330_v20 = vcombine.low %v10603_v1, %v10607_v18  ;;  %v19636_v34 = vld [vmem:[#allocation6 + $0x13d0] ss:$40 sps:$4 sm:$0xff]   ;;  %v19645_v57 = vld [vmem:[#allocation6 + $0x14c0] ss:$40 sps:$4 sm:$0xff]   ;;  %v19653_v44 = vld [vmem:[#allocation6 + $0x1564] ss:$40 sps:$4 sm:$0xff]  }
 0x607   :  { %14163 = vmatpush1.bf16.msra.mxu1 %v17274_v2  ;;  %9947 = vmatpush1.bf16.msra.mxu0 %v19615_v4  ;;  %v17331_v2 = vcombine.high %v10603_v1, %v10607_v18  ;;  %v19638_v4 = vld [vmem:[#allocation6 + $0x13d4] ss:$40 sps:$4 sm:$0xff]   ;;  %v19642_v26 = vld [vmem:[#allocation6 + $0x1470] ss:$40 sps:$4 sm:$0xff]   ;;  %v2072_v1 = vrot.slane %v20493_v45, %v20338_v54  ;;  %v19657_v45 = vld [vmem:[#allocation6 + $0x1600] ss:$40 sps:$4 sm:$0xff]  }
 0x608   :  { %14164 = vmatprep.subr.bf16.mxu1 %v17283_v8  ;;  %9948 = vmatprep.subr.bf16.mxu0 %v19620_v6  ;;  %v10611_v8 = vld [vmem:[#allocation9 + $0xe40] sm:$0xff] }
 0x609   :  { %v10615_v6 = vld [vmem:[#allocation9 + $0xe60] sm:$0xff] }
 0x60a   :  { %v17338_v51 = vcombine.low %v10611_v8, %v10615_v6 }
 0x60b   :  { %14165 = vmatpush1.bf16.msra.mxu1 %v17282_v14  ;;  %9949 = vmatpush1.bf16.msra.mxu0 %v19618_v11  ;;  %v17339_v14 = vcombine.high %v10611_v8, %v10615_v6  ;;  %v19641_v11 = vld [vmem:[#allocation6 + $0x1424] ss:$40 sps:$4 sm:$0xff]   ;;  %v19654_v8 = vld [vmem:[#allocation6 + $0x15b0] ss:$40 sps:$4 sm:$0xff]   ;;  %v17681_v6 = vadd.f32 %v20501_v30, %v2072_v1  ;;  %v19663_v30 = vld [vmem:[#allocation6 + $0x16a0] ss:$40 sps:$4 sm:$0xff]  }
 0x60c   :  { %14166 = vmatprep.subr.bf16.mxu1 %v17291_v52  ;;  %9950 = vmatprep.subr.bf16.mxu0 %v19623_v15  ;;  %v10619_v52 = vld [vmem:[#allocation9 + $0xe80] sm:$0xff]  ;;  %v19704_v1 = vld [vmem:[#allocation6 + $0x1ab4] ss:$40 sps:$4 sm:$0xff]  }
 0x60d   :  { %v10623_v15 = vld [vmem:[#allocation9 + $0xea0] sm:$0xff] }
 0x60e   :  { %v17346_v3 = vcombine.low %v10619_v52, %v10623_v15 }
 0x60f   :  { %14167 = vmatpush1.bf16.msra.mxu1 %v17290_v17  ;;  %9951 = vmatpush1.bf16.msra.mxu0 %v19621_v31  ;;  %v17347_v17 = vcombine.high %v10619_v52, %v10623_v15  ;;  %v19644_v31 = vld [vmem:[#allocation6 + $0x1474] ss:$40 sps:$4 sm:$0xff]   ;;  %v19660_v15 = vld [vmem:[#allocation6 + $0x1650] ss:$40 sps:$4 sm:$0xff]  }
 0x610   :  { %14168 = vmatprep.subr.bf16.mxu1 %v17299_v23  ;;  %9952 = vmatprep.subr.bf16.mxu0 %v19626_v24  ;;  %v10627_v23 = vld [vmem:[#allocation9 + $0xec0] sm:$0xff]  ;;  %v19662_v52 = vld [vmem:[#allocation6 + $0x1654] ss:$40 sps:$4 sm:$0xff]  }
 0x611   :  { %v10631_v24 = vld [vmem:[#allocation9 + $0xee0] sm:$0xff] }
 0x612   :  { %v17354_v39 = vcombine.low %v10627_v23, %v10631_v24 }
 0x613   :  { %14169 = vmatpush1.bf16.msra.mxu1 %v17298_v27  ;;  %9953 = vmatpush1.bf16.msra.mxu0 %v19624_v32  ;;  %v17355_v27 = vcombine.high %v10627_v23, %v10631_v24  ;;  %v19647_v32 = vld [vmem:[#allocation6 + $0x14c4] ss:$40 sps:$4 sm:$0xff]   ;;  %v19669_v24 = vld [vmem:[#allocation6 + $0x1740] ss:$40 sps:$4 sm:$0xff]  }
 0x614   :  { %14170 = vmatprep.subr.bf16.mxu1 %v17307_v36  ;;  %9954 = vmatprep.subr.bf16.mxu0 %v19629_v38  ;;  %v10635_v36 = vld [vmem:[#allocation9 + $0xf00] sm:$0xff] }
 0x615   :  { %v10639_v38 = vld [vmem:[#allocation9 + $0xf20] sm:$0xff] }
 0x616   :  { %v19671_v23 = vld [vmem:[#allocation6 + $0x1744] ss:$40 sps:$4 sm:$0xff]  }
 0x617   :  { %14171 = vmatpush1.bf16.msra.mxu1 %v17306_v33  ;;  %9955 = vmatpush1.bf16.msra.mxu0 %v19627_v22  ;;  %v17363_v33 = vcombine.high %v10635_v36, %v10639_v38  ;;  %v10643_v22 = vld [vmem:[#allocation9 + $0xf40] sm:$0xff] }
 0x618   :  { %14172 = vmatprep.subr.bf16.mxu1 %v17315_v41  ;;  %9956 = vmatprep.subr.bf16.mxu0 %v19632_v43  ;;  %v10647_v41 = vld [vmem:[#allocation9 + $0xf60] sm:$0xff]  ;;  %v17362_v43 = vcombine.low %v10635_v36, %v10639_v38  ;;  %v19680_v36 = vld [vmem:[#allocation6 + $0x1834] ss:$40 sps:$4 sm:$0xff]  }
 0x619   :  { %v17371_v58 = vcombine.high %v10643_v22, %v10647_v41  ;;  %v19678_v38 = vld [vmem:[#allocation6 + $0x1830] ss:$40 sps:$4 sm:$0xff]  }
 0x61b   :  { %14173 = vmatpush1.bf16.msra.mxu1 %v17314_v55  ;;  %9957 = vmatpush1.bf16.msra.mxu0 %v19630_v53  ;;  %v10651_v55 = vld [vmem:[#allocation9 + $0xf80] sm:$0xff] }
 0x61c   :  { %14174 = vmatprep.subr.bf16.mxu1 %v17323_v60  ;;  %9958 = vmatprep.subr.bf16.mxu0 %v19635_v62  ;;  %v10655_v53 = vld [vmem:[#allocation9 + $0xfa0] sm:$0xff]  ;;  %v17370_v60 = vcombine.low %v10643_v22, %v10647_v41 }
 0x61d   :  { %v19651_v62 = vld [vmem:[#allocation6 + $0x1560] ss:$40 sps:$4 sm:$0xff]   ;;  %v17379_v18 = vcombine.high %v10651_v55, %v10655_v53  ;;  %v19689_v22 = vld [vmem:[#allocation6 + $0x1924] ss:$40 sps:$4 sm:$0xff]  }
 0x61e   :  { %v19687_v41 = vld [vmem:[#allocation6 + $0x1920] ss:$40 sps:$4 sm:$0xff]  }
 0x61f   :  { %14175 = vmatpush1.bf16.msra.mxu1 %v17322_v56  ;;  %9959 = vmatpush1.bf16.msra.mxu0 %v19633_v46  ;;  %v19656_v56 = vld [vmem:[#allocation6 + $0x15b4] ss:$40 sps:$4 sm:$0xff]   ;;  %v10659_v46 = vld [vmem:[#allocation9 + $0xfc0] sm:$0xff] }
 0x620   :  { %14176 = vmatprep.subr.bf16.mxu1 %v17331_v2  ;;  %9960 = vmatprep.subr.bf16.mxu0 %v19638_v4  ;;  %v10663_v2 = vld [vmem:[#allocation9 + $0xfe0] sm:$0xff]  ;;  %v17378_v4 = vcombine.low %v10651_v55, %v10655_v53  ;;  %v19698_v55 = vld [vmem:[#allocation6 + $0x1a14] ss:$40 sps:$4 sm:$0xff]  }
 0x621   :  { %v19696_v53 = vld [vmem:[#allocation6 + $0x1a10] ss:$40 sps:$4 sm:$0xff]  }
 0x623   :  { %14177 = vmatpush1.bf16.msra.mxu1 %v17330_v20  ;;  %9961 = vmatpush1.bf16.msra.mxu0 %v19636_v34  ;;  %v17387_v20 = vcombine.high %v10659_v46, %v10663_v2  ;;  %v19659_v34 = vld [vmem:[#allocation6 + $0x1604] ss:$40 sps:$4 sm:$0xff]  }
 0x624   :  { %14178 = vmatprep.subr.bf16.mxu1 %v17339_v14  ;;  %9971 = vmatprep.subr.bf16.mxu0 %v19641_v11  ;;  %v17386_v14 = vcombine.low %v10659_v46, %v10663_v2  ;;  %v10141_v11 = vmax.f32 %v17681_v6, 0.0  ;;  %v19708_v46 = vld [vmem:[#allocation6 + $0x1b50] ss:$40 sps:$4 sm:$0xff]   ;;  %v19713_v2 = vld [vmem:[#allocation6 + $0x1ba4] ss:$40 sps:$4 sm:$0xff]  }
 0x625   :  { %v19714_v6 = vld [vmem:[#allocation6 + $0x1bf0] ss:$40 sps:$4 sm:$0xff]  }
 0x626   :  { %9963 = vmatmul.mubr.bf16.vlgmr.msra.gmra.mrb[24].mxu0 %v20352_v25  ;;  %v19650_v25 = vld [vmem:[#allocation6 + $0x1514] ss:$40 sps:$4 sm:$0xff]  }
 0x627   :  { %14179 = vmatpush1.bf16.msra.mxu1 %v17338_v51  ;;  %9972 = vmatpush1.bf16.msra.mxu0 %v19639_v16  ;;  %v20519_v51 = vpack.c.bf16 %v10141_v11, %v10141_v11  ;;  %v19665_v16 = vld [vmem:[#allocation6 + $0x16a4] ss:$40 sps:$4 sm:$0xff]  }
 0x628   :  { %10003 = vmatprep.mubr.bf16.mxu0 %v20354_v49  ;;  %14180 = vmatprep.subr.bf16.mxu1 %v17347_v17  ;;  %v19648_v49 = vld [vmem:[#allocation6 + $0x1510] ss:$40 sps:$4 sm:$0xff]   ;;  %v19668_v17 = vld [vmem:[#allocation6 + $0x16f4] ss:$40 sps:$4 sm:$0xff]   ;;  %v19725_v11 = vld [vmem:[#allocation6 + $0x1ce4] ss:$40 sps:$4 sm:$0xff]  }
 0x629   :  { %9973 = vmatprep.subr.bf16.mxu0 %v19644_v31  ;;  %v19666_v31 = vld [vmem:[#allocation6 + $0x16f0] ss:$40 sps:$4 sm:$0xff]  }
 0x62b   :  { %14181 = vmatpush1.bf16.msra.mxu1 %v17346_v3  ;;  %9974 = vmatpush1.bf16.msra.mxu0 %v19642_v26  ;;  %v19674_v3 = vld [vmem:[#allocation6 + $0x1794] ss:$40 sps:$4 sm:$0xff]   ;;  %v19672_v26 = vld [vmem:[#allocation6 + $0x1790] ss:$40 sps:$4 sm:$0xff]  }
 0x62c   :  { %14182 = vmatprep.subr.bf16.mxu1 %v17355_v27  ;;  %9975 = vmatprep.subr.bf16.mxu0 %v19647_v32  ;;  %v19677_v27 = vld [vmem:[#allocation6 + $0x17e4] ss:$40 sps:$4 sm:$0xff]   ;;  %v19675_v32 = vld [vmem:[#allocation6 + $0x17e0] ss:$40 sps:$4 sm:$0xff]  }
 0x62f   :  { %14183 = vmatpush1.bf16.msra.mxu1 %v17354_v39  ;;  %9976 = vmatpush1.bf16.msra.mxu0 %v19645_v57  ;;  %v19683_v39 = vld [vmem:[#allocation6 + $0x1884] ss:$40 sps:$4 sm:$0xff]   ;;  %v19681_v57 = vld [vmem:[#allocation6 + $0x1880] ss:$40 sps:$4 sm:$0xff]  }
 0x630   :  { %14184 = vmatprep.subr.bf16.mxu1 %v17363_v33  ;;  %9977 = vmatprep.subr.bf16.mxu0 %v19650_v25  ;;  %v19686_v33 = vld [vmem:[#allocation6 + $0x18d4] ss:$40 sps:$4 sm:$0xff]   ;;  %v19684_v25 = vld [vmem:[#allocation6 + $0x18d0] ss:$40 sps:$4 sm:$0xff]  }
 0x633   :  { %14185 = vmatpush1.bf16.msra.mxu1 %v17362_v43  ;;  %9978 = vmatpush1.bf16.msra.mxu0 %v19648_v49  ;;  %v19692_v43 = vld [vmem:[#allocation6 + $0x1974] ss:$40 sps:$4 sm:$0xff]   ;;  %v19690_v49 = vld [vmem:[#allocation6 + $0x1970] ss:$40 sps:$4 sm:$0xff]  }
 0x634   :  { %14186 = vmatprep.subr.bf16.mxu1 %v17371_v58  ;;  %9979 = vmatprep.subr.bf16.mxu0 %v19653_v44  ;;  %v19695_v58 = vld [vmem:[#allocation6 + $0x19c4] ss:$40 sps:$4 sm:$0xff]   ;;  %v19693_v44 = vld [vmem:[#allocation6 + $0x19c0] ss:$40 sps:$4 sm:$0xff]  }
 0x637   :  { %14187 = vmatpush1.bf16.msra.mxu1 %v17370_v60  ;;  %9980 = vmatpush1.bf16.msra.mxu0 %v19651_v62  ;;  %v19701_v60 = vld [vmem:[#allocation6 + $0x1a64] ss:$40 sps:$4 sm:$0xff]   ;;  %v19699_v62 = vld [vmem:[#allocation6 + $0x1a60] ss:$40 sps:$4 sm:$0xff]  }
 0x638   :  { %14188 = vmatprep.subr.bf16.mxu1 %v17379_v18  ;;  %9981 = vmatprep.subr.bf16.mxu0 %v19656_v56  ;;  %v19707_v18 = vld [vmem:[#allocation6 + $0x1b04] ss:$40 sps:$4 sm:$0xff]   ;;  %v19710_v56 = vld [vmem:[#allocation6 + $0x1b54] ss:$40 sps:$4 sm:$0xff]  }
 0x63b   :  { %14189 = vmatpush1.bf16.msra.mxu1 %v17378_v4  ;;  %9982 = vmatpush1.bf16.msra.mxu0 %v19654_v8  ;;  %v19711_v4 = vld [vmem:[#allocation6 + $0x1ba0] ss:$40 sps:$4 sm:$0xff]   ;;  %v19716_v8 = vld [vmem:[#allocation6 + $0x1bf4] ss:$40 sps:$4 sm:$0xff]  }
 0x63c   :  { %14190 = vmatprep.subr.bf16.mxu1 %v17387_v20  ;;  %9983 = vmatprep.subr.bf16.mxu0 %v19659_v34  ;;  %v19719_v20 = vld [vmem:[#allocation6 + $0x1c44] ss:$40 sps:$4 sm:$0xff]   ;;  %v19717_v34 = vld [vmem:[#allocation6 + $0x1c40] ss:$40 sps:$4 sm:$0xff]  }
 0x63f   :  { %14191 = vmatpush1.bf16.msra.mxu1 %v17386_v14  ;;  %9984 = vmatpush1.bf16.msra.mxu0 %v19657_v45  ;;  %v19722_v14 = vld [vmem:[#allocation6 + $0x1c94] ss:$40 sps:$4 sm:$0xff]   ;;  %v19720_v45 = vld [vmem:[#allocation6 + $0x1c90] ss:$40 sps:$4 sm:$0xff]  }
 0x640   :  { %9985 = vmatprep.subr.bf16.mxu0 %v19662_v52  ;;  %v19723_v52 = vld [vmem:[#allocation6 + $0x1ce0] ss:$40 sps:$4 sm:$0xff]  }
 0x642   :  { %14193 = vmatmul.mubr.bf16.vlgmr.msra.gmra.mrb[24].mxu1 %v20519_v51 }
 0x643   :  { %9986 = vmatpush1.bf16.msra.mxu0 %v19660_v15  ;;  %v19728_v15 = vld [vmem:[#allocation6 + $0x1d34] ss:$40 sps:$4 sm:$0xff]  }
 0x644   :  { %9987 = vmatprep.subr.bf16.mxu0 %v19665_v16  ;;  %v19726_v16 = vld [vmem:[#allocation6 + $0x1d30] ss:$40 sps:$4 sm:$0xff]  }
 0x647   :  { %9988 = vmatpush1.bf16.msra.mxu0 %v19663_v30  ;;  %v19731_v30 = vld [vmem:[#allocation6 + $0x1d84] ss:$40 sps:$4 sm:$0xff]  }
 0x648   :  { %9989 = vmatprep.subr.bf16.mxu0 %v19668_v17  ;;  %v19729_v17 = vld [vmem:[#allocation6 + $0x1d80] ss:$40 sps:$4 sm:$0xff]  }
 0x64b   :  { %9990 = vmatpush1.bf16.msra.mxu0 %v19666_v31  ;;  %v19734_v31 = vld [vmem:[#allocation6 + $0x1dd4] ss:$40 sps:$4 sm:$0xff]  }
 0x64c   :  { %9991 = vmatprep.subr.bf16.mxu0 %v19671_v23  ;;  %v19732_v23 = vld [vmem:[#allocation6 + $0x1dd0] ss:$40 sps:$4 sm:$0xff]  }
 0x64f   :  { %9992 = vmatpush1.bf16.msra.mxu0 %v19669_v24  ;;  %v19737_v24 = vld [vmem:[#allocation6 + $0x1e24] ss:$40 sps:$4 sm:$0xff]  }
 0x650   :  { %9993 = vmatprep.subr.bf16.mxu0 %v19674_v3  ;;  %v19735_v3 = vld [vmem:[#allocation6 + $0x1e20] ss:$40 sps:$4 sm:$0xff]  }
 0x653   :  { %9994 = vmatpush1.bf16.msra.mxu0 %v19672_v26  ;;  %v19740_v26 = vld [vmem:[#allocation6 + $0x1e74] ss:$40 sps:$4 sm:$0xff]  }
 0x654   :  { %9995 = vmatprep.subr.bf16.mxu0 %v19677_v27  ;;  %v19738_v27 = vld [vmem:[#allocation6 + $0x1e70] ss:$40 sps:$4 sm:$0xff]  }
 0x657   :  { %9996 = vmatpush1.bf16.msra.mxu0 %v19675_v32  ;;  %v19743_v32 = vld [vmem:[#allocation6 + $0x1ec4] ss:$40 sps:$4 sm:$0xff]  }
 0x658   :  { %9997 = vmatprep.subr.bf16.mxu0 %v19680_v36  ;;  %v19741_v36 = vld [vmem:[#allocation6 + $0x1ec0] ss:$40 sps:$4 sm:$0xff]  }
 0x65b   :  { %9998 = vmatpush1.bf16.msra.mxu0 %v19678_v38  ;;  %v19746_v38 = vld [vmem:[#allocation6 + $0x1f14] ss:$40 sps:$4 sm:$0xff]  }
 0x65c   :  { %9999 = vmatprep.subr.bf16.mxu0 %v19683_v39  ;;  %v19744_v39 = vld [vmem:[#allocation6 + $0x1f10] ss:$40 sps:$4 sm:$0xff]  }
 0x65f   :  { %10000 = vmatpush1.bf16.msra.mxu0 %v19681_v57  ;;  %v19749_v57 = vld [vmem:[#allocation6 + $0x1f64] ss:$40 sps:$4 sm:$0xff]  }
 0x660   :  { %10001 = vmatprep.subr.bf16.mxu0 %v19686_v33  ;;  %v19747_v33 = vld [vmem:[#allocation6 + $0x1f60] ss:$40 sps:$4 sm:$0xff]  }
 0x663   :  { %10002 = vmatpush1.bf16.msra.mxu0 %v19684_v25  ;;  %v19752_v25 = vld [vmem:[#allocation6 + $0x1fb4] ss:$40 sps:$4 sm:$0xff]  }
 0x664   :  { %10012 = vmatprep.subr.bf16.mxu0 %v19689_v22  ;;  %v19755_v22 = vld [vmem:[#allocation6 + $0x2004] ss:$40 sps:$4 sm:$0xff]  }
 0x666   :  { %10004 = vmatmul.mubr.bf16.vlgmr.msra.gmra.mrb[24].mxu0 %v20366_v5  ;;  %v19702_v5 = vld [vmem:[#allocation6 + $0x1ab0] ss:$40 sps:$4 sm:$0xff]  }
 0x667   :  { %10013 = vmatpush1.bf16.msra.mxu0 %v19687_v41  ;;  %10044 = vmatprep.mubr.bf16.mxu0 %v20368_v35  ;;  %v19705_v35 = vld [vmem:[#allocation6 + $0x1b00] ss:$40 sps:$4 sm:$0xff]   ;;  %v19758_v41 = vld [vmem:[#allocation6 + $0x2054] ss:$40 sps:$4 sm:$0xff]  }
 0x668   :  { %10014 = vmatprep.subr.bf16.mxu0 %v19692_v43  ;;  %v19756_v43 = vld [vmem:[#allocation6 + $0x2050] ss:$40 sps:$4 sm:$0xff]  }
 0x66b   :  { %10015 = vmatpush1.bf16.msra.mxu0 %v19690_v49  ;;  %v19761_v49 = vld [vmem:[#allocation6 + $0x20a4] ss:$40 sps:$4 sm:$0xff]  }
 0x66c   :  { %10016 = vmatprep.subr.bf16.mxu0 %v19695_v58  ;;  %v19759_v58 = vld [vmem:[#allocation6 + $0x20a0] ss:$40 sps:$4 sm:$0xff]  }
 0x66f   :  { %10017 = vmatpush1.bf16.msra.mxu0 %v19693_v44  ;;  %v19764_v44 = vld [vmem:[#allocation6 + $0x20f4] ss:$40 sps:$4 sm:$0xff]  }
 0x670   :  { %10018 = vmatprep.subr.bf16.mxu0 %v19698_v55  ;;  %v19762_v55 = vld [vmem:[#allocation6 + $0x20f0] ss:$40 sps:$4 sm:$0xff]  }
 0x673   :  { %10019 = vmatpush1.bf16.msra.mxu0 %v19696_v53  ;;  %v19767_v53 = vld [vmem:[#allocation6 + $0x2144] ss:$40 sps:$4 sm:$0xff]  }
 0x674   :  { %10020 = vmatprep.subr.bf16.mxu0 %v19701_v60  ;;  %v19765_v60 = vld [vmem:[#allocation6 + $0x2140] ss:$40 sps:$4 sm:$0xff]  }
 0x677   :  { %10021 = vmatpush1.bf16.msra.mxu0 %v19699_v62  ;;  %v19770_v62 = vld [vmem:[#allocation6 + $0x2194] ss:$40 sps:$4 sm:$0xff]  }
 0x678   :  { %10022 = vmatprep.subr.bf16.mxu0 %v19704_v1  ;;  %v19768_v1 = vld [vmem:[#allocation6 + $0x2190] ss:$40 sps:$4 sm:$0xff]  }
 0x67b   :  { %10023 = vmatpush1.bf16.msra.mxu0 %v19702_v5  ;;  %v19773_v5 = vld [vmem:[#allocation6 + $0x21e4] ss:$40 sps:$4 sm:$0xff]  }
 0x67c   :  { %10024 = vmatprep.subr.bf16.mxu0 %v19707_v18  ;;  %v19771_v18 = vld [vmem:[#allocation6 + $0x21e0] ss:$40 sps:$4 sm:$0xff]  }
 0x67f   :  { %10025 = vmatpush1.bf16.msra.mxu0 %v19705_v35  ;;  %v19776_v35 = vld [vmem:[#allocation6 + $0x2234] ss:$40 sps:$4 sm:$0xff]  }
 0x680   :  { %10026 = vmatprep.subr.bf16.mxu0 %v19710_v56  ;;  %v19774_v56 = vld [vmem:[#allocation6 + $0x2230] ss:$40 sps:$4 sm:$0xff]  }
 0x683   :  { %10027 = vmatpush1.bf16.msra.mxu0 %v19708_v46  ;;  %v19779_v46 = vld [vmem:[#allocation6 + $0x2284] ss:$40 sps:$4 sm:$0xff]  }
 0x684   :  { %10028 = vmatprep.subr.bf16.mxu0 %v19713_v2  ;;  %v19777_v2 = vld [vmem:[#allocation6 + $0x2280] ss:$40 sps:$4 sm:$0xff]  }
 0x687   :  { %10029 = vmatpush1.bf16.msra.mxu0 %v19711_v4  ;;  %v19782_v4 = vld [vmem:[#allocation6 + $0x22d4] ss:$40 sps:$4 sm:$0xff]  }
 0x688   :  { %10030 = vmatprep.subr.bf16.mxu0 %v19716_v8  ;;  %v19780_v8 = vld [vmem:[#allocation6 + $0x22d0] ss:$40 sps:$4 sm:$0xff]  }
 0x68b   :  { %10031 = vmatpush1.bf16.msra.mxu0 %v19714_v6  ;;  %v19785_v6 = vld [vmem:[#allocation6 + $0x2324] ss:$40 sps:$4 sm:$0xff]  }
 0x68c   :  { %10032 = vmatprep.subr.bf16.mxu0 %v19719_v20  ;;  %v19783_v20 = vld [vmem:[#allocation6 + $0x2320] ss:$40 sps:$4 sm:$0xff]  }
 0x68f   :  { %10033 = vmatpush1.bf16.msra.mxu0 %v19717_v34  ;;  %v19788_v34 = vld [vmem:[#allocation6 + $0x2374] ss:$40 sps:$4 sm:$0xff]  }
 0x690   :  { %10034 = vmatprep.subr.bf16.mxu0 %v19722_v14  ;;  %v19786_v14 = vld [vmem:[#allocation6 + $0x2370] ss:$40 sps:$4 sm:$0xff]  }
 0x693   :  { %10035 = vmatpush1.bf16.msra.mxu0 %v19720_v45  ;;  %v19791_v45 = vld [vmem:[#allocation6 + $0x23c4] ss:$40 sps:$4 sm:$0xff]  }
 0x694   :  { %10036 = vmatprep.subr.bf16.mxu0 %v19725_v11  ;;  %v19789_v11 = vld [vmem:[#allocation6 + $0x23c0] ss:$40 sps:$4 sm:$0xff]  }
 0x697   :  { %10037 = vmatpush1.bf16.msra.mxu0 %v19723_v52  ;;  %v19794_v52 = vld [vmem:[#allocation6 + $0x2414] ss:$40 sps:$4 sm:$0xff]  }
 0x698   :  { %10038 = vmatprep.subr.bf16.mxu0 %v19728_v15  ;;  %v19792_v15 = vld [vmem:[#allocation6 + $0x2410] ss:$40 sps:$4 sm:$0xff]  }
 0x69b   :  { %10039 = vmatpush1.bf16.msra.mxu0 %v19726_v16  ;;  %v19797_v16 = vld [vmem:[#allocation6 + $0x2464] ss:$40 sps:$4 sm:$0xff]  }
 0x69c   :  { %10040 = vmatprep.subr.bf16.mxu0 %v19731_v30  ;;  %v19795_v30 = vld [vmem:[#allocation6 + $0x2460] ss:$40 sps:$4 sm:$0xff]  }
 0x69f   :  { %10041 = vmatpush1.bf16.msra.mxu0 %v19729_v17  ;;  %v19800_v17 = vld [vmem:[#allocation6 + $0x24b4] ss:$40 sps:$4 sm:$0xff]  }
 0x6a0   :  { %10042 = vmatprep.subr.bf16.mxu0 %v19734_v31  ;;  %v19803_v31 = vld [vmem:[#allocation6 + $0x2504] ss:$40 sps:$4 sm:$0xff]  }
 0x6a3   :  { %10043 = vmatpush1.bf16.msra.mxu0 %v19732_v23  ;;  %v19806_v23 = vld [vmem:[#allocation6 + $0x2554] ss:$40 sps:$4 sm:$0xff]  }
 0x6a4   :  { %10053 = vmatprep.subr.bf16.mxu0 %v19737_v24  ;;  %v19804_v24 = vld [vmem:[#allocation6 + $0x2550] ss:$40 sps:$4 sm:$0xff]  }
 0x6a6   :  { %10045 = vmatmul.mubr.bf16.vlgmr.msra.gmra.mrb[24].mxu0 %v20386_v59  ;;  %v19750_v59 = vld [vmem:[#allocation6 + $0x1fb0] ss:$40 sps:$4 sm:$0xff]  }
 0x6a7   :  { %10054 = vmatpush1.bf16.msra.mxu0 %v19735_v3  ;;  %10085 = vmatprep.mubr.bf16.mxu0 %v20388_v61  ;;  %v19753_v61 = vld [vmem:[#allocation6 + $0x2000] ss:$40 sps:$4 sm:$0xff]   ;;  %v19809_v3 = vld [vmem:[#allocation6 + $0x25a4] ss:$40 sps:$4 sm:$0xff]  }
 0x6a8   :  { %10055 = vmatprep.subr.bf16.mxu0 %v19740_v26  ;;  %v19807_v26 = vld [vmem:[#allocation6 + $0x25a0] ss:$40 sps:$4 sm:$0xff]  }
 0x6ab   :  { %10056 = vmatpush1.bf16.msra.mxu0 %v19738_v27  ;;  %v19812_v27 = vld [vmem:[#allocation6 + $0x25f4] ss:$40 sps:$4 sm:$0xff]  }
 0x6ac   :  { %10057 = vmatprep.subr.bf16.mxu0 %v19743_v32  ;;  %v19810_v32 = vld [vmem:[#allocation6 + $0x25f0] ss:$40 sps:$4 sm:$0xff]  }
 0x6af   :  { %10058 = vmatpush1.bf16.msra.mxu0 %v19741_v36  ;;  %v19815_v36 = vld [vmem:[#allocation6 + $0x2644] ss:$40 sps:$4 sm:$0xff]  }
 0x6b0   :  { %10059 = vmatprep.subr.bf16.mxu0 %v19746_v38  ;;  %v19813_v38 = vld [vmem:[#allocation6 + $0x2640] ss:$40 sps:$4 sm:$0xff]  }
 0x6b3   :  { %10060 = vmatpush1.bf16.msra.mxu0 %v19744_v39  ;;  %v19818_v39 = vld [vmem:[#allocation6 + $0x2694] ss:$40 sps:$4 sm:$0xff]  }
 0x6b4   :  { %10061 = vmatprep.subr.bf16.mxu0 %v19749_v57  ;;  %v19816_v57 = vld [vmem:[#allocation6 + $0x2690] ss:$40 sps:$4 sm:$0xff]  }
 0x6b7   :  { %10062 = vmatpush1.bf16.msra.mxu0 %v19747_v33  ;;  %v19821_v33 = vld [vmem:[#allocation6 + $0x26e4] ss:$40 sps:$4 sm:$0xff]  }
 0x6b8   :  { %10063 = vmatprep.subr.bf16.mxu0 %v19752_v25  ;;  %v19819_v25 = vld [vmem:[#allocation6 + $0x26e0] ss:$40 sps:$4 sm:$0xff]  }
 0x6bb   :  { %10064 = vmatpush1.bf16.msra.mxu0 %v19750_v59  ;;  %v19824_v59 = vld [vmem:[#allocation6 + $0x2734] ss:$40 sps:$4 sm:$0xff]  }
 0x6bc   :  { %10065 = vmatprep.subr.bf16.mxu0 %v19755_v22  ;;  %v19822_v22 = vld [vmem:[#allocation6 + $0x2730] ss:$40 sps:$4 sm:$0xff]  }
 0x6bf   :  { %10066 = vmatpush1.bf16.msra.mxu0 %v19753_v61  ;;  %v19827_v61 = vld [vmem:[#allocation6 + $0x2784] ss:$40 sps:$4 sm:$0xff]  }
 0x6c0   :  { %10067 = vmatprep.subr.bf16.mxu0 %v19758_v41  ;;  %v19825_v41 = vld [vmem:[#allocation6 + $0x2780] ss:$40 sps:$4 sm:$0xff]  }
 0x6c3   :  { %10068 = vmatpush1.bf16.msra.mxu0 %v19756_v43  ;;  %v19830_v43 = vld [vmem:[#allocation6 + $0x27d4] ss:$40 sps:$4 sm:$0xff]  }
 0x6c4   :  { %10069 = vmatprep.subr.bf16.mxu0 %v19761_v49  ;;  %v10157_v49 = vld [vmem:[#allocation9 + $0x10] sm:$0xff] }
 0x6c7   :  { %10070 = vmatpush1.bf16.msra.mxu0 %v19759_v58  ;;  %v10161_v58 = vld [vmem:[#allocation9 + $0x30] sm:$0xff] }
 0x6c8   :  { %10071 = vmatprep.subr.bf16.mxu0 %v19764_v44  ;;  %v19828_v44 = vld [vmem:[#allocation6 + $0x27d0] ss:$40 sps:$4 sm:$0xff]  }
 0x6cb   :  { %10072 = vmatpush1.bf16.msra.mxu0 %v19762_v55  ;;  %v16887_v55 = vcombine.high %v10157_v49, %v10161_v58 }
 0x6cc   :  { %10073 = vmatprep.subr.bf16.mxu0 %v19767_v53  ;;  %v10165_v53 = vld [vmem:[#allocation9 + $0x50] sm:$0xff] }
 0x6cf   :  { %10074 = vmatpush1.bf16.msra.mxu0 %v19765_v60  ;;  %v10169_v60 = vld [vmem:[#allocation9 + $0x70] sm:$0xff] }
 0x6d0   :  { %10075 = vmatprep.subr.bf16.mxu0 %v19770_v62  ;;  %v16886_v62 = vcombine.low %v10157_v49, %v10161_v58  ;;  %v10237_v49 = vld [vmem:[#allocation9 + $0x290] sm:$0xff] }
 0x6d1   :  { %v10241_v58 = vld [vmem:[#allocation9 + $0x2b0] sm:$0xff] }
 0x6d3   :  { %10076 = vmatpush1.bf16.msra.mxu0 %v19768_v1  ;;  %v16895_v1 = vcombine.high %v10165_v53, %v10169_v60 }
 0x6d4   :  { %10077 = vmatprep.subr.bf16.mxu0 %v19773_v5  ;;  %v10173_v5 = vld [vmem:[#allocation9 + $0x90] sm:$0xff] }
 0x6d7   :  { %10078 = vmatpush1.bf16.msra.mxu0 %v19771_v18  ;;  %v10177_v18 = vld [vmem:[#allocation9 + $0xb0] sm:$0xff] }
 0x6d8   :  { %10079 = vmatprep.subr.bf16.mxu0 %v19776_v35  ;;  %v16894_v35 = vcombine.low %v10165_v53, %v10169_v60  ;;  %v10687_v53 = vld [vmem:[#allocation9 + $0x10a0] sm:$0xff]  ;;  %v16967_v60 = vcombine.high %v10237_v49, %v10241_v58 }
 0x6db   :  { %10080 = vmatpush1.bf16.msra.mxu0 %v19774_v56  ;;  %v16903_v56 = vcombine.high %v10173_v5, %v10177_v18 }
 0x6dc   :  { %10081 = vmatprep.subr.bf16.mxu0 %v19779_v46  ;;  %v10181_v46 = vld [vmem:[#allocation9 + $0xd0] sm:$0xff] }
 0x6df   :  { %10082 = vmatpush1.bf16.msra.mxu0 %v19777_v2  ;;  %v10185_v2 = vld [vmem:[#allocation9 + $0xf0] sm:$0xff] }
 0x6e0   :  { %10083 = vmatprep.subr.bf16.mxu0 %v19782_v4  ;;  %v16902_v4 = vcombine.low %v10173_v5, %v10177_v18  ;;  %v10245_v5 = vld [vmem:[#allocation9 + $0x2d0] sm:$0xff] }
 0x6e1   :  { %v10249_v18 = vld [vmem:[#allocation9 + $0x2f0] sm:$0xff] }
 0x6e3   :  { %10084 = vmatpush1.bf16.msra.mxu0 %v19780_v8  ;;  %v16911_v8 = vcombine.high %v10181_v46, %v10185_v2 }
 0x6e4   :  { %10094 = vmatprep.subr.bf16.mxu0 %v19785_v6  ;;  %v10189_v6 = vld [vmem:[#allocation9 + $0x110] sm:$0xff] }
 0x6e6   :  { %10086 = vmatmul.mubr.bf16.vlgmr.msra.gmra.mrb[24].mxu0 %v20400_v47  ;;  %v19798_v47 = vld [vmem:[#allocation6 + $0x24b0] ss:$40 sps:$4 sm:$0xff]  }
 0x6e7   :  { %10095 = vmatpush1.bf16.msra.mxu0 %v19783_v20  ;;  %10126 = vmatprep.mubr.bf16.mxu0 %v20402_v40  ;;  %v19801_v40 = vld [vmem:[#allocation6 + $0x2500] ss:$40 sps:$4 sm:$0xff]  }
 0x6e8   :  { %10096 = vmatprep.subr.bf16.mxu0 %v19788_v34  ;;  %v10193_v20 = vld [vmem:[#allocation9 + $0x130] sm:$0xff]  ;;  %v16910_v34 = vcombine.low %v10181_v46, %v10185_v2  ;;  %v10695_v46 = vld [vmem:[#allocation9 + $0x10e0] sm:$0xff]  ;;  %v16975_v2 = vcombine.high %v10245_v5, %v10249_v18 }
 0x6eb   :  { %10097 = vmatpush1.bf16.msra.mxu0 %v19786_v14  ;;  %v16919_v14 = vcombine.high %v10189_v6, %v10193_v20 }
 0x6ec   :  { %10098 = vmatprep.subr.bf16.mxu0 %v19791_v45  ;;  %v10197_v45 = vld [vmem:[#allocation9 + $0x150] sm:$0xff] }
 0x6ef   :  { %10099 = vmatpush1.bf16.msra.mxu0 %v19789_v11  ;;  %v16918_v11 = vcombine.low %v10189_v6, %v10193_v20  ;;  %v10253_v6 = vld [vmem:[#allocation9 + $0x310] sm:$0xff] }
 0x6f0   :  { %10100 = vmatprep.subr.bf16.mxu0 %v19794_v52  ;;  %v10257_v20 = vld [vmem:[#allocation9 + $0x330] sm:$0xff] }
 0x6f3   :  { %10101 = vmatpush1.bf16.msra.mxu0 %v19792_v15  ;;  %v10205_v15 = vld [vmem:[#allocation9 + $0x190] sm:$0xff] }
 0x6f4   :  { %10102 = vmatprep.subr.bf16.mxu0 %v19797_v16  ;;  %v10209_v16 = vld [vmem:[#allocation9 + $0x1b0] sm:$0xff] }
 0x6f7   :  { %10103 = vmatpush1.bf16.msra.mxu0 %v19795_v30 }
 0x6f8   :  { %10104 = vmatprep.subr.bf16.mxu0 %v19800_v17  ;;  %v16935_v17 = vcombine.high %v10205_v15, %v10209_v16 }
 0x6fb   :  { %10105 = vmatpush1.bf16.msra.mxu0 %v19798_v47  ;;  %v10213_v47 = vld [vmem:[#allocation9 + $0x1d0] sm:$0xff] }
 0x6fc   :  { %10106 = vmatprep.subr.bf16.mxu0 %v19803_v31  ;;  %v10217_v31 = vld [vmem:[#allocation9 + $0x1f0] sm:$0xff] }
 0x6ff   :  { %10107 = vmatpush1.bf16.msra.mxu0 %v19801_v40  ;;  %v16934_v40 = vcombine.low %v10205_v15, %v10209_v16  ;;  %v10261_v15 = vld [vmem:[#allocation9 + $0x350] sm:$0xff] }
 0x700   :  { %10108 = vmatprep.subr.bf16.mxu0 %v19806_v23  ;;  %v16943_v23 = vcombine.high %v10213_v47, %v10217_v31  ;;  %v10265_v16 = vld [vmem:[#allocation9 + $0x370] sm:$0xff] }
 0x703   :  { %10109 = vmatpush1.bf16.msra.mxu0 %v19804_v24  ;;  %v10221_v24 = vld [vmem:[#allocation9 + $0x210] sm:$0xff] }
 0x704   :  { %10110 = vmatprep.subr.bf16.mxu0 %v19809_v3  ;;  %v10225_v3 = vld [vmem:[#allocation9 + $0x230] sm:$0xff] }
 0x707   :  { %10111 = vmatpush1.bf16.msra.mxu0 %v19807_v26  ;;  %v16942_v26 = vcombine.low %v10213_v47, %v10217_v31  ;;  %v10711_v47 = vld [vmem:[#allocation9 + $0x1160] sm:$0xff]  ;;  %v16991_v31 = vcombine.high %v10261_v15, %v10265_v16 }
 0x708   :  { %10112 = vmatprep.subr.bf16.mxu0 %v19812_v27  ;;  %v10667_v27 = vld [vmem:[#allocation9 + $0x1000] sm:$0xff] }
 0x70b   :  { %10113 = vmatpush1.bf16.msra.mxu0 %v19810_v32  ;;  %v10671_v32 = vld [vmem:[#allocation9 + $0x1020] sm:$0xff] }
 0x70c   :  { %10114 = vmatprep.subr.bf16.mxu0 %v19815_v36  ;;  %v16951_v36 = vcombine.high %v10221_v24, %v10225_v3 }
 0x70f   :  { %10115 = vmatpush1.bf16.msra.mxu0 %v19813_v38  ;;  %v17394_v38 = vcombine.low %v10667_v27, %v10671_v32 }
 0x710   :  { %10116 = vmatprep.subr.bf16.mxu0 %v19818_v39  ;;  %v17395_v39 = vcombine.high %v10667_v27, %v10671_v32  ;;  %v10715_v27 = vld [vmem:[#allocation9 + $0x1180] sm:$0xff] }
 0x711   :  { %v10719_v32 = vld [vmem:[#allocation9 + $0x11a0] sm:$0xff] }
 0x712   :  { %14201 = vmatprep.subr.bf16.mxu1 %v17395_v39  ;;  %v17443_v39 = vcombine.high %v10715_v27, %v10719_v32 }
 0x713   :  { %10117 = vmatpush1.bf16.msra.mxu0 %v19816_v57  ;;  %v10229_v57 = vld [vmem:[#allocation9 + $0x250] sm:$0xff]  ;;  %14202 = vmatpush1.bf16.msra.mxu1 %v17394_v38  ;;  %v17442_v38 = vcombine.low %v10715_v27, %v10719_v32  ;;  %v10763_v27 = vld [vmem:[#allocation9 + $0x1300] sm:$0xff] }
 0x714   :  { %10118 = vmatprep.subr.bf16.mxu0 %v19821_v33  ;;  %v10233_v33 = vld [vmem:[#allocation9 + $0x270] sm:$0xff]  ;;  %v10767_v32 = vld [vmem:[#allocation9 + $0x1320] sm:$0xff] }
 0x717   :  { %10119 = vmatpush1.bf16.msra.mxu0 %v19819_v25  ;;  %v16950_v25 = vcombine.low %v10221_v24, %v10225_v3  ;;  %v10269_v24 = vld [vmem:[#allocation9 + $0x390] sm:$0xff] }
 0x718   :  { %10120 = vmatprep.subr.bf16.mxu0 %v19824_v59  ;;  %v10675_v59 = vld [vmem:[#allocation9 + $0x1040] sm:$0xff]  ;;  %v10273_v3 = vld [vmem:[#allocation9 + $0x3b0] sm:$0xff] }
 0x71b   :  { %10121 = vmatpush1.bf16.msra.mxu0 %v19822_v22  ;;  %v10679_v22 = vld [vmem:[#allocation9 + $0x1060] sm:$0xff] }
 0x71c   :  { %10122 = vmatprep.subr.bf16.mxu0 %v19827_v61  ;;  %v16959_v61 = vcombine.high %v10229_v57, %v10233_v33 }
 0x71f   :  { %10123 = vmatpush1.bf16.msra.mxu0 %v19825_v41  ;;  %v17402_v41 = vcombine.low %v10675_v59, %v10679_v22 }
 0x720   :  { %10124 = vmatprep.subr.bf16.mxu0 %v19830_v43  ;;  %v17403_v43 = vcombine.high %v10675_v59, %v10679_v22  ;;  %v10723_v59 = vld [vmem:[#allocation9 + $0x11c0] sm:$0xff] }
 0x721   :  { %v10727_v22 = vld [vmem:[#allocation9 + $0x11e0] sm:$0xff] }
 0x722   :  { %14203 = vmatprep.subr.bf16.mxu1 %v17403_v43  ;;  %v17451_v43 = vcombine.high %v10723_v59, %v10727_v22 }
 0x723   :  { %10125 = vmatpush1.bf16.msra.mxu0 %v19828_v44  ;;  %v16958_v44 = vcombine.low %v10229_v57, %v10233_v33  ;;  %14204 = vmatpush1.bf16.msra.mxu1 %v17402_v41  ;;  %v10277_v57 = vld [vmem:[#allocation9 + $0x3d0] sm:$0xff]  ;;  %v17450_v41 = vcombine.low %v10723_v59, %v10727_v22  ;;  %v10771_v59 = vld [vmem:[#allocation9 + $0x1340] sm:$0xff] }
 0x724   :  { %14447 = vmatprep.subr.bf16.mxu0 %v16887_v55  ;;  %v10683_v55 = vld [vmem:[#allocation9 + $0x1080] sm:$0xff]  ;;  %v10281_v33 = vld [vmem:[#allocation9 + $0x3f0] sm:$0xff] }
 0x725   :  { %v10775_v22 = vld [vmem:[#allocation9 + $0x1360] sm:$0xff] }
 0x726   :  { %10127 = vmatmul.mubr.bf16.vlgmr.msra.gmra.mrb[24].mxu0 %v20410_v50  ;;  %v10201_v50 = vld [vmem:[#allocation9 + $0x170] sm:$0xff] }
 0x727   :  { %14448 = vmatpush1.bf16.msra.mxu0 %v16886_v62  ;;  %14479 = vmatprep.mubr.bf16.mxu0 %v20458_v29  ;;  %v16927_v52 = vcombine.high %v10197_v45, %v10201_v50  ;;  %v16926_v30 = vcombine.low %v10197_v45, %v10201_v50  ;;  %v17410_v62 = vcombine.low %v10683_v55, %v10687_v53  ;;  %v10703_v45 = vld [vmem:[#allocation9 + $0x1120] sm:$0xff] }
 0x728   :  { %14449 = vmatprep.subr.bf16.mxu0 %v16895_v1  ;;  %v17411_v1 = vcombine.high %v10683_v55, %v10687_v53  ;;  %v16983_v50 = vcombine.high %v10253_v6, %v10257_v20  ;;  %v10731_v55 = vld [vmem:[#allocation9 + $0x1200] sm:$0xff] }
 0x729   :  { %v10735_v53 = vld [vmem:[#allocation9 + $0x1220] sm:$0xff] }
 0x72a   :  { %14205 = vmatprep.subr.bf16.mxu1 %v17411_v1  ;;  %v17459_v1 = vcombine.high %v10731_v55, %v10735_v53 }
 0x72b   :  { %14450 = vmatpush1.bf16.msra.mxu0 %v16894_v35  ;;  %v16966_v35 = vcombine.low %v10237_v49, %v10241_v58  ;;  %14206 = vmatpush1.bf16.msra.mxu1 %v17410_v62  ;;  %v10285_v49 = vld [vmem:[#allocation9 + $0x410] sm:$0xff]  ;;  %v17458_v62 = vcombine.low %v10731_v55, %v10735_v53  ;;  %v10779_v53 = vld [vmem:[#allocation9 + $0x1380] sm:$0xff] }
 0x72c   :  { %14451 = vmatprep.subr.bf16.mxu0 %v16903_v56  ;;  %v10691_v56 = vld [vmem:[#allocation9 + $0x10c0] sm:$0xff]  ;;  %v10289_v58 = vld [vmem:[#allocation9 + $0x430] sm:$0xff] }
 0x72f   :  { %14452 = vmatpush1.bf16.msra.mxu0 %v16902_v4  ;;  %v17418_v4 = vcombine.low %v10691_v56, %v10695_v46 }
 0x730   :  { %14453 = vmatprep.subr.bf16.mxu0 %v16911_v8  ;;  %v17419_v8 = vcombine.high %v10691_v56, %v10695_v46  ;;  %v10739_v56 = vld [vmem:[#allocation9 + $0x1240] sm:$0xff] }
 0x731   :  { %v10743_v46 = vld [vmem:[#allocation9 + $0x1260] sm:$0xff] }
 0x732   :  { %14207 = vmatprep.subr.bf16.mxu1 %v17419_v8  ;;  %v17467_v8 = vcombine.high %v10739_v56, %v10743_v46 }
 0x733   :  { %14454 = vmatpush1.bf16.msra.mxu0 %v16910_v34  ;;  %v16974_v34 = vcombine.low %v10245_v5, %v10249_v18  ;;  %14208 = vmatpush1.bf16.msra.mxu1 %v17418_v4  ;;  %v10293_v5 = vld [vmem:[#allocation9 + $0x450] sm:$0xff]  ;;  %v17466_v4 = vcombine.low %v10739_v56, %v10743_v46  ;;  %v10787_v46 = vld [vmem:[#allocation9 + $0x13c0] sm:$0xff] }
 0x734   :  { %14455 = vmatprep.subr.bf16.mxu0 %v16919_v14  ;;  %v10699_v14 = vld [vmem:[#allocation9 + $0x1100] sm:$0xff]  ;;  %v10297_v18 = vld [vmem:[#allocation9 + $0x470] sm:$0xff] }
 0x737   :  { %14456 = vmatpush1.bf16.msra.mxu0 %v16918_v11  ;;  %v17426_v11 = vcombine.low %v10699_v14, %v10703_v45 }
 0x738   :  { %14457 = vmatprep.subr.bf16.mxu0 %v16927_v52  ;;  %v17427_v52 = vcombine.high %v10699_v14, %v10703_v45  ;;  %v10747_v14 = vld [vmem:[#allocation9 + $0x1280] sm:$0xff] }
 0x739   :  { %v10751_v45 = vld [vmem:[#allocation9 + $0x12a0] sm:$0xff] }
 0x73a   :  { %14209 = vmatprep.subr.bf16.mxu1 %v17427_v52  ;;  %v17475_v52 = vcombine.high %v10747_v14, %v10751_v45 }
 0x73b   :  { %14458 = vmatpush1.bf16.msra.mxu0 %v16926_v30  ;;  %v16982_v30 = vcombine.low %v10253_v6, %v10257_v20  ;;  %14210 = vmatpush1.bf16.msra.mxu1 %v17426_v11  ;;  %v10301_v6 = vld [vmem:[#allocation9 + $0x490] sm:$0xff]  ;;  %v17474_v11 = vcombine.low %v10747_v14, %v10751_v45  ;;  %v20532_v45 = vld [vmem:[#allocation9 + $0x8] sm:$0xff] }
 0x73c   :  { %14459 = vmatprep.subr.bf16.mxu0 %v16935_v17  ;;  %v10707_v17 = vld [vmem:[#allocation9 + $0x1140] sm:$0xff]  ;;  %v10305_v20 = vld [vmem:[#allocation9 + $0x4b0] sm:$0xff] }
 0x73f   :  { %14460 = vmatpush1.bf16.msra.mxu0 %v16934_v40  ;;  %v17434_v40 = vcombine.low %v10707_v17, %v10711_v47 }
 0x740   :  { %14461 = vmatprep.subr.bf16.mxu0 %v16943_v23  ;;  %v17435_v23 = vcombine.high %v10707_v17, %v10711_v47  ;;  %v10755_v17 = vld [vmem:[#allocation9 + $0x12c0] sm:$0xff] }
 0x741   :  { %v10759_v47 = vld [vmem:[#allocation9 + $0x12e0] sm:$0xff] }
 0x742   :  { %14211 = vmatprep.subr.bf16.mxu1 %v17435_v23  ;;  %v17483_v23 = vcombine.high %v10755_v17, %v10759_v47 }
 0x743   :  { %14462 = vmatpush1.bf16.msra.mxu0 %v16942_v26  ;;  %v16990_v26 = vcombine.low %v10261_v15, %v10265_v16  ;;  %14212 = vmatpush1.bf16.msra.mxu1 %v17434_v40  ;;  %v10309_v15 = vld [vmem:[#allocation9 + $0x4d0] sm:$0xff]  ;;  %v17482_v40 = vcombine.low %v10755_v17, %v10759_v47 }
 0x744   :  { %14463 = vmatprep.subr.bf16.mxu0 %v16951_v36  ;;  %v16999_v36 = vcombine.high %v10269_v24, %v10273_v3  ;;  %14213 = vmatprep.subr.bf16.mxu1 %v17443_v39  ;;  %v10313_v16 = vld [vmem:[#allocation9 + $0x4f0] sm:$0xff]  ;;  %v17491_v39 = vcombine.high %v10763_v27, %v10767_v32 }
 0x745   :  { %v10365_v47 = vld [vmem:[#allocation9 + $0x690] sm:$0xff] }
 0x747   :  { %14464 = vmatpush1.bf16.msra.mxu0 %v16950_v25  ;;  %v16998_v25 = vcombine.low %v10269_v24, %v10273_v3  ;;  %14214 = vmatpush1.bf16.msra.mxu1 %v17442_v38  ;;  %v10317_v24 = vld [vmem:[#allocation9 + $0x510] sm:$0xff]  ;;  %v17490_v38 = vcombine.low %v10763_v27, %v10767_v32 }
 0x748   :  { %14465 = vmatprep.subr.bf16.mxu0 %v16959_v61  ;;  %v17007_v61 = vcombine.high %v10277_v57, %v10281_v33  ;;  %14215 = vmatprep.subr.bf16.mxu1 %v17451_v43  ;;  %v10321_v3 = vld [vmem:[#allocation9 + $0x530] sm:$0xff]  ;;  %v17499_v43 = vcombine.high %v10771_v59, %v10775_v22 }
 0x749   :  { %v10381_v32 = vld [vmem:[#allocation9 + $0x710] sm:$0xff] }
 0x74b   :  { %14466 = vmatpush1.bf16.msra.mxu0 %v16958_v44  ;;  %v17006_v44 = vcombine.low %v10277_v57, %v10281_v33  ;;  %14216 = vmatpush1.bf16.msra.mxu1 %v17450_v41  ;;  %v10325_v57 = vld [vmem:[#allocation9 + $0x550] sm:$0xff]  ;;  %v17498_v41 = vcombine.low %v10771_v59, %v10775_v22 }
 0x74c   :  { %14467 = vmatprep.subr.bf16.mxu0 %v16967_v60  ;;  %v17015_v60 = vcombine.high %v10285_v49, %v10289_v58  ;;  %14217 = vmatprep.subr.bf16.mxu1 %v17459_v1  ;;  %v10329_v33 = vld [vmem:[#allocation9 + $0x570] sm:$0xff] }
 0x74d   :  { %v10345_v1 = vld [vmem:[#allocation9 + $0x5f0] sm:$0xff] }
 0x74e   :  { %v10397_v22 = vld [vmem:[#allocation9 + $0x790] sm:$0xff] }
 0x74f   :  { %14468 = vmatpush1.bf16.msra.mxu0 %v16966_v35  ;;  %v17014_v35 = vcombine.low %v10285_v49, %v10289_v58  ;;  %14218 = vmatpush1.bf16.msra.mxu1 %v17458_v62  ;;  %v10333_v49 = vld [vmem:[#allocation9 + $0x590] sm:$0xff] }
 0x750   :  { %14469 = vmatprep.subr.bf16.mxu0 %v16975_v2  ;;  %v17023_v2 = vcombine.high %v10293_v5, %v10297_v18  ;;  %14219 = vmatprep.subr.bf16.mxu1 %v17467_v8  ;;  %v10337_v58 = vld [vmem:[#allocation9 + $0x5b0] sm:$0xff] }
 0x751   :  { %v17063_v55 = vcombine.high %v10333_v49, %v10337_v58  ;;  %v10341_v62 = vld [vmem:[#allocation9 + $0x5d0] sm:$0xff] }
 0x752   :  { %v17071_v56 = vcombine.high %v10341_v62, %v10345_v1  ;;  %v10353_v8 = vld [vmem:[#allocation9 + $0x630] sm:$0xff] }
 0x753   :  { %14470 = vmatpush1.bf16.msra.mxu0 %v16974_v34  ;;  %v17022_v34 = vcombine.low %v10293_v5, %v10297_v18  ;;  %14220 = vmatpush1.bf16.msra.mxu1 %v17466_v4  ;;  %v10349_v4 = vld [vmem:[#allocation9 + $0x610] sm:$0xff] }
 0x754   :  { %14471 = vmatprep.subr.bf16.mxu0 %v16983_v50  ;;  %v17031_v50 = vcombine.high %v10301_v6, %v10305_v20  ;;  %14221 = vmatprep.subr.bf16.mxu1 %v17475_v52  ;;  %v17079_v14 = vcombine.high %v10349_v4, %v10353_v8  ;;  %v10361_v52 = vld [vmem:[#allocation9 + $0x670] sm:$0xff] }
 0x757   :  { %14472 = vmatpush1.bf16.msra.mxu0 %v16982_v30  ;;  %v17030_v30 = vcombine.low %v10301_v6, %v10305_v20  ;;  %14222 = vmatpush1.bf16.msra.mxu1 %v17474_v11  ;;  %v10357_v11 = vld [vmem:[#allocation9 + $0x650] sm:$0xff] }
 0x758   :  { %14473 = vmatprep.subr.bf16.mxu0 %v16991_v31  ;;  %v17039_v31 = vcombine.high %v10309_v15, %v10313_v16  ;;  %14223 = vmatprep.subr.bf16.mxu1 %v17483_v23  ;;  %v17087_v17 = vcombine.high %v10357_v11, %v10361_v52 }
 0x75b   :  { %14474 = vmatpush1.bf16.msra.mxu0 %v16990_v26  ;;  %v17038_v26 = vcombine.low %v10309_v15, %v10313_v16  ;;  %14224 = vmatpush1.bf16.msra.mxu1 %v17482_v40  ;;  %v17086_v40 = vcombine.low %v10357_v11, %v10361_v52  ;;  %v10445_v11 = vld [vmem:[#allocation9 + $0x910] sm:$0xff] }
 0x75c   :  { %14475 = vmatprep.subr.bf16.mxu0 %v16999_v36  ;;  %v17047_v36 = vcombine.high %v10317_v24, %v10321_v3  ;;  %14225 = vmatprep.subr.bf16.mxu1 %v17491_v39  ;;  %v10449_v52 = vld [vmem:[#allocation9 + $0x930] sm:$0xff] }
 0x75f   :  { %14476 = vmatpush1.bf16.msra.mxu0 %v16998_v25  ;;  %v17046_v25 = vcombine.low %v10317_v24, %v10321_v3  ;;  %14226 = vmatpush1.bf16.msra.mxu1 %v17490_v38  ;;  %v10373_v24 = vld [vmem:[#allocation9 + $0x6d0] sm:$0xff] }
 0x760   :  { %14477 = vmatprep.subr.bf16.mxu0 %v17007_v61  ;;  %v17055_v61 = vcombine.high %v10325_v57, %v10329_v33  ;;  %14227 = vmatprep.subr.bf16.mxu1 %v17499_v43  ;;  %v10377_v3 = vld [vmem:[#allocation9 + $0x6f0] sm:$0xff] }
 0x761   :  { %v17103_v27 = vcombine.high %v10373_v24, %v10377_v3  ;;  %v17102_v38 = vcombine.low %v10373_v24, %v10377_v3  ;;  %v10465_v24 = vld [vmem:[#allocation9 + $0x9b0] sm:$0xff] }
 0x763   :  { %14478 = vmatpush1.bf16.msra.mxu0 %v17006_v44  ;;  %v17054_v44 = vcombine.low %v10325_v57, %v10329_v33  ;;  %14228 = vmatpush1.bf16.msra.mxu1 %v17498_v41  ;;  %v10389_v57 = vld [vmem:[#allocation9 + $0x750] sm:$0xff] }
 0x764   :  { %14488 = vmatprep.subr.bf16.mxu0 %v17015_v60  ;;  %v10783_v60 = vld [vmem:[#allocation9 + $0x13a0] sm:$0xff]  ;;  %v10393_v33 = vld [vmem:[#allocation9 + $0x770] sm:$0xff] }
 0x765   :  { %v17507_v5 = vcombine.high %v10779_v53, %v10783_v60  ;;  %v17506_v18 = vcombine.low %v10779_v53, %v10783_v60  ;;  %v17119_v59 = vcombine.high %v10389_v57, %v10393_v33  ;;  %v17118_v41 = vcombine.low %v10389_v57, %v10393_v33  ;;  %v10413_v53 = vld [vmem:[#allocation9 + $0x810] sm:$0xff] }
 0x766   :  { %14480 = vmatmul.mubr.bf16.vlgmr.msra.gmra.mrb[28].mxu0 %v20469_v13  ;;  %v10417_v60 = vld [vmem:[#allocation9 + $0x830] sm:$0xff] }
 0x767   :  { %14489 = vmatpush1.bf16.msra.mxu0 %v17014_v35  ;;  %14520 = vmatprep.mubr.bf16.mxu0 %v20472_v21  ;;  %v17062_v35 = vcombine.low %v10333_v49, %v10337_v58  ;;  %v10405_v49 = vld [vmem:[#allocation9 + $0x7d0] sm:$0xff] }
 0x768   :  { %14490 = vmatprep.subr.bf16.mxu0 %v17023_v2  ;;  %14229 = vmatprep.subr.bf16.mxu1 %v17507_v5  ;;  %v10791_v2 = vld [vmem:[#allocation9 + $0x13e0] sm:$0xff]  ;;  %v10409_v58 = vld [vmem:[#allocation9 + $0x7f0] sm:$0xff] }
 0x769   :  { %14230 = vmatpush1.bf16.msra.mxu1 %v17506_v18  ;;  %v17515_v6 = vcombine.high %v10787_v46, %v10791_v2  ;;  %v17514_v20 = vcombine.low %v10787_v46, %v10791_v2  ;;  %v10421_v5 = vld [vmem:[#allocation9 + $0x850] sm:$0xff] }
 0x76a   :  { %v10425_v18 = vld [vmem:[#allocation9 + $0x870] sm:$0xff] }
 0x76b   :  { %14491 = vmatpush1.bf16.msra.mxu0 %v17022_v34  ;;  %v17070_v34 = vcombine.low %v10341_v62, %v10345_v1  ;;  %14231 = vmatprep.subr.bf16.mxu1 %v17515_v6  ;;  %v17134_v62 = vcombine.low %v10405_v49, %v10409_v58  ;;  %v17143_v1 = vcombine.high %v10413_v53, %v10417_v60  ;;  %v10429_v46 = vld [vmem:[#allocation9 + $0x890] sm:$0xff] }
 0x76c   :  { %14492 = vmatprep.subr.bf16.mxu0 %v17031_v50  ;;  %v20534_v50 = vld [vmem:[#allocation9 + $0x28] sm:$0xff]  ;;  %v10433_v2 = vld [vmem:[#allocation9 + $0x8b0] sm:$0xff] }
 0x76d   :  { %14232 = vmatpush1.bf16.msra.mxu1 %v17514_v20  ;;  %v16884_v15 = vcombine.low %v20532_v45, %v20534_v50  ;;  %v16885_v16 = vcombine.high %v20532_v45, %v20534_v50  ;;  %v10437_v6 = vld [vmem:[#allocation9 + $0x8d0] sm:$0xff] }
 0x76e   :  { %v10441_v20 = vld [vmem:[#allocation9 + $0x8f0] sm:$0xff] }
 0x76f   :  { %14493 = vmatpush1.bf16.msra.mxu0 %v17030_v30  ;;  %v17078_v30 = vcombine.low %v10349_v4, %v10353_v8  ;;  %14242 = vmatprep.subr.bf16.mxu1 %v16885_v16  ;;  %v17150_v4 = vcombine.low %v10421_v5, %v10425_v18  ;;  %v17159_v8 = vcombine.high %v10429_v46, %v10433_v2  ;;  %v10481_v57 = vld [vmem:[#allocation9 + $0xa30] sm:$0xff] }
 0x770   :  { %14494 = vmatprep.subr.bf16.mxu0 %v17039_v31  ;;  %v10369_v31 = vld [vmem:[#allocation9 + $0x6b0] sm:$0xff]  ;;  %v17166_v16 = vcombine.low %v10437_v6, %v10441_v20 }
 0x771   :  { %v17095_v23 = vcombine.high %v10365_v47, %v10369_v31 }
 0x773   :  { %14495 = vmatpush1.bf16.msra.mxu0 %v17038_v26  ;;  %v17094_v26 = vcombine.low %v10365_v47, %v10369_v31  ;;  %v10457_v47 = vld [vmem:[#allocation9 + $0x970] sm:$0xff]  ;;  %v17174_v31 = vcombine.low %v10445_v11, %v10449_v52 }
 0x774   :  { %14496 = vmatprep.subr.bf16.mxu0 %v17047_v36  ;;  %v10385_v36 = vld [vmem:[#allocation9 + $0x730] sm:$0xff] }
 0x775   :  { %v17111_v39 = vcombine.high %v10381_v32, %v10385_v36 }
 0x777   :  { %14497 = vmatpush1.bf16.msra.mxu0 %v17046_v25  ;;  %v17110_v25 = vcombine.low %v10381_v32, %v10385_v36  ;;  %v10473_v32 = vld [vmem:[#allocation9 + $0x9f0] sm:$0xff] }
 0x778   :  { %14498 = vmatprep.subr.bf16.mxu0 %v17055_v61  ;;  %v10401_v61 = vld [vmem:[#allocation9 + $0x7b0] sm:$0xff] }
 0x779   :  { %v17127_v43 = vcombine.high %v10397_v22, %v10401_v61 }
 0x77b   :  { %14499 = vmatpush1.bf16.msra.mxu0 %v17054_v44  ;;  %v17126_v44 = vcombine.low %v10397_v22, %v10401_v61  ;;  %v10489_v22 = vld [vmem:[#allocation9 + $0xa70] sm:$0xff] }
 0x77c   :  { %14500 = vmatprep.subr.bf16.mxu0 %v17063_v55  ;;  %v17135_v55 = vcombine.high %v10405_v49, %v10409_v58  ;;  %v10497_v49 = vld [vmem:[#allocation9 + $0xab0] sm:$0xff] }
 0x77f   :  { %14501 = vmatpush1.bf16.msra.mxu0 %v17062_v35  ;;  %v17142_v35 = vcombine.low %v10413_v53, %v10417_v60  ;;  %v10505_v53 = vld [vmem:[#allocation9 + $0xaf0] sm:$0xff] }
 0x780   :  { %14502 = vmatprep.subr.bf16.mxu0 %v17071_v56  ;;  %v17151_v56 = vcombine.high %v10421_v5, %v10425_v18  ;;  %v10513_v5 = vld [vmem:[#allocation9 + $0xb30] sm:$0xff] }
 0x783   :  { %14503 = vmatpush1.bf16.msra.mxu0 %v17070_v34  ;;  %v17158_v34 = vcombine.low %v10429_v46, %v10433_v2  ;;  %v10521_v46 = vld [vmem:[#allocation9 + $0xb70] sm:$0xff] }
 0x784   :  { %14504 = vmatprep.subr.bf16.mxu0 %v17079_v14  ;;  %v17167_v14 = vcombine.high %v10437_v6, %v10441_v20  ;;  %v10529_v6 = vld [vmem:[#allocation9 + $0xbb0] sm:$0xff] }
 0x787   :  { %14505 = vmatpush1.bf16.msra.mxu0 %v17078_v30  ;;  %v17175_v30 = vcombine.high %v10445_v11, %v10449_v52  ;;  %v10537_v11 = vld [vmem:[#allocation9 + $0xbf0] sm:$0xff] }
 0x788   :  { %14506 = vmatprep.subr.bf16.mxu0 %v17087_v17  ;;  %v10453_v17 = vld [vmem:[#allocation9 + $0x950] sm:$0xff] }
 0x789   :  { %v17182_v3 = vcombine.low %v10453_v17, %v10457_v47 }
 0x78b   :  { %14507 = vmatpush1.bf16.msra.mxu0 %v17086_v40  ;;  %v17183_v40 = vcombine.high %v10453_v17, %v10457_v47  ;;  %v10545_v17 = vld [vmem:[#allocation9 + $0xc30] sm:$0xff] }
 0x78c   :  { %14508 = vmatprep.subr.bf16.mxu0 %v17095_v23  ;;  %v10461_v23 = vld [vmem:[#allocation9 + $0x990] sm:$0xff] }
 0x78d   :  { %v17190_v36 = vcombine.low %v10461_v23, %v10465_v24 }
 0x78f   :  { %14509 = vmatpush1.bf16.msra.mxu0 %v17094_v26  ;;  %v17191_v26 = vcombine.high %v10461_v23, %v10465_v24  ;;  %v10553_v23 = vld [vmem:[#allocation9 + $0xc70] sm:$0xff] }
 0x790   :  { %14510 = vmatprep.subr.bf16.mxu0 %v17103_v27  ;;  %v10469_v27 = vld [vmem:[#allocation9 + $0x9d0] sm:$0xff] }
 0x791   :  { %v17198_v33 = vcombine.low %v10469_v27, %v10473_v32 }
 0x793   :  { %14511 = vmatpush1.bf16.msra.mxu0 %v17102_v38  ;;  %v17199_v38 = vcombine.high %v10469_v27, %v10473_v32  ;;  %v10561_v27 = vld [vmem:[#allocation9 + $0xcb0] sm:$0xff] }
 0x794   :  { %14512 = vmatprep.subr.bf16.mxu0 %v17111_v39  ;;  %v10477_v39 = vld [vmem:[#allocation9 + $0xa10] sm:$0xff] }
 0x795   :  { %v17206_v61 = vcombine.low %v10477_v39, %v10481_v57 }
 0x797   :  { %14513 = vmatpush1.bf16.msra.mxu0 %v17110_v25  ;;  %v17207_v25 = vcombine.high %v10477_v39, %v10481_v57  ;;  %v10569_v39 = vld [vmem:[#allocation9 + $0xcf0] sm:$0xff] }
 0x798   :  { %14514 = vmatprep.subr.bf16.mxu0 %v17119_v59  ;;  %v10485_v59 = vld [vmem:[#allocation9 + $0xa50] sm:$0xff] }
 0x799   :  { %v17214_v58 = vcombine.low %v10485_v59, %v10489_v22 }
 0x79b   :  { %14515 = vmatpush1.bf16.msra.mxu0 %v17118_v41  ;;  %v17215_v41 = vcombine.high %v10485_v59, %v10489_v22  ;;  %v10577_v59 = vld [vmem:[#allocation9 + $0xd30] sm:$0xff] }
 0x79c   :  { %14516 = vmatprep.subr.bf16.mxu0 %v17127_v43  ;;  %v10493_v43 = vld [vmem:[#allocation9 + $0xa90] sm:$0xff] }
 0x79d   :  { %v17222_v60 = vcombine.low %v10493_v43, %v10497_v49 }
 0x79f   :  { %14517 = vmatpush1.bf16.msra.mxu0 %v17126_v44  ;;  %v17223_v44 = vcombine.high %v10493_v43, %v10497_v49  ;;  %v10585_v43 = vld [vmem:[#allocation9 + $0xd70] sm:$0xff] }
 0x7a0   :  { %14518 = vmatprep.subr.bf16.mxu0 %v17135_v55  ;;  %v10501_v55 = vld [vmem:[#allocation9 + $0xad0] sm:$0xff] }
 0x7a1   :  { %v17230_v18 = vcombine.low %v10501_v55, %v10505_v53 }
 0x7a3   :  { %14519 = vmatpush1.bf16.msra.mxu0 %v17134_v62  ;;  %v17231_v62 = vcombine.high %v10501_v55, %v10505_v53  ;;  %v10589_v55 = vld [vmem:[#allocation9 + $0xd90] sm:$0xff] }
 0x7a4   :  { %14529 = vmatprep.subr.bf16.mxu0 %v17143_v1  ;;  %v10509_v1 = vld [vmem:[#allocation9 + $0xb10] sm:$0xff] }
 0x7a5   :  { %v17238_v2 = vcombine.low %v10509_v1, %v10513_v5  ;;  %v10593_v53 = vld [vmem:[#allocation9 + $0xdb0] sm:$0xff] }
 0x7a6   :  { %14521 = vmatmul.mubr.bf16.vlgmr.msra.gmra.mrb[28].mxu0 %v20480_v48 }
 0x7a7   :  { %14530 = vmatpush1.bf16.msra.mxu0 %v17142_v35  ;;  %14561 = vmatprep.mubr.bf16.mxu0 %v20503_v28  ;;  %v17239_v35 = vcombine.high %v10509_v1, %v10513_v5  ;;  %v17319_v5 = vcombine.high %v10589_v55, %v10593_v53 }
 0x7a8   :  { %14531 = vmatprep.subr.bf16.mxu0 %v17151_v56  ;;  %v10517_v56 = vld [vmem:[#allocation9 + $0xb50] sm:$0xff] }
 0x7a9   :  { %v17246_v20 = vcombine.low %v10517_v56, %v10521_v46 }
 0x7ab   :  { %14532 = vmatpush1.bf16.msra.mxu0 %v17150_v4  ;;  %v17247_v4 = vcombine.high %v10517_v56, %v10521_v46  ;;  %v10601_v56 = vld [vmem:[#allocation9 + $0xdf0] sm:$0xff] }
 0x7ac   :  { %14533 = vmatprep.subr.bf16.mxu0 %v17159_v8  ;;  %v10525_v8 = vld [vmem:[#allocation9 + $0xb90] sm:$0xff] }
 0x7ad   :  { %v17254_v52 = vcombine.low %v10525_v8, %v10529_v6 }
 0x7af   :  { %14534 = vmatpush1.bf16.msra.mxu0 %v17158_v34  ;;  %v17255_v34 = vcombine.high %v10525_v8, %v10529_v6  ;;  %v17318_v6 = vcombine.low %v10589_v55, %v10593_v53 }
 0x7b0   :  { %14535 = vmatprep.subr.bf16.mxu0 %v17167_v14  ;;  %v10533_v14 = vld [vmem:[#allocation9 + $0xbd0] sm:$0xff] }
 0x7b1   :  { %v17262_v47 = vcombine.low %v10533_v14, %v10537_v11 }
 0x7b3   :  { %14536 = vmatpush1.bf16.msra.mxu0 %v17166_v16  ;;  %v17263_v16 = vcombine.high %v10533_v14, %v10537_v11 }
 0x7b4   :  { %14537 = vmatprep.subr.bf16.mxu0 %v17175_v30  ;;  %v10541_v30 = vld [vmem:[#allocation9 + $0xc10] sm:$0xff] }
 0x7b5   :  { %v17270_v24 = vcombine.low %v10541_v30, %v10545_v17 }
 0x7b7   :  { %14538 = vmatpush1.bf16.msra.mxu0 %v17174_v31  ;;  %v17271_v31 = vcombine.high %v10541_v30, %v10545_v17  ;;  %v10605_v30 = vld [vmem:[#allocation9 + $0xe10] sm:$0xff] }
 0x7b8   :  { %14539 = vmatprep.subr.bf16.mxu0 %v17183_v40  ;;  %v10549_v40 = vld [vmem:[#allocation9 + $0xc50] sm:$0xff] }
 0x7b9   :  { %v17278_v32 = vcombine.low %v10549_v40, %v10553_v23  ;;  %v10609_v17 = vld [vmem:[#allocation9 + $0xe30] sm:$0xff] }
 0x7bb   :  { %14540 = vmatpush1.bf16.msra.mxu0 %v17182_v3  ;;  %v17279_v3 = vcombine.high %v10549_v40, %v10553_v23 }
 0x7bc   :  { %14541 = vmatprep.subr.bf16.mxu0 %v17191_v26  ;;  %v10557_v26 = vld [vmem:[#allocation9 + $0xc90] sm:$0xff] }
 0x7bd   :  { %v17286_v57 = vcombine.low %v10557_v26, %v10561_v27 }
 0x7bf   :  { %14542 = vmatpush1.bf16.msra.mxu0 %v17190_v36  ;;  %v17287_v36 = vcombine.high %v10557_v26, %v10561_v27  ;;  %v10176_v26 = vld [vmem:[#allocation9 + $0xa8] sm:$0xff]  ;;  %v10613_v27 = vld [vmem:[#allocation9 + $0xe50] sm:$0xff] }
 0x7c0   :  { %14543 = vmatprep.subr.bf16.mxu0 %v17199_v38  ;;  %v10565_v38 = vld [vmem:[#allocation9 + $0xcd0] sm:$0xff] }
 0x7c1   :  { %v17294_v22 = vcombine.low %v10565_v38, %v10569_v39 }
 0x7c3   :  { %14544 = vmatpush1.bf16.msra.mxu0 %v17198_v33  ;;  %v17295_v33 = vcombine.high %v10565_v38, %v10569_v39  ;;  %v17334_v38 = vcombine.low %v10605_v30, %v10609_v17 }
 0x7c4   :  { %14545 = vmatprep.subr.bf16.mxu0 %v17207_v25  ;;  %v10573_v25 = vld [vmem:[#allocation9 + $0xd10] sm:$0xff] }
 0x7c5   :  { %v17302_v49 = vcombine.low %v10573_v25, %v10577_v59 }
 0x7c7   :  { %14546 = vmatpush1.bf16.msra.mxu0 %v17206_v61  ;;  %v17303_v61 = vcombine.high %v10573_v25, %v10577_v59  ;;  %v10184_v25 = vld [vmem:[#allocation9 + $0xe8] sm:$0xff]  ;;  %v10621_v59 = vld [vmem:[#allocation9 + $0xe90] sm:$0xff] }
 0x7c8   :  { %14547 = vmatprep.subr.bf16.mxu0 %v17215_v41  ;;  %v10581_v41 = vld [vmem:[#allocation9 + $0xd50] sm:$0xff] }
 0x7c9   :  { %v17310_v1 = vcombine.low %v10581_v41, %v10585_v43 }
 0x7cb   :  { %14548 = vmatpush1.bf16.msra.mxu0 %v17214_v58  ;;  %v2042_v58 = vld [vmem:[#allocation7 + $0x8] sm:$0x3] }
 0x7cc   :  { %14549 = vmatprep.subr.bf16.mxu0 %v17223_v44  ;;  %v17311_v44 = vcombine.high %v10581_v41, %v10585_v43  ;;  %v10192_v43 = vld [vmem:[#allocation9 + $0x128] sm:$0xff] }
 0x7cf   :  { %14550 = vmatpush1.bf16.msra.mxu0 %v17222_v60  ;;  %v2080_v60 = vrot.slane %v2042_v58, %v20249_v7 }
 0x7d0   :  { %14551 = vmatprep.subr.bf16.mxu0 %v17231_v62  ;;  %v2084_v62 = vrot.slane %v2042_v58, %v20254_v9  ;;  %v10633_v58 = vld [vmem:[#allocation9 + $0xef0] sm:$0xff] }
 0x7d3   :  { %14552 = vmatpush1.bf16.msra.mxu0 %v17230_v18 }
 0x7d4   :  { %14553 = vmatprep.subr.bf16.mxu0 %v17239_v35  ;;  %v10597_v35 = vld [vmem:[#allocation9 + $0xdd0] sm:$0xff] }
 0x7d5   :  { %v17327_v14 = vcombine.high %v10597_v35, %v10601_v56  ;;  %v17326_v40 = vcombine.low %v10597_v35, %v10601_v56 }
 0x7d7   :  { %14554 = vmatpush1.bf16.msra.mxu0 %v17238_v2 }
 0x7d8   :  { %14555 = vmatprep.subr.bf16.mxu0 %v17247_v4 }
 0x7db   :  { %14556 = vmatpush1.bf16.msra.mxu0 %v17246_v20 }
 0x7dc   :  { %14557 = vmatprep.subr.bf16.mxu0 %v17255_v34 }
 0x7df   :  { %14558 = vmatpush1.bf16.msra.mxu0 %v17254_v52  ;;  %v10164_v52 = vld [vmem:[#allocation9 + $0x48] sm:$0xff] }
 0x7e0   :  { %14559 = vmatprep.subr.bf16.mxu0 %v17263_v16  ;;  %v10168_v16 = vld [vmem:[#allocation9 + $0x68] sm:$0xff] }
 0x7e1   :  { %v16893_v23 = vcombine.high %v10164_v52, %v10168_v16 }
 0x7e3   :  { %14560 = vmatpush1.bf16.msra.mxu0 %v17262_v47 }
 0x7e4   :  { %14570 = vmatprep.subr.bf16.mxu0 %v17271_v31 }
 0x7e6   :  { %14562 = vmatmul.mubr.bf16.vlgmr.msra.gmra.mrb[28].mxu0 %v20507_v63 }
 0x7e7   :  { %14571 = vmatpush1.bf16.msra.mxu0 %v17270_v24  ;;  %14602 = vmatprep.mubr.bf16.mxu0 %v20510_v10  ;;  %v17335_v24 = vcombine.high %v10605_v30, %v10609_v17  ;;  %v10216_v30 = vld [vmem:[#allocation9 + $0x1e8] sm:$0xff]  ;;  %v10653_v17 = vld [vmem:[#allocation9 + $0xf90] sm:$0xff] }
 0x7e8   :  { %14572 = vmatprep.subr.bf16.mxu0 %v17279_v3  ;;  %v10172_v3 = vld [vmem:[#allocation9 + $0x88] sm:$0xff] }
 0x7e9   :  { %v16901_v39 = vcombine.high %v10172_v3, %v10176_v26 }
 0x7eb   :  { %14573 = vmatpush1.bf16.msra.mxu0 %v17278_v32  ;;  %v10617_v32 = vld [vmem:[#allocation9 + $0xe70] sm:$0xff] }
 0x7ec   :  { %14574 = vmatprep.subr.bf16.mxu0 %v17287_v36  ;;  %v16892_v36 = vcombine.low %v10164_v52, %v10168_v16  ;;  %v17342_v41 = vcombine.low %v10613_v27, %v10617_v32  ;;  %v10212_v16 = vld [vmem:[#allocation9 + $0x1c8] sm:$0xff] }
 0x7ef   :  { %14575 = vmatpush1.bf16.msra.mxu0 %v17286_v57  ;;  %v17343_v57 = vcombine.high %v10613_v27, %v10617_v32  ;;  %v10220_v27 = vld [vmem:[#allocation9 + $0x208] sm:$0xff] }
 0x7f0   :  { %14576 = vmatprep.subr.bf16.mxu0 %v17295_v33  ;;  %v10180_v33 = vld [vmem:[#allocation9 + $0xc8] sm:$0xff] }
 0x7f1   :  { %v16909_v45 = vcombine.high %v10180_v33, %v10184_v25  ;;  %v10224_v32 = vld [vmem:[#allocation9 + $0x228] sm:$0xff] }
 0x7f3   :  { %14577 = vmatpush1.bf16.msra.mxu0 %v17294_v22  ;;  %v10625_v22 = vld [vmem:[#allocation9 + $0xeb0] sm:$0xff] }
 0x7f4   :  { %14578 = vmatprep.subr.bf16.mxu0 %v17303_v61  ;;  %v16900_v61 = vcombine.low %v10172_v3, %v10176_v26  ;;  %v17351_v50 = vcombine.high %v10621_v59, %v10625_v22  ;;  %v17350_v55 = vcombine.low %v10621_v59, %v10625_v22  ;;  %v16941_v3 = vcombine.high %v10212_v16, %v10216_v30  ;;  %v10228_v59 = vld [vmem:[#allocation9 + $0x248] sm:$0xff] }
 0x7f5   :  { %v10232_v22 = vld [vmem:[#allocation9 + $0x268] sm:$0xff] }
 0x7f7   :  { %14579 = vmatpush1.bf16.msra.mxu0 %v17302_v49  ;;  %v10629_v49 = vld [vmem:[#allocation9 + $0xed0] sm:$0xff] }
 0x7f8   :  { %14580 = vmatprep.subr.bf16.mxu0 %v17311_v44  ;;  %v16908_v44 = vcombine.low %v10180_v33, %v10184_v25  ;;  %v17358_v56 = vcombine.low %v10629_v49, %v10633_v58  ;;  %v16949_v33 = vcombine.high %v10220_v27, %v10224_v32 }
 0x7f9   :  { %v10128_v18 = vpop.f32.mrb[24].mxu0 }
 0x7fa   :  { %v17683_v46 = vadd.f32 %v10128_v18, %v2080_v60  ;;  %v10130_v2 = vpop.f32.mrb[25].mxu0  ;;  %v17359_v60 = vcombine.high %v10629_v49, %v10633_v58  ;;  %v10641_v18 = vld [vmem:[#allocation9 + $0xf30] sm:$0xff]  ;;  %v10236_v49 = vld [vmem:[#allocation9 + $0x288] sm:$0xff] }
 0x7fb   :  { %v17684_v4 = vadd.f32 %v10130_v2, %v2084_v62  ;;  %v10132_v8 = vpop.f32.mrb[26].mxu0  ;;  %14581 = vmatpush1.bf16.msra.mxu0 %v17310_v1  ;;  %v10196_v62 = vld [vmem:[#allocation9 + $0x148] sm:$0xff] }
 0x7fc   :  { %v10143_v20 = vmax.f32 %v17683_v46, 0.0  ;;  %v10133_v34 = vpop.f32.mrb[27].mxu0  ;;  %14582 = vmatprep.subr.bf16.mxu0 %v17319_v5  ;;  %v10200_v1 = vld [vmem:[#allocation9 + $0x168] sm:$0xff]  ;;  %v10637_v5 = vld [vmem:[#allocation9 + $0xf10] sm:$0xff] }
 0x7fd   :  { %v10144_v11 = vmax.f32 %v17684_v4, 0.0  ;;  %v16925_v46 = vcombine.high %v10196_v62, %v10200_v1  ;;  %v17367_v2 = vcombine.high %v10637_v5, %v10641_v18  ;;  %v10204_v4 = vld [vmem:[#allocation9 + $0x188] sm:$0xff]  ;;  %v16924_v34 = vcombine.low %v10196_v62, %v10200_v1 }
 0x7fe   :  { %v20548_v31 = vpack.c.bf16 %v10143_v20, %v10143_v20  ;;  %v10208_v8 = vld [vmem:[#allocation9 + $0x1a8] sm:$0xff]  ;;  %v10649_v20 = vld [vmem:[#allocation9 + $0xf70] sm:$0xff] }
 0x7ff   :  { %v20546_v47 = vpack.c.bf16 %v10144_v11, %v10144_v11  ;;  %14583 = vmatpush1.bf16.msra.mxu0 %v17318_v6  ;;  %v10645_v6 = vld [vmem:[#allocation9 + $0xf50] sm:$0xff]  ;;  %v16933_v11 = vcombine.high %v10204_v4, %v10208_v8  ;;  %v10240_v58 = vld [vmem:[#allocation9 + $0x2a8] sm:$0xff] }
 0x800   :  { %14584 = vmatprep.subr.bf16.mxu0 %v17327_v14  ;;  %v17366_v14 = vcombine.low %v10637_v5, %v10641_v18  ;;  %v17375_v52 = vcombine.high %v10645_v6, %v10649_v20  ;;  %v16965_v62 = vcombine.high %v10236_v49, %v10240_v58  ;;  %v10244_v5 = vld [vmem:[#allocation9 + $0x2c8] sm:$0xff] }
 0x801   :  { %14233 = vmatprep.mubr.bf16.mxu1 %v20546_v47  ;;  %v10248_v18 = vld [vmem:[#allocation9 + $0x2e8] sm:$0xff] }
 0x802   :  { %14234 = vmatmul.mubr.bf16.vlgmr.msra.gmra.mrb[24].mxu1 %v20548_v31 }
 0x803   :  { %14243 = vmatpush1.bf16.msra.mxu1 %v16884_v15  ;;  %14274 = vmatprep.mubr.bf16.mxu1 %v20458_v29  ;;  %v10188_v15 = vld [vmem:[#allocation9 + $0x108] sm:$0xff] }
 0x804   :  { %14585 = vmatpush1.bf16.msra.mxu0 %v17326_v40  ;;  %14244 = vmatprep.subr.bf16.mxu1 %v16893_v23  ;;  %v16917_v53 = vcombine.high %v10188_v15, %v10192_v43  ;;  %v16916_v35 = vcombine.low %v10188_v15, %v10192_v43  ;;  %v10657_v40 = vld [vmem:[#allocation9 + $0xfb0] sm:$0xff]  ;;  %v16932_v23 = vcombine.low %v10204_v4, %v10208_v8 }
 0x805   :  { %14586 = vmatprep.subr.bf16.mxu0 %v17335_v24  ;;  %v17374_v24 = vcombine.low %v10645_v6, %v10649_v20  ;;  %v17383_v26 = vcombine.high %v10653_v17, %v10657_v40  ;;  %v16957_v15 = vcombine.high %v10228_v59, %v10232_v22  ;;  %v16973_v4 = vcombine.high %v10244_v5, %v10248_v18  ;;  %v10252_v6 = vld [vmem:[#allocation9 + $0x308] sm:$0xff] }
 0x806   :  { %v10256_v20 = vld [vmem:[#allocation9 + $0x328] sm:$0xff] }
 0x807   :  { %14245 = vmatpush1.bf16.msra.mxu1 %v16892_v36  ;;  %v10661_v36 = vld [vmem:[#allocation9 + $0xfd0] sm:$0xff] }
 0x808   :  { %14587 = vmatpush1.bf16.msra.mxu0 %v17334_v38  ;;  %14246 = vmatprep.subr.bf16.mxu1 %v16901_v39  ;;  %v10665_v38 = vld [vmem:[#allocation9 + $0xff0] sm:$0xff]  ;;  %v16940_v39 = vcombine.low %v10212_v16, %v10216_v30  ;;  %v16981_v16 = vcombine.high %v10252_v6, %v10256_v20 }
 0x809   :  { %14588 = vmatprep.subr.bf16.mxu0 %v17343_v57  ;;  %v17382_v57 = vcombine.low %v10653_v17, %v10657_v40  ;;  %v17391_v25 = vcombine.high %v10661_v36, %v10665_v38  ;;  %v10260_v17 = vld [vmem:[#allocation9 + $0x348] sm:$0xff] }
 0x80a   :  { %v10264_v40 = vld [vmem:[#allocation9 + $0x368] sm:$0xff] }
 0x80b   :  { %14247 = vmatpush1.bf16.msra.mxu1 %v16900_v61  ;;  %v10669_v61 = vld [vmem:[#allocation9 + $0x1010] sm:$0xff] }
 0x80c   :  { %14589 = vmatpush1.bf16.msra.mxu0 %v17342_v41  ;;  %14248 = vmatprep.subr.bf16.mxu1 %v16909_v45  ;;  %v10673_v41 = vld [vmem:[#allocation9 + $0x1030] sm:$0xff]  ;;  %v16948_v45 = vcombine.low %v10220_v27, %v10224_v32  ;;  %v16989_v27 = vcombine.high %v10260_v17, %v10264_v40 }
 0x80d   :  { %14590 = vmatprep.subr.bf16.mxu0 %v17351_v50  ;;  %v17390_v50 = vcombine.low %v10661_v36, %v10665_v38  ;;  %v17399_v43 = vcombine.high %v10669_v61, %v10673_v41  ;;  %v10268_v36 = vld [vmem:[#allocation9 + $0x388] sm:$0xff] }
 0x80e   :  { %v10272_v38 = vld [vmem:[#allocation9 + $0x3a8] sm:$0xff] }
 0x80f   :  { %14249 = vmatpush1.bf16.msra.mxu1 %v16908_v44  ;;  %v10677_v44 = vld [vmem:[#allocation9 + $0x1050] sm:$0xff] }
 0x810   :  { %14591 = vmatpush1.bf16.msra.mxu0 %v17350_v55  ;;  %14250 = vmatprep.subr.bf16.mxu1 %v16917_v53  ;;  %v10681_v55 = vld [vmem:[#allocation9 + $0x1070] sm:$0xff]  ;;  %v16956_v53 = vcombine.low %v10228_v59, %v10232_v22  ;;  %v16997_v59 = vcombine.high %v10268_v36, %v10272_v38 }
 0x811   :  { %14592 = vmatprep.subr.bf16.mxu0 %v17359_v60  ;;  %v17398_v60 = vcombine.low %v10669_v61, %v10673_v41  ;;  %v17407_v1 = vcombine.high %v10677_v44, %v10681_v55  ;;  %v10276_v61 = vld [vmem:[#allocation9 + $0x3c8] sm:$0xff] }
 0x812   :  { %v10280_v41 = vld [vmem:[#allocation9 + $0x3e8] sm:$0xff] }
 0x813   :  { %14251 = vmatpush1.bf16.msra.mxu1 %v16916_v35  ;;  %v10685_v35 = vld [vmem:[#allocation9 + $0x1090] sm:$0xff] }
 0x814   :  { %14593 = vmatpush1.bf16.msra.mxu0 %v17358_v56  ;;  %14252 = vmatprep.subr.bf16.mxu1 %v16925_v46  ;;  %v10689_v56 = vld [vmem:[#allocation9 + $0x10b0] sm:$0xff]  ;;  %v16964_v46 = vcombine.low %v10236_v49, %v10240_v58  ;;  %v17005_v49 = vcombine.high %v10276_v61, %v10280_v41 }
 0x815   :  { %14594 = vmatprep.subr.bf16.mxu0 %v17367_v2  ;;  %v17406_v2 = vcombine.low %v10677_v44, %v10681_v55  ;;  %v17415_v8 = vcombine.high %v10685_v35, %v10689_v56  ;;  %v10284_v44 = vld [vmem:[#allocation9 + $0x408] sm:$0xff] }
 0x816   :  { %v10288_v55 = vld [vmem:[#allocation9 + $0x428] sm:$0xff] }
 0x817   :  { %14253 = vmatpush1.bf16.msra.mxu1 %v16924_v34  ;;  %v10693_v34 = vld [vmem:[#allocation9 + $0x10d0] sm:$0xff] }
 0x818   :  { %14595 = vmatpush1.bf16.msra.mxu0 %v17366_v14  ;;  %14254 = vmatprep.subr.bf16.mxu1 %v16933_v11  ;;  %v10697_v14 = vld [vmem:[#allocation9 + $0x10f0] sm:$0xff]  ;;  %v16972_v11 = vcombine.low %v10244_v5, %v10248_v18  ;;  %v17013_v5 = vcombine.high %v10284_v44, %v10288_v55 }
 0x819   :  { %14596 = vmatprep.subr.bf16.mxu0 %v17375_v52  ;;  %v17414_v52 = vcombine.low %v10685_v35, %v10689_v56  ;;  %v17423_v30 = vcombine.high %v10693_v34, %v10697_v14  ;;  %v10292_v35 = vld [vmem:[#allocation9 + $0x448] sm:$0xff] }
 0x81a   :  { %v10296_v56 = vld [vmem:[#allocation9 + $0x468] sm:$0xff] }
 0x81b   :  { %14255 = vmatpush1.bf16.msra.mxu1 %v16932_v23  ;;  %v10701_v23 = vld [vmem:[#allocation9 + $0x1110] sm:$0xff] }
 0x81c   :  { %14597 = vmatpush1.bf16.msra.mxu0 %v17374_v24  ;;  %14256 = vmatprep.subr.bf16.mxu1 %v16941_v3  ;;  %v10705_v24 = vld [vmem:[#allocation9 + $0x1130] sm:$0xff]  ;;  %v16980_v3 = vcombine.low %v10252_v6, %v10256_v20  ;;  %v17021_v6 = vcombine.high %v10292_v35, %v10296_v56 }
 0x81d   :  { %14598 = vmatprep.subr.bf16.mxu0 %v17383_v26  ;;  %v17422_v26 = vcombine.low %v10693_v34, %v10697_v14  ;;  %v17431_v32 = vcombine.high %v10701_v23, %v10705_v24  ;;  %v10300_v34 = vld [vmem:[#allocation9 + $0x488] sm:$0xff] }
 0x81e   :  { %v10304_v14 = vld [vmem:[#allocation9 + $0x4a8] sm:$0xff] }
 0x81f   :  { %14257 = vmatpush1.bf16.msra.mxu1 %v16940_v39  ;;  %v10709_v39 = vld [vmem:[#allocation9 + $0x1150] sm:$0xff] }
 0x820   :  { %14599 = vmatpush1.bf16.msra.mxu0 %v17382_v57  ;;  %14258 = vmatprep.subr.bf16.mxu1 %v16949_v33  ;;  %v10713_v57 = vld [vmem:[#allocation9 + $0x1170] sm:$0xff]  ;;  %v16988_v33 = vcombine.low %v10260_v17, %v10264_v40  ;;  %v17029_v17 = vcombine.high %v10300_v34, %v10304_v14 }
 0x821   :  { %14600 = vmatprep.subr.bf16.mxu0 %v17391_v25  ;;  %v17430_v25 = vcombine.low %v10701_v23, %v10705_v24  ;;  %v17439_v22 = vcombine.high %v10709_v39, %v10713_v57  ;;  %v10308_v23 = vld [vmem:[#allocation9 + $0x4c8] sm:$0xff] }
 0x822   :  { %v10312_v24 = vld [vmem:[#allocation9 + $0x4e8] sm:$0xff] }
 0x823   :  { %14259 = vmatpush1.bf16.msra.mxu1 %v16948_v45  ;;  %v10717_v45 = vld [vmem:[#allocation9 + $0x1190] sm:$0xff] }
 0x824   :  { %14601 = vmatpush1.bf16.msra.mxu0 %v17390_v50  ;;  %14260 = vmatprep.subr.bf16.mxu1 %v16957_v15  ;;  %v10721_v50 = vld [vmem:[#allocation9 + $0x11b0] sm:$0xff]  ;;  %v16996_v15 = vcombine.low %v10268_v36, %v10272_v38  ;;  %v17037_v36 = vcombine.high %v10308_v23, %v10312_v24 }
 0x825   :  { %14611 = vmatprep.subr.bf16.mxu0 %v17399_v43  ;;  %v17438_v43 = vcombine.low %v10709_v39, %v10713_v57  ;;  %v17447_v58 = vcombine.high %v10717_v45, %v10721_v50  ;;  %v10316_v39 = vld [vmem:[#allocation9 + $0x508] sm:$0xff] }
 0x826   :  { %v10320_v57 = vld [vmem:[#allocation9 + $0x528] sm:$0xff] }
 0x827   :  { %14261 = vmatpush1.bf16.msra.mxu1 %v16956_v53  ;;  %14603 = vmatmul.mubr.bf16.vlgmr.msra.gmra.mrb[28].mxu0 %v20519_v51  ;;  %v10725_v53 = vld [vmem:[#allocation9 + $0x11d0] sm:$0xff] }
 0x828   :  { %14612 = vmatpush1.bf16.msra.mxu0 %v17398_v60  ;;  %14643 = vmatprep.mubr.bf16.mxu0 %v20546_v47  ;;  %v10729_v60 = vld [vmem:[#allocation9 + $0x11f0] sm:$0xff] }
 0x829   :  { %14262 = vmatprep.subr.bf16.mxu1 %v16965_v62  ;;  %14613 = vmatprep.subr.bf16.mxu0 %v17407_v1  ;;  %v17004_v62 = vcombine.low %v10276_v61, %v10280_v41  ;;  %v17446_v1 = vcombine.low %v10717_v45, %v10721_v50  ;;  %v17455_v18 = vcombine.high %v10725_v53, %v10729_v60  ;;  %v10324_v45 = vld [vmem:[#allocation9 + $0x548] sm:$0xff] }
 0x82a   :  { %v17045_v61 = vcombine.high %v10316_v39, %v10320_v57  ;;  %v10328_v50 = vld [vmem:[#allocation9 + $0x568] sm:$0xff] }
 0x82b   :  { %14263 = vmatpush1.bf16.msra.mxu1 %v16964_v46  ;;  %v10733_v46 = vld [vmem:[#allocation9 + $0x1210] sm:$0xff] }
 0x82c   :  { %14614 = vmatpush1.bf16.msra.mxu0 %v17406_v2  ;;  %14264 = vmatprep.subr.bf16.mxu1 %v16973_v4  ;;  %v10737_v2 = vld [vmem:[#allocation9 + $0x1230] sm:$0xff]  ;;  %v17012_v4 = vcombine.low %v10284_v44, %v10288_v55  ;;  %v17053_v44 = vcombine.high %v10324_v45, %v10328_v50 }
 0x82d   :  { %14615 = vmatprep.subr.bf16.mxu0 %v17415_v8  ;;  %v17454_v8 = vcombine.low %v10725_v53, %v10729_v60  ;;  %v17463_v20 = vcombine.high %v10733_v46, %v10737_v2  ;;  %v10332_v53 = vld [vmem:[#allocation9 + $0x588] sm:$0xff] }
 0x82e   :  { %v10336_v60 = vld [vmem:[#allocation9 + $0x5a8] sm:$0xff] }
 0x82f   :  { %14265 = vmatpush1.bf16.msra.mxu1 %v16972_v11  ;;  %v10741_v11 = vld [vmem:[#allocation9 + $0x1250] sm:$0xff] }
 0x830   :  { %14616 = vmatpush1.bf16.msra.mxu0 %v17414_v52  ;;  %14266 = vmatprep.subr.bf16.mxu1 %v16981_v16  ;;  %v10745_v52 = vld [vmem:[#allocation9 + $0x1270] sm:$0xff]  ;;  %v17020_v16 = vcombine.low %v10292_v35, %v10296_v56  ;;  %v17061_v35 = vcombine.high %v10332_v53, %v10336_v60 }
 0x831   :  { %14617 = vmatprep.subr.bf16.mxu0 %v17423_v30  ;;  %v17462_v30 = vcombine.low %v10733_v46, %v10737_v2  ;;  %v17471_v40 = vcombine.high %v10741_v11, %v10745_v52  ;;  %v10340_v46 = vld [vmem:[#allocation9 + $0x5c8] sm:$0xff] }
 0x832   :  { %v10344_v2 = vld [vmem:[#allocation9 + $0x5e8] sm:$0xff] }
 0x833   :  { %14267 = vmatpush1.bf16.msra.mxu1 %v16980_v3  ;;  %v10749_v3 = vld [vmem:[#allocation9 + $0x1290] sm:$0xff] }
 0x834   :  { %14618 = vmatpush1.bf16.msra.mxu0 %v17422_v26  ;;  %14268 = vmatprep.subr.bf16.mxu1 %v16989_v27  ;;  %v10753_v26 = vld [vmem:[#allocation9 + $0x12b0] sm:$0xff]  ;;  %v17028_v27 = vcombine.low %v10300_v34, %v10304_v14  ;;  %v17069_v34 = vcombine.high %v10340_v46, %v10344_v2 }
 0x835   :  { %14619 = vmatprep.subr.bf16.mxu0 %v17431_v32  ;;  %v17470_v32 = vcombine.low %v10741_v11, %v10745_v52  ;;  %v17479_v38 = vcombine.high %v10749_v3, %v10753_v26  ;;  %v10348_v11 = vld [vmem:[#allocation9 + $0x608] sm:$0xff] }
 0x836   :  { %v10352_v52 = vld [vmem:[#allocation9 + $0x628] sm:$0xff] }
 0x837   :  { %14269 = vmatpush1.bf16.msra.mxu1 %v16988_v33  ;;  %v10757_v33 = vld [vmem:[#allocation9 + $0x12d0] sm:$0xff] }
 0x838   :  { %14620 = vmatpush1.bf16.msra.mxu0 %v17430_v25  ;;  %14270 = vmatprep.subr.bf16.mxu1 %v16997_v59  ;;  %v10761_v25 = vld [vmem:[#allocation9 + $0x12f0] sm:$0xff]  ;;  %v17036_v59 = vcombine.low %v10308_v23, %v10312_v24  ;;  %v17077_v23 = vcombine.high %v10348_v11, %v10352_v52 }
 0x839   :  { %14621 = vmatprep.subr.bf16.mxu0 %v17439_v22  ;;  %v17478_v22 = vcombine.low %v10749_v3, %v10753_v26  ;;  %v17487_v41 = vcombine.high %v10757_v33, %v10761_v25  ;;  %v10356_v3 = vld [vmem:[#allocation9 + $0x648] sm:$0xff] }
 0x83a   :  { %v10360_v26 = vld [vmem:[#allocation9 + $0x668] sm:$0xff] }
 0x83b   :  { %14271 = vmatpush1.bf16.msra.mxu1 %v16996_v15  ;;  %v10765_v15 = vld [vmem:[#allocation9 + $0x1310] sm:$0xff] }
 0x83c   :  { %14622 = vmatpush1.bf16.msra.mxu0 %v17438_v43  ;;  %14272 = vmatprep.subr.bf16.mxu1 %v17005_v49  ;;  %v10769_v43 = vld [vmem:[#allocation9 + $0x1330] sm:$0xff]  ;;  %v17044_v49 = vcombine.low %v10316_v39, %v10320_v57  ;;  %v10368_v39 = vld [vmem:[#allocation9 + $0x6a8] sm:$0xff] }
 0x83d   :  { %14623 = vmatprep.subr.bf16.mxu0 %v17447_v58  ;;  %v17486_v58 = vcombine.low %v10757_v33, %v10761_v25  ;;  %v17495_v55 = vcombine.high %v10765_v15, %v10769_v43  ;;  %v19831_v57 = vld [vmem:[%s20805_s7 + $0x40] sm:$0xff]   ;;  %v17084_v33 = vcombine.low %v10356_v3, %v10360_v26 }
 0x83f   :  { %14273 = vmatpush1.bf16.msra.mxu1 %v17004_v62  ;;  %v10773_v62 = vld [vmem:[#allocation9 + $0x1350] sm:$0xff] }
 0x840   :  { %14624 = vmatpush1.bf16.msra.mxu0 %v17446_v1  ;;  %14283 = vmatprep.subr.bf16.mxu1 %v17013_v5  ;;  %v10777_v1 = vld [vmem:[#allocation9 + $0x1370] sm:$0xff]  ;;  %v17052_v5 = vcombine.low %v10324_v45, %v10328_v50 }
 0x841   :  { %14625 = vmatprep.subr.bf16.mxu0 %v17455_v18  ;;  %v17494_v18 = vcombine.low %v10765_v15, %v10769_v43  ;;  %v17503_v56 = vcombine.high %v10773_v62, %v10777_v1  ;;  %v19834_v15 = vld [vmem:[%s20805_s7 + $0x8] sm:$0xff]  }
 0x842   :  { %14275 = vmatmul.mubr.bf16.vlgmr.msra.gmra.mrb[28].mxu1 %v20469_v13  ;;  %v10380_v43 = vld [vmem:[#allocation9 + $0x708] sm:$0xff] }
 0x843   :  { %14284 = vmatpush1.bf16.msra.mxu1 %v17012_v4  ;;  %14315 = vmatprep.mubr.bf16.mxu1 %v20472_v21  ;;  %v10781_v4 = vld [vmem:[#allocation9 + $0x1390] sm:$0xff] }
 0x844   :  { %14626 = vmatpush1.bf16.msra.mxu0 %v17454_v8  ;;  %14285 = vmatprep.subr.bf16.mxu1 %v17021_v6  ;;  %v10785_v8 = vld [vmem:[#allocation9 + $0x13b0] sm:$0xff]  ;;  %v17060_v6 = vcombine.low %v10332_v53, %v10336_v60  ;;  %v10388_v60 = vld [vmem:[#allocation9 + $0x748] sm:$0xff] }
 0x845   :  { %14627 = vmatprep.subr.bf16.mxu0 %v17463_v20  ;;  %v17502_v20 = vcombine.low %v10773_v62, %v10777_v1  ;;  %v17511_v14 = vcombine.high %v10781_v4, %v10785_v8  ;;  %v19836_v53 = vld [vmem:[%s20805_s7 + $0x10] sm:$0xff]   ;;  %v10392_v62 = vld [vmem:[#allocation9 + $0x768] sm:$0xff]  ;;  %v19837_v1 = vld [vmem:[%s20805_s7 + $0x58] sm:$0xff]  }
 0x847   :  { %14286 = vmatpush1.bf16.msra.mxu1 %v17020_v16  ;;  %v10789_v16 = vld [vmem:[#allocation9 + $0x13d0] sm:$0xff] }
 0x848   :  { %14628 = vmatpush1.bf16.msra.mxu0 %v17462_v30  ;;  %14287 = vmatprep.subr.bf16.mxu1 %v17029_v17  ;;  %v10793_v30 = vld [vmem:[#allocation9 + $0x13f0] sm:$0xff]  ;;  %v17068_v17 = vcombine.low %v10340_v46, %v10344_v2  ;;  %v10400_v46 = vld [vmem:[#allocation9 + $0x7a8] sm:$0xff] }
 0x849   :  { %14629 = vmatprep.subr.bf16.mxu0 %v17471_v40  ;;  %v17510_v40 = vcombine.low %v10781_v4, %v10785_v8  ;;  %v17519_v24 = vcombine.high %v10789_v16, %v10793_v30  ;;  %v19839_v2 = vld [vmem:[%s20805_s7 + $0x60] sm:$0xff]   ;;  %v17116_v4 = vcombine.low %v10388_v60, %v10392_v62 }
 0x84b   :  { %14288 = vmatpush1.bf16.msra.mxu1 %v17028_v27  ;;  %v17076_v27 = vcombine.low %v10348_v11, %v10352_v52 }
 0x84c   :  { %14630 = vmatpush1.bf16.msra.mxu0 %v17470_v32  ;;  %14289 = vmatprep.subr.bf16.mxu1 %v17037_v36  ;;  %v17518_v32 = vcombine.low %v10789_v16, %v10793_v30  ;;  %v17085_v36 = vcombine.high %v10356_v3, %v10360_v26  ;;  %v19842_v16 = vld [vmem:[%s20805_s7 + $0x28] sm:$0xff]   ;;  %v19844_v3 = vld [vmem:[%s20805_s7 + $0x30] sm:$0xff]  }
 0x84d   :  { %14631 = vmatprep.subr.bf16.mxu0 %v17479_v38  ;;  %v10364_v38 = vld [vmem:[#allocation9 + $0x688] sm:$0xff] }
 0x84e   :  { %v17093_v25 = vcombine.high %v10364_v38, %v10368_v39  ;;  %v17092_v45 = vcombine.low %v10364_v38, %v10368_v39  ;;  %v10412_v30 = vld [vmem:[#allocation9 + $0x808] sm:$0xff]  ;;  %v19846_v39 = vld [vmem:[%s20805_s7 + $0x38] sm:$0xff]  }
 0x84f   :  { %14290 = vmatpush1.bf16.msra.mxu1 %v17036_v59  ;;  %v19832_v59 = vld [vmem:[%s20805_s7] sm:$0xff]  }
 0x850   :  { %14632 = vmatpush1.bf16.msra.mxu0 %v17478_v22  ;;  %14291 = vmatprep.subr.bf16.mxu1 %v17045_v61  ;;  %v10372_v22 = vld [vmem:[#allocation9 + $0x6c8] sm:$0xff] }
 0x851   :  { %14633 = vmatprep.subr.bf16.mxu0 %v17487_v41  ;;  %v10376_v61 = vld [vmem:[#allocation9 + $0x6e8] sm:$0xff] }
 0x852   :  { %v19833_v41 = vld [vmem:[%s20805_s7 + $0x48] sm:$0xff]   ;;  %v17101_v50 = vcombine.high %v10372_v22, %v10376_v61 }
 0x853   :  { %14292 = vmatpush1.bf16.msra.mxu1 %v17044_v49  ;;  %v10384_v49 = vld [vmem:[#allocation9 + $0x728] sm:$0xff] }
 0x854   :  { %14634 = vmatpush1.bf16.msra.mxu0 %v17486_v58  ;;  %14293 = vmatprep.subr.bf16.mxu1 %v17053_v44  ;;  %v19835_v58 = vld [vmem:[%s20805_s7 + $0x50] sm:$0xff]   ;;  %v17100_v44 = vcombine.low %v10372_v22, %v10376_v61  ;;  %v10420_v26 = vld [vmem:[#allocation9 + $0x848] sm:$0xff] }
 0x855   :  { %14635 = vmatprep.subr.bf16.mxu0 %v17495_v55  ;;  %v17109_v55 = vcombine.high %v10380_v43, %v10384_v49  ;;  %v10436_v22 = vld [vmem:[#allocation9 + $0x8c8] sm:$0xff] }
 0x856   :  { %v10440_v61 = vld [vmem:[#allocation9 + $0x8e8] sm:$0xff] }
 0x857   :  { %14294 = vmatpush1.bf16.msra.mxu1 %v17052_v5  ;;  %v17108_v5 = vcombine.low %v10380_v43, %v10384_v49  ;;  %v17164_v43 = vcombine.low %v10436_v22, %v10440_v61 }
 0x858   :  { %14636 = vmatpush1.bf16.msra.mxu0 %v17494_v18  ;;  %14295 = vmatprep.subr.bf16.mxu1 %v17061_v35  ;;  %v17117_v18 = vcombine.high %v10388_v60, %v10392_v62  ;;  %v19838_v35 = vld [vmem:[%s20805_s7 + $0x18] sm:$0xff]   ;;  %v10460_v60 = vld [vmem:[#allocation9 + $0x988] sm:$0xff] }
 0x859   :  { %14637 = vmatprep.subr.bf16.mxu0 %v17503_v56  ;;  %v10396_v56 = vld [vmem:[#allocation9 + $0x788] sm:$0xff] }
 0x85a   :  { %v17125_v8 = vcombine.high %v10396_v56, %v10400_v46  ;;  %v17124_v11 = vcombine.low %v10396_v56, %v10400_v46  ;;  %v10464_v62 = vld [vmem:[#allocation9 + $0x9a8] sm:$0xff] }
 0x85b   :  { %14296 = vmatpush1.bf16.msra.mxu1 %v17060_v6  ;;  %v19840_v6 = vld [vmem:[%s20805_s7 + $0x20] sm:$0xff]   ;;  %v17188_v56 = vcombine.low %v10460_v60, %v10464_v62 }
 0x85c   :  { %14638 = vmatpush1.bf16.msra.mxu0 %v17502_v20  ;;  %14297 = vmatprep.subr.bf16.mxu1 %v17069_v34  ;;  %v10404_v20 = vld [vmem:[#allocation9 + $0x7c8] sm:$0xff] }
 0x85d   :  { %14639 = vmatprep.subr.bf16.mxu0 %v17511_v14  ;;  %v10408_v34 = vld [vmem:[#allocation9 + $0x7e8] sm:$0xff] }
 0x85e   :  { %v19841_v14 = vld [vmem:[%s20805_s7 + $0x68] sm:$0xff]   ;;  %v17133_v52 = vcombine.high %v10404_v20, %v10408_v34 }
 0x85f   :  { %14298 = vmatpush1.bf16.msra.mxu1 %v17068_v17  ;;  %v10416_v17 = vld [vmem:[#allocation9 + $0x828] sm:$0xff] }
 0x860   :  { %14640 = vmatpush1.bf16.msra.mxu0 %v17510_v40  ;;  %14299 = vmatprep.subr.bf16.mxu1 %v17077_v23  ;;  %v19843_v40 = vld [vmem:[%s20805_s7 + $0x70] sm:$0xff]   ;;  %v17132_v23 = vcombine.low %v10404_v20, %v10408_v34  ;;  %v10484_v20 = vld [vmem:[#allocation9 + $0xa48] sm:$0xff] }
 0x861   :  { %14641 = vmatprep.subr.bf16.mxu0 %v17519_v24  ;;  %v17141_v24 = vcombine.high %v10412_v30, %v10416_v17  ;;  %v10488_v34 = vld [vmem:[#allocation9 + $0xa68] sm:$0xff] }
 0x863   :  { %14300 = vmatpush1.bf16.msra.mxu1 %v17076_v27  ;;  %v10424_v27 = vld [vmem:[#allocation9 + $0x868] sm:$0xff] }
 0x864   :  { %14642 = vmatpush1.bf16.msra.mxu0 %v17518_v32  ;;  %14301 = vmatprep.subr.bf16.mxu1 %v17085_v36  ;;  %v19845_v32 = vld [vmem:[%s20805_s7 + $0x78] sm:$0xff]   ;;  %v17140_v36 = vcombine.low %v10412_v30, %v10416_v17  ;;  %v17149_v38 = vcombine.high %v10420_v26, %v10424_v27  ;;  %v17212_v30 = vcombine.low %v10484_v20, %v10488_v34 }
 0x865   :  { %17587 = vmatprep.subr.bf16.mxu0 %v19831_v57  ;;  %v10428_v57 = vld [vmem:[#allocation9 + $0x888] sm:$0xff] }
 0x867   :  { %14302 = vmatpush1.bf16.msra.mxu1 %v17084_v33  ;;  %14644 = vmatmul.mubr.bf16.vlgmr.msra.gmra.mrb[28].mxu0 %v20548_v31  ;;  %v10432_v33 = vld [vmem:[#allocation9 + $0x8a8] sm:$0xff] }
 0x868   :  { %14303 = vmatprep.subr.bf16.mxu1 %v17093_v25  ;;  %17588 = vmatpush3.bf16.msra.mxu0 %v19832_v59  ;;  %v17148_v25 = vcombine.low %v10420_v26, %v10424_v27  ;;  %v17157_v59 = vcombine.high %v10428_v57, %v10432_v33  ;;  %v10508_v26 = vld [vmem:[#allocation9 + $0xb08] sm:$0xff] }
 0x869   :  { %17589 = vmatprep.subr.bf16.mxu0 %v19833_v41  ;;  %v17156_v41 = vcombine.low %v10428_v57, %v10432_v33  ;;  %v10512_v27 = vld [vmem:[#allocation9 + $0xb28] sm:$0xff] }
 0x86a   :  { %v17236_v57 = vcombine.low %v10508_v26, %v10512_v27 }
 0x86b   :  { %14304 = vmatpush1.bf16.msra.mxu1 %v17092_v45  ;;  %v17165_v45 = vcombine.high %v10436_v22, %v10440_v61 }
 0x86c   :  { %14305 = vmatprep.subr.bf16.mxu1 %v17101_v50  ;;  %17590 = vmatpush3.bf16.msra.mxu0 %v19834_v15  ;;  %v10444_v50 = vld [vmem:[#allocation9 + $0x908] sm:$0xff] }
 0x86d   :  { %17591 = vmatprep.subr.bf16.mxu0 %v19835_v58  ;;  %v10448_v15 = vld [vmem:[#allocation9 + $0x928] sm:$0xff] }
 0x86e   :  { %v17173_v49 = vcombine.high %v10444_v50, %v10448_v15  ;;  %v10452_v58 = vld [vmem:[#allocation9 + $0x948] sm:$0xff] }
 0x86f   :  { %14306 = vmatpush1.bf16.msra.mxu1 %v17100_v44  ;;  %v10456_v44 = vld [vmem:[#allocation9 + $0x968] sm:$0xff] }
 0x870   :  { %14307 = vmatprep.subr.bf16.mxu1 %v17109_v55  ;;  %17592 = vmatpush3.bf16.msra.mxu0 %v19836_v53  ;;  %v17172_v55 = vcombine.low %v10444_v50, %v10448_v15  ;;  %v17181_v53 = vcombine.high %v10452_v58, %v10456_v44 }
 0x871   :  { %17593 = vmatprep.subr.bf16.mxu0 %v19837_v1  ;;  %v17180_v1 = vcombine.low %v10452_v58, %v10456_v44 }
 0x873   :  { %14308 = vmatpush1.bf16.msra.mxu1 %v17108_v5  ;;  %v17189_v5 = vcombine.high %v10460_v60, %v10464_v62 }
 0x874   :  { %14309 = vmatprep.subr.bf16.mxu1 %v17117_v18  ;;  %17594 = vmatpush3.bf16.msra.mxu0 %v19838_v35  ;;  %v10468_v18 = vld [vmem:[#allocation9 + $0x9c8] sm:$0xff] }
 0x875   :  { %17595 = vmatprep.subr.bf16.mxu0 %v19839_v2  ;;  %v10472_v35 = vld [vmem:[#allocation9 + $0x9e8] sm:$0xff] }
 0x876   :  { %v17197_v46 = vcombine.high %v10468_v18, %v10472_v35  ;;  %v10476_v2 = vld [vmem:[#allocation9 + $0xa08] sm:$0xff] }
 0x877   :  { %14310 = vmatpush1.bf16.msra.mxu1 %v17116_v4  ;;  %v10480_v4 = vld [vmem:[#allocation9 + $0xa28] sm:$0xff] }
 0x878   :  { %14311 = vmatprep.subr.bf16.mxu1 %v17125_v8  ;;  %17596 = vmatpush3.bf16.msra.mxu0 %v19840_v6  ;;  %v17196_v8 = vcombine.low %v10468_v18, %v10472_v35  ;;  %v17205_v6 = vcombine.high %v10476_v2, %v10480_v4 }
 0x879   :  { %17597 = vmatprep.subr.bf16.mxu0 %v19841_v14  ;;  %v17204_v14 = vcombine.low %v10476_v2, %v10480_v4 }
 0x87b   :  { %14312 = vmatpush1.bf16.msra.mxu1 %v17124_v11  ;;  %v17213_v11 = vcombine.high %v10484_v20, %v10488_v34 }
 0x87c   :  { %14313 = vmatprep.subr.bf16.mxu1 %v17133_v52  ;;  %17598 = vmatpush3.bf16.msra.mxu0 %v19842_v16  ;;  %v10492_v52 = vld [vmem:[#allocation9 + $0xa88] sm:$0xff] }
 0x87d   :  { %17599 = vmatprep.subr.bf16.mxu0 %v19843_v40  ;;  %v10496_v16 = vld [vmem:[#allocation9 + $0xaa8] sm:$0xff] }
 0x87e   :  { %v17221_v17 = vcombine.high %v10492_v52, %v10496_v16  ;;  %v10500_v40 = vld [vmem:[#allocation9 + $0xac8] sm:$0xff] }
 0x87f   :  { %14314 = vmatpush1.bf16.msra.mxu1 %v17132_v23  ;;  %v10504_v23 = vld [vmem:[#allocation9 + $0xae8] sm:$0xff] }
 0x880   :  { %14324 = vmatprep.subr.bf16.mxu1 %v17141_v24  ;;  %17600 = vmatpush3.bf16.msra.mxu0 %v19844_v3  ;;  %v17220_v24 = vcombine.low %v10492_v52, %v10496_v16  ;;  %v17229_v3 = vcombine.high %v10500_v40, %v10504_v23  ;;  %v10795_v16 = vld [vmem:[#allocation10] sm:$0xff] }
 0x881   :  { %17601 = vmatprep.subr.bf16.mxu0 %v19845_v32  ;;  %v17228_v32 = vcombine.low %v10500_v40, %v10504_v23  ;;  %v10592_v40 = vld [vmem:[#allocation9 + $0xda8] sm:$0xff]  ;;  %v10800_v23 = vrot.slane %v10795_v16, %v20249_v7 }
 0x882   :  { %14316 = vmatmul.mubr.bf16.vlgmr.msra.gmra.mrb[28].mxu1 %v20480_v48 }
 0x883   :  { %14325 = vmatpush1.bf16.msra.mxu1 %v17140_v36  ;;  %14356 = vmatprep.mubr.bf16.mxu1 %v20503_v28  ;;  %v17237_v36 = vcombine.high %v10508_v26, %v10512_v27 }
 0x884   :  { %14326 = vmatprep.subr.bf16.mxu1 %v17149_v38  ;;  %17602 = vmatpush3.bf16.msra.mxu0 %v19846_v39  ;;  %v10516_v38 = vld [vmem:[#allocation9 + $0xb48] sm:$0xff] }
 0x885   :  { %v10520_v39 = vld [vmem:[#allocation9 + $0xb68] sm:$0xff] }
 0x886   :  { %v17245_v33 = vcombine.high %v10516_v38, %v10520_v39  ;;  %v17244_v22 = vcombine.low %v10516_v38, %v10520_v39 }
 0x887   :  { %14327 = vmatpush1.bf16.msra.mxu1 %v17148_v25  ;;  %v10524_v25 = vld [vmem:[#allocation9 + $0xb88] sm:$0xff] }
 0x888   :  { %14328 = vmatprep.subr.bf16.mxu1 %v17157_v59  ;;  %v10528_v59 = vld [vmem:[#allocation9 + $0xba8] sm:$0xff] }
 0x889   :  { %v17253_v61 = vcombine.high %v10524_v25, %v10528_v59  ;;  %v17252_v50 = vcombine.low %v10524_v25, %v10528_v59 }
 0x88b   :  { %14329 = vmatpush1.bf16.msra.mxu1 %v17156_v41  ;;  %v10532_v41 = vld [vmem:[#allocation9 + $0xbc8] sm:$0xff] }
 0x88c   :  { %14330 = vmatprep.subr.bf16.mxu1 %v17165_v45  ;;  %v10536_v45 = vld [vmem:[#allocation9 + $0xbe8] sm:$0xff] }
 0x88d   :  { %v17261_v15 = vcombine.high %v10532_v41, %v10536_v45  ;;  %v17260_v58 = vcombine.low %v10532_v41, %v10536_v45  ;;  %v10604_v41 = vld [vmem:[#allocation9 + $0xe08] sm:$0xff] }
 0x88e   :  { %v10608_v45 = vld [vmem:[#allocation9 + $0xe28] sm:$0xff] }
 0x88f   :  { %14331 = vmatpush1.bf16.msra.mxu1 %v17164_v43  ;;  %v10540_v43 = vld [vmem:[#allocation9 + $0xc08] sm:$0xff] }
 0x890   :  { %14332 = vmatprep.subr.bf16.mxu1 %v17173_v49  ;;  %v10544_v49 = vld [vmem:[#allocation9 + $0xc28] sm:$0xff] }
 0x891   :  { %v17269_v44 = vcombine.high %v10540_v43, %v10544_v49  ;;  %v17268_v60 = vcombine.low %v10540_v43, %v10544_v49  ;;  %v17333_v43 = vcombine.high %v10604_v41, %v10608_v45  ;;  %v10612_v49 = vld [vmem:[#allocation9 + $0xe48] sm:$0xff] }
 0x893   :  { %14333 = vmatpush1.bf16.msra.mxu1 %v17172_v55  ;;  %v10548_v55 = vld [vmem:[#allocation9 + $0xc48] sm:$0xff] }
 0x894   :  { %14334 = vmatprep.subr.bf16.mxu1 %v17181_v53  ;;  %v10552_v53 = vld [vmem:[#allocation9 + $0xc68] sm:$0xff] }
 0x895   :  { %v17277_v62 = vcombine.high %v10548_v55, %v10552_v53  ;;  %v17276_v18 = vcombine.low %v10548_v55, %v10552_v53  ;;  %v10620_v53 = vld [vmem:[#allocation9 + $0xe88] sm:$0xff] }
 0x897   :  { %14335 = vmatpush1.bf16.msra.mxu1 %v17180_v1  ;;  %v10556_v1 = vld [vmem:[#allocation9 + $0xc88] sm:$0xff] }
 0x898   :  { %14336 = vmatprep.subr.bf16.mxu1 %v17189_v5  ;;  %v10560_v5 = vld [vmem:[#allocation9 + $0xca8] sm:$0xff] }
 0x899   :  { %v17285_v35 = vcombine.high %v10556_v1, %v10560_v5  ;;  %v17284_v2 = vcombine.low %v10556_v1, %v10560_v5  ;;  %v10628_v5 = vld [vmem:[#allocation9 + $0xec8] sm:$0xff] }
 0x89b   :  { %14337 = vmatpush1.bf16.msra.mxu1 %v17188_v56  ;;  %v10564_v56 = vld [vmem:[#allocation9 + $0xcc8] sm:$0xff] }
 0x89c   :  { %14338 = vmatprep.subr.bf16.mxu1 %v17197_v46  ;;  %v10568_v46 = vld [vmem:[#allocation9 + $0xce8] sm:$0xff] }
 0x89d   :  { %v17293_v4 = vcombine.high %v10564_v56, %v10568_v46  ;;  %v17292_v20 = vcombine.low %v10564_v56, %v10568_v46  ;;  %v10636_v46 = vld [vmem:[#allocation9 + $0xf08] sm:$0xff] }
 0x89f   :  { %14339 = vmatpush1.bf16.msra.mxu1 %v17196_v8  ;;  %v10572_v8 = vld [vmem:[#allocation9 + $0xd08] sm:$0xff] }
 0x8a0   :  { %14340 = vmatprep.subr.bf16.mxu1 %v17205_v6  ;;  %v10576_v6 = vld [vmem:[#allocation9 + $0xd28] sm:$0xff] }
 0x8a1   :  { %v17301_v34 = vcombine.high %v10572_v8, %v10576_v6  ;;  %v17300_v52 = vcombine.low %v10572_v8, %v10576_v6  ;;  %v10644_v6 = vld [vmem:[#allocation9 + $0xf48] sm:$0xff] }
 0x8a3   :  { %14341 = vmatpush1.bf16.msra.mxu1 %v17204_v14  ;;  %v10580_v14 = vld [vmem:[#allocation9 + $0xd48] sm:$0xff] }
 0x8a4   :  { %14342 = vmatprep.subr.bf16.mxu1 %v17213_v11  ;;  %v10584_v11 = vld [vmem:[#allocation9 + $0xd68] sm:$0xff] }
 0x8a7   :  { %14343 = vmatpush1.bf16.msra.mxu1 %v17212_v30  ;;  %v17309_v30 = vcombine.high %v10580_v14, %v10584_v11 }
 0x8a8   :  { %14344 = vmatprep.subr.bf16.mxu1 %v17221_v17  ;;  %v10588_v17 = vld [vmem:[#allocation9 + $0xd88] sm:$0xff] }
 0x8a9   :  { %v17317_v26 = vcombine.high %v10588_v17, %v10592_v40  ;;  %v17316_v25 = vcombine.low %v10588_v17, %v10592_v40  ;;  %v10660_v17 = vld [vmem:[#allocation9 + $0xfc8] sm:$0xff] }
 0x8aa   :  { %v10664_v40 = vld [vmem:[#allocation9 + $0xfe8] sm:$0xff] }
 0x8ab   :  { %14345 = vmatpush1.bf16.msra.mxu1 %v17220_v24  ;;  %v17308_v24 = vcombine.low %v10580_v14, %v10584_v11  ;;  %v10652_v11 = vld [vmem:[#allocation9 + $0xf88] sm:$0xff] }
 0x8ac   :  { %14346 = vmatprep.subr.bf16.mxu1 %v17229_v3  ;;  %v10804_v3 = vrot.slane %v10795_v16, %v20254_v9 }
 0x8af   :  { %14347 = vmatpush1.bf16.msra.mxu1 %v17228_v32  ;;  %v10596_v32 = vld [vmem:[#allocation9 + $0xdc8] sm:$0xff] }
 0x8b0   :  { %14348 = vmatprep.subr.bf16.mxu1 %v17237_v36  ;;  %v10600_v36 = vld [vmem:[#allocation9 + $0xde8] sm:$0xff] }
 0x8b1   :  { %v17324_v9 = vcombine.low %v10596_v32, %v10600_v36 }
 0x8b3   :  { %14349 = vmatpush1.bf16.msra.mxu1 %v17236_v57 }
 0x8b4   :  { %14350 = vmatprep.subr.bf16.mxu1 %v17245_v33 }
 0x8b7   :  { %14351 = vmatpush1.bf16.msra.mxu1 %v17244_v22 }
 0x8b8   :  { %14352 = vmatprep.subr.bf16.mxu1 %v17253_v61  ;;  %v17325_v61 = vcombine.high %v10596_v32, %v10600_v36  ;;  %v10676_v36 = vld [vmem:[#allocation9 + $0x1048] sm:$0xff] }
 0x8bb   :  { %14353 = vmatpush1.bf16.msra.mxu1 %v17252_v50 }
 0x8bc   :  { %14354 = vmatprep.subr.bf16.mxu1 %v17261_v15 }
 0x8bf   :  { %14355 = vmatpush1.bf16.msra.mxu1 %v17260_v58  ;;  %v10616_v58 = vld [vmem:[#allocation9 + $0xe68] sm:$0xff] }
 0x8c0   :  { %14365 = vmatprep.subr.bf16.mxu1 %v17269_v44  ;;  %v17332_v44 = vcombine.low %v10604_v41, %v10608_v45  ;;  %v17341_v55 = vcombine.high %v10612_v49, %v10616_v58 }
 0x8c2   :  { %14357 = vmatmul.mubr.bf16.vlgmr.msra.gmra.mrb[28].mxu1 %v20507_v63 }
 0x8c3   :  { %14366 = vmatpush1.bf16.msra.mxu1 %v17268_v60  ;;  %14397 = vmatprep.mubr.bf16.mxu1 %v20510_v10  ;;  %v10624_v60 = vld [vmem:[#allocation9 + $0xea8] sm:$0xff] }
 0x8c4   :  { %14367 = vmatprep.subr.bf16.mxu1 %v17277_v62  ;;  %v17340_v62 = vcombine.low %v10612_v49, %v10616_v58  ;;  %v17349_v1 = vcombine.high %v10620_v53, %v10624_v60  ;;  %v10708_v49 = vld [vmem:[#allocation9 + $0x1148] sm:$0xff] }
 0x8c5   :  { %v10712_v58 = vld [vmem:[#allocation9 + $0x1168] sm:$0xff] }
 0x8c7   :  { %14368 = vmatpush1.bf16.msra.mxu1 %v17276_v18  ;;  %v10632_v18 = vld [vmem:[#allocation9 + $0xee8] sm:$0xff] }
 0x8c8   :  { %14369 = vmatprep.subr.bf16.mxu1 %v17285_v35  ;;  %v17348_v35 = vcombine.low %v10620_v53, %v10624_v60  ;;  %v17357_v56 = vcombine.high %v10628_v5, %v10632_v18  ;;  %v10716_v53 = vld [vmem:[#allocation9 + $0x1188] sm:$0xff] }
 0x8c9   :  { %v10720_v60 = vld [vmem:[#allocation9 + $0x11a8] sm:$0xff] }
 0x8cb   :  { %14370 = vmatpush1.bf16.msra.mxu1 %v17284_v2  ;;  %v10640_v2 = vld [vmem:[#allocation9 + $0xf28] sm:$0xff] }
 0x8cc   :  { %14371 = vmatprep.subr.bf16.mxu1 %v17293_v4  ;;  %v17356_v4 = vcombine.low %v10628_v5, %v10632_v18  ;;  %v17365_v8 = vcombine.high %v10636_v46, %v10640_v2  ;;  %v10724_v5 = vld [vmem:[#allocation9 + $0x11c8] sm:$0xff] }
 0x8cd   :  { %v10728_v18 = vld [vmem:[#allocation9 + $0x11e8] sm:$0xff] }
 0x8cf   :  { %14372 = vmatpush1.bf16.msra.mxu1 %v17292_v20  ;;  %v10648_v20 = vld [vmem:[#allocation9 + $0xf68] sm:$0xff] }
 0x8d0   :  { %14373 = vmatprep.subr.bf16.mxu1 %v17301_v34  ;;  %v17364_v34 = vcombine.low %v10636_v46, %v10640_v2  ;;  %v17373_v14 = vcombine.high %v10644_v6, %v10648_v20  ;;  %v17372_v16 = vcombine.low %v10644_v6, %v10648_v20  ;;  %v10732_v46 = vld [vmem:[#allocation9 + $0x1208] sm:$0xff] }
 0x8d1   :  { %v10736_v2 = vld [vmem:[#allocation9 + $0x1228] sm:$0xff] }
 0x8d2   :  { %v10740_v6 = vld [vmem:[#allocation9 + $0x1248] sm:$0xff] }
 0x8d3   :  { %14374 = vmatpush1.bf16.msra.mxu1 %v17300_v52  ;;  %v10656_v52 = vld [vmem:[#allocation9 + $0xfa8] sm:$0xff] }
 0x8d4   :  { %14375 = vmatprep.subr.bf16.mxu1 %v17309_v30  ;;  %v17381_v30 = vcombine.high %v10652_v11, %v10656_v52  ;;  %v10744_v20 = vld [vmem:[#allocation9 + $0x1268] sm:$0xff] }
 0x8d5   :  { %v14235_v27 = vpop.f32.mrb[24].mxu1 }
 0x8d6   :  { %v17685_v38 = vadd.f32 %v14235_v27, %v10800_v23  ;;  %v14237_v39 = vpop.f32.mrb[25].mxu1  ;;  %v17380_v23 = vcombine.low %v10652_v11, %v10656_v52  ;;  %v17388_v27 = vcombine.low %v10660_v17, %v10664_v40  ;;  %v10748_v11 = vld [vmem:[#allocation9 + $0x1288] sm:$0xff] }
 0x8d7   :  { %v17686_v57 = vadd.f32 %v14237_v39, %v10804_v3  ;;  %14376 = vmatpush1.bf16.msra.mxu1 %v17308_v24  ;;  %v14239_v33 = vpop.f32.mrb[26].mxu1  ;;  %v17389_v24 = vcombine.high %v10660_v17, %v10664_v40  ;;  %v10668_v3 = vld [vmem:[#allocation9 + $0x1008] sm:$0xff] }
 0x8d8   :  { %v14857_v59 = vmax.f32 %v17685_v38, 0.0  ;;  %v14240_v22 = vpop.f32.mrb[27].mxu1  ;;  %14377 = vmatprep.subr.bf16.mxu1 %v17317_v26  ;;  %v10672_v26 = vld [vmem:[#allocation9 + $0x1028] sm:$0xff] }
 0x8d9   :  { %v14858_v7 = vmax.f32 %v17686_v57, 0.0  ;;  %v17397_v32 = vcombine.high %v10668_v3, %v10672_v26  ;;  %v10680_v38 = vld [vmem:[#allocation9 + $0x1068] sm:$0xff]  ;;  %v17396_v39 = vcombine.low %v10668_v3, %v10672_v26 }
 0x8da   :  { %v14865_v15 = vpack.c.bf16 %v14857_v59, %v14857_v59  ;;  %v17405_v57 = vcombine.high %v10676_v36, %v10680_v38  ;;  %v10684_v33 = vld [vmem:[#allocation9 + $0x1088] sm:$0xff]  ;;  %v17404_v59 = vcombine.low %v10676_v36, %v10680_v38 }
 0x8db   :  { %v14866_v50 = vpack.c.bf16 %v14858_v7, %v14858_v7  ;;  %14378 = vmatpush1.bf16.msra.mxu1 %v17316_v25  ;;  %v10688_v25 = vld [vmem:[#allocation9 + $0x10a8] sm:$0xff] }
 0x8dc   :  { %14379 = vmatprep.subr.bf16.mxu1 %v17325_v61  ;;  %v17413_v22 = vcombine.high %v10684_v33, %v10688_v25  ;;  %v10692_v61 = vld [vmem:[#allocation9 + $0x10c8] sm:$0xff]  ;;  %v17412_v41 = vcombine.low %v10684_v33, %v10688_v25 }
 0x8dd   :  { %15424 = vmatprep.mubr.bf16.mxu0 %v14866_v50  ;;  %v10696_v7 = vld [vmem:[#allocation9 + $0x10e8] sm:$0xff] }
 0x8de   :  { %15425 = vmatmul.mubr.bf16.vlgmr.msra.gmra.mrb[32].mxu0 %v14865_v15  ;;  %v17421_v45 = vcombine.high %v10692_v61, %v10696_v7  ;;  %v10700_v50 = vld [vmem:[#allocation9 + $0x1108] sm:$0xff]  ;;  %v17420_v15 = vcombine.low %v10692_v61, %v10696_v7 }
 0x8df   :  { %14380 = vmatpush1.bf16.msra.mxu1 %v17324_v9  ;;  %v10704_v9 = vld [vmem:[#allocation9 + $0x1128] sm:$0xff] }
 0x8e0   :  { %14381 = vmatprep.subr.bf16.mxu1 %v17333_v43  ;;  %v17429_v43 = vcombine.high %v10700_v50, %v10704_v9  ;;  %v10752_v52 = vld [vmem:[#allocation9 + $0x12a8] sm:$0xff] }
 0x8e1   :  { %v10756_v17 = vld [vmem:[#allocation9 + $0x12c8] sm:$0xff] }
 0x8e2   :  { %v10760_v40 = vld [vmem:[#allocation9 + $0x12e8] sm:$0xff] }
 0x8e3   :  { %14382 = vmatpush1.bf16.msra.mxu1 %v17332_v44  ;;  %v17428_v44 = vcombine.low %v10700_v50, %v10704_v9  ;;  %v10764_v3 = vld [vmem:[#allocation9 + $0x1308] sm:$0xff]  ;;  %v10158_v50 = vld [vmem:[#allocation9 + $0x18] sm:$0xff] }
 0x8e4   :  { %14383 = vmatprep.subr.bf16.mxu1 %v17341_v55  ;;  %v17437_v55 = vcombine.high %v10708_v49, %v10712_v58  ;;  %v10768_v26 = vld [vmem:[#allocation9 + $0x1328] sm:$0xff]  ;;  %v10162_v9 = vld [vmem:[#allocation9 + $0x38] sm:$0xff] }
 0x8e5   :  { %v10772_v36 = vld [vmem:[#allocation9 + $0x1348] sm:$0xff] }
 0x8e6   :  { %v10776_v38 = vld [vmem:[#allocation9 + $0x1368] sm:$0xff] }
 0x8e7   :  { %14384 = vmatpush1.bf16.msra.mxu1 %v17340_v62  ;;  %v17436_v62 = vcombine.low %v10708_v49, %v10712_v58  ;;  %v10780_v33 = vld [vmem:[#allocation9 + $0x1388] sm:$0xff] }
 0x8e8   :  { %14385 = vmatprep.subr.bf16.mxu1 %v17349_v1  ;;  %v17445_v1 = vcombine.high %v10716_v53, %v10720_v60  ;;  %v10784_v25 = vld [vmem:[#allocation9 + $0x13a8] sm:$0xff] }
 0x8e9   :  { %v10788_v61 = vld [vmem:[#allocation9 + $0x13c8] sm:$0xff] }
 0x8ea   :  { %v10792_v7 = vld [vmem:[#allocation9 + $0x13e8] sm:$0xff] }
 0x8eb   :  { %14386 = vmatpush1.bf16.msra.mxu1 %v17348_v35  ;;  %v17444_v35 = vcombine.low %v10716_v53, %v10720_v60  ;;  %v17516_v49 = vcombine.low %v10788_v61, %v10792_v7  ;;  %v10166_v53 = vld [vmem:[#allocation9 + $0x58] sm:$0xff] }
 0x8ec   :  { %14387 = vmatprep.subr.bf16.mxu1 %v17357_v56  ;;  %v17453_v56 = vcombine.high %v10724_v5, %v10728_v18  ;;  %v10170_v60 = vld [vmem:[#allocation9 + $0x78] sm:$0xff] }
 0x8ef   :  { %14388 = vmatpush1.bf16.msra.mxu1 %v17356_v4  ;;  %v17452_v4 = vcombine.low %v10724_v5, %v10728_v18  ;;  %v10174_v5 = vld [vmem:[#allocation9 + $0x98] sm:$0xff] }
 0x8f0   :  { %14389 = vmatprep.subr.bf16.mxu1 %v17365_v8  ;;  %v17461_v8 = vcombine.high %v10732_v46, %v10736_v2  ;;  %v10178_v18 = vld [vmem:[#allocation9 + $0xb8] sm:$0xff] }
 0x8f3   :  { %14390 = vmatpush1.bf16.msra.mxu1 %v17364_v34  ;;  %v17460_v34 = vcombine.low %v10732_v46, %v10736_v2  ;;  %v10182_v46 = vld [vmem:[#allocation9 + $0xd8] sm:$0xff] }
 0x8f4   :  { %14391 = vmatprep.subr.bf16.mxu1 %v17373_v14  ;;  %v17469_v14 = vcombine.high %v10740_v6, %v10744_v20  ;;  %v10186_v2 = vld [vmem:[#allocation9 + $0xf8] sm:$0xff] }
 0x8f7   :  { %14392 = vmatpush1.bf16.msra.mxu1 %v17372_v16  ;;  %v17468_v16 = vcombine.low %v10740_v6, %v10744_v20  ;;  %v10190_v6 = vld [vmem:[#allocation9 + $0x118] sm:$0xff] }
 0x8f8   :  { %14393 = vmatprep.subr.bf16.mxu1 %v17381_v30  ;;  %v17477_v30 = vcombine.high %v10748_v11, %v10752_v52  ;;  %v10194_v20 = vld [vmem:[#allocation9 + $0x138] sm:$0xff] }
 0x8fb   :  { %14394 = vmatpush1.bf16.msra.mxu1 %v17380_v23  ;;  %v17476_v23 = vcombine.low %v10748_v11, %v10752_v52  ;;  %v10198_v11 = vld [vmem:[#allocation9 + $0x158] sm:$0xff] }
 0x8fc   :  { %14395 = vmatprep.subr.bf16.mxu1 %v17389_v24  ;;  %v17485_v24 = vcombine.high %v10756_v17, %v10760_v40  ;;  %v10202_v52 = vld [vmem:[#allocation9 + $0x178] sm:$0xff] }
 0x8ff   :  { %14396 = vmatpush1.bf16.msra.mxu1 %v17388_v27  ;;  %v17484_v27 = vcombine.low %v10756_v17, %v10760_v40  ;;  %v10210_v17 = vld [vmem:[#allocation9 + $0x1b8] sm:$0xff]  ;;  %v16928_v40 = vcombine.low %v10198_v11, %v10202_v52 }
 0x900   :  { %14406 = vmatprep.subr.bf16.mxu1 %v17397_v32  ;;  %v17493_v32 = vcombine.high %v10764_v3, %v10768_v26 }
 0x902   :  { %14398 = vmatmul.mubr.bf16.vlgmr.msra.gmra.mrb[28].mxu1 %v20519_v51 }
 0x903   :  { %14407 = vmatpush1.bf16.msra.mxu1 %v17396_v39  ;;  %14438 = vmatprep.mubr.bf16.mxu1 %v20546_v47  ;;  %v17492_v39 = vcombine.low %v10764_v3, %v10768_v26  ;;  %v10218_v3 = vld [vmem:[#allocation9 + $0x1f8] sm:$0xff] }
 0x904   :  { %14408 = vmatprep.subr.bf16.mxu1 %v17405_v57  ;;  %v17501_v57 = vcombine.high %v10772_v36, %v10776_v38 }
 0x907   :  { %14409 = vmatpush1.bf16.msra.mxu1 %v17404_v59  ;;  %v17500_v59 = vcombine.low %v10772_v36, %v10776_v38  ;;  %v10226_v36 = vld [vmem:[#allocation9 + $0x238] sm:$0xff] }
 0x908   :  { %14410 = vmatprep.subr.bf16.mxu1 %v17413_v22  ;;  %v17509_v22 = vcombine.high %v10780_v33, %v10784_v25 }
 0x90b   :  { %14411 = vmatpush1.bf16.msra.mxu1 %v17412_v41  ;;  %v17508_v41 = vcombine.low %v10780_v33, %v10784_v25  ;;  %v10234_v33 = vld [vmem:[#allocation9 + $0x278] sm:$0xff] }
 0x90c   :  { %14412 = vmatprep.subr.bf16.mxu1 %v17421_v45  ;;  %v17517_v45 = vcombine.high %v10788_v61, %v10792_v7  ;;  %v10242_v61 = vld [vmem:[#allocation9 + $0x2b8] sm:$0xff] }
 0x90f   :  { %14413 = vmatpush1.bf16.msra.mxu1 %v17420_v15 }
 0x910   :  { %14414 = vmatprep.subr.bf16.mxu1 %v17429_v43 }
 0x913   :  { %14415 = vmatpush1.bf16.msra.mxu1 %v17428_v44  ;;  %v16889_v44 = vcombine.high %v10158_v50, %v10162_v9 }
 0x914   :  { %14416 = vmatprep.subr.bf16.mxu1 %v17437_v55 }
 0x917   :  { %14417 = vmatpush1.bf16.msra.mxu1 %v17436_v62  ;;  %v16888_v62 = vcombine.low %v10158_v50, %v10162_v9  ;;  %v10250_v50 = vld [vmem:[#allocation9 + $0x2f8] sm:$0xff] }
 0x918   :  { %14418 = vmatprep.subr.bf16.mxu1 %v17445_v1  ;;  %v16897_v1 = vcombine.high %v10166_v53, %v10170_v60 }
 0x91b   :  { %14419 = vmatpush1.bf16.msra.mxu1 %v17444_v35  ;;  %v16896_v35 = vcombine.low %v10166_v53, %v10170_v60  ;;  %v10262_v60 = vld [vmem:[#allocation9 + $0x358] sm:$0xff] }
 0x91c   :  { %14420 = vmatprep.subr.bf16.mxu1 %v17453_v56  ;;  %v16905_v56 = vcombine.high %v10174_v5, %v10178_v18 }
 0x91f   :  { %14421 = vmatpush1.bf16.msra.mxu1 %v17452_v4  ;;  %v16904_v4 = vcombine.low %v10174_v5, %v10178_v18  ;;  %v10270_v18 = vld [vmem:[#allocation9 + $0x398] sm:$0xff] }
 0x920   :  { %14422 = vmatprep.subr.bf16.mxu1 %v17461_v8  ;;  %v16913_v8 = vcombine.high %v10182_v46, %v10186_v2 }
 0x923   :  { %14423 = vmatpush1.bf16.msra.mxu1 %v17460_v34  ;;  %v16912_v34 = vcombine.low %v10182_v46, %v10186_v2  ;;  %v10278_v2 = vld [vmem:[#allocation9 + $0x3d8] sm:$0xff] }
 0x924   :  { %14424 = vmatprep.subr.bf16.mxu1 %v17469_v14  ;;  %v16921_v14 = vcombine.high %v10190_v6, %v10194_v20 }
 0x927   :  { %14425 = vmatpush1.bf16.msra.mxu1 %v17468_v16  ;;  %v16920_v16 = vcombine.low %v10190_v6, %v10194_v20  ;;  %v10286_v20 = vld [vmem:[#allocation9 + $0x418] sm:$0xff] }
 0x928   :  { %14426 = vmatprep.subr.bf16.mxu1 %v17477_v30  ;;  %v10206_v30 = vld [vmem:[#allocation9 + $0x198] sm:$0xff] }
 0x929   :  { %v16936_v26 = vcombine.low %v10206_v30, %v10210_v17 }
 0x92b   :  { %14427 = vmatpush1.bf16.msra.mxu1 %v17476_v23  ;;  %v16937_v23 = vcombine.high %v10206_v30, %v10210_v17  ;;  %v10298_v30 = vld [vmem:[#allocation9 + $0x478] sm:$0xff] }
 0x92c   :  { %14428 = vmatprep.subr.bf16.mxu1 %v17485_v24  ;;  %v10214_v24 = vld [vmem:[#allocation9 + $0x1d8] sm:$0xff] }
 0x92d   :  { %v16944_v38 = vcombine.low %v10214_v24, %v10218_v3 }
 0x92f   :  { %14429 = vmatpush1.bf16.msra.mxu1 %v17484_v27  ;;  %v16945_v27 = vcombine.high %v10214_v24, %v10218_v3  ;;  %v10302_v24 = vld [vmem:[#allocation9 + $0x498] sm:$0xff] }
 0x930   :  { %14430 = vmatprep.subr.bf16.mxu1 %v17493_v32  ;;  %v10222_v32 = vld [vmem:[#allocation9 + $0x218] sm:$0xff] }
 0x931   :  { %v16952_v25 = vcombine.low %v10222_v32, %v10226_v36  ;;  %v10306_v3 = vld [vmem:[#allocation9 + $0x4b8] sm:$0xff] }
 0x933   :  { %14431 = vmatpush1.bf16.msra.mxu1 %v17492_v39  ;;  %v16953_v39 = vcombine.high %v10222_v32, %v10226_v36  ;;  %v19851_v32 = vld [vmem:[%s20805_s7 + $0xd0] sm:$0xff]   ;;  %v17033_v36 = vcombine.high %v10302_v24, %v10306_v3 }
 0x934   :  { %14432 = vmatprep.subr.bf16.mxu1 %v17501_v57  ;;  %v10230_v57 = vld [vmem:[#allocation9 + $0x258] sm:$0xff] }
 0x935   :  { %v16960_v7 = vcombine.low %v10230_v57, %v10234_v33 }
 0x937   :  { %14433 = vmatpush1.bf16.msra.mxu1 %v17500_v59  ;;  %v16961_v59 = vcombine.high %v10230_v57, %v10234_v33  ;;  %v10314_v57 = vld [vmem:[#allocation9 + $0x4f8] sm:$0xff] }
 0x938   :  { %14434 = vmatprep.subr.bf16.mxu1 %v17509_v22  ;;  %v10238_v22 = vld [vmem:[#allocation9 + $0x298] sm:$0xff] }
 0x939   :  { %v16968_v9 = vcombine.low %v10238_v22, %v10242_v61 }
 0x93a   :  { %v20617_v15 = vpop.f32.mrb[28].mxu0 }
 0x93b   :  { %14435 = vmatpush1.bf16.msra.mxu1 %v17508_v41  ;;  %v20619_v43 = vpop.f32.mrb[29].mxu0  ;;  %v16969_v41 = vcombine.high %v10238_v22, %v10242_v61  ;;  %v10322_v22 = vld [vmem:[#allocation9 + $0x538] sm:$0xff] }
 0x93c   :  { %v14649_v58 = vpop.f32.mrb[30].mxu0  ;;  %14436 = vmatprep.subr.bf16.mxu1 %v17517_v45  ;;  %v10246_v45 = vld [vmem:[#allocation9 + $0x2d8] sm:$0xff] }
 0x93d   :  { %v14650_v55 = vpop.f32.mrb[31].mxu0  ;;  %v10254_v58 = vld [vmem:[#allocation9 + $0x318] sm:$0xff] }
 0x93e   :  { %v16976_v55 = vcombine.low %v10246_v45, %v10250_v50 }
 0x93f   :  { %14437 = vmatpush1.bf16.msra.mxu1 %v17516_v49  ;;  %v16977_v49 = vcombine.high %v10246_v45, %v10250_v50  ;;  %v19856_v45 = vld [vmem:[%s20805_s7 + $0xa0] sm:$0xff]   ;;  %v10326_v50 = vld [vmem:[#allocation9 + $0x558] sm:$0xff] }
 0x940   :  { %14652 = vmatprep.subr.bf16.mxu1 %v16889_v44  ;;  %v10258_v44 = vld [vmem:[#allocation9 + $0x338] sm:$0xff] }
 0x941   :  { %v16985_v53 = vcombine.high %v10254_v58, %v10258_v44 }
 0x942   :  { %14439 = vmatmul.mubr.bf16.vlgmr.msra.gmra.mrb[28].mxu1 %v20548_v31 }
 0x943   :  { %14653 = vmatpush1.bf16.msra.mxu1 %v16888_v62  ;;  %14684 = vmatprep.mubr.bf16.mxu1 %v20458_v29  ;;  %v16929_v29 = vcombine.high %v10198_v11, %v10202_v52  ;;  %v10266_v62 = vld [vmem:[#allocation9 + $0x378] sm:$0xff]  ;;  %v19847_v11 = vld [vmem:[%s20805_s7 + $0xc0] sm:$0xff]  }
 0x944   :  { %14654 = vmatprep.subr.bf16.mxu1 %v16897_v1  ;;  %v16984_v1 = vcombine.low %v10254_v58, %v10258_v44  ;;  %v16993_v5 = vcombine.high %v10262_v60, %v10266_v62  ;;  %17609 = vmatprep.subr.bf16.mxu0 %v19847_v11  ;;  %v19857_v58 = vld [vmem:[%s20805_s7 + $0xe8] sm:$0xff]   ;;  %v19863_v11 = vld [vmem:[%s20805_s7 + $0x140] sm:$0xff]  }
 0x947   :  { %14655 = vmatpush1.bf16.msra.mxu1 %v16896_v35  ;;  %v10274_v35 = vld [vmem:[#allocation9 + $0x3b8] sm:$0xff] }
 0x948   :  { %14656 = vmatprep.subr.bf16.mxu1 %v16905_v56  ;;  %v16992_v56 = vcombine.low %v10262_v60, %v10266_v62  ;;  %v17001_v46 = vcombine.high %v10270_v18, %v10274_v35  ;;  %v10338_v60 = vld [vmem:[#allocation9 + $0x5b8] sm:$0xff] }
 0x94b   :  { %14657 = vmatpush1.bf16.msra.mxu1 %v16904_v4  ;;  %v10282_v4 = vld [vmem:[#allocation9 + $0x3f8] sm:$0xff] }
 0x94c   :  { %14658 = vmatprep.subr.bf16.mxu1 %v16913_v8  ;;  %v17000_v8 = vcombine.low %v10270_v18, %v10274_v35  ;;  %v17009_v6 = vcombine.high %v10278_v2, %v10282_v4  ;;  %v10342_v18 = vld [vmem:[#allocation9 + $0x5d8] sm:$0xff] }
 0x94d   :  { %v10346_v35 = vld [vmem:[#allocation9 + $0x5f8] sm:$0xff] }
 0x94f   :  { %14659 = vmatpush1.bf16.msra.mxu1 %v16912_v34  ;;  %v10290_v34 = vld [vmem:[#allocation9 + $0x438] sm:$0xff] }
 0x950   :  { %14660 = vmatprep.subr.bf16.mxu1 %v16921_v14  ;;  %v17008_v14 = vcombine.low %v10278_v2, %v10282_v4  ;;  %v17017_v52 = vcombine.high %v10286_v20, %v10290_v34  ;;  %v17016_v17 = vcombine.low %v10286_v20, %v10290_v34  ;;  %v17073_v2 = vcombine.high %v10342_v18, %v10346_v35  ;;  %v19861_v4 = vld [vmem:[%s20805_s7 + $0xf8] sm:$0xff]  }
 0x951   :  { %v19862_v20 = vld [vmem:[%s20805_s7 + $0xb8] sm:$0xff]   ;;  %v17072_v34 = vcombine.low %v10342_v18, %v10346_v35 }
 0x952   :  { %v10422_v18 = vld [vmem:[#allocation9 + $0x858] sm:$0xff] }
 0x953   :  { %14661 = vmatpush1.bf16.msra.mxu1 %v16920_v16  ;;  %v19848_v16 = vld [vmem:[%s20805_s7 + $0x80] sm:$0xff]   ;;  %v10426_v35 = vld [vmem:[#allocation9 + $0x878] sm:$0xff] }
 0x954   :  { %14662 = vmatprep.subr.bf16.mxu1 %v16929_v29  ;;  %v10294_v29 = vld [vmem:[#allocation9 + $0x458] sm:$0xff]  ;;  %17610 = vmatpush3.bf16.msra.mxu0 %v19848_v16 }
 0x955   :  { %v10362_v16 = vld [vmem:[#allocation9 + $0x678] sm:$0xff] }
 0x957   :  { %14663 = vmatpush1.bf16.msra.mxu1 %v16928_v40  ;;  %v19849_v40 = vld [vmem:[%s20805_s7 + $0xc8] sm:$0xff]  }
 0x958   :  { %14664 = vmatprep.subr.bf16.mxu1 %v16937_v23  ;;  %v17025_v23 = vcombine.high %v10294_v29, %v10298_v30  ;;  %17611 = vmatprep.subr.bf16.mxu0 %v19849_v40  ;;  %v10370_v40 = vld [vmem:[#allocation9 + $0x6b8] sm:$0xff] }
 0x95b   :  { %14665 = vmatpush1.bf16.msra.mxu1 %v16936_v26  ;;  %v19850_v26 = vld [vmem:[%s20805_s7 + $0x88] sm:$0xff]  }
 0x95c   :  { %14666 = vmatprep.subr.bf16.mxu1 %v16945_v27  ;;  %v17024_v27 = vcombine.low %v10294_v29, %v10298_v30  ;;  %17612 = vmatpush3.bf16.msra.mxu0 %v19850_v26  ;;  %v10378_v26 = vld [vmem:[#allocation9 + $0x6f8] sm:$0xff] }
 0x95d   :  { %17613 = vmatprep.subr.bf16.mxu0 %v19851_v32 }
 0x95f   :  { %14667 = vmatpush1.bf16.msra.mxu1 %v16944_v38  ;;  %v19852_v38 = vld [vmem:[%s20805_s7 + $0x90] sm:$0xff]  }
 0x960   :  { %14668 = vmatprep.subr.bf16.mxu1 %v16953_v39  ;;  %v10310_v39 = vld [vmem:[#allocation9 + $0x4d8] sm:$0xff]  ;;  %17614 = vmatpush3.bf16.msra.mxu0 %v19852_v38 }
 0x961   :  { %v17041_v33 = vcombine.high %v10310_v39, %v10314_v57  ;;  %v17040_v61 = vcombine.low %v10310_v39, %v10314_v57  ;;  %v10386_v38 = vld [vmem:[#allocation9 + $0x738] sm:$0xff] }
 0x963   :  { %14669 = vmatpush1.bf16.msra.mxu1 %v16952_v25  ;;  %v19854_v25 = vld [vmem:[%s20805_s7 + $0x98] sm:$0xff]  }
 0x964   :  { %14670 = vmatprep.subr.bf16.mxu1 %v16961_v59  ;;  %v10318_v59 = vld [vmem:[#allocation9 + $0x518] sm:$0xff] }
 0x967   :  { %14671 = vmatpush1.bf16.msra.mxu1 %v16960_v7  ;;  %v19855_v7 = vld [vmem:[%s20805_s7 + $0xe0] sm:$0xff]  }
 0x968   :  { %14672 = vmatprep.subr.bf16.mxu1 %v16969_v41  ;;  %v17049_v41 = vcombine.high %v10318_v59, %v10322_v22 }
 0x96b   :  { %14673 = vmatpush1.bf16.msra.mxu1 %v16968_v9  ;;  %v10330_v9 = vld [vmem:[#allocation9 + $0x578] sm:$0xff] }
 0x96c   :  { %14674 = vmatprep.subr.bf16.mxu1 %v16977_v49  ;;  %v17048_v49 = vcombine.low %v10318_v59, %v10322_v22  ;;  %v17057_v44 = vcombine.high %v10326_v50, %v10330_v9  ;;  %v17056_v62 = vcombine.low %v10326_v50, %v10330_v9  ;;  %v10398_v22 = vld [vmem:[#allocation9 + $0x798] sm:$0xff] }
 0x96f   :  { %14675 = vmatpush1.bf16.msra.mxu1 %v16976_v55  ;;  %v19858_v55 = vld [vmem:[%s20805_s7 + $0xa8] sm:$0xff]  }
 0x970   :  { %14676 = vmatprep.subr.bf16.mxu1 %v16985_v53  ;;  %v10334_v53 = vld [vmem:[#allocation9 + $0x598] sm:$0xff] }
 0x973   :  { %14677 = vmatpush1.bf16.msra.mxu1 %v16984_v1  ;;  %v17065_v1 = vcombine.high %v10334_v53, %v10338_v60 }
 0x974   :  { %14678 = vmatprep.subr.bf16.mxu1 %v16993_v5  ;;  %v19859_v5 = vld [vmem:[%s20805_s7 + $0xf0] sm:$0xff]  }
 0x977   :  { %14679 = vmatpush1.bf16.msra.mxu1 %v16992_v56  ;;  %v19860_v56 = vld [vmem:[%s20805_s7 + $0xb0] sm:$0xff]  }
 0x978   :  { %14680 = vmatprep.subr.bf16.mxu1 %v17001_v46  ;;  %v17064_v46 = vcombine.low %v10334_v53, %v10338_v60  ;;  %v10414_v60 = vld [vmem:[#allocation9 + $0x818] sm:$0xff] }
 0x97b   :  { %14681 = vmatpush1.bf16.msra.mxu1 %v17000_v8  ;;  %v10350_v8 = vld [vmem:[#allocation9 + $0x618] sm:$0xff] }
 0x97c   :  { %14682 = vmatprep.subr.bf16.mxu1 %v17009_v6  ;;  %v10354_v6 = vld [vmem:[#allocation9 + $0x638] sm:$0xff] }
 0x97d   :  { %v17080_v29 = vcombine.low %v10350_v8, %v10354_v6 }
 0x97f   :  { %14683 = vmatpush1.bf16.msra.mxu1 %v17008_v14  ;;  %v17081_v14 = vcombine.high %v10350_v8, %v10354_v6  ;;  %v17152_v8 = vcombine.low %v10422_v18, %v10426_v35 }
 0x980   :  { %14693 = vmatprep.subr.bf16.mxu1 %v17017_v52  ;;  %v10358_v52 = vld [vmem:[#allocation9 + $0x658] sm:$0xff] }
 0x981   :  { %v17089_v30 = vcombine.high %v10358_v52, %v10362_v16 }
 0x982   :  { %14685 = vmatmul.mubr.bf16.vlgmr.msra.gmra.mrb[32].mxu1 %v20469_v13  ;;  %v17032_v13 = vcombine.low %v10302_v24, %v10306_v3  ;;  %v10374_v3 = vld [vmem:[#allocation9 + $0x6d8] sm:$0xff] }
 0x983   :  { %14694 = vmatpush1.bf16.msra.mxu1 %v17016_v17  ;;  %14725 = vmatprep.mubr.bf16.mxu1 %v20472_v21  ;;  %v19853_v21 = vld [vmem:[%s20805_s7 + $0xd8] sm:$0xff]   ;;  %v17105_v32 = vcombine.high %v10374_v3, %v10378_v26  ;;  %v17104_v39 = vcombine.low %v10374_v3, %v10378_v26 }
 0x984   :  { %14695 = vmatprep.subr.bf16.mxu1 %v17025_v23  ;;  %17615 = vmatprep.subr.bf16.mxu0 %v19853_v21  ;;  %v10366_v17 = vld [vmem:[#allocation9 + $0x698] sm:$0xff]  ;;  %v17088_v23 = vcombine.low %v10358_v52, %v10362_v16 }
 0x985   :  { %17616 = vmatpush3.bf16.msra.mxu0 %v19854_v25  ;;  %v17097_v24 = vcombine.high %v10366_v17, %v10370_v40  ;;  %v10394_v21 = vld [vmem:[#allocation9 + $0x778] sm:$0xff] }
 0x986   :  { %17617 = vmatprep.subr.bf16.mxu0 %v19855_v7  ;;  %v10446_v52 = vld [vmem:[#allocation9 + $0x918] sm:$0xff] }
 0x987   :  { %14696 = vmatpush1.bf16.msra.mxu1 %v17024_v27  ;;  %v17096_v27 = vcombine.low %v10366_v17, %v10370_v40  ;;  %v10450_v16 = vld [vmem:[#allocation9 + $0x938] sm:$0xff] }
 0x988   :  { %14697 = vmatprep.subr.bf16.mxu1 %v17033_v36  ;;  %v10382_v36 = vld [vmem:[#allocation9 + $0x718] sm:$0xff]  ;;  %v17176_v40 = vcombine.low %v10446_v52, %v10450_v16 }
 0x989   :  { %17618 = vmatpush3.bf16.msra.mxu0 %v19856_v45  ;;  %v17113_v57 = vcombine.high %v10382_v36, %v10386_v38  ;;  %v10454_v17 = vld [vmem:[#allocation9 + $0x958] sm:$0xff] }
 0x98a   :  { %17619 = vmatprep.subr.bf16.mxu0 %v19857_v58  ;;  %v10406_v58 = vld [vmem:[#allocation9 + $0x7d8] sm:$0xff] }
 0x98b   :  { %14698 = vmatpush1.bf16.msra.mxu1 %v17032_v13  ;;  %v10390_v13 = vld [vmem:[#allocation9 + $0x758] sm:$0xff] }
 0x98c   :  { %14699 = vmatprep.subr.bf16.mxu1 %v17041_v33  ;;  %v17112_v33 = vcombine.low %v10382_v36, %v10386_v38  ;;  %v17121_v25 = vcombine.high %v10390_v13, %v10394_v21  ;;  %v17120_v50 = vcombine.low %v10390_v13, %v10394_v21 }
 0x98d   :  { %17620 = vmatpush3.bf16.msra.mxu0 %v19858_v55 }
 0x98e   :  { %17621 = vmatprep.subr.bf16.mxu0 %v19859_v5 }
 0x98f   :  { %14700 = vmatpush1.bf16.msra.mxu1 %v17040_v61  ;;  %v10402_v61 = vld [vmem:[#allocation9 + $0x7b8] sm:$0xff] }
 0x990   :  { %14701 = vmatprep.subr.bf16.mxu1 %v17049_v41  ;;  %v17128_v55 = vcombine.low %v10398_v22, %v10402_v61 }
 0x991   :  { %17622 = vmatpush3.bf16.msra.mxu0 %v19860_v56 }
 0x992   :  { %17623 = vmatprep.subr.bf16.mxu0 %v19861_v4  ;;  %v10434_v4 = vld [vmem:[#allocation9 + $0x8b8] sm:$0xff] }
 0x993   :  { %14702 = vmatpush1.bf16.msra.mxu1 %v17048_v49  ;;  %v17129_v49 = vcombine.high %v10398_v22, %v10402_v61  ;;  %v10494_v61 = vld [vmem:[#allocation9 + $0xa98] sm:$0xff] }
 0x994   :  { %14703 = vmatprep.subr.bf16.mxu1 %v17057_v44  ;;  %v10410_v44 = vld [vmem:[#allocation9 + $0x7f8] sm:$0xff] }
 0x995   :  { %17624 = vmatpush3.bf16.msra.mxu0 %v19862_v20  ;;  %v17137_v53 = vcombine.high %v10406_v58, %v10410_v44  ;;  %v10438_v20 = vld [vmem:[#allocation9 + $0x8d8] sm:$0xff] }
 0x996   :  { %17631 = vmatprep.subr.bf16.mxu0 %v19863_v11 }
 0x997   :  { %14704 = vmatpush1.bf16.msra.mxu1 %v17056_v62  ;;  %v10418_v62 = vld [vmem:[#allocation9 + $0x838] sm:$0xff] }
 0x998   :  { %14705 = vmatprep.subr.bf16.mxu1 %v17065_v1  ;;  %v17136_v1 = vcombine.low %v10406_v58, %v10410_v44  ;;  %v17145_v5 = vcombine.high %v10414_v60, %v10418_v62  ;;  %v17144_v56 = vcombine.low %v10414_v60, %v10418_v62 }
 0x99b   :  { %14706 = vmatpush1.bf16.msra.mxu1 %v17064_v46  ;;  %v17153_v46 = vcombine.high %v10422_v18, %v10426_v35 }
 0x99c   :  { %14707 = vmatprep.subr.bf16.mxu1 %v17073_v2  ;;  %v10430_v2 = vld [vmem:[#allocation9 + $0x898] sm:$0xff] }
 0x99d   :  { %v17161_v6 = vcombine.high %v10430_v2, %v10434_v4 }
 0x99f   :  { %14708 = vmatpush1.bf16.msra.mxu1 %v17072_v34  ;;  %v10442_v34 = vld [vmem:[#allocation9 + $0x8f8] sm:$0xff] }
 0x9a0   :  { %14709 = vmatprep.subr.bf16.mxu1 %v17081_v14  ;;  %v17160_v14 = vcombine.low %v10430_v2, %v10434_v4  ;;  %v17169_v11 = vcombine.high %v10438_v20, %v10442_v34 }
 0x9a3   :  { %14710 = vmatpush1.bf16.msra.mxu1 %v17080_v29  ;;  %v17168_v29 = vcombine.low %v10438_v20, %v10442_v34 }
 0x9a4   :  { %14711 = vmatprep.subr.bf16.mxu1 %v17089_v30  ;;  %v17177_v30 = vcombine.high %v10446_v52, %v10450_v16 }
 0x9a7   :  { %14712 = vmatpush1.bf16.msra.mxu1 %v17088_v23  ;;  %v10462_v23 = vld [vmem:[#allocation9 + $0x998] sm:$0xff] }
 0x9a8   :  { %14713 = vmatprep.subr.bf16.mxu1 %v17097_v24  ;;  %v10466_v24 = vld [vmem:[#allocation9 + $0x9b8] sm:$0xff] }
 0x9a9   :  { %v17193_v26 = vcombine.high %v10462_v23, %v10466_v24  ;;  %v17192_v36 = vcombine.low %v10462_v23, %v10466_v24 }
 0x9ab   :  { %14714 = vmatpush1.bf16.msra.mxu1 %v17096_v27  ;;  %v10470_v27 = vld [vmem:[#allocation9 + $0x9d8] sm:$0xff] }
 0x9ac   :  { %14715 = vmatprep.subr.bf16.mxu1 %v17105_v32  ;;  %v10474_v32 = vld [vmem:[#allocation9 + $0x9f8] sm:$0xff] }
 0x9ad   :  { %v17201_v38 = vcombine.high %v10470_v27, %v10474_v32  ;;  %v17200_v13 = vcombine.low %v10470_v27, %v10474_v32 }
 0x9af   :  { %14716 = vmatpush1.bf16.msra.mxu1 %v17104_v39  ;;  %v10478_v39 = vld [vmem:[#allocation9 + $0xa18] sm:$0xff] }
 0x9b0   :  { %14717 = vmatprep.subr.bf16.mxu1 %v17113_v57  ;;  %v10482_v57 = vld [vmem:[#allocation9 + $0xa38] sm:$0xff] }
 0x9b1   :  { %v17603_v59 = vpop.f32.mrb[32].mxu0  ;;  %v17209_v21 = vcombine.high %v10478_v39, %v10482_v57 }
 0x9b2   :  { %v17604_v7 = vpop.f32.mrb[33].mxu0 }
 0x9b3   :  { %14718 = vmatpush1.bf16.msra.mxu1 %v17112_v33  ;;  %v20676_v41 = vadd.f32 %v17604_v7, %v17603_v59  ;;  %v17606_v45 = vpop.f32.mrb[34].mxu0  ;;  %v10486_v33 = vld [vmem:[#allocation9 + $0xa58] sm:$0xff]  ;;  %v17208_v59 = vcombine.low %v10478_v39, %v10482_v57 }
 0x9b4   :  { %v17607_v9 = vpop.f32.mrb[35].mxu0  ;;  %14719 = vmatprep.subr.bf16.mxu1 %v17121_v25  ;;  %v10490_v25 = vld [vmem:[#allocation9 + $0xa78] sm:$0xff] }
 0x9b5   :  { %v17217_v22 = vcombine.high %v10486_v33, %v10490_v25  ;;  %v10498_v7 = vld [vmem:[#allocation9 + $0xab8] sm:$0xff]  ;;  %v17216_v45 = vcombine.low %v10486_v33, %v10490_v25 }
 0x9b6   :  { %v10502_v9 = vld [vmem:[#allocation9 + $0xad8] sm:$0xff]  ;;  %v17224_v58 = vcombine.low %v10494_v61, %v10498_v7 }
 0x9b7   :  { %14720 = vmatpush1.bf16.msra.mxu1 %v17120_v50  ;;  %v17225_v50 = vcombine.high %v10494_v61, %v10498_v7  ;;  %v10590_v33 = vld [vmem:[#allocation9 + $0xd98] sm:$0xff] }
 0x9b8   :  { %14721 = vmatprep.subr.bf16.mxu1 %v17129_v49  ;;  %v10506_v49 = vld [vmem:[#allocation9 + $0xaf8] sm:$0xff] }
 0x9b9   :  { %v17233_v44 = vcombine.high %v10502_v9, %v10506_v49  ;;  %v17232_v60 = vcombine.low %v10502_v9, %v10506_v49  ;;  %v10594_v25 = vld [vmem:[#allocation9 + $0xdb8] sm:$0xff] }
 0x9ba   :  { %v10598_v49 = vld [vmem:[#allocation9 + $0xdd8] sm:$0xff] }
 0x9bb   :  { %14722 = vmatpush1.bf16.msra.mxu1 %v17128_v55  ;;  %v10510_v55 = vld [vmem:[#allocation9 + $0xb18] sm:$0xff] }
 0x9bc   :  { %14723 = vmatprep.subr.bf16.mxu1 %v17137_v53  ;;  %v10514_v53 = vld [vmem:[#allocation9 + $0xb38] sm:$0xff] }
 0x9bd   :  { %v17241_v62 = vcombine.high %v10510_v55, %v10514_v53  ;;  %v17240_v18 = vcombine.low %v10510_v55, %v10514_v53 }
 0x9bf   :  { %14724 = vmatpush1.bf16.msra.mxu1 %v17136_v1  ;;  %v10518_v1 = vld [vmem:[#allocation9 + $0xb58] sm:$0xff] }
 0x9c0   :  { %14734 = vmatprep.subr.bf16.mxu1 %v17145_v5  ;;  %v10522_v5 = vld [vmem:[#allocation9 + $0xb78] sm:$0xff] }
 0x9c1   :  { %v17249_v35 = vcombine.high %v10518_v1, %v10522_v5  ;;  %v17248_v2 = vcombine.low %v10518_v1, %v10522_v5 }
 0x9c2   :  { %14726 = vmatmul.mubr.bf16.vlgmr.msra.gmra.mrb[32].mxu1 %v20480_v48  ;;  %v10458_v48 = vld [vmem:[#allocation9 + $0x978] sm:$0xff] }
 0x9c3   :  { %14735 = vmatpush1.bf16.msra.mxu1 %v17144_v56  ;;  %14766 = vmatprep.mubr.bf16.mxu1 %v20503_v28  ;;  %v17185_v28 = vcombine.high %v10454_v17, %v10458_v48  ;;  %v17184_v3 = vcombine.low %v10454_v17, %v10458_v48  ;;  %v10526_v56 = vld [vmem:[#allocation9 + $0xb98] sm:$0xff] }
 0x9c4   :  { %14736 = vmatprep.subr.bf16.mxu1 %v17153_v46  ;;  %v10530_v46 = vld [vmem:[#allocation9 + $0xbb8] sm:$0xff] }
 0x9c5   :  { %v17257_v4 = vcombine.high %v10526_v56, %v10530_v46  ;;  %v17256_v20 = vcombine.low %v10526_v56, %v10530_v46  ;;  %v10610_v56 = vld [vmem:[#allocation9 + $0xe38] sm:$0xff] }
 0x9c7   :  { %14737 = vmatpush1.bf16.msra.mxu1 %v17152_v8  ;;  %v10534_v8 = vld [vmem:[#allocation9 + $0xbd8] sm:$0xff] }
 0x9c8   :  { %14738 = vmatprep.subr.bf16.mxu1 %v17161_v6  ;;  %v10538_v6 = vld [vmem:[#allocation9 + $0xbf8] sm:$0xff] }
 0x9c9   :  { %v17265_v34 = vcombine.high %v10534_v8, %v10538_v6  ;;  %v17264_v52 = vcombine.low %v10534_v8, %v10538_v6  ;;  %v19865_v8 = vld [vmem:[%s20805_s7 + $0x148] sm:$0xff]  }
 0x9cb   :  { %14739 = vmatpush1.bf16.msra.mxu1 %v17160_v14  ;;  %v10542_v14 = vld [vmem:[#allocation9 + $0xc18] sm:$0xff] }
 0x9cc   :  { %14740 = vmatprep.subr.bf16.mxu1 %v17169_v11  ;;  %v10546_v11 = vld [vmem:[#allocation9 + $0xc38] sm:$0xff] }
 0x9cd   :  { %v17273_v16 = vcombine.high %v10542_v14, %v10546_v11  ;;  %v17272_v17 = vcombine.low %v10542_v14, %v10546_v11 }
 0x9cf   :  { %14741 = vmatpush1.bf16.msra.mxu1 %v17168_v29  ;;  %v10550_v29 = vld [vmem:[#allocation9 + $0xc58] sm:$0xff] }
 0x9d0   :  { %14742 = vmatprep.subr.bf16.mxu1 %v17177_v30  ;;  %v10554_v30 = vld [vmem:[#allocation9 + $0xc78] sm:$0xff] }
 0x9d1   :  { %v17281_v48 = vcombine.high %v10550_v29, %v10554_v30  ;;  %v17280_v23 = vcombine.low %v10550_v29, %v10554_v30  ;;  %v10622_v30 = vld [vmem:[#allocation9 + $0xe98] sm:$0xff] }
 0x9d3   :  { %14743 = vmatpush1.bf16.msra.mxu1 %v17176_v40  ;;  %v10558_v40 = vld [vmem:[#allocation9 + $0xc98] sm:$0xff] }
 0x9d4   :  { %14744 = vmatprep.subr.bf16.mxu1 %v17185_v28  ;;  %v10562_v28 = vld [vmem:[#allocation9 + $0xcb8] sm:$0xff] }
 0x9d5   :  { %v17289_v24 = vcombine.high %v10558_v40, %v10562_v28  ;;  %v17288_v27 = vcombine.low %v10558_v40, %v10562_v28  ;;  %v19868_v40 = vld [vmem:[%s20805_s7 + $0x110] sm:$0xff]   ;;  %v19869_v28 = vld [vmem:[%s20805_s7 + $0x158] sm:$0xff]  }
 0x9d7   :  { %14745 = vmatpush1.bf16.msra.mxu1 %v17184_v3  ;;  %v10566_v3 = vld [vmem:[#allocation9 + $0xcd8] sm:$0xff] }
 0x9d8   :  { %14746 = vmatprep.subr.bf16.mxu1 %v17193_v26  ;;  %v10570_v26 = vld [vmem:[#allocation9 + $0xcf8] sm:$0xff] }
 0x9d9   :  { %v17297_v32 = vcombine.high %v10566_v3, %v10570_v26  ;;  %v17296_v39 = vcombine.low %v10566_v3, %v10570_v26  ;;  %v10634_v3 = vld [vmem:[#allocation9 + $0xef8] sm:$0xff] }
 0x9db   :  { %14747 = vmatpush1.bf16.msra.mxu1 %v17192_v36  ;;  %v10574_v36 = vld [vmem:[#allocation9 + $0xd18] sm:$0xff] }
 0x9dc   :  { %14748 = vmatprep.subr.bf16.mxu1 %v17201_v38  ;;  %v10578_v38 = vld [vmem:[#allocation9 + $0xd38] sm:$0xff] }
 0x9dd   :  { %v17305_v57 = vcombine.high %v10574_v36, %v10578_v38 }
 0x9df   :  { %14749 = vmatpush1.bf16.msra.mxu1 %v17200_v13  ;;  %v10582_v13 = vld [vmem:[#allocation9 + $0xd58] sm:$0xff] }
 0x9e0   :  { %14750 = vmatprep.subr.bf16.mxu1 %v17209_v21  ;;  %v17304_v21 = vcombine.low %v10574_v36, %v10578_v38  ;;  %v10638_v38 = vld [vmem:[#allocation9 + $0xf18] sm:$0xff] }
 0x9e3   :  { %14751 = vmatpush1.bf16.msra.mxu1 %v17208_v59  ;;  %v20682_v59 = vld [vmem:[#allocation10] sm:$0xff] }
 0x9e4   :  { %14752 = vmatprep.subr.bf16.mxu1 %v17217_v22  ;;  %v10820_v22 = vrot.slane %v20682_v59, %v20295_v42  ;;  %v10808_v61 = vrot.slane %v20682_v59, %v20292_v37  ;;  %v10812_v7 = vrot.slane %v20682_v59, %v20257_v0  ;;  %v17320_v42 = vcombine.low %v10590_v33, %v10594_v25 }
 0x9e7   :  { %14753 = vmatpush1.bf16.msra.mxu1 %v17216_v45 }
 0x9e8   :  { %14754 = vmatprep.subr.bf16.mxu1 %v17225_v50  ;;  %v17321_v50 = vcombine.high %v10590_v33, %v10594_v25  ;;  %v10650_v33 = vld [vmem:[#allocation9 + $0xf78] sm:$0xff] }
 0x9eb   :  { %14755 = vmatpush1.bf16.msra.mxu1 %v17224_v58  ;;  %v10602_v58 = vld [vmem:[#allocation9 + $0xdf8] sm:$0xff] }
 0x9ec   :  { %14756 = vmatprep.subr.bf16.mxu1 %v17233_v44  ;;  %v17690_v44 = vadd.f32 %v20619_v43, %v10820_v22  ;;  %v17329_v5 = vcombine.high %v10598_v49, %v10602_v58  ;;  %v19864_v43 = vld [vmem:[%s20805_s7 + $0x100] sm:$0xff]   ;;  %v19874_v22 = vld [vmem:[%s20805_s7 + $0x128] sm:$0xff]  }
 0x9ee   :  { %v14862_v0 = vmax.f32 %v17690_v44, 0.0 }
 0x9ef   :  { %14757 = vmatpush1.bf16.msra.mxu1 %v17232_v60 }
 0x9f0   :  { %14758 = vmatprep.subr.bf16.mxu1 %v17241_v62  ;;  %v14870_v14 = vpack.c.bf16 %v14862_v0, %v14862_v0 }
 0x9f3   :  { %14759 = vmatpush1.bf16.msra.mxu1 %v17240_v18 }
 0x9f4   :  { %14760 = vmatprep.subr.bf16.mxu1 %v17249_v35  ;;  %v10606_v35 = vld [vmem:[#allocation9 + $0xe18] sm:$0xff] }
 0x9f5   :  { %v17337_v6 = vcombine.high %v10606_v35, %v10610_v56  ;;  %v17336_v11 = vcombine.low %v10606_v35, %v10610_v56  ;;  %v10678_v56 = vld [vmem:[#allocation9 + $0x1058] sm:$0xff] }
 0x9f7   :  { %14761 = vmatpush1.bf16.msra.mxu1 %v17248_v2  ;;  %v17328_v2 = vcombine.low %v10598_v49, %v10602_v58  ;;  %v19876_v58 = vld [vmem:[%s20805_s7 + $0x130] sm:$0xff]  }
 0x9f8   :  { %14762 = vmatprep.subr.bf16.mxu1 %v17257_v4 }
 0x9fb   :  { %14763 = vmatpush1.bf16.msra.mxu1 %v17256_v20  ;;  %v10614_v20 = vld [vmem:[#allocation9 + $0xe58] sm:$0xff] }
 0x9fc   :  { %14764 = vmatprep.subr.bf16.mxu1 %v17265_v34  ;;  %v10618_v34 = vld [vmem:[#allocation9 + $0xe78] sm:$0xff] }
 0x9fd   :  { %v17345_v29 = vcombine.high %v10614_v20, %v10618_v34 }
 0x9ff   :  { %14765 = vmatpush1.bf16.msra.mxu1 %v17264_v52  ;;  %v19866_v52 = vld [vmem:[%s20805_s7 + $0x108] sm:$0xff]  }
 0xa00   :  { %14775 = vmatprep.subr.bf16.mxu1 %v17273_v16  ;;  %v19867_v16 = vld [vmem:[%s20805_s7 + $0x150] sm:$0xff]  }
 0xa02   :  { %14767 = vmatmul.mubr.bf16.vlgmr.msra.gmra.mrb[32].mxu1 %v20507_v63  ;;  %v10586_v63 = vld [vmem:[#allocation9 + $0xd78] sm:$0xff] }
 0xa03   :  { %14776 = vmatpush1.bf16.msra.mxu1 %v17272_v17  ;;  %14807 = vmatprep.mubr.bf16.mxu1 %v20510_v10  ;;  %v17313_v10 = vcombine.high %v10582_v13, %v10586_v63  ;;  %v17312_v45 = vcombine.low %v10582_v13, %v10586_v63  ;;  %v10626_v17 = vld [vmem:[#allocation9 + $0xeb8] sm:$0xff]  ;;  %v19872_v13 = vld [vmem:[%s20805_s7 + $0x120] sm:$0xff]   ;;  %v19873_v63 = vld [vmem:[%s20805_s7 + $0x168] sm:$0xff]  }
 0xa04   :  { %14777 = vmatprep.subr.bf16.mxu1 %v17281_v48  ;;  %v17344_v48 = vcombine.low %v10614_v20, %v10618_v34  ;;  %v17352_v26 = vcombine.low %v10622_v30, %v10626_v17  ;;  %v10694_v34 = vld [vmem:[#allocation9 + $0x10d8] sm:$0xff] }
 0xa07   :  { %14778 = vmatpush1.bf16.msra.mxu1 %v17280_v23  ;;  %v17353_v23 = vcombine.high %v10622_v30, %v10626_v17 }
 0xa08   :  { %14779 = vmatprep.subr.bf16.mxu1 %v17289_v24  ;;  %v10630_v24 = vld [vmem:[#allocation9 + $0xed8] sm:$0xff] }
 0xa09   :  { %v17361_v36 = vcombine.high %v10630_v24, %v10634_v3 }
 0xa0b   :  { %14780 = vmatpush1.bf16.msra.mxu1 %v17288_v27  ;;  %v19870_v27 = vld [vmem:[%s20805_s7 + $0x118] sm:$0xff]  }
 0xa0c   :  { %14781 = vmatprep.subr.bf16.mxu1 %v17297_v32  ;;  %v19871_v32 = vld [vmem:[%s20805_s7 + $0x160] sm:$0xff]  }
 0xa0f   :  { %14782 = vmatpush1.bf16.msra.mxu1 %v17296_v39  ;;  %v10642_v39 = vld [vmem:[#allocation9 + $0xf38] sm:$0xff] }
 0xa10   :  { %14783 = vmatprep.subr.bf16.mxu1 %v17305_v57  ;;  %v17360_v57 = vcombine.low %v10630_v24, %v10634_v3  ;;  %v17368_v25 = vcombine.low %v10638_v38, %v10642_v39 }
 0xa13   :  { %14784 = vmatpush1.bf16.msra.mxu1 %v17304_v21  ;;  %v17369_v21 = vcombine.high %v10638_v38, %v10642_v39  ;;  %v10734_v38 = vld [vmem:[#allocation9 + $0x1218] sm:$0xff] }
 0xa14   :  { %14785 = vmatprep.subr.bf16.mxu1 %v17313_v10  ;;  %v10646_v10 = vld [vmem:[#allocation9 + $0xf58] sm:$0xff] }
 0xa15   :  { %v14440_v9 = vpop.f32.mrb[28].mxu1  ;;  %v17376_v49 = vcombine.low %v10646_v10, %v10650_v33  ;;  %v10738_v39 = vld [vmem:[#allocation9 + $0x1238] sm:$0xff] }
 0xa16   :  { %v17687_v55 = vadd.f32 %v14440_v9, %v10808_v61  ;;  %v14442_v53 = vpop.f32.mrb[29].mxu1  ;;  %v10816_v61 = vrot.slane %v20682_v59, %v20316_v12  ;;  %v10658_v9 = vld [vmem:[#allocation9 + $0xfb8] sm:$0xff] }
 0xa17   :  { %v17688_v60 = vadd.f32 %v14442_v53, %v10812_v7  ;;  %v14444_v62 = vpop.f32.mrb[30].mxu1  ;;  %14786 = vmatpush1.bf16.msra.mxu1 %v17312_v45  ;;  %v19875_v7 = vld [vmem:[%s20805_s7 + $0x170] sm:$0xff]   ;;  %v17377_v45 = vcombine.high %v10646_v10, %v10650_v33  ;;  %v19877_v12 = vld [vmem:[%s20805_s7 + $0x178] sm:$0xff]   ;;  %v17464_v10 = vcombine.low %v10734_v38, %v10738_v39 }
 0xa18   :  { %v14859_v1 = vmax.f32 %v17687_v55, 0.0  ;;  %v14445_v37 = vpop.f32.mrb[31].mxu1  ;;  %14787 = vmatprep.subr.bf16.mxu1 %v17321_v50  ;;  %v10654_v50 = vld [vmem:[#allocation9 + $0xf98] sm:$0xff]  ;;  %v17689_v44 = vadd.f32 %v20617_v15, %v10816_v61 }
 0xa19   :  { %v14860_v18 = vmax.f32 %v17688_v60, 0.0  ;;  %v17385_v55 = vcombine.high %v10654_v50, %v10658_v9  ;;  %v10662_v53 = vld [vmem:[#allocation9 + $0xfd8] sm:$0xff]  ;;  %v17384_v62 = vcombine.low %v10654_v50, %v10658_v9 }
 0xa1a   :  { %v14867_v4 = vpack.c.bf16 %v14859_v1, %v14859_v1  ;;  %v10666_v60 = vld [vmem:[#allocation9 + $0xff8] sm:$0xff]  ;;  %v14861_v1 = vmax.f32 %v17689_v44, 0.0 }
 0xa1b   :  { %v14868_v46 = vpack.c.bf16 %v14860_v18, %v14860_v18  ;;  %14788 = vmatpush1.bf16.msra.mxu1 %v17320_v42  ;;  %v19878_v42 = vld [vmem:[%s20805_s7 + $0x138] sm:$0xff]   ;;  %v17393_v15 = vcombine.high %v10662_v53, %v10666_v60  ;;  %v17392_v18 = vcombine.low %v10662_v53, %v10666_v60 }
 0xa1c   :  { %14789 = vmatprep.subr.bf16.mxu1 %v17329_v5  ;;  %v10670_v37 = vld [vmem:[#allocation9 + $0x1018] sm:$0xff]  ;;  %v14869_v0 = vpack.c.bf16 %v14861_v1, %v14861_v1 }
 0xa1d   :  { %15464 = vmatprep.mubr.bf16.mxu0 %v14868_v46  ;;  %v10674_v5 = vld [vmem:[#allocation9 + $0x1038] sm:$0xff] }
 0xa1e   :  { %15465 = vmatmul.mubr.bf16.vlgmr.msra.gmra.mrb[36].mxu0 %v14867_v4  ;;  %v17401_v35 = vcombine.high %v10670_v37, %v10674_v5  ;;  %v10682_v46 = vld [vmem:[#allocation9 + $0x1078] sm:$0xff] }
 0xa1f   :  { %17632 = vmatpush3.bf16.msra.mxu0 %v19864_v43  ;;  %14790 = vmatpush1.bf16.msra.mxu1 %v17328_v2  ;;  %v17400_v2 = vcombine.low %v10670_v37, %v10674_v5  ;;  %v17409_v43 = vcombine.high %v10678_v56, %v10682_v46  ;;  %v10686_v4 = vld [vmem:[#allocation9 + $0x1098] sm:$0xff] }
 0xa20   :  { %15504 = vmatprep.mubr.bf16.mxu0 %v14870_v14  ;;  %17633 = vmatprep.subr.bf16.mxu0 %v19865_v8  ;;  %v10690_v8 = vld [vmem:[#allocation9 + $0x10b8] sm:$0xff] }
 0xa21   :  { %14791 = vmatprep.subr.bf16.mxu1 %v17337_v6  ;;  %v17408_v6 = vcombine.low %v10678_v56, %v10682_v46  ;;  %v17417_v20 = vcombine.high %v10686_v4, %v10690_v8  ;;  %v10698_v14 = vld [vmem:[#allocation9 + $0x10f8] sm:$0xff] }
 0xa22   :  { %v17424_v30 = vcombine.low %v10694_v34, %v10698_v14  ;;  %v10762_v50 = vld [vmem:[#allocation9 + $0x12f8] sm:$0xff] }
 0xa23   :  { %17634 = vmatpush3.bf16.msra.mxu0 %v19866_v52  ;;  %14792 = vmatpush1.bf16.msra.mxu1 %v17336_v11  ;;  %v17416_v11 = vcombine.low %v10686_v4, %v10690_v8  ;;  %v17425_v52 = vcombine.high %v10694_v34, %v10698_v14  ;;  %v10770_v44 = vld [vmem:[#allocation9 + $0x1338] sm:$0xff]  ;;  %v19881_v4 = vld [vmem:[%s20805_s7 + $0x1c8] sm:$0xff]   ;;  %v19887_v14 = vld [vmem:[%s20805_s7 + $0x1e0] sm:$0xff]  }
 0xa24   :  { %17635 = vmatprep.subr.bf16.mxu0 %v19867_v16  ;;  %14793 = vmatprep.subr.bf16.mxu1 %v17345_v29  ;;  %v10702_v16 = vld [vmem:[#allocation9 + $0x1118] sm:$0xff]  ;;  %v19882_v8 = vld [vmem:[%s20805_s7 + $0x188] sm:$0xff]  }
 0xa25   :  { %v10706_v29 = vld [vmem:[#allocation9 + $0x1138] sm:$0xff] }
 0xa26   :  { %v17433_v17 = vcombine.high %v10702_v16, %v10706_v29  ;;  %v10774_v53 = vld [vmem:[#allocation9 + $0x1358] sm:$0xff] }
 0xa27   :  { %17636 = vmatpush3.bf16.msra.mxu0 %v19868_v40  ;;  %14794 = vmatpush1.bf16.msra.mxu1 %v17344_v48  ;;  %v10710_v48 = vld [vmem:[#allocation9 + $0x1158] sm:$0xff]  ;;  %v17432_v40 = vcombine.low %v10702_v16, %v10706_v29  ;;  %v19890_v16 = vld [vmem:[%s20805_s7 + $0x1a8] sm:$0xff]  }
 0xa28   :  { %17637 = vmatprep.subr.bf16.mxu0 %v19869_v28  ;;  %14795 = vmatprep.subr.bf16.mxu1 %v17353_v23  ;;  %v10718_v28 = vld [vmem:[#allocation9 + $0x1198] sm:$0xff] }
 0xa29   :  { %v10722_v23 = vld [vmem:[#allocation9 + $0x11b8] sm:$0xff] }
 0xa2a   :  { %v17449_v3 = vcombine.high %v10718_v28, %v10722_v23  ;;  %v10778_v60 = vld [vmem:[#allocation9 + $0x1378] sm:$0xff] }
 0xa2b   :  { %17638 = vmatpush3.bf16.msra.mxu0 %v19870_v27  ;;  %14796 = vmatpush1.bf16.msra.mxu1 %v17352_v26  ;;  %v10726_v26 = vld [vmem:[#allocation9 + $0x11d8] sm:$0xff]  ;;  %v17504_v37 = vcombine.low %v10774_v53, %v10778_v60 }
 0xa2c   :  { %17639 = vmatprep.subr.bf16.mxu0 %v19871_v32  ;;  %14797 = vmatprep.subr.bf16.mxu1 %v17361_v36  ;;  %v10730_v27 = vld [vmem:[#allocation9 + $0x11f8] sm:$0xff]  ;;  %v17448_v32 = vcombine.low %v10718_v28, %v10722_v23 }
 0xa2d   :  { %v17457_v36 = vcombine.high %v10726_v26, %v10730_v27  ;;  %v10782_v1 = vld [vmem:[#allocation9 + $0x1398] sm:$0xff] }
 0xa2e   :  { %v19886_v34 = vld [vmem:[%s20805_s7 + $0x198] sm:$0xff]   ;;  %v19891_v29 = vld [vmem:[%s20805_s7 + $0x1f0] sm:$0xff]  }
 0xa2f   :  { %17640 = vmatpush3.bf16.msra.mxu0 %v19872_v13  ;;  %14798 = vmatpush1.bf16.msra.mxu1 %v17360_v57  ;;  %v17456_v57 = vcombine.low %v10726_v26, %v10730_v27  ;;  %v17465_v13 = vcombine.high %v10734_v38, %v10738_v39 }
 0xa30   :  { %17641 = vmatprep.subr.bf16.mxu0 %v19873_v63  ;;  %14799 = vmatprep.subr.bf16.mxu1 %v17369_v21  ;;  %v10742_v63 = vld [vmem:[#allocation9 + $0x1258] sm:$0xff] }
 0xa31   :  { %v10746_v21 = vld [vmem:[#allocation9 + $0x1278] sm:$0xff] }
 0xa32   :  { %v17473_v33 = vcombine.high %v10742_v63, %v10746_v21  ;;  %v17472_v61 = vcombine.low %v10742_v63, %v10746_v21  ;;  %v10828_v63 = vrot.slane %v20682_v59, %v20319_v19 }
 0xa33   :  { %17642 = vmatpush3.bf16.msra.mxu0 %v19874_v22  ;;  %14800 = vmatpush1.bf16.msra.mxu1 %v17368_v25  ;;  %v10750_v25 = vld [vmem:[#allocation9 + $0x1298] sm:$0xff] }
 0xa34   :  { %17643 = vmatprep.subr.bf16.mxu0 %v19875_v7  ;;  %14801 = vmatprep.subr.bf16.mxu1 %v17377_v45  ;;  %v10754_v22 = vld [vmem:[#allocation9 + $0x12b8] sm:$0xff] }
 0xa35   :  { %v17481_v7 = vcombine.high %v10750_v25, %v10754_v22  ;;  %v10758_v45 = vld [vmem:[#allocation9 + $0x12d8] sm:$0xff]  ;;  %v17480_v9 = vcombine.low %v10750_v25, %v10754_v22 }
 0xa37   :  { %17644 = vmatpush3.bf16.msra.mxu0 %v19876_v58  ;;  %14802 = vmatpush1.bf16.msra.mxu1 %v17376_v49  ;;  %v17489_v49 = vcombine.high %v10758_v45, %v10762_v50  ;;  %v10766_v58 = vld [vmem:[#allocation9 + $0x1318] sm:$0xff] }
 0xa38   :  { %17645 = vmatprep.subr.bf16.mxu0 %v19877_v12  ;;  %14803 = vmatprep.subr.bf16.mxu1 %v17385_v55  ;;  %v17488_v12 = vcombine.low %v10758_v45, %v10762_v50  ;;  %v17497_v55 = vcombine.high %v10766_v58, %v10770_v44 }
 0xa3b   :  { %17646 = vmatpush3.bf16.msra.mxu0 %v19878_v42  ;;  %14804 = vmatpush1.bf16.msra.mxu1 %v17384_v62  ;;  %v17496_v62 = vcombine.low %v10766_v58, %v10770_v44  ;;  %v17505_v42 = vcombine.high %v10774_v53, %v10778_v60 }
 0xa3c   :  { %14805 = vmatprep.subr.bf16.mxu1 %v17393_v15  ;;  %v10786_v15 = vld [vmem:[#allocation9 + $0x13b8] sm:$0xff] }
 0xa3d   :  { %v17513_v5 = vcombine.high %v10782_v1, %v10786_v15 }
 0xa3e   :  { %15505 = vmatmul.mubr.bf16.vlgmr.msra.gmra.mrb[40].mxu0 %v14869_v0  ;;  %v10794_v0 = vld [vmem:[#allocation9 + $0x13f8] sm:$0xff] }
 0xa3f   :  { %14806 = vmatpush1.bf16.msra.mxu1 %v17392_v18  ;;  %v10790_v18 = vld [vmem:[#allocation9 + $0x13d8] sm:$0xff] }
 0xa40   :  { %14816 = vmatprep.subr.bf16.mxu1 %v17401_v35  ;;  %v17512_v35 = vcombine.low %v10782_v1, %v10786_v15  ;;  %v17521_v56 = vcombine.high %v10790_v18, %v10794_v0  ;;  %v17520_v46 = vcombine.low %v10790_v18, %v10794_v0 }
 0xa42   :  { %14808 = vmatmul.mubr.bf16.vlgmr.msra.gmra.mrb[32].mxu1 %v20519_v51  ;;  %v10714_v51 = vld [vmem:[#allocation9 + $0x1178] sm:$0xff] }
 0xa43   :  { %14817 = vmatpush1.bf16.msra.mxu1 %v17400_v2  ;;  %14848 = vmatprep.mubr.bf16.mxu1 %v20546_v47  ;;  %v17441_v47 = vcombine.high %v10710_v48, %v10714_v51  ;;  %v17440_v24 = vcombine.low %v10710_v48, %v10714_v51  ;;  %v19879_v2 = vld [vmem:[%s20805_s7 + $0x1c0] sm:$0xff]   ;;  %v19894_v48 = vld [vmem:[%s20805_s7 + $0x1b8] sm:$0xff]  }
 0xa44   :  { %14818 = vmatprep.subr.bf16.mxu1 %v17409_v43  ;;  %v19880_v43 = vld [vmem:[%s20805_s7 + $0x180] sm:$0xff]   ;;  %17653 = vmatprep.subr.bf16.mxu0 %v19879_v2 }
 0xa45   :  { %17654 = vmatpush3.bf16.msra.mxu0 %v19880_v43  ;;  %v17522_v51 = vld [vmem:[#allocation12] ss:$0 sm:$0xff] }
 0xa46   :  { %17655 = vmatprep.subr.bf16.mxu0 %v19881_v4  ;;  %v15427_v28 = vadd.f32 %v20676_v41, %v17522_v51 }
 0xa47   :  { %14819 = vmatpush1.bf16.msra.mxu1 %v17408_v6  ;;  %v19884_v6 = vld [vmem:[%s20805_s7 + $0x190] sm:$0xff]  }
 0xa48   :  { %14820 = vmatprep.subr.bf16.mxu1 %v17417_v20  ;;  %v19885_v20 = vld [vmem:[%s20805_s7 + $0x1d8] sm:$0xff]  }
 0xa49   :  { %17656 = vmatpush3.bf16.msra.mxu0 %v19882_v8 }
 0xa4b   :  { %14821 = vmatpush1.bf16.msra.mxu1 %v17416_v11  ;;  %v19888_v11 = vld [vmem:[%s20805_s7 + $0x1a0] sm:$0xff]  }
 0xa4c   :  { %14822 = vmatprep.subr.bf16.mxu1 %v17425_v52  ;;  %v19889_v52 = vld [vmem:[%s20805_s7 + $0x1e8] sm:$0xff]  }
 0xa4f   :  { %14823 = vmatpush1.bf16.msra.mxu1 %v17424_v30  ;;  %v19892_v30 = vld [vmem:[%s20805_s7 + $0x1b0] sm:$0xff]  }
 0xa50   :  { %14824 = vmatprep.subr.bf16.mxu1 %v17433_v17  ;;  %v19893_v17 = vld [vmem:[%s20805_s7 + $0x1f8] sm:$0xff]  }
 0xa53   :  { %14825 = vmatpush1.bf16.msra.mxu1 %v17432_v40 }
 0xa54   :  { %14826 = vmatprep.subr.bf16.mxu1 %v17441_v47 }
 0xa57   :  { %14827 = vmatpush1.bf16.msra.mxu1 %v17440_v24 }
 0xa58   :  { %14828 = vmatprep.subr.bf16.mxu1 %v17449_v3 }
 0xa5b   :  { %14829 = vmatpush1.bf16.msra.mxu1 %v17448_v32 }
 0xa5c   :  { %14830 = vmatprep.subr.bf16.mxu1 %v17457_v36 }
 0xa5f   :  { %14831 = vmatpush1.bf16.msra.mxu1 %v17456_v57 }
 0xa60   :  { %14832 = vmatprep.subr.bf16.mxu1 %v17465_v13  ;;  %v10824_v13 = vrot.slane %v20682_v59, %v20338_v54 }
 0xa63   :  { %14833 = vmatpush1.bf16.msra.mxu1 %v17464_v10 }
 0xa64   :  { %14834 = vmatprep.subr.bf16.mxu1 %v17473_v33 }
 0xa67   :  { %14835 = vmatpush1.bf16.msra.mxu1 %v17472_v61 }
 0xa68   :  { %14836 = vmatprep.subr.bf16.mxu1 %v17481_v7 }
 0xa6b   :  { %14837 = vmatpush1.bf16.msra.mxu1 %v17480_v9 }
 0xa6c   :  { %14838 = vmatprep.subr.bf16.mxu1 %v17489_v49 }
 0xa6f   :  { %14839 = vmatpush1.bf16.msra.mxu1 %v17488_v12 }
 0xa70   :  { %14840 = vmatprep.subr.bf16.mxu1 %v17497_v55 }
 0xa73   :  { %14841 = vmatpush1.bf16.msra.mxu1 %v17496_v62 }
 0xa74   :  { %14842 = vmatprep.subr.bf16.mxu1 %v17505_v42 }
 0xa77   :  { %14843 = vmatpush1.bf16.msra.mxu1 %v17504_v37 }
 0xa78   :  { %14844 = vmatprep.subr.bf16.mxu1 %v17513_v5 }
 0xa7b   :  { %14845 = vmatpush1.bf16.msra.mxu1 %v17512_v35 }
 0xa7c   :  { %14846 = vmatprep.subr.bf16.mxu1 %v17521_v56 }
 0xa7f   :  { %14847 = vmatpush1.bf16.msra.mxu1 %v17520_v46 }
 0xa82   :  { %14849 = vmatmul.mubr.bf16.vlgmr.msra.gmra.mrb[32].mxu1 %v20548_v31  ;;  %v19883_v31 = vld [vmem:[%s20805_s7 + $0x1d0] sm:$0xff]  }
 0xa83   :  { %17657 = vmatprep.subr.bf16.mxu0 %v19883_v31 }
 0xa84   :  { %17658 = vmatpush3.bf16.msra.mxu0 %v19884_v6 }
 0xa85   :  { %17659 = vmatprep.subr.bf16.mxu0 %v19885_v20 }
 0xa88   :  { %17660 = vmatpush3.bf16.msra.mxu0 %v19886_v34 }
 0xa89   :  { %17661 = vmatprep.subr.bf16.mxu0 %v19887_v14 }
 0xa8c   :  { %17662 = vmatpush3.bf16.msra.mxu0 %v19888_v11 }
 0xa8d   :  { %17663 = vmatprep.subr.bf16.mxu0 %v19889_v52 }
 0xa90   :  { %17664 = vmatpush3.bf16.msra.mxu0 %v19890_v16 }
 0xa91   :  { %17665 = vmatprep.subr.bf16.mxu0 %v19891_v29 }
 0xa94   :  { %17666 = vmatpush3.bf16.msra.mxu0 %v19892_v30 }
 0xa95   :  { %17667 = vmatprep.subr.bf16.mxu0 %v19893_v17 }
 0xa98   :  { %17668 = vmatpush3.bf16.msra.mxu0 %v19894_v48 }
 0xaf1   :  { %v17625_v40 = vpop.f32.mrb[36].mxu0 }
 0xaf2   :  { %v17626_v47 = vpop.f32.mrb[37].mxu0 }
 0xaf3   :  { %v17627_v23 = vadd.f32 %v17626_v47, %v17625_v40  ;;  %v17628_v24 = vpop.f32.mrb[38].mxu0 }
 0xaf4   :  { %v17629_v3 = vpop.f32.mrb[39].mxu0 }
 0xaf5   :  { %v15467_v26 = vadd.f32 %v17627_v23, %v15427_v28 }
 0xb11   :  { %v17647_v27 = vpop.f32.mrb[40].mxu0 }
 0xb12   :  { %v17648_v32 = vpop.f32.mrb[41].mxu0 }
 0xb13   :  { %v17649_v36 = vadd.f32 %v17648_v32, %v17647_v27  ;;  %v17650_v38 = vpop.f32.mrb[42].mxu0 }
 0xb14   :  { %v17651_v39 = vpop.f32.mrb[43].mxu0 }
 0xb15   :  { %v15507_v57 = vadd.f32 %v17649_v36, %v15467_v26 }
 0xb55   :  { %v14850_v21 = vpop.f32.mrb[32].mxu1 }
 0xb56   :  { %v17691_v10 = vadd.f32 %v14850_v21, %v10824_v13  ;;  %v14852_v33 = vpop.f32.mrb[33].mxu1 }
 0xb57   :  { %v17692_v41 = vadd.f32 %v14852_v33, %v10828_v63  ;;  %v14854_v25 = vpop.f32.mrb[34].mxu1 }
 0xb58   :  { %v14863_v22 = vmax.f32 %v17691_v10, 0.0  ;;  %v14855_v61 = vpop.f32.mrb[35].mxu1 }
 0xb59   :  { %v14864_v7 = vmax.f32 %v17692_v41, 0.0 }
 0xb5a   :  { %v14871_v50 = vpack.c.bf16 %v14863_v22, %v14863_v22 }
 0xb5b   :  { %v14872_v45 = vpack.c.bf16 %v14864_v7, %v14864_v7 }
 0xb5d   :  { %15544 = vmatprep.mubr.bf16.mxu0 %v14872_v45 }
 0xb5e   :  { %15545 = vmatmul.mubr.bf16.vlgmr.msra.gmra.mrb[44].mxu0 %v14871_v50 }
 0xc31   :  { %v17669_v9 = vpop.f32.mrb[44].mxu0 }
 0xc32   :  { %v17670_v49 = vpop.f32.mrb[45].mxu0 }
 0xc33   :  { %v17671_v58 = vadd.f32 %v17670_v49, %v17669_v9  ;;  %v17672_v44 = vpop.f32.mrb[46].mxu0 }
 0xc34   :  { %v17673_v54 = vpop.f32.mrb[47].mxu0 }
 0xc35   :  { %v15547_v12 = vadd.f32 %v17671_v58, %v15507_v57 }
 0xc37   :  { %15553 = vst.msk [vmem:[%s20807_s9] sm:$0xff] %vm15552_vm1, %v15547_v12 }
 0xc38   :  { %15558 = vsyncpa [#allocation3], 1 }
 0xc39   :  { %15559 = vsyncpa [#allocation5], 1 }
 0xc3a   :  { %15560 = vsyncpa [#allocation8], 1 }
 0xc3b   :  { %15561 = vsyncpa [#allocation11], 1 }

</bundles_post_ra>
